<compile_context>
chip_gen: v7x
topology: tpu7x:2x2x1
jax: 0.10.0
libtpu: 0.0.40
codegen_flags: <defaults>
</compile_context>

<pallas_src>
import functools
import math

import jax
import jax.numpy as jnp
from jax import lax
from jax.experimental import pallas as pl
from jax.experimental.pallas import tpu as pltpu


# --------------------------------------------------------------------------- helpers
def _round_up(x, m):
    return ((x + m - 1) // m) * m


def _pad2(a, M, N):
    m, n = a.shape
    if m == M and n == N:
        return a
    return jnp.pad(a, ((0, M - m), (0, N - n)))


def _apply_act(y, act):
    if act is None:
        return y
    if act == "silu":
        return y * (1.0 / (1.0 + jnp.exp(-y)))
    if act == "gelu":
        # TODO(synk): PyTorch nn.GELU defaults to the exact erf form; tanh approximation used here.
        c = math.sqrt(2.0 / math.pi)
        return 0.5 * y * (1.0 + jnp.tanh(c * (y + 0.044715 * y * y * y)))
    raise ValueError(act)


# --------------------------------------------------------------------------- tiled matmul (+bias, +act)
def _matmul_kernel(act, x_ref, w_ref, b_ref, o_ref, acc_ref):
    @pl.when(pl.program_id(2) == 0)
    def _():
        acc_ref[...] = jnp.zeros_like(acc_ref)

    acc_ref[...] += jnp.dot(x_ref[...], w_ref[...], preferred_element_type=jnp.float32)

    @pl.when(pl.program_id(2) == pl.num_programs(2) - 1)
    def _():
        y = acc_ref[...] + b_ref[...]
        o_ref[...] = _apply_act(y, act).astype(o_ref.dtype)


def linear(x, w, b=None, act=None, tm=256, tn=256, tk=512):
    """x: (M, K), w: (K, N) [already transposed vs torch], b: (N,) or None.
    bf16 operands on the MXU, f32 accumulation; result sliced back to (M, N)."""
    M, K = x.shape
    N = w.shape[1]
    if b is None:
        b = jnp.zeros((N,), jnp.float32)
    tm = min(tm, _round_up(M, 8))
    tn = min(tn, _round_up(N, 128))
    tk = min(tk, _round_up(K, 128))
    Mp, Np, Kp = _round_up(M, tm), _round_up(N, tn), _round_up(K, tk)

    xp = _pad2(x.astype(jnp.float32), Mp, Kp).astype(jnp.bfloat16)
    wp = _pad2(w.astype(jnp.float32), Kp, Np).astype(jnp.bfloat16)
    bp = jnp.pad(b.astype(jnp.float32), (0, Np - N)).reshape(1, Np)

    kern = functools.partial(_matmul_kernel, act)
    out = pl.pallas_call(
        kern,
        grid=(Mp // tm, Np // tn, Kp // tk),
        in_specs=[
            pl.BlockSpec((tm, tk), lambda i, j, k: (i, k)),
            pl.BlockSpec((tk, tn), lambda i, j, k: (k, j)),
            pl.BlockSpec((1, tn), lambda i, j, k: (0, j)),
        ],
        out_specs=pl.BlockSpec((tm, tn), lambda i, j, k: (i, j)),
        out_shape=jax.ShapeDtypeStruct((Mp, Np), jnp.float32),
        scratch_shapes=[pltpu.VMEM((tm, tn), jnp.float32)],
        compiler_params=pltpu.CompilerParams(
            dimension_semantics=("parallel", "parallel", "arbitrary")),
    )(xp, wp, bp)
    return out[:M, :N]


# --------------------------------------------------------------------------- LayerNorm fused with matmul
def _ln_linear_kernel(eps, act, x_ref, g_ref, bln_ref, w_ref, b_ref, o_ref):
    x = x_ref[...]                                     # (tm, K) f32
    mu = jnp.mean(x, axis=-1, keepdims=True)
    xc = x - mu
    var = jnp.mean(xc * xc, axis=-1, keepdims=True)
    xn = (xc * lax.rsqrt(var + eps)) * g_ref[...] + bln_ref[...]
    y = jnp.dot(xn.astype(jnp.bfloat16), w_ref[...], preferred_element_type=jnp.float32)
    y = y + b_ref[...]
    o_ref[...] = _apply_act(y, act).astype(o_ref.dtype)


def ln_linear(x, g_ln, b_ln, w, b=None, act=None, eps=1e-5, tm=256, tn=256):
    """LayerNorm(x) @ w + b, with LN in f32 and the matmul in bf16 on the MXU.
    K (= normalized dim) is kept whole per block."""
    M, K = x.shape
    N = w.shape[1]
    if b is None:
        b = jnp.zeros((N,), jnp.float32)
    tm = min(tm, _round_up(M, 8))
    tn = min(tn, _round_up(N, 128))
    Mp, Np = _round_up(M, tm), _round_up(N, tn)

    xp = _pad2(x.astype(jnp.float32), Mp, K)
    wp = _pad2(w.astype(jnp.float32), K, Np).astype(jnp.bfloat16)
    bp = jnp.pad(b.astype(jnp.float32), (0, Np - N)).reshape(1, Np)

    kern = functools.partial(_ln_linear_kernel, eps, act)
    out = pl.pallas_call(
        kern,
        grid=(Mp // tm, Np // tn),
        in_specs=[
            pl.BlockSpec((tm, K), lambda i, j: (i, 0)),
            pl.BlockSpec((1, K), lambda i, j: (0, 0)),
            pl.BlockSpec((1, K), lambda i, j: (0, 0)),
            pl.BlockSpec((K, tn), lambda i, j: (0, j)),
            pl.BlockSpec((1, tn), lambda i, j: (0, j)),
        ],
        out_specs=pl.BlockSpec((tm, tn), lambda i, j: (i, j)),
        out_shape=jax.ShapeDtypeStruct((Mp, Np), jnp.float32),
        compiler_params=pltpu.CompilerParams(
            dimension_semantics=("parallel", "parallel")),
    )(xp, g_ln.reshape(1, K).astype(jnp.float32),
      b_ln.reshape(1, K).astype(jnp.float32), wp, bp)
    return out[:M, :N]


# --------------------------------------------------------------------------- depthwise 3x3 conv (+act, +residual)
def _dwconv_kernel(H, W, dil, act, residual, xp_ref, k_ref, b_ref, o_ref):
    xp = xp_ref[...]          # (Hp, Wp, ct)
    k = k_ref[...]            # (3, 3, ct)
    acc = jnp.zeros((H, W, xp.shape[-1]), jnp.float32)
    for di in range(3):
        for dj in range(3):
            patch = xp[di * dil: di * dil + H, dj * dil: dj * dil + W, :]
            acc = acc + patch * k[di, dj, :]
    acc = acc + b_ref[...]    # (1, ct) broadcasts over (H, W, ct)
    acc = _apply_act(acc, act)
    if residual:
        acc = acc + xp[dil:dil + H, dil:dil + W, :]   # center of the padded tile == original x
    o_ref[...] = acc.astype(o_ref.dtype)


def dwconv3x3(x, k, b=None, dilation=1, pad_mode="zero", act=None, residual=False):
    """x: (B, H, W, C) NHWC, k: (3, 3, C) depthwise weights, b: (C,) or None."""
    # TODO(synk): halo is materialized with jnp.pad in HBM; an in-kernel masked/clamped halo
    # would save one padded copy per conv.
    B, H, W, C = x.shape
    p = dilation
    mode = "constant" if pad_mode == "zero" else "edge"
    xp = jnp.pad(x, ((0, 0), (p, p), (p, p), (0, 0)), mode=mode)
    if b is None:
        b = jnp.zeros((C,), jnp.float32)
    Hp, Wp = H + 2 * p, W + 2 * p
    ct = 128 if C % 128 == 0 else C
    nc = C // ct
    kern = functools.partial(_dwconv_kernel, H, W, dilation, act, residual)
    return pl.pallas_call(
        kern,
        grid=(B, nc),
        in_specs=[
            pl.BlockSpec((None, Hp, Wp, ct), lambda i, c: (i, 0, 0, c)),
            pl.BlockSpec((3, 3, ct), lambda i, c: (0, 0, c)),
            pl.BlockSpec((1, ct), lambda i, c: (0, c)),
        ],
        out_specs=pl.BlockSpec((None, H, W, ct), lambda i, c: (i, 0, 0, c)),
        out_shape=jax.ShapeDtypeStruct((B, H, W, C), jnp.float32),
        compiler_params=pltpu.CompilerParams(
            dimension_semantics=("parallel", "parallel")),
    )(xp.astype(jnp.float32), k.astype(jnp.float32), b.reshape(1, C).astype(jnp.float32))


# --------------------------------------------------------------------------- fused StateFusion (3 dilated dw convs)
def _statefusion_kernel(H, W, xp_ref, k1_ref, k2_ref, k3_ref, o_ref):
    xp = xp_ref[...]          # (H+10, W+10, ct) replicate-padded by 5
    acc = jnp.zeros((H, W, xp.shape[-1]), jnp.float32)
    for kr, dil in ((k1_ref, 1), (k2_ref, 3), (k3_ref, 5)):
        k = kr[...]
        off = 5 - dil         # replicate pad-5 sliced at (5-dil) == replicate pad-dil
        for di in range(3):
            for dj in range(3):
                r0 = off + di * dil
                c0 = off + dj * dil
                acc = acc + xp[r0: r0 + H, c0: c0 + W, :] * k[di, dj, :]
    o_ref[...] = acc.astype(o_ref.dtype)


def state_fusion(hf, k1, k2, k3):
    """hf: (B, H, W, C); k*: (3,3,C) already scaled by alpha. One read of hf, one write."""
    B, H, W, C = hf.shape
    xp = jnp.pad(hf, ((0, 0), (5, 5), (5, 5), (0, 0)), mode="edge")
    Hp, Wp = H + 10, W + 10
    ct = 128 if C % 128 == 0 else C
    nc = C // ct
    kern = functools.partial(_statefusion_kernel, H, W)
    kspec = pl.BlockSpec((3, 3, ct), lambda i, c: (0, 0, c))
    return pl.pallas_call(
        kern,
        grid=(B, nc),
        in_specs=[
            pl.BlockSpec((None, Hp, Wp, ct), lambda i, c: (i, 0, 0, c)),
            kspec, kspec, kspec,
        ],
        out_specs=pl.BlockSpec((None, H, W, ct), lambda i, c: (i, 0, 0, c)),
        out_shape=jax.ShapeDtypeStruct((B, H, W, C), jnp.float32),
        compiler_params=pltpu.CompilerParams(
            dimension_semantics=("parallel", "parallel")),
    )(xp.astype(jnp.float32), k1.astype(jnp.float32),
      k2.astype(jnp.float32), k3.astype(jnp.float32))


# --------------------------------------------------------------------------- selective scan (d_state = 1)
def _scan_kernel(csize, dt_ref, bu_ref, a_ref, dbias_ref, o_ref, h_ref, buf_ref):
    # grid = (B, D-tiles, L-tiles); L axis is serial ("arbitrary"), h carried in VMEM scratch.
    @pl.when(pl.program_id(2) == 0)
    def _():
        h_ref[...] = jnp.zeros_like(h_ref)

    a = a_ref[...]            # (1, dtile)
    dbias = dbias_ref[...]    # (1, dtile)
    ltile = dt_ref.shape[0]
    nchunk = ltile // csize

    def chunk(c, h):
        off = pl.multiple_of(c * csize, csize)
        dt_c = dt_ref[pl.ds(off, csize), :]            # (csize, dtile)
        bu_c = bu_ref[pl.ds(off, csize), :]
        raw = dt_c + dbias
        dlt = jnp.maximum(raw, 0.0) + jnp.log(1.0 + jnp.exp(-jnp.abs(raw)))  # softplus
        decay = jnp.exp(dlt * a)                       # vectorized over the chunk
        inp = dlt * bu_c
        for i in range(csize):                         # only the recurrence is serial
            h = decay[i:i + 1, :] * h + inp[i:i + 1, :]
            buf_ref[pl.ds(i, 1), :] = h
        o_ref[pl.ds(off, csize), :] = buf_ref[...]     # dense chunk store
        return h

    h_ref[...] = lax.fori_loop(0, nchunk, chunk, h_ref[...])


def selective_scan(bu_bld, dt_bld, A_d, dbias_d, csize=8):
    """bu = u * B_l, dt: (B, L, D); A, dbias: (D,). Returns h: (B, L, D)."""
    Bn, L, D = bu_bld.shape
    Lp0 = _round_up(L, csize)
    ltile = min(512, Lp0)
    Lp = _round_up(L, ltile)
    dtile = 128 if D % 128 == 0 else D
    nd = D // dtile
    nl = Lp // ltile

    bu = jnp.pad(bu_bld, ((0, 0), (0, Lp - L), (0, 0))).astype(jnp.float32)
    dt = jnp.pad(dt_bld, ((0, 0), (0, Lp - L), (0, 0))).astype(jnp.float32)

    kern = functools.partial(_scan_kernel, csize)
    out = pl.pallas_call(
        kern,
        grid=(Bn, nd, nl),
        in_specs=[
            pl.BlockSpec((None, ltile, dtile), lambda b, dj, lj: (b, lj, dj)),
            pl.BlockSpec((None, ltile, dtile), lambda b, dj, lj: (b, lj, dj)),
            pl.BlockSpec((1, dtile), lambda b, dj, lj: (0, dj)),
            pl.BlockSpec((1, dtile), lambda b, dj, lj: (0, dj)),
        ],
        out_specs=pl.BlockSpec((None, ltile, dtile), lambda b, dj, lj: (b, lj, dj)),
        out_shape=jax.ShapeDtypeStruct((Bn, Lp, D), jnp.float32),
        scratch_shapes=[pltpu.VMEM((1, dtile), jnp.float32),
                        pltpu.VMEM((csize, dtile), jnp.float32)],
        compiler_params=pltpu.CompilerParams(
            dimension_semantics=("parallel", "parallel", "arbitrary")),
    )(dt, bu, A_d.reshape(1, D).astype(jnp.float32),
      dbias_d.reshape(1, D).astype(jnp.float32))
    return out[:, :L, :]


# --------------------------------------------------------------------------- fused SSM tail: h*C + u*D -> LN -> *silu(z)
def _tail_kernel(eps, h_ref, cs_ref, u_ref, d_ref, g_ref, b_ref, z_ref, o_ref):
    y = h_ref[...] * cs_ref[...] + u_ref[...] * d_ref[...]
    mu = jnp.mean(y, axis=-1, keepdims=True)
    yc = y - mu
    var = jnp.mean(yc * yc, axis=-1, keepdims=True)
    y = yc * lax.rsqrt(var + eps)
    y = y * g_ref[...] + b_ref[...]
    z = z_ref[...]
    o_ref[...] = (y * (z * (1.0 / (1.0 + jnp.exp(-z))))).astype(o_ref.dtype)


def fused_tail(h, cs, u, d, g, b, z, eps=1e-5, tm=256):
    M, Di = h.shape
    tm = min(tm, _round_up(M, 8))
    Mp = _round_up(M, tm)
    hp, up, zp = _pad2(h, Mp, Di), _pad2(u, Mp, Di), _pad2(z, Mp, Di)
    csp = _pad2(cs, Mp, 1)
    kern = functools.partial(_tail_kernel, eps)
    row = pl.BlockSpec((tm, Di), lambda i: (i, 0))
    vec = pl.BlockSpec((1, Di), lambda i: (0, 0))
    out = pl.pallas_call(
        kern,
        grid=(Mp // tm,),
        in_specs=[row, pl.BlockSpec((tm, 1), lambda i: (i, 0)), row, vec, vec, vec, row],
        out_specs=row,
        out_shape=jax.ShapeDtypeStruct((Mp, Di), jnp.float32),
        compiler_params=pltpu.CompilerParams(dimension_semantics=("parallel",)),
    )(hp, csp, up, d.reshape(1, Di).astype(jnp.float32),
      g.reshape(1, Di).astype(jnp.float32), b.reshape(1, Di).astype(jnp.float32), zp)
    return out[:M]


# --------------------------------------------------------------------------- StructureAwareSSM
def ssm_forward(p, x_raw):
    """x_raw: (B, Hs, Ws, C) channel-last, pre-LN (LN1 fused into in_proj). Returns same shape."""
    B, Hs, Ws, C = x_raw.shape
    Di = p["in_proj_w"].shape[1] // 2
    R = p["dt_proj_w"].shape[0]
    L = Hs * Ws

    # LN1 + in_proj fused (bias=False)
    xz = ln_linear(x_raw.reshape(-1, C), p["ln1_g"], p["ln1_b"], p["in_proj_w"], None)
    xpart, z = xz[:, :Di], xz[:, Di:]

    xc = xpart.reshape(B, Hs, Ws, Di)
    xc = dwconv3x3(xc, p["conv2d_w"], p["conv2d_b"], dilation=1, pad_mode="zero", act="silu")
    xs2 = xc.reshape(B * L, Di)                       # row order matches torch .view(B, C, L)

    # x_proj with dt_proj folded in: columns = [dts (Di), Bs (1), Cs (1)]
    w_fused = jnp.concatenate(
        [p["x_proj_w"][:, :R] @ p["dt_proj_w"], p["x_proj_w"][:, R:]], axis=1)
    x_dbl = linear(xs2, w_fused)                      # (B*L, Di + 2)
    dts = x_dbl[:, :Di]
    Bs = x_dbl[:, Di:Di + 1]
    Cs = x_dbl[:, Di + 1:Di + 2]

    # Fold the scalar-per-step input gate B_l into u so the scan is fully lane-dense.
    bu = xs2 * Bs

    h = selective_scan(bu.reshape(B, L, Di), dts.reshape(B, L, Di), p["A"], p["dt_proj_b"])
    hf = h.reshape(B, Hs, Ws, Di)

    # StateFusion (training path): 3 replicate-padded dilated dw convs, fused into one kernel.
    a = p["sf_alpha"]
    hfuse = state_fusion(hf, p["sf_k1"] * a[0], p["sf_k2"] * a[1], p["sf_k3"] * a[2])
    hfuse = hfuse.reshape(B * L, Di)

    # fused: (h*C + u*D) -> out_norm -> * silu(z)
    y = fused_tail(hfuse, Cs, xs2, p["Ds"], p["out_norm_g"], p["out_norm_b"], z, eps=1e-5)
    y = linear(y, p["out_proj_w"])                    # bias=False
    return y.reshape(B, Hs, Ws, C)


# --------------------------------------------------------------------------- SpatialMambaBlock
def block_forward(p, x):
    B, H, W, C = x.shape
    # x = x + cpe1(x)   (residual fused into the dwconv kernel)
    x = dwconv3x3(x, p["cpe1_w"], p["cpe1_b"], dilation=1, pad_mode="zero", residual=True)
    # x = x + SSM(LN1(x.permute)).permute back   (drop_path = identity; LN1 fused in ssm_forward)
    t = jnp.transpose(x, (0, 2, 1, 3))
    a = ssm_forward(p, t)
    x = x + jnp.transpose(a, (0, 2, 1, 3))
    # x = x + cpe2(x)
    x = dwconv3x3(x, p["cpe2_w"], p["cpe2_b"], dilation=1, pad_mode="zero", residual=True)
    # x = x + MLP(LN2(x.permute)).permute back   (LN2 fused with fc1)
    t = jnp.transpose(x, (0, 2, 1, 3)).reshape(-1, C)
    m = ln_linear(t, p["ln2_g"], p["ln2_b"], p["fc1_w"], p["fc1_b"], act="gelu")
    m = linear(m, p["fc2_w"], p["fc2_b"])
    x = x + jnp.transpose(m.reshape(B, W, H, C), (0, 2, 1, 3))
    return x


def spatial_mamba_layer_forward(params_list, x):
    for p in params_list:
        x = block_forward(p, x)
    return x  # downsample=None


# --------------------------------------------------------------------------- parameter init
def init_block_params(key, C, d_state=1, expand=2, mlp_ratio=4.0,
                      dt_min=0.001, dt_max=0.1, dt_init_floor=1e-4):
    assert d_state == 1, "reference forward requires d_state == 1 (rearrange 'b d 1 (h w)')"
    Di = int(expand * C)
    R = math.ceil(C / 16)
    Hh = int(C * mlp_ratio)
    K = R + 2 * d_state
    ks = jax.random.split(key, 16)

    def unif(k, shape, bound):
        return jax.random.uniform(k, shape, jnp.float32, -bound, bound)

    p = {}
    p["cpe1_w"] = unif(ks[0], (3, 3, C), 1.0 / 3.0)
    p["cpe1_b"] = unif(ks[1], (C,), 1.0 / 3.0)
    p["ln1_g"], p["ln1_b"] = jnp.ones((C,)), jnp.zeros((C,))
    p["in_proj_w"] = unif(ks[2], (C, 2 * Di), 1.0 / math.sqrt(C))
    p["conv2d_w"] = unif(ks[3], (3, 3, Di), 1.0 / 3.0)
    p["conv2d_b"] = unif(ks[4], (Di,), 1.0 / 3.0)
    p["x_proj_w"] = unif(ks[5], (Di, K), 1.0 / math.sqrt(Di))
    p["dt_proj_w"] = unif(ks[6], (R, Di), R ** -0.5)
    dt = jnp.exp(jax.random.uniform(ks[7], (Di,)) * (math.log(dt_max) - math.log(dt_min))
                 + math.log(dt_min))
    dt = jnp.maximum(dt, dt_init_floor)
    p["dt_proj_b"] = dt + jnp.log(-jnp.expm1(-dt))
    A_log = jnp.log(jnp.tile(jnp.arange(1, d_state + 1, dtype=jnp.float32), (Di, 1)))  # (Di, 1)
    p["A"] = (-jnp.exp(A_log))[:, 0]
    p["Ds"] = jnp.ones((Di,))
    p["sf_k1"] = jnp.ones((3, 3, Di))
    p["sf_k2"] = jnp.ones((3, 3, Di))
    p["sf_k3"] = jnp.ones((3, 3, Di))
    p["sf_alpha"] = jnp.ones((3,))
    p["out_norm_g"], p["out_norm_b"] = jnp.ones((Di,)), jnp.zeros((Di,))
    p["out_proj_w"] = unif(ks[8], (Di, C), 1.0 / math.sqrt(Di))
    p["cpe2_w"] = unif(ks[9], (3, 3, C), 1.0 / 3.0)
    p["cpe2_b"] = unif(ks[10], (C,), 1.0 / 3.0)
    p["ln2_g"], p["ln2_b"] = jnp.ones((C,)), jnp.zeros((C,))
    p["fc1_w"] = unif(ks[11], (C, Hh), 1.0 / math.sqrt(C))
    p["fc1_b"] = unif(ks[12], (Hh,), 1.0 / math.sqrt(C))
    p["fc2_w"] = unif(ks[13], (Hh, C), 1.0 / math.sqrt(Hh))
    p["fc2_b"] = unif(ks[14], (C,), 1.0 / math.sqrt(Hh))
    return p


# --------------------------------------------------------------------------- main
if __name__ == "__main__":
    B, H, W, C = 2, 8, 8, 32      # NHWC (PyTorch reference would see (2, 32, 8, 8) NCHW)
    depth = 2
    d_state = 1

    key = jax.random.PRNGKey(0)
    kx, kp = jax.random.split(key)
    x = jax.random.normal(kx, (B, H, W, C), jnp.float32)
    pkeys = jax.random.split(kp, depth)
    params = [init_block_params(pkeys[i], C, d_state=d_state) for i in range(depth)]

    fwd = jax.jit(lambda xx: spatial_mamba_layer_forward(params, xx))
    out = fwd(x)
    jax.block_until_ready(out)
    assert out.shape == (B, H, W, C)
    assert jnp.all(jnp.isfinite(out))
    print("KERNEL_OK")
</pallas_src>

<mosaic_0001>
module attributes {stable_mosaic.version = 11 : i64} {
  func.func @_dwconv_kernel(%arg0: i32, %arg1: i32, %arg2: memref<1x10x10x32xf32, #tpu.memory_space<vmem>>, %arg3: memref<3x3x32xf32, #tpu.memory_space<vmem>>, %arg4: memref<1x32xf32, #tpu.memory_space<vmem>>, %arg5: memref<1x8x8x32xf32, #tpu.memory_space<vmem>>) attributes {dimension_semantics = [#tpu.dimension_semantics<parallel>, #tpu.dimension_semantics<parallel>], iteration_bounds = array<i64: 2, 1>, scalar_prefetch = 0 : i64, scratch_operands = 0 : i64, tpu.core_type = #tpu.core_type<tc>, window_params = [{transform_indices = @transform_0, window_bounds = array<i64: 1, 10, 10, 32>}, {transform_indices = @transform_1, window_bounds = array<i64: 3, 3, 32>}, {transform_indices = @transform_2, window_bounds = array<i64: 1, 32>}, {transform_indices = @transform_3, window_bounds = array<i64: 1, 8, 8, 32>}]} {
    %c0 = arith.constant 0 : index
    %c0_0 = arith.constant 0 : index
    %c0_1 = arith.constant 0 : index
    %c0_2 = arith.constant 0 : index
    %0 = vector.load %arg2[%c0, %c0_0, %c0_1, %c0_2] : memref<1x10x10x32xf32, #tpu.memory_space<vmem>>, vector<1x10x10x32xf32>
    %1 = vector.shape_cast %0 : vector<1x10x10x32xf32> to vector<10x10x32xf32>
    %c0_3 = arith.constant 0 : index
    %c0_4 = arith.constant 0 : index
    %c0_5 = arith.constant 0 : index
    %2 = vector.load %arg3[%c0_3, %c0_4, %c0_5] : memref<3x3x32xf32, #tpu.memory_space<vmem>>, vector<3x3x32xf32>
    %cst = arith.constant 0.000000e+00 : f32
    %3 = vector.broadcast %cst : f32 to vector<8x8x32xf32>
    %4 = vector.extract_strided_slice %1 {offsets = [0, 0, 0], sizes = [8, 8, 32], strides = [1, 1, 1]} : vector<10x10x32xf32> to vector<8x8x32xf32>
    %5 = vector.extract_strided_slice %2 {offsets = [0, 0, 0], sizes = [1, 1, 32], strides = [1, 1, 1]} : vector<3x3x32xf32> to vector<1x1x32xf32>
    %6 = vector.shape_cast %5 : vector<1x1x32xf32> to vector<32xf32>
    %7 = vector.shape_cast %6 : vector<32xf32> to vector<1x1x32xf32>
    %8 = vector.broadcast %7 : vector<1x1x32xf32> to vector<8x8x32xf32>
    %9 = arith.mulf %4, %8 : vector<8x8x32xf32>
    %10 = arith.addf %3, %9 : vector<8x8x32xf32>
    %11 = vector.extract_strided_slice %1 {offsets = [0, 1, 0], sizes = [8, 8, 32], strides = [1, 1, 1]} : vector<10x10x32xf32> to vector<8x8x32xf32>
    %12 = vector.extract_strided_slice %2 {offsets = [0, 1, 0], sizes = [1, 1, 32], strides = [1, 1, 1]} : vector<3x3x32xf32> to vector<1x1x32xf32>
    %13 = vector.shape_cast %12 : vector<1x1x32xf32> to vector<32xf32>
    %14 = vector.shape_cast %13 : vector<32xf32> to vector<1x1x32xf32>
    %15 = vector.broadcast %14 : vector<1x1x32xf32> to vector<8x8x32xf32>
    %16 = arith.mulf %11, %15 : vector<8x8x32xf32>
    %17 = arith.addf %10, %16 : vector<8x8x32xf32>
    %18 = vector.extract_strided_slice %1 {offsets = [0, 2, 0], sizes = [8, 8, 32], strides = [1, 1, 1]} : vector<10x10x32xf32> to vector<8x8x32xf32>
    %19 = vector.extract_strided_slice %2 {offsets = [0, 2, 0], sizes = [1, 1, 32], strides = [1, 1, 1]} : vector<3x3x32xf32> to vector<1x1x32xf32>
    %20 = vector.shape_cast %19 : vector<1x1x32xf32> to vector<32xf32>
    %21 = vector.shape_cast %20 : vector<32xf32> to vector<1x1x32xf32>
    %22 = vector.broadcast %21 : vector<1x1x32xf32> to vector<8x8x32xf32>
    %23 = arith.mulf %18, %22 : vector<8x8x32xf32>
    %24 = arith.addf %17, %23 : vector<8x8x32xf32>
    %25 = vector.extract_strided_slice %1 {offsets = [1, 0, 0], sizes = [8, 8, 32], strides = [1, 1, 1]} : vector<10x10x32xf32> to vector<8x8x32xf32>
    %26 = vector.extract_strided_slice %2 {offsets = [1, 0, 0], sizes = [1, 1, 32], strides = [1, 1, 1]} : vector<3x3x32xf32> to vector<1x1x32xf32>
    %27 = vector.shape_cast %26 : vector<1x1x32xf32> to vector<32xf32>
    %28 = vector.shape_cast %27 : vector<32xf32> to vector<1x1x32xf32>
    %29 = vector.broadcast %28 : vector<1x1x32xf32> to vector<8x8x32xf32>
    %30 = arith.mulf %25, %29 : vector<8x8x32xf32>
    %31 = arith.addf %24, %30 : vector<8x8x32xf32>
    %32 = vector.extract_strided_slice %1 {offsets = [1, 1, 0], sizes = [8, 8, 32], strides = [1, 1, 1]} : vector<10x10x32xf32> to vector<8x8x32xf32>
    %33 = vector.extract_strided_slice %2 {offsets = [1, 1, 0], sizes = [1, 1, 32], strides = [1, 1, 1]} : vector<3x3x32xf32> to vector<1x1x32xf32>
    %34 = vector.shape_cast %33 : vector<1x1x32xf32> to vector<32xf32>
    %35 = vector.shape_cast %34 : vector<32xf32> to vector<1x1x32xf32>
    %36 = vector.broadcast %35 : vector<1x1x32xf32> to vector<8x8x32xf32>
    %37 = arith.mulf %32, %36 : vector<8x8x32xf32>
    %38 = arith.addf %31, %37 : vector<8x8x32xf32>
    %39 = vector.extract_strided_slice %1 {offsets = [1, 2, 0], sizes = [8, 8, 32], strides = [1, 1, 1]} : vector<10x10x32xf32> to vector<8x8x32xf32>
    %40 = vector.extract_strided_slice %2 {offsets = [1, 2, 0], sizes = [1, 1, 32], strides = [1, 1, 1]} : vector<3x3x32xf32> to vector<1x1x32xf32>
    %41 = vector.shape_cast %40 : vector<1x1x32xf32> to vector<32xf32>
    %42 = vector.shape_cast %41 : vector<32xf32> to vector<1x1x32xf32>
    %43 = vector.broadcast %42 : vector<1x1x32xf32> to vector<8x8x32xf32>
    %44 = arith.mulf %39, %43 : vector<8x8x32xf32>
    %45 = arith.addf %38, %44 : vector<8x8x32xf32>
    %46 = vector.extract_strided_slice %1 {offsets = [2, 0, 0], sizes = [8, 8, 32], strides = [1, 1, 1]} : vector<10x10x32xf32> to vector<8x8x32xf32>
    %47 = vector.extract_strided_slice %2 {offsets = [2, 0, 0], sizes = [1, 1, 32], strides = [1, 1, 1]} : vector<3x3x32xf32> to vector<1x1x32xf32>
    %48 = vector.shape_cast %47 : vector<1x1x32xf32> to vector<32xf32>
    %49 = vector.shape_cast %48 : vector<32xf32> to vector<1x1x32xf32>
    %50 = vector.broadcast %49 : vector<1x1x32xf32> to vector<8x8x32xf32>
    %51 = arith.mulf %46, %50 : vector<8x8x32xf32>
    %52 = arith.addf %45, %51 : vector<8x8x32xf32>
    %53 = vector.extract_strided_slice %1 {offsets = [2, 1, 0], sizes = [8, 8, 32], strides = [1, 1, 1]} : vector<10x10x32xf32> to vector<8x8x32xf32>
    %54 = vector.extract_strided_slice %2 {offsets = [2, 1, 0], sizes = [1, 1, 32], strides = [1, 1, 1]} : vector<3x3x32xf32> to vector<1x1x32xf32>
    %55 = vector.shape_cast %54 : vector<1x1x32xf32> to vector<32xf32>
    %56 = vector.shape_cast %55 : vector<32xf32> to vector<1x1x32xf32>
    %57 = vector.broadcast %56 : vector<1x1x32xf32> to vector<8x8x32xf32>
    %58 = arith.mulf %53, %57 : vector<8x8x32xf32>
    %59 = arith.addf %52, %58 : vector<8x8x32xf32>
    %60 = vector.extract_strided_slice %1 {offsets = [2, 2, 0], sizes = [8, 8, 32], strides = [1, 1, 1]} : vector<10x10x32xf32> to vector<8x8x32xf32>
    %61 = vector.extract_strided_slice %2 {offsets = [2, 2, 0], sizes = [1, 1, 32], strides = [1, 1, 1]} : vector<3x3x32xf32> to vector<1x1x32xf32>
    %62 = vector.shape_cast %61 : vector<1x1x32xf32> to vector<32xf32>
    %63 = vector.shape_cast %62 : vector<32xf32> to vector<1x1x32xf32>
    %64 = vector.broadcast %63 : vector<1x1x32xf32> to vector<8x8x32xf32>
    %65 = arith.mulf %60, %64 : vector<8x8x32xf32>
    %66 = arith.addf %59, %65 : vector<8x8x32xf32>
    %c0_6 = arith.constant 0 : index
    %c0_7 = arith.constant 0 : index
    %67 = vector.load %arg4[%c0_6, %c0_7] : memref<1x32xf32, #tpu.memory_space<vmem>>, vector<1x32xf32>
    %68 = vector.shape_cast %67 : vector<1x32xf32> to vector<1x1x32xf32>
    %69 = vector.broadcast %68 : vector<1x1x32xf32> to vector<8x8x32xf32>
    %70 = arith.addf %66, %69 : vector<8x8x32xf32>
    %71 = vector.extract_strided_slice %1 {offsets = [1, 1, 0], sizes = [8, 8, 32], strides = [1, 1, 1]} : vector<10x10x32xf32> to vector<8x8x32xf32>
    %72 = arith.addf %70, %71 : vector<8x8x32xf32>
    %c0_8 = arith.constant 0 : index
    %c0_9 = arith.constant 0 : index
    %c0_10 = arith.constant 0 : index
    %c0_11 = arith.constant 0 : index
    %73 = vector.load %arg5[%c0_8, %c0_9, %c0_10, %c0_11] : memref<1x8x8x32xf32, #tpu.memory_space<vmem>>, vector<1x8x8x32xf32>
    %74 = vector.shape_cast %73 : vector<1x8x8x32xf32> to vector<8x8x32xf32>
    %75 = vector.shape_cast %72 : vector<8x8x32xf32> to vector<1x8x8x32xf32>
    tpu.vector_store %arg5[%c0_8, %c0_9, %c0_10, %c0_11], %75 {strides = array<i32>} : memref<1x8x8x32xf32, #tpu.memory_space<vmem>>, vector<1x8x8x32xf32>,
    return
  }
  func.func @transform_0(%arg0: i32, %arg1: i32) -> (i32, i32, i32, i32) {
    %c0_i32 = arith.constant 0 : i32
    %c0_i32_0 = arith.constant 0 : i32
    %c0_i32_1 = arith.constant 0 : i32
    return %arg0, %c0_i32, %c0_i32_0, %arg1 : i32, i32, i32, i32
  }
  func.func @transform_1(%arg0: i32, %arg1: i32) -> (i32, i32, i32) {
    %c0_i32 = arith.constant 0 : i32
    %c0_i32_0 = arith.constant 0 : i32
    %c0_i32_1 = arith.constant 0 : i32
    return %c0_i32, %c0_i32_0, %arg1 : i32, i32, i32
  }
  func.func @transform_2(%arg0: i32, %arg1: i32) -> (i32, i32) {
    %c0_i32 = arith.constant 0 : i32
    %c0_i32_0 = arith.constant 0 : i32
    return %c0_i32, %arg1 : i32, i32
  }
  func.func @transform_3(%arg0: i32, %arg1: i32) -> (i32, i32, i32, i32) {
    %c0_i32 = arith.constant 0 : i32
    %c0_i32_0 = arith.constant 0 : i32
    %c0_i32_1 = arith.constant 0 : i32
    return %arg0, %c0_i32, %c0_i32_0, %arg1 : i32, i32, i32, i32
  }
}

module attributes {stable_mosaic.version = 11 : i64} {
  func.func @_dwconv_kernel(%arg0: i32, %arg1: i32, %arg2: memref<1x10x10x64xf32, #tpu.memory_space<vmem>>, %arg3: memref<3x3x64xf32, #tpu.memory_space<vmem>>, %arg4: memref<1x64xf32, #tpu.memory_space<vmem>>, %arg5: memref<1x8x8x64xf32, #tpu.memory_space<vmem>>) attributes {dimension_semantics = [#tpu.dimension_semantics<parallel>, #tpu.dimension_semantics<parallel>], iteration_bounds = array<i64: 2, 1>, scalar_prefetch = 0 : i64, scratch_operands = 0 : i64, tpu.core_type = #tpu.core_type<tc>, window_params = [{transform_indices = @transform_0, window_bounds = array<i64: 1, 10, 10, 64>}, {transform_indices = @transform_1, window_bounds = array<i64: 3, 3, 64>}, {transform_indices = @transform_2, window_bounds = array<i64: 1, 64>}, {transform_indices = @transform_3, window_bounds = array<i64: 1, 8, 8, 64>}]} {
    %c0 = arith.constant 0 : index
    %c0_0 = arith.constant 0 : index
    %c0_1 = arith.constant 0 : index
    %c0_2 = arith.constant 0 : index
    %0 = vector.load %arg2[%c0, %c0_0, %c0_1, %c0_2] : memref<1x10x10x64xf32, #tpu.memory_space<vmem>>, vector<1x10x10x64xf32>
    %1 = vector.shape_cast %0 : vector<1x10x10x64xf32> to vector<10x10x64xf32>
    %c0_3 = arith.constant 0 : index
    %c0_4 = arith.constant 0 : index
    %c0_5 = arith.constant 0 : index
    %2 = vector.load %arg3[%c0_3, %c0_4, %c0_5] : memref<3x3x64xf32, #tpu.memory_space<vmem>>, vector<3x3x64xf32>
    %cst = arith.constant 0.000000e+00 : f32
    %3 = vector.broadcast %cst : f32 to vector<8x8x64xf32>
    %4 = vector.extract_strided_slice %1 {offsets = [0, 0, 0], sizes = [8, 8, 64], strides = [1, 1, 1]} : vector<10x10x64xf32> to vector<8x8x64xf32>
    %5 = vector.extract_strided_slice %2 {offsets = [0, 0, 0], sizes = [1, 1, 64], strides = [1, 1, 1]} : vector<3x3x64xf32> to vector<1x1x64xf32>
    %6 = vector.shape_cast %5 : vector<1x1x64xf32> to vector<64xf32>
    %7 = vector.shape_cast %6 : vector<64xf32> to vector<1x1x64xf32>
    %8 = vector.broadcast %7 : vector<1x1x64xf32> to vector<8x8x64xf32>
    %9 = arith.mulf %4, %8 : vector<8x8x64xf32>
    %10 = arith.addf %3, %9 : vector<8x8x64xf32>
    %11 = vector.extract_strided_slice %1 {offsets = [0, 1, 0], sizes = [8, 8, 64], strides = [1, 1, 1]} : vector<10x10x64xf32> to vector<8x8x64xf32>
    %12 = vector.extract_strided_slice %2 {offsets = [0, 1, 0], sizes = [1, 1, 64], strides = [1, 1, 1]} : vector<3x3x64xf32> to vector<1x1x64xf32>
    %13 = vector.shape_cast %12 : vector<1x1x64xf32> to vector<64xf32>
    %14 = vector.shape_cast %13 : vector<64xf32> to vector<1x1x64xf32>
    %15 = vector.broadcast %14 : vector<1x1x64xf32> to vector<8x8x64xf32>
    %16 = arith.mulf %11, %15 : vector<8x8x64xf32>
    %17 = arith.addf %10, %16 : vector<8x8x64xf32>
    %18 = vector.extract_strided_slice %1 {offsets = [0, 2, 0], sizes = [8, 8, 64], strides = [1, 1, 1]} : vector<10x10x64xf32> to vector<8x8x64xf32>
    %19 = vector.extract_strided_slice %2 {offsets = [0, 2, 0], sizes = [1, 1, 64], strides = [1, 1, 1]} : vector<3x3x64xf32> to vector<1x1x64xf32>
    %20 = vector.shape_cast %19 : vector<1x1x64xf32> to vector<64xf32>
    %21 = vector.shape_cast %20 : vector<64xf32> to vector<1x1x64xf32>
    %22 = vector.broadcast %21 : vector<1x1x64xf32> to vector<8x8x64xf32>
    %23 = arith.mulf %18, %22 : vector<8x8x64xf32>
    %24 = arith.addf %17, %23 : vector<8x8x64xf32>
    %25 = vector.extract_strided_slice %1 {offsets = [1, 0, 0], sizes = [8, 8, 64], strides = [1, 1, 1]} : vector<10x10x64xf32> to vector<8x8x64xf32>
    %26 = vector.extract_strided_slice %2 {offsets = [1, 0, 0], sizes = [1, 1, 64], strides = [1, 1, 1]} : vector<3x3x64xf32> to vector<1x1x64xf32>
    %27 = vector.shape_cast %26 : vector<1x1x64xf32> to vector<64xf32>
    %28 = vector.shape_cast %27 : vector<64xf32> to vector<1x1x64xf32>
    %29 = vector.broadcast %28 : vector<1x1x64xf32> to vector<8x8x64xf32>
    %30 = arith.mulf %25, %29 : vector<8x8x64xf32>
    %31 = arith.addf %24, %30 : vector<8x8x64xf32>
    %32 = vector.extract_strided_slice %1 {offsets = [1, 1, 0], sizes = [8, 8, 64], strides = [1, 1, 1]} : vector<10x10x64xf32> to vector<8x8x64xf32>
    %33 = vector.extract_strided_slice %2 {offsets = [1, 1, 0], sizes = [1, 1, 64], strides = [1, 1, 1]} : vector<3x3x64xf32> to vector<1x1x64xf32>
    %34 = vector.shape_cast %33 : vector<1x1x64xf32> to vector<64xf32>
    %35 = vector.shape_cast %34 : vector<64xf32> to vector<1x1x64xf32>
    %36 = vector.broadcast %35 : vector<1x1x64xf32> to vector<8x8x64xf32>
    %37 = arith.mulf %32, %36 : vector<8x8x64xf32>
    %38 = arith.addf %31, %37 : vector<8x8x64xf32>
    %39 = vector.extract_strided_slice %1 {offsets = [1, 2, 0], sizes = [8, 8, 64], strides = [1, 1, 1]} : vector<10x10x64xf32> to vector<8x8x64xf32>
    %40 = vector.extract_strided_slice %2 {offsets = [1, 2, 0], sizes = [1, 1, 64], strides = [1, 1, 1]} : vector<3x3x64xf32> to vector<1x1x64xf32>
    %41 = vector.shape_cast %40 : vector<1x1x64xf32> to vector<64xf32>
    %42 = vector.shape_cast %41 : vector<64xf32> to vector<1x1x64xf32>
    %43 = vector.broadcast %42 : vector<1x1x64xf32> to vector<8x8x64xf32>
    %44 = arith.mulf %39, %43 : vector<8x8x64xf32>
    %45 = arith.addf %38, %44 : vector<8x8x64xf32>
    %46 = vector.extract_strided_slice %1 {offsets = [2, 0, 0], sizes = [8, 8, 64], strides = [1, 1, 1]} : vector<10x10x64xf32> to vector<8x8x64xf32>
    %47 = vector.extract_strided_slice %2 {offsets = [2, 0, 0], sizes = [1, 1, 64], strides = [1, 1, 1]} : vector<3x3x64xf32> to vector<1x1x64xf32>
    %48 = vector.shape_cast %47 : vector<1x1x64xf32> to vector<64xf32>
    %49 = vector.shape_cast %48 : vector<64xf32> to vector<1x1x64xf32>
    %50 = vector.broadcast %49 : vector<1x1x64xf32> to vector<8x8x64xf32>
    %51 = arith.mulf %46, %50 : vector<8x8x64xf32>
    %52 = arith.addf %45, %51 : vector<8x8x64xf32>
    %53 = vector.extract_strided_slice %1 {offsets = [2, 1, 0], sizes = [8, 8, 64], strides = [1, 1, 1]} : vector<10x10x64xf32> to vector<8x8x64xf32>
    %54 = vector.extract_strided_slice %2 {offsets = [2, 1, 0], sizes = [1, 1, 64], strides = [1, 1, 1]} : vector<3x3x64xf32> to vector<1x1x64xf32>
    %55 = vector.shape_cast %54 : vector<1x1x64xf32> to vector<64xf32>
    %56 = vector.shape_cast %55 : vector<64xf32> to vector<1x1x64xf32>
    %57 = vector.broadcast %56 : vector<1x1x64xf32> to vector<8x8x64xf32>
    %58 = arith.mulf %53, %57 : vector<8x8x64xf32>
    %59 = arith.addf %52, %58 : vector<8x8x64xf32>
    %60 = vector.extract_strided_slice %1 {offsets = [2, 2, 0], sizes = [8, 8, 64], strides = [1, 1, 1]} : vector<10x10x64xf32> to vector<8x8x64xf32>
    %61 = vector.extract_strided_slice %2 {offsets = [2, 2, 0], sizes = [1, 1, 64], strides = [1, 1, 1]} : vector<3x3x64xf32> to vector<1x1x64xf32>
    %62 = vector.shape_cast %61 : vector<1x1x64xf32> to vector<64xf32>
    %63 = vector.shape_cast %62 : vector<64xf32> to vector<1x1x64xf32>
    %64 = vector.broadcast %63 : vector<1x1x64xf32> to vector<8x8x64xf32>
    %65 = arith.mulf %60, %64 : vector<8x8x64xf32>
    %66 = arith.addf %59, %65 : vector<8x8x64xf32>
    %c0_6 = arith.constant 0 : index
    %c0_7 = arith.constant 0 : index
    %67 = vector.load %arg4[%c0_6, %c0_7] : memref<1x64xf32, #tpu.memory_space<vmem>>, vector<1x64xf32>
    %68 = vector.shape_cast %67 : vector<1x64xf32> to vector<1x1x64xf32>
    %69 = vector.broadcast %68 : vector<1x1x64xf32> to vector<8x8x64xf32>
    %70 = arith.addf %66, %69 : vector<8x8x64xf32>
    %cst_8 = arith.constant 0.000000e+00 : f32
    %71 = vector.broadcast %cst_8 : f32 to vector<8x8x64xf32>
    %72 = arith.subf %71, %70 : vector<8x8x64xf32>
    %73 = math.exp %72 : vector<8x8x64xf32>
    %cst_9 = arith.constant 1.000000e+00 : f32
    %74 = vector.broadcast %cst_9 : f32 to vector<8x8x64xf32>
    %75 = arith.addf %74, %73 : vector<8x8x64xf32>
    %cst_10 = arith.constant 1.000000e+00 : f32
    %76 = vector.broadcast %cst_10 : f32 to vector<8x8x64xf32>
    %77 = arith.divf %76, %75 : vector<8x8x64xf32>
    %78 = arith.mulf %70, %77 : vector<8x8x64xf32>
    %c0_11 = arith.constant 0 : index
    %c0_12 = arith.constant 0 : index
    %c0_13 = arith.constant 0 : index
    %c0_14 = arith.constant 0 : index
    %79 = vector.load %arg5[%c0_11, %c0_12, %c0_13, %c0_14] : memref<1x8x8x64xf32, #tpu.memory_space<vmem>>, vector<1x8x8x64xf32>
    %80 = vector.shape_cast %79 : vector<1x8x8x64xf32> to vector<8x8x64xf32>
    %81 = vector.shape_cast %78 : vector<8x8x64xf32> to vector<1x8x8x64xf32>
    tpu.vector_store %arg5[%c0_11, %c0_12, %c0_13, %c0_14], %81 {strides = array<i32>} : memref<1x8x8x64xf32, #tpu.memory_space<vmem>>, vector<1x8x8x64xf32>,
    return
  }
  func.func @transform_0(%arg0: i32, %arg1: i32) -> (i32, i32, i32, i32) {
    %c0_i32 = arith.constant 0 : i32
    %c0_i32_0 = arith.constant 0 : i32
    %c0_i32_1 = arith.constant 0 : i32
    return %arg0, %c0_i32, %c0_i32_0, %arg1 : i32, i32, i32, i32
  }
  func.func @transform_1(%arg0: i32, %arg1: i32) -> (i32, i32, i32) {
    %c0_i32 = arith.constant 0 : i32
    %c0_i32_0 = arith.constant 0 : i32
    %c0_i32_1 = arith.constant 0 : i32
    return %c0_i32, %c0_i32_0, %arg1 : i32, i32, i32
  }
  func.func @transform_2(%arg0: i32, %arg1: i32) -> (i32, i32) {
    %c0_i32 = arith.constant 0 : i32
    %c0_i32_0 = arith.constant 0 : i32
    return %c0_i32, %arg1 : i32, i32
  }
  func.func @transform_3(%arg0: i32, %arg1: i32) -> (i32, i32, i32, i32) {
    %c0_i32 = arith.constant 0 : i32
    %c0_i32_0 = arith.constant 0 : i32
    %c0_i32_1 = arith.constant 0 : i32
    return %arg0, %c0_i32, %c0_i32_0, %arg1 : i32, i32, i32, i32
  }
}

module attributes {stable_mosaic.version = 11 : i64} {
  func.func @_ln_linear_kernel(%arg0: i32, %arg1: i32, %arg2: memref<128x32xf32, #tpu.memory_space<vmem>>, %arg3: memref<1x32xf32, #tpu.memory_space<vmem>>, %arg4: memref<1x32xf32, #tpu.memory_space<vmem>>, %arg5: memref<32x128xbf16, #tpu.memory_space<vmem>>, %arg6: memref<1x128xf32, #tpu.memory_space<vmem>>, %arg7: memref<128x128xf32, #tpu.memory_space<vmem>>) attributes {dimension_semantics = [#tpu.dimension_semantics<parallel>, #tpu.dimension_semantics<parallel>], iteration_bounds = array<i64: 1, 1>, scalar_prefetch = 0 : i64, scratch_operands = 0 : i64, tpu.core_type = #tpu.core_type<tc>, window_params = [{transform_indices = @transform_0, window_bounds = array<i64: 128, 32>}, {pipeline_mode = #tpu.pipeline_mode<synchronous>, transform_indices = @transform_1, window_bounds = array<i64: 1, 32>}, {pipeline_mode = #tpu.pipeline_mode<synchronous>, transform_indices = @transform_2, window_bounds = array<i64: 1, 32>}, {transform_indices = @transform_3, window_bounds = array<i64: 32, 128>}, {transform_indices = @transform_4, window_bounds = array<i64: 1, 128>}, {transform_indices = @transform_5, window_bounds = array<i64: 128, 128>}]} {
    %c0 = arith.constant 0 : index
    %c0_0 = arith.constant 0 : index
    %0 = vector.load %arg2[%c0, %c0_0] : memref<128x32xf32, #tpu.memory_space<vmem>>, vector<128x32xf32>
    %cst = arith.constant dense<0.000000e+00> : vector<128xf32>
    %1 = vector.multi_reduction <add>, %0, %cst [1] : vector<128x32xf32> to vector<128xf32>
    %2 = vector.shape_cast %1 : vector<128xf32> to vector<128x1xf32>
    %cst_1 = arith.constant 3.200000e+01 : f32
    %3 = vector.broadcast %cst_1 : f32 to vector<128x1xf32>
    %4 = arith.divf %2, %3 : vector<128x1xf32>
    %5 = vector.broadcast %4 : vector<128x1xf32> to vector<128x32xf32>
    %6 = arith.subf %0, %5 : vector<128x32xf32>
    %7 = arith.mulf %6, %6 : vector<128x32xf32>
    %cst_2 = arith.constant dense<0.000000e+00> : vector<128xf32>
    %8 = vector.multi_reduction <add>, %7, %cst_2 [1] : vector<128x32xf32> to vector<128xf32>
    %9 = vector.shape_cast %8 : vector<128xf32> to vector<128x1xf32>
    %cst_3 = arith.constant 3.200000e+01 : f32
    %10 = vector.broadcast %cst_3 : f32 to vector<128x1xf32>
    %11 = arith.divf %9, %10 : vector<128x1xf32>
    %cst_4 = arith.constant 9.99999974E-6 : f32
    %12 = vector.broadcast %cst_4 : f32 to vector<128x1xf32>
    %13 = arith.addf %11, %12 : vector<128x1xf32>
    %14 = math.rsqrt %13 : vector<128x1xf32>
    %15 = vector.broadcast %14 : vector<128x1xf32> to vector<128x32xf32>
    %16 = arith.mulf %6, %15 : vector<128x32xf32>
    %c0_5 = arith.constant 0 : index
    %c0_6 = arith.constant 0 : index
    %17 = vector.load %arg3[%c0_5, %c0_6] : memref<1x32xf32, #tpu.memory_space<vmem>>, vector<1x32xf32>
    %18 = vector.broadcast %17 : vector<1x32xf32> to vector<128x32xf32>
    %19 = arith.mulf %16, %18 : vector<128x32xf32>
    %c0_7 = arith.constant 0 : index
    %c0_8 = arith.constant 0 : index
    %20 = vector.load %arg4[%c0_7, %c0_8] : memref<1x32xf32, #tpu.memory_space<vmem>>, vector<1x32xf32>
    %21 = vector.broadcast %20 : vector<1x32xf32> to vector<128x32xf32>
    %22 = arith.addf %19, %21 : vector<128x32xf32>
    %23 = arith.truncf %22 : vector<128x32xf32> to vector<128x32xbf16>
    %c0_9 = arith.constant 0 : index
    %c0_10 = arith.constant 0 : index
    %24 = vector.load %arg5[%c0_9, %c0_10] : memref<32x128xbf16, #tpu.memory_space<vmem>>, vector<32x128xbf16>
    %cst_11 = arith.constant dense<0.000000e+00> : vector<128x128xf32>
    %25 = tpu.matmul %23, %24, %cst_11 {dimension_numbers = #tpu.dot_dimension_numbers<[1], [0], [0], [1], [0, 0, 1, 1], [], []>} : vector<128x32xbf16>, vector<32x128xbf16>, vector<128x128xf32> -> vector<128x128xf32>
    %c0_12 = arith.constant 0 : index
    %c0_13 = arith.constant 0 : index
    %26 = vector.load %arg6[%c0_12, %c0_13] : memref<1x128xf32, #tpu.memory_space<vmem>>, vector<1x128xf32>
    %27 = vector.broadcast %26 : vector<1x128xf32> to vector<128x128xf32>
    %28 = arith.addf %25, %27 : vector<128x128xf32>
    %c0_14 = arith.constant 0 : index
    %c0_15 = arith.constant 0 : index
    %29 = vector.load %arg7[%c0_14, %c0_15] : memref<128x128xf32, #tpu.memory_space<vmem>>, vector<128x128xf32>
    tpu.vector_store %arg7[%c0_14, %c0_15], %28 {strides = array<i32>} : memref<128x128xf32, #tpu.memory_space<vmem>>, vector<128x128xf32>,
    return
  }
  func.func @transform_0(%arg0: i32, %arg1: i32) -> (i32, i32) {
    %c0_i32 = arith.constant 0 : i32
    %c0_i32_0 = arith.constant 0 : i32
    return %arg0, %c0_i32 : i32, i32
  }
  func.func @transform_1(%arg0: i32, %arg1: i32) -> (i32, i32) {
    %c0_i32 = arith.constant 0 : i32
    %c0_i32_0 = arith.constant 0 : i32
    %c0_i32_1 = arith.constant 0 : i32
    return %c0_i32, %c0_i32_0 : i32, i32
  }
  func.func @transform_2(%arg0: i32, %arg1: i32) -> (i32, i32) {
    %c0_i32 = arith.constant 0 : i32
    %c0_i32_0 = arith.constant 0 : i32
    %c0_i32_1 = arith.constant 0 : i32
    return %c0_i32, %c0_i32_0 : i32, i32
  }
  func.func @transform_3(%arg0: i32, %arg1: i32) -> (i32, i32) {
    %c0_i32 = arith.constant 0 : i32
    %c0_i32_0 = arith.constant 0 : i32
    return %c0_i32, %arg1 : i32, i32
  }
  func.func @transform_4(%arg0: i32, %arg1: i32) -> (i32, i32) {
    %c0_i32 = arith.constant 0 : i32
    %c0_i32_0 = arith.constant 0 : i32
    return %c0_i32, %arg1 : i32, i32
  }
  func.func @transform_5(%arg0: i32, %arg1: i32) -> (i32, i32) {
    %c0_i32 = arith.constant 0 : i32
    return %arg0, %arg1 : i32, i32
  }
}

module attributes {stable_mosaic.version = 11 : i64} {
  func.func @_matmul_kernel(%arg0: i32, %arg1: i32, %arg2: i32, %arg3: memref<128x128xbf16, #tpu.memory_space<vmem>>, %arg4: memref<128x128xbf16, #tpu.memory_space<vmem>>, %arg5: memref<1x128xf32, #tpu.memory_space<vmem>>, %arg6: memref<128x128xf32, #tpu.memory_space<vmem>>, %arg7: memref<128x128xf32, #tpu.memory_space<vmem>>) attributes {dimension_semantics = [#tpu.dimension_semantics<parallel>, #tpu.dimension_semantics<parallel>, #tpu.dimension_semantics<arbitrary>], iteration_bounds = array<i64: 1, 1, 1>, scalar_prefetch = 0 : i64, scratch_operands = 1 : i64, tpu.core_type = #tpu.core_type<tc>, window_params = [{transform_indices = @transform_0, window_bounds = array<i64: 128, 128>}, {transform_indices = @transform_1, window_bounds = array<i64: 128, 128>}, {transform_indices = @transform_2, window_bounds = array<i64: 1, 128>}, {transform_indices = @transform_3, window_bounds = array<i64: 128, 128>}]} {
    %c0_i32 = arith.constant 0 : i32
    %0 = arith.cmpi eq, %arg2, %c0_i32 : i32
    %1 = arith.extui %0 : i1 to i32
    %c0_i32_0 = arith.constant 0 : i32
    %2 = arith.cmpi ne, %1, %c0_i32_0 : i32
    scf.if %2 {
      %cst_10 = arith.constant 0.000000e+00 : f32
      %12 = vector.broadcast %cst_10 : f32 to vector<128x128xf32>
      %c0_11 = arith.constant 0 : index
      %c0_12 = arith.constant 0 : index
      %13 = vector.load %arg7[%c0_11, %c0_12] : memref<128x128xf32, #tpu.memory_space<vmem>>, vector<128x128xf32>
      tpu.vector_store %arg7[%c0_11, %c0_12], %12 {strides = array<i32>} : memref<128x128xf32, #tpu.memory_space<vmem>>, vector<128x128xf32>,
    } else {
    }
    %c0 = arith.constant 0 : index
    %c0_1 = arith.constant 0 : index
    %3 = vector.load %arg7[%c0, %c0_1] : memref<128x128xf32, #tpu.memory_space<vmem>>, vector<128x128xf32>
    %c0_2 = arith.constant 0 : index
    %c0_3 = arith.constant 0 : index
    %4 = vector.load %arg3[%c0_2, %c0_3] : memref<128x128xbf16, #tpu.memory_space<vmem>>, vector<128x128xbf16>
    %c0_4 = arith.constant 0 : index
    %c0_5 = arith.constant 0 : index
    %5 = vector.load %arg4[%c0_4, %c0_5] : memref<128x128xbf16, #tpu.memory_space<vmem>>, vector<128x128xbf16>
    %cst = arith.constant dense<0.000000e+00> : vector<128x128xf32>
    %6 = tpu.matmul %4, %5, %cst {dimension_numbers = #tpu.dot_dimension_numbers<[1], [0], [0], [1], [0, 0, 1, 1], [], []>} : vector<128x128xbf16>, vector<128x128xbf16>, vector<128x128xf32> -> vector<128x128xf32>
    %7 = arith.addf %3, %6 : vector<128x128xf32>
    %c0_6 = arith.constant 0 : index
    %c0_7 = arith.constant 0 : index
    %8 = vector.load %arg7[%c0_6, %c0_7] : memref<128x128xf32, #tpu.memory_space<vmem>>, vector<128x128xf32>
    tpu.vector_store %arg7[%c0_6, %c0_7], %7 {strides = array<i32>} : memref<128x128xf32, #tpu.memory_space<vmem>>, vector<128x128xf32>,
    %c0_i32_8 = arith.constant 0 : i32
    %9 = arith.cmpi eq, %arg2, %c0_i32_8 : i32
    %10 = arith.extui %9 : i1 to i32
    %c0_i32_9 = arith.constant 0 : i32
    %11 = arith.cmpi ne, %10, %c0_i32_9 : i32
    scf.if %11 {
      %c0_10 = arith.constant 0 : index
      %c0_11 = arith.constant 0 : index
      %12 = vector.load %arg7[%c0_10, %c0_11] : memref<128x128xf32, #tpu.memory_space<vmem>>, vector<128x128xf32>
      %c0_12 = arith.constant 0 : index
      %c0_13 = arith.constant 0 : index
      %13 = vector.load %arg5[%c0_12, %c0_13] : memref<1x128xf32, #tpu.memory_space<vmem>>, vector<1x128xf32>
      %14 = vector.broadcast %13 : vector<1x128xf32> to vector<128x128xf32>
      %15 = arith.addf %12, %14 : vector<128x128xf32>
      %c0_14 = arith.constant 0 : index
      %c0_15 = arith.constant 0 : index
      %16 = vector.load %arg6[%c0_14, %c0_15] : memref<128x128xf32, #tpu.memory_space<vmem>>, vector<128x128xf32>
      tpu.vector_store %arg6[%c0_14, %c0_15], %15 {strides = array<i32>} : memref<128x128xf32, #tpu.memory_space<vmem>>, vector<128x128xf32>,
    } else {
    }
    return
  }
  func.func @transform_0(%arg0: i32, %arg1: i32, %arg2: i32) -> (i32, i32) {
    %c0_i32 = arith.constant 0 : i32
    return %arg0, %arg2 : i32, i32
  }
  func.func @transform_1(%arg0: i32, %arg1: i32, %arg2: i32) -> (i32, i32) {
    %c0_i32 = arith.constant 0 : i32
    return %arg2, %arg1 : i32, i32
  }
  func.func @transform_2(%arg0: i32, %arg1: i32, %arg2: i32) -> (i32, i32) {
    %c0_i32 = arith.constant 0 : i32
    %c0_i32_0 = arith.constant 0 : i32
    return %c0_i32, %arg1 : i32, i32
  }
  func.func @transform_3(%arg0: i32, %arg1: i32, %arg2: i32) -> (i32, i32) {
    %c0_i32 = arith.constant 0 : i32
    return %arg0, %arg1 : i32, i32
  }
}

module attributes {stable_mosaic.version = 11 : i64} {
  func.func @_scan_kernel(%arg0: i32, %arg1: i32, %arg2: i32, %arg3: memref<1x64x64xf32, #tpu.memory_space<vmem>>, %arg4: memref<1x64x64xf32, #tpu.memory_space<vmem>>, %arg5: memref<1x64xf32, #tpu.memory_space<vmem>>, %arg6: memref<1x64xf32, #tpu.memory_space<vmem>>, %arg7: memref<1x64x64xf32, #tpu.memory_space<vmem>>, %arg8: memref<1x64xf32, #tpu.memory_space<vmem>>, %arg9: memref<8x64xf32, #tpu.memory_space<vmem>>) attributes {dimension_semantics = [#tpu.dimension_semantics<parallel>, #tpu.dimension_semantics<parallel>, #tpu.dimension_semantics<arbitrary>], iteration_bounds = array<i64: 2, 1, 1>, scalar_prefetch = 0 : i64, scratch_operands = 2 : i64, tpu.core_type = #tpu.core_type<tc>, window_params = [{transform_indices = @transform_0, window_bounds = array<i64: 1, 64, 64>}, {transform_indices = @transform_1, window_bounds = array<i64: 1, 64, 64>}, {transform_indices = @transform_2, window_bounds = array<i64: 1, 64>}, {transform_indices = @transform_3, window_bounds = array<i64: 1, 64>}, {transform_indices = @transform_4, window_bounds = array<i64: 1, 64, 64>}]} {
    %c0_i32 = arith.constant 0 : i32
    %0 = arith.cmpi eq, %arg2, %c0_i32 : i32
    %1 = arith.extui %0 : i1 to i32
    %c0_i32_0 = arith.constant 0 : i32
    %2 = arith.cmpi ne, %1, %c0_i32_0 : i32
    scf.if %2 {
      %cst = arith.constant 0.000000e+00 : f32
      %9 = vector.broadcast %cst : f32 to vector<1x64xf32>
      %c0_10 = arith.constant 0 : index
      %c0_11 = arith.constant 0 : index
      %10 = vector.load %arg8[%c0_10, %c0_11] : memref<1x64xf32, #tpu.memory_space<vmem>>, vector<1x64xf32>
      tpu.vector_store %arg8[%c0_10, %c0_11], %9 {strides = array<i32>} : memref<1x64xf32, #tpu.memory_space<vmem>>, vector<1x64xf32>,
    } else {
    }
    %c0 = arith.constant 0 : index
    %c0_1 = arith.constant 0 : index
    %3 = vector.load %arg5[%c0, %c0_1] : memref<1x64xf32, #tpu.memory_space<vmem>>, vector<1x64xf32>
    %c0_2 = arith.constant 0 : index
    %c0_3 = arith.constant 0 : index
    %4 = vector.load %arg6[%c0_2, %c0_3] : memref<1x64xf32, #tpu.memory_space<vmem>>, vector<1x64xf32>
    %c0_4 = arith.constant 0 : index
    %c0_5 = arith.constant 0 : index
    %5 = vector.load %arg8[%c0_4, %c0_5] : memref<1x64xf32, #tpu.memory_space<vmem>>, vector<1x64xf32>
    %c0_i32_6 = arith.constant 0 : i32
    %c8_i32 = arith.constant 8 : i32
    %6 = arith.addi %c0_i32_6, %c8_i32 : i32
    %c1_i32 = arith.constant 1 : i32
    %7 = scf.for %arg10 = %c0_i32_6 to %6 step %c1_i32 iter_args(%arg11 = %5) -> (vector<1x64xf32>)  : i32 {
      %c8_i32_10 = arith.constant 8 : i32
      %9 = arith.muli %arg10, %c8_i32_10 : i32
      %10 = tpu.assume_multiple %9, 8 : i32
      %c0_11 = arith.constant 0 : index
      %11 = arith.index_cast %10 : i32 to index
      %c0_12 = arith.constant 0 : index
      %12 = vector.load %arg3[%c0_11, %11, %c0_12] : memref<1x64x64xf32, #tpu.memory_space<vmem>>, vector<1x8x64xf32>
      %13 = vector.shape_cast %12 : vector<1x8x64xf32> to vector<8x64xf32>
      %c0_13 = arith.constant 0 : index
      %14 = arith.index_cast %10 : i32 to index
      %c0_14 = arith.constant 0 : index
      %15 = vector.load %arg4[%c0_13, %14, %c0_14] : memref<1x64x64xf32, #tpu.memory_space<vmem>>, vector<1x8x64xf32>
      %16 = vector.shape_cast %15 : vector<1x8x64xf32> to vector<8x64xf32>
      %17 = vector.broadcast %4 : vector<1x64xf32> to vector<8x64xf32>
      %18 = arith.addf %13, %17 : vector<8x64xf32>
      %cst = arith.constant 0.000000e+00 : f32
      %19 = vector.broadcast %cst : f32 to vector<8x64xf32>
      %20 = arith.maximumf %18, %19 : vector<8x64xf32>
      %21 = math.absf %18 : vector<8x64xf32>
      %cst_15 = arith.constant 0.000000e+00 : f32
      %22 = vector.broadcast %cst_15 : f32 to vector<8x64xf32>
      %23 = arith.subf %22, %21 : vector<8x64xf32>
      %24 = math.exp %23 : vector<8x64xf32>
      %cst_16 = arith.constant 1.000000e+00 : f32
      %25 = vector.broadcast %cst_16 : f32 to vector<8x64xf32>
      %26 = arith.addf %25, %24 : vector<8x64xf32>
      %27 = math.log %26 : vector<8x64xf32>
      %28 = arith.addf %20, %27 : vector<8x64xf32>
      %29 = vector.broadcast %3 : vector<1x64xf32> to vector<8x64xf32>
      %30 = arith.mulf %28, %29 : vector<8x64xf32>
      %31 = math.exp %30 : vector<8x64xf32>
      %32 = arith.mulf %28, %16 : vector<8x64xf32>
      %33 = vector.extract_strided_slice %31 {offsets = [0, 0], sizes = [1, 64], strides = [1, 1]} : vector<8x64xf32> to vector<1x64xf32>
      %34 = arith.mulf %33, %arg11 : vector<1x64xf32>
      %35 = vector.extract_strided_slice %32 {offsets = [0, 0], sizes = [1, 64], strides = [1, 1]} : vector<8x64xf32> to vector<1x64xf32>
      %36 = arith.addf %34, %35 : vector<1x64xf32>
      %c0_17 = arith.constant 0 : index
      %c0_18 = arith.constant 0 : index
      %37 = vector.load %arg9[%c0_17, %c0_18] : memref<8x64xf32, #tpu.memory_space<vmem>>, vector<1x64xf32>
      tpu.vector_store %arg9[%c0_17, %c0_18], %36 {strides = array<i32>} : memref<8x64xf32, #tpu.memory_space<vmem>>, vector<1x64xf32>,
      %38 = vector.extract_strided_slice %31 {offsets = [1, 0], sizes = [1, 64], strides = [1, 1]} : vector<8x64xf32> to vector<1x64xf32>
      %39 = arith.mulf %38, %36 : vector<1x64xf32>
      %40 = vector.extract_strided_slice %32 {offsets = [1, 0], sizes = [1, 64], strides = [1, 1]} : vector<8x64xf32> to vector<1x64xf32>
      %41 = arith.addf %39, %40 : vector<1x64xf32>
      %c1 = arith.constant 1 : index
      %c0_19 = arith.constant 0 : index
      %42 = vector.load %arg9[%c1, %c0_19] : memref<8x64xf32, #tpu.memory_space<vmem>>, vector<1x64xf32>
      tpu.vector_store %arg9[%c1, %c0_19], %41 {strides = array<i32>} : memref<8x64xf32, #tpu.memory_space<vmem>>, vector<1x64xf32>,
      %43 = vector.extract_strided_slice %31 {offsets = [2, 0], sizes = [1, 64], strides = [1, 1]} : vector<8x64xf32> to vector<1x64xf32>
      %44 = arith.mulf %43, %41 : vector<1x64xf32>
      %45 = vector.extract_strided_slice %32 {offsets = [2, 0], sizes = [1, 64], strides = [1, 1]} : vector<8x64xf32> to vector<1x64xf32>
      %46 = arith.addf %44, %45 : vector<1x64xf32>
      %c2 = arith.constant 2 : index
      %c0_20 = arith.constant 0 : index
      %47 = vector.load %arg9[%c2, %c0_20] : memref<8x64xf32, #tpu.memory_space<vmem>>, vector<1x64xf32>
      tpu.vector_store %arg9[%c2, %c0_20], %46 {strides = array<i32>} : memref<8x64xf32, #tpu.memory_space<vmem>>, vector<1x64xf32>,
      %48 = vector.extract_strided_slice %31 {offsets = [3, 0], sizes = [1, 64], strides = [1, 1]} : vector<8x64xf32> to vector<1x64xf32>
      %49 = arith.mulf %48, %46 : vector<1x64xf32>
      %50 = vector.extract_strided_slice %32 {offsets = [3, 0], sizes = [1, 64], strides = [1, 1]} : vector<8x64xf32> to vector<1x64xf32>
      %51 = arith.addf %49, %50 : vector<1x64xf32>
      %c3 = arith.constant 3 : index
      %c0_21 = arith.constant 0 : index
      %52 = vector.load %arg9[%c3, %c0_21] : memref<8x64xf32, #tpu.memory_space<vmem>>, vector<1x64xf32>
      tpu.vector_store %arg9[%c3, %c0_21], %51 {strides = array<i32>} : memref<8x64xf32, #tpu.memory_space<vmem>>, vector<1x64xf32>,
      %53 = vector.extract_strided_slice %31 {offsets = [4, 0], sizes = [1, 64], strides = [1, 1]} : vector<8x64xf32> to vector<1x64xf32>
      %54 = arith.mulf %53, %51 : vector<1x64xf32>
      %55 = vector.extract_strided_slice %32 {offsets = [4, 0], sizes = [1, 64], strides = [1, 1]} : vector<8x64xf32> to vector<1x64xf32>
      %56 = arith.addf %54, %55 : vector<1x64xf32>
      %c4 = arith.constant 4 : index
      %c0_22 = arith.constant 0 : index
      %57 = vector.load %arg9[%c4, %c0_22] : memref<8x64xf32, #tpu.memory_space<vmem>>, vector<1x64xf32>
      tpu.vector_store %arg9[%c4, %c0_22], %56 {strides = array<i32>} : memref<8x64xf32, #tpu.memory_space<vmem>>, vector<1x64xf32>,
      %58 = vector.extract_strided_slice %31 {offsets = [5, 0], sizes = [1, 64], strides = [1, 1]} : vector<8x64xf32> to vector<1x64xf32>
      %59 = arith.mulf %58, %56 : vector<1x64xf32>
      %60 = vector.extract_strided_slice %32 {offsets = [5, 0], sizes = [1, 64], strides = [1, 1]} : vector<8x64xf32> to vector<1x64xf32>
      %61 = arith.addf %59, %60 : vector<1x64xf32>
      %c5 = arith.constant 5 : index
      %c0_23 = arith.constant 0 : index
      %62 = vector.load %arg9[%c5, %c0_23] : memref<8x64xf32, #tpu.memory_space<vmem>>, vector<1x64xf32>
      tpu.vector_store %arg9[%c5, %c0_23], %61 {strides = array<i32>} : memref<8x64xf32, #tpu.memory_space<vmem>>, vector<1x64xf32>,
      %63 = vector.extract_strided_slice %31 {offsets = [6, 0], sizes = [1, 64], strides = [1, 1]} : vector<8x64xf32> to vector<1x64xf32>
      %64 = arith.mulf %63, %61 : vector<1x64xf32>
      %65 = vector.extract_strided_slice %32 {offsets = [6, 0], sizes = [1, 64], strides = [1, 1]} : vector<8x64xf32> to vector<1x64xf32>
      %66 = arith.addf %64, %65 : vector<1x64xf32>
      %c6 = arith.constant 6 : index
      %c0_24 = arith.constant 0 : index
      %67 = vector.load %arg9[%c6, %c0_24] : memref<8x64xf32, #tpu.memory_space<vmem>>, vector<1x64xf32>
      tpu.vector_store %arg9[%c6, %c0_24], %66 {strides = array<i32>} : memref<8x64xf32, #tpu.memory_space<vmem>>, vector<1x64xf32>,
      %68 = vector.extract_strided_slice %31 {offsets = [7, 0], sizes = [1, 64], strides = [1, 1]} : vector<8x64xf32> to vector<1x64xf32>
      %69 = arith.mulf %68, %66 : vector<1x64xf32>
      %70 = vector.extract_strided_slice %32 {offsets = [7, 0], sizes = [1, 64], strides = [1, 1]} : vector<8x64xf32> to vector<1x64xf32>
      %71 = arith.addf %69, %70 : vector<1x64xf32>
      %c7 = arith.constant 7 : index
      %c0_25 = arith.constant 0 : index
      %72 = vector.load %arg9[%c7, %c0_25] : memref<8x64xf32, #tpu.memory_space<vmem>>, vector<1x64xf32>
      tpu.vector_store %arg9[%c7, %c0_25], %71 {strides = array<i32>} : memref<8x64xf32, #tpu.memory_space<vmem>>, vector<1x64xf32>,
      %c0_26 = arith.constant 0 : index
      %c0_27 = arith.constant 0 : index
      %73 = vector.load %arg9[%c0_26, %c0_27] : memref<8x64xf32, #tpu.memory_space<vmem>>, vector<8x64xf32>
      %c0_28 = arith.constant 0 : index
      %74 = arith.index_cast %10 : i32 to index
      %c0_29 = arith.constant 0 : index
      %75 = vector.load %arg7[%c0_28, %74, %c0_29] : memref<1x64x64xf32, #tpu.memory_space<vmem>>, vector<1x8x64xf32>
      %76 = vector.shape_cast %75 : vector<1x8x64xf32> to vector<8x64xf32>
      %77 = vector.shape_cast %73 : vector<8x64xf32> to vector<1x8x64xf32>
      tpu.vector_store %arg7[%c0_28, %74, %c0_29], %77 {strides = array<i32>} : memref<1x64x64xf32, #tpu.memory_space<vmem>>, vector<1x8x64xf32>,
      scf.yield %71 : vector<1x64xf32>
    }
    %c8_i32_7 = arith.constant 8 : i32
    %c0_8 = arith.constant 0 : index
    %c0_9 = arith.constant 0 : index
    %8 = vector.load %arg8[%c0_8, %c0_9] : memref<1x64xf32, #tpu.memory_space<vmem>>, vector<1x64xf32>
    tpu.vector_store %arg8[%c0_8, %c0_9], %7 {strides = array<i32>} : memref<1x64xf32, #tpu.memory_space<vmem>>, vector<1x64xf32>,
    return
  }
  func.func @transform_0(%arg0: i32, %arg1: i32, %arg2: i32) -> (i32, i32, i32) {
    %c0_i32 = arith.constant 0 : i32
    return %arg0, %arg2, %arg1 : i32, i32, i32
  }
  func.func @transform_1(%arg0: i32, %arg1: i32, %arg2: i32) -> (i32, i32, i32) {
    %c0_i32 = arith.constant 0 : i32
    return %arg0, %arg2, %arg1 : i32, i32, i32
  }
  func.func @transform_2(%arg0: i32, %arg1: i32, %arg2: i32) -> (i32, i32) {
    %c0_i32 = arith.constant 0 : i32
    %c0_i32_0 = arith.constant 0 : i32
    return %c0_i32, %arg1 : i32, i32
  }
  func.func @transform_3(%arg0: i32, %arg1: i32, %arg2: i32) -> (i32, i32) {
    %c0_i32 = arith.constant 0 : i32
    %c0_i32_0 = arith.constant 0 : i32
    return %c0_i32, %arg1 : i32, i32
  }
  func.func @transform_4(%arg0: i32, %arg1: i32, %arg2: i32) -> (i32, i32, i32) {
    %c0_i32 = arith.constant 0 : i32
    return %arg0, %arg2, %arg1 : i32, i32, i32
  }
}

module attributes {stable_mosaic.version = 11 : i64} {
  func.func @_statefusion_kernel(%arg0: i32, %arg1: i32, %arg2: memref<1x18x18x64xf32, #tpu.memory_space<vmem>>, %arg3: memref<3x3x64xf32, #tpu.memory_space<vmem>>, %arg4: memref<3x3x64xf32, #tpu.memory_space<vmem>>, %arg5: memref<3x3x64xf32, #tpu.memory_space<vmem>>, %arg6: memref<1x8x8x64xf32, #tpu.memory_space<vmem>>) attributes {dimension_semantics = [#tpu.dimension_semantics<parallel>, #tpu.dimension_semantics<parallel>], iteration_bounds = array<i64: 2, 1>, scalar_prefetch = 0 : i64, scratch_operands = 0 : i64, tpu.core_type = #tpu.core_type<tc>, window_params = [{transform_indices = @transform_0, window_bounds = array<i64: 1, 18, 18, 64>}, {transform_indices = @transform_1, window_bounds = array<i64: 3, 3, 64>}, {transform_indices = @transform_2, window_bounds = array<i64: 3, 3, 64>}, {transform_indices = @transform_3, window_bounds = array<i64: 3, 3, 64>}, {transform_indices = @transform_4, window_bounds = array<i64: 1, 8, 8, 64>}]} {
    %c0 = arith.constant 0 : index
    %c0_0 = arith.constant 0 : index
    %c0_1 = arith.constant 0 : index
    %c0_2 = arith.constant 0 : index
    %0 = vector.load %arg2[%c0, %c0_0, %c0_1, %c0_2] : memref<1x18x18x64xf32, #tpu.memory_space<vmem>>, vector<1x18x18x64xf32>
    %1 = vector.shape_cast %0 : vector<1x18x18x64xf32> to vector<18x18x64xf32>
    %cst = arith.constant 0.000000e+00 : f32
    %2 = vector.broadcast %cst : f32 to vector<8x8x64xf32>
    %c0_3 = arith.constant 0 : index
    %c0_4 = arith.constant 0 : index
    %c0_5 = arith.constant 0 : index
    %3 = vector.load %arg3[%c0_3, %c0_4, %c0_5] : memref<3x3x64xf32, #tpu.memory_space<vmem>>, vector<3x3x64xf32>
    %4 = vector.extract_strided_slice %1 {offsets = [4, 4, 0], sizes = [8, 8, 64], strides = [1, 1, 1]} : vector<18x18x64xf32> to vector<8x8x64xf32>
    %5 = vector.extract_strided_slice %3 {offsets = [0, 0, 0], sizes = [1, 1, 64], strides = [1, 1, 1]} : vector<3x3x64xf32> to vector<1x1x64xf32>
    %6 = vector.shape_cast %5 : vector<1x1x64xf32> to vector<64xf32>
    %7 = vector.shape_cast %6 : vector<64xf32> to vector<1x1x64xf32>
    %8 = vector.broadcast %7 : vector<1x1x64xf32> to vector<8x8x64xf32>
    %9 = arith.mulf %4, %8 : vector<8x8x64xf32>
    %10 = arith.addf %2, %9 : vector<8x8x64xf32>
    %11 = vector.extract_strided_slice %1 {offsets = [4, 5, 0], sizes = [8, 8, 64], strides = [1, 1, 1]} : vector<18x18x64xf32> to vector<8x8x64xf32>
    %12 = vector.extract_strided_slice %3 {offsets = [0, 1, 0], sizes = [1, 1, 64], strides = [1, 1, 1]} : vector<3x3x64xf32> to vector<1x1x64xf32>
    %13 = vector.shape_cast %12 : vector<1x1x64xf32> to vector<64xf32>
    %14 = vector.shape_cast %13 : vector<64xf32> to vector<1x1x64xf32>
    %15 = vector.broadcast %14 : vector<1x1x64xf32> to vector<8x8x64xf32>
    %16 = arith.mulf %11, %15 : vector<8x8x64xf32>
    %17 = arith.addf %10, %16 : vector<8x8x64xf32>
    %18 = vector.extract_strided_slice %1 {offsets = [4, 6, 0], sizes = [8, 8, 64], strides = [1, 1, 1]} : vector<18x18x64xf32> to vector<8x8x64xf32>
    %19 = vector.extract_strided_slice %3 {offsets = [0, 2, 0], sizes = [1, 1, 64], strides = [1, 1, 1]} : vector<3x3x64xf32> to vector<1x1x64xf32>
    %20 = vector.shape_cast %19 : vector<1x1x64xf32> to vector<64xf32>
    %21 = vector.shape_cast %20 : vector<64xf32> to vector<1x1x64xf32>
    %22 = vector.broadcast %21 : vector<1x1x64xf32> to vector<8x8x64xf32>
    %23 = arith.mulf %18, %22 : vector<8x8x64xf32>
    %24 = arith.addf %17, %23 : vector<8x8x64xf32>
    %25 = vector.extract_strided_slice %1 {offsets = [5, 4, 0], sizes = [8, 8, 64], strides = [1, 1, 1]} : vector<18x18x64xf32> to vector<8x8x64xf32>
    %26 = vector.extract_strided_slice %3 {offsets = [1, 0, 0], sizes = [1, 1, 64], strides = [1, 1, 1]} : vector<3x3x64xf32> to vector<1x1x64xf32>
    %27 = vector.shape_cast %26 : vector<1x1x64xf32> to vector<64xf32>
    %28 = vector.shape_cast %27 : vector<64xf32> to vector<1x1x64xf32>
    %29 = vector.broadcast %28 : vector<1x1x64xf32> to vector<8x8x64xf32>
    %30 = arith.mulf %25, %29 : vector<8x8x64xf32>
    %31 = arith.addf %24, %30 : vector<8x8x64xf32>
    %32 = vector.extract_strided_slice %1 {offsets = [5, 5, 0], sizes = [8, 8, 64], strides = [1, 1, 1]} : vector<18x18x64xf32> to vector<8x8x64xf32>
    %33 = vector.extract_strided_slice %3 {offsets = [1, 1, 0], sizes = [1, 1, 64], strides = [1, 1, 1]} : vector<3x3x64xf32> to vector<1x1x64xf32>
    %34 = vector.shape_cast %33 : vector<1x1x64xf32> to vector<64xf32>
    %35 = vector.shape_cast %34 : vector<64xf32> to vector<1x1x64xf32>
    %36 = vector.broadcast %35 : vector<1x1x64xf32> to vector<8x8x64xf32>
    %37 = arith.mulf %32, %36 : vector<8x8x64xf32>
    %38 = arith.addf %31, %37 : vector<8x8x64xf32>
    %39 = vector.extract_strided_slice %1 {offsets = [5, 6, 0], sizes = [8, 8, 64], strides = [1, 1, 1]} : vector<18x18x64xf32> to vector<8x8x64xf32>
    %40 = vector.extract_strided_slice %3 {offsets = [1, 2, 0], sizes = [1, 1, 64], strides = [1, 1, 1]} : vector<3x3x64xf32> to vector<1x1x64xf32>
    %41 = vector.shape_cast %40 : vector<1x1x64xf32> to vector<64xf32>
    %42 = vector.shape_cast %41 : vector<64xf32> to vector<1x1x64xf32>
    %43 = vector.broadcast %42 : vector<1x1x64xf32> to vector<8x8x64xf32>
    %44 = arith.mulf %39, %43 : vector<8x8x64xf32>
    %45 = arith.addf %38, %44 : vector<8x8x64xf32>
    %46 = vector.extract_strided_slice %1 {offsets = [6, 4, 0], sizes = [8, 8, 64], strides = [1, 1, 1]} : vector<18x18x64xf32> to vector<8x8x64xf32>
    %47 = vector.extract_strided_slice %3 {offsets = [2, 0, 0], sizes = [1, 1, 64], strides = [1, 1, 1]} : vector<3x3x64xf32> to vector<1x1x64xf32>
    %48 = vector.shape_cast %47 : vector<1x1x64xf32> to vector<64xf32>
    %49 = vector.shape_cast %48 : vector<64xf32> to vector<1x1x64xf32>
    %50 = vector.broadcast %49 : vector<1x1x64xf32> to vector<8x8x64xf32>
    %51 = arith.mulf %46, %50 : vector<8x8x64xf32>
    %52 = arith.addf %45, %51 : vector<8x8x64xf32>
    %53 = vector.extract_strided_slice %1 {offsets = [6, 5, 0], sizes = [8, 8, 64], strides = [1, 1, 1]} : vector<18x18x64xf32> to vector<8x8x64xf32>
    %54 = vector.extract_strided_slice %3 {offsets = [2, 1, 0], sizes = [1, 1, 64], strides = [1, 1, 1]} : vector<3x3x64xf32> to vector<1x1x64xf32>
    %55 = vector.shape_cast %54 : vector<1x1x64xf32> to vector<64xf32>
    %56 = vector.shape_cast %55 : vector<64xf32> to vector<1x1x64xf32>
    %57 = vector.broadcast %56 : vector<1x1x64xf32> to vector<8x8x64xf32>
    %58 = arith.mulf %53, %57 : vector<8x8x64xf32>
    %59 = arith.addf %52, %58 : vector<8x8x64xf32>
    %60 = vector.extract_strided_slice %1 {offsets = [6, 6, 0], sizes = [8, 8, 64], strides = [1, 1, 1]} : vector<18x18x64xf32> to vector<8x8x64xf32>
    %61 = vector.extract_strided_slice %3 {offsets = [2, 2, 0], sizes = [1, 1, 64], strides = [1, 1, 1]} : vector<3x3x64xf32> to vector<1x1x64xf32>
    %62 = vector.shape_cast %61 : vector<1x1x64xf32> to vector<64xf32>
    %63 = vector.shape_cast %62 : vector<64xf32> to vector<1x1x64xf32>
    %64 = vector.broadcast %63 : vector<1x1x64xf32> to vector<8x8x64xf32>
    %65 = arith.mulf %60, %64 : vector<8x8x64xf32>
    %66 = arith.addf %59, %65 : vector<8x8x64xf32>
    %c0_6 = arith.constant 0 : index
    %c0_7 = arith.constant 0 : index
    %c0_8 = arith.constant 0 : index
    %67 = vector.load %arg4[%c0_6, %c0_7, %c0_8] : memref<3x3x64xf32, #tpu.memory_space<vmem>>, vector<3x3x64xf32>
    %68 = vector.extract_strided_slice %1 {offsets = [2, 2, 0], sizes = [8, 8, 64], strides = [1, 1, 1]} : vector<18x18x64xf32> to vector<8x8x64xf32>
    %69 = vector.extract_strided_slice %67 {offsets = [0, 0, 0], sizes = [1, 1, 64], strides = [1, 1, 1]} : vector<3x3x64xf32> to vector<1x1x64xf32>
    %70 = vector.shape_cast %69 : vector<1x1x64xf32> to vector<64xf32>
    %71 = vector.shape_cast %70 : vector<64xf32> to vector<1x1x64xf32>
    %72 = vector.broadcast %71 : vector<1x1x64xf32> to vector<8x8x64xf32>
    %73 = arith.mulf %68, %72 : vector<8x8x64xf32>
    %74 = arith.addf %66, %73 : vector<8x8x64xf32>
    %75 = vector.extract_strided_slice %1 {offsets = [2, 5, 0], sizes = [8, 8, 64], strides = [1, 1, 1]} : vector<18x18x64xf32> to vector<8x8x64xf32>
    %76 = vector.extract_strided_slice %67 {offsets = [0, 1, 0], sizes = [1, 1, 64], strides = [1, 1, 1]} : vector<3x3x64xf32> to vector<1x1x64xf32>
    %77 = vector.shape_cast %76 : vector<1x1x64xf32> to vector<64xf32>
    %78 = vector.shape_cast %77 : vector<64xf32> to vector<1x1x64xf32>
    %79 = vector.broadcast %78 : vector<1x1x64xf32> to vector<8x8x64xf32>
    %80 = arith.mulf %75, %79 : vector<8x8x64xf32>
    %81 = arith.addf %74, %80 : vector<8x8x64xf32>
    %82 = vector.extract_strided_slice %1 {offsets = [2, 8, 0], sizes = [8, 8, 64], strides = [1, 1, 1]} : vector<18x18x64xf32> to vector<8x8x64xf32>
    %83 = vector.extract_strided_slice %67 {offsets = [0, 2, 0], sizes = [1, 1, 64], strides = [1, 1, 1]} : vector<3x3x64xf32> to vector<1x1x64xf32>
    %84 = vector.shape_cast %83 : vector<1x1x64xf32> to vector<64xf32>
    %85 = vector.shape_cast %84 : vector<64xf32> to vector<1x1x64xf32>
    %86 = vector.broadcast %85 : vector<1x1x64xf32> to vector<8x8x64xf32>
    %87 = arith.mulf %82, %86 : vector<8x8x64xf32>
    %88 = arith.addf %81, %87 : vector<8x8x64xf32>
    %89 = vector.extract_strided_slice %1 {offsets = [5, 2, 0], sizes = [8, 8, 64], strides = [1, 1, 1]} : vector<18x18x64xf32> to vector<8x8x64xf32>
    %90 = vector.extract_strided_slice %67 {offsets = [1, 0, 0], sizes = [1, 1, 64], strides = [1, 1, 1]} : vector<3x3x64xf32> to vector<1x1x64xf32>
    %91 = vector.shape_cast %90 : vector<1x1x64xf32> to vector<64xf32>
    %92 = vector.shape_cast %91 : vector<64xf32> to vector<1x1x64xf32>
    %93 = vector.broadcast %92 : vector<1x1x64xf32> to vector<8x8x64xf32>
    %94 = arith.mulf %89, %93 : vector<8x8x64xf32>
    %95 = arith.addf %88, %94 : vector<8x8x64xf32>
    %96 = vector.extract_strided_slice %1 {offsets = [5, 5, 0], sizes = [8, 8, 64], strides = [1, 1, 1]} : vector<18x18x64xf32> to vector<8x8x64xf32>
    %97 = vector.extract_strided_slice %67 {offsets = [1, 1, 0], sizes = [1, 1, 64], strides = [1, 1, 1]} : vector<3x3x64xf32> to vector<1x1x64xf32>
    %98 = vector.shape_cast %97 : vector<1x1x64xf32> to vector<64xf32>
    %99 = vector.shape_cast %98 : vector<64xf32> to vector<1x1x64xf32>
    %100 = vector.broadcast %99 : vector<1x1x64xf32> to vector<8x8x64xf32>
    %101 = arith.mulf %96, %100 : vector<8x8x64xf32>
    %102 = arith.addf %95, %101 : vector<8x8x64xf32>
    %103 = vector.extract_strided_slice %1 {offsets = [5, 8, 0], sizes = [8, 8, 64], strides = [1, 1, 1]} : vector<18x18x64xf32> to vector<8x8x64xf32>
    %104 = vector.extract_strided_slice %67 {offsets = [1, 2, 0], sizes = [1, 1, 64], strides = [1, 1, 1]} : vector<3x3x64xf32> to vector<1x1x64xf32>
    %105 = vector.shape_cast %104 : vector<1x1x64xf32> to vector<64xf32>
    %106 = vector.shape_cast %105 : vector<64xf32> to vector<1x1x64xf32>
    %107 = vector.broadcast %106 : vector<1x1x64xf32> to vector<8x8x64xf32>
    %108 = arith.mulf %103, %107 : vector<8x8x64xf32>
    %109 = arith.addf %102, %108 : vector<8x8x64xf32>
    %110 = vector.extract_strided_slice %1 {offsets = [8, 2, 0], sizes = [8, 8, 64], strides = [1, 1, 1]} : vector<18x18x64xf32> to vector<8x8x64xf32>
    %111 = vector.extract_strided_slice %67 {offsets = [2, 0, 0], sizes = [1, 1, 64], strides = [1, 1, 1]} : vector<3x3x64xf32> to vector<1x1x64xf32>
    %112 = vector.shape_cast %111 : vector<1x1x64xf32> to vector<64xf32>
    %113 = vector.shape_cast %112 : vector<64xf32> to vector<1x1x64xf32>
    %114 = vector.broadcast %113 : vector<1x1x64xf32> to vector<8x8x64xf32>
    %115 = arith.mulf %110, %114 : vector<8x8x64xf32>
    %116 = arith.addf %109, %115 : vector<8x8x64xf32>
    %117 = vector.extract_strided_slice %1 {offsets = [8, 5, 0], sizes = [8, 8, 64], strides = [1, 1, 1]} : vector<18x18x64xf32> to vector<8x8x64xf32>
    %118 = vector.extract_strided_slice %67 {offsets = [2, 1, 0], sizes = [1, 1, 64], strides = [1, 1, 1]} : vector<3x3x64xf32> to vector<1x1x64xf32>
    %119 = vector.shape_cast %118 : vector<1x1x64xf32> to vector<64xf32>
    %120 = vector.shape_cast %119 : vector<64xf32> to vector<1x1x64xf32>
    %121 = vector.broadcast %120 : vector<1x1x64xf32> to vector<8x8x64xf32>
    %122 = arith.mulf %117, %121 : vector<8x8x64xf32>
    %123 = arith.addf %116, %122 : vector<8x8x64xf32>
    %124 = vector.extract_strided_slice %1 {offsets = [8, 8, 0], sizes = [8, 8, 64], strides = [1, 1, 1]} : vector<18x18x64xf32> to vector<8x8x64xf32>
    %125 = vector.extract_strided_slice %67 {offsets = [2, 2, 0], sizes = [1, 1, 64], strides = [1, 1, 1]} : vector<3x3x64xf32> to vector<1x1x64xf32>
    %126 = vector.shape_cast %125 : vector<1x1x64xf32> to vector<64xf32>
    %127 = vector.shape_cast %126 : vector<64xf32> to vector<1x1x64xf32>
    %128 = vector.broadcast %127 : vector<1x1x64xf32> to vector<8x8x64xf32>
    %129 = arith.mulf %124, %128 : vector<8x8x64xf32>
    %130 = arith.addf %123, %129 : vector<8x8x64xf32>
    %c0_9 = arith.constant 0 : index
    %c0_10 = arith.constant 0 : index
    %c0_11 = arith.constant 0 : index
    %131 = vector.load %arg5[%c0_9, %c0_10, %c0_11] : memref<3x3x64xf32, #tpu.memory_space<vmem>>, vector<3x3x64xf32>
    %132 = vector.extract_strided_slice %1 {offsets = [0, 0, 0], sizes = [8, 8, 64], strides = [1, 1, 1]} : vector<18x18x64xf32> to vector<8x8x64xf32>
    %133 = vector.extract_strided_slice %131 {offsets = [0, 0, 0], sizes = [1, 1, 64], strides = [1, 1, 1]} : vector<3x3x64xf32> to vector<1x1x64xf32>
    %134 = vector.shape_cast %133 : vector<1x1x64xf32> to vector<64xf32>
    %135 = vector.shape_cast %134 : vector<64xf32> to vector<1x1x64xf32>
    %136 = vector.broadcast %135 : vector<1x1x64xf32> to vector<8x8x64xf32>
    %137 = arith.mulf %132, %136 : vector<8x8x64xf32>
    %138 = arith.addf %130, %137 : vector<8x8x64xf32>
    %139 = vector.extract_strided_slice %1 {offsets = [0, 5, 0], sizes = [8, 8, 64], strides = [1, 1, 1]} : vector<18x18x64xf32> to vector<8x8x64xf32>
    %140 = vector.extract_strided_slice %131 {offsets = [0, 1, 0], sizes = [1, 1, 64], strides = [1, 1, 1]} : vector<3x3x64xf32> to vector<1x1x64xf32>
    %141 = vector.shape_cast %140 : vector<1x1x64xf32> to vector<64xf32>
    %142 = vector.shape_cast %141 : vector<64xf32> to vector<1x1x64xf32>
    %143 = vector.broadcast %142 : vector<1x1x64xf32> to vector<8x8x64xf32>
    %144 = arith.mulf %139, %143 : vector<8x8x64xf32>
    %145 = arith.addf %138, %144 : vector<8x8x64xf32>
    %146 = vector.extract_strided_slice %1 {offsets = [0, 10, 0], sizes = [8, 8, 64], strides = [1, 1, 1]} : vector<18x18x64xf32> to vector<8x8x64xf32>
    %147 = vector.extract_strided_slice %131 {offsets = [0, 2, 0], sizes = [1, 1, 64], strides = [1, 1, 1]} : vector<3x3x64xf32> to vector<1x1x64xf32>
    %148 = vector.shape_cast %147 : vector<1x1x64xf32> to vector<64xf32>
    %149 = vector.shape_cast %148 : vector<64xf32> to vector<1x1x64xf32>
    %150 = vector.broadcast %149 : vector<1x1x64xf32> to vector<8x8x64xf32>
    %151 = arith.mulf %146, %150 : vector<8x8x64xf32>
    %152 = arith.addf %145, %151 : vector<8x8x64xf32>
    %153 = vector.extract_strided_slice %1 {offsets = [5, 0, 0], sizes = [8, 8, 64], strides = [1, 1, 1]} : vector<18x18x64xf32> to vector<8x8x64xf32>
    %154 = vector.extract_strided_slice %131 {offsets = [1, 0, 0], sizes = [1, 1, 64], strides = [1, 1, 1]} : vector<3x3x64xf32> to vector<1x1x64xf32>
    %155 = vector.shape_cast %154 : vector<1x1x64xf32> to vector<64xf32>
    %156 = vector.shape_cast %155 : vector<64xf32> to vector<1x1x64xf32>
    %157 = vector.broadcast %156 : vector<1x1x64xf32> to vector<8x8x64xf32>
    %158 = arith.mulf %153, %157 : vector<8x8x64xf32>
    %159 = arith.addf %152, %158 : vector<8x8x64xf32>
    %160 = vector.extract_strided_slice %1 {offsets = [5, 5, 0], sizes = [8, 8, 64], strides = [1, 1, 1]} : vector<18x18x64xf32> to vector<8x8x64xf32>
    %161 = vector.extract_strided_slice %131 {offsets = [1, 1, 0], sizes = [1, 1, 64], strides = [1, 1, 1]} : vector<3x3x64xf32> to vector<1x1x64xf32>
    %162 = vector.shape_cast %161 : vector<1x1x64xf32> to vector<64xf32>
    %163 = vector.shape_cast %162 : vector<64xf32> to vector<1x1x64xf32>
    %164 = vector.broadcast %163 : vector<1x1x64xf32> to vector<8x8x64xf32>
    %165 = arith.mulf %160, %164 : vector<8x8x64xf32>
    %166 = arith.addf %159, %165 : vector<8x8x64xf32>
    %167 = vector.extract_strided_slice %1 {offsets = [5, 10, 0], sizes = [8, 8, 64], strides = [1, 1, 1]} : vector<18x18x64xf32> to vector<8x8x64xf32>
    %168 = vector.extract_strided_slice %131 {offsets = [1, 2, 0], sizes = [1, 1, 64], strides = [1, 1, 1]} : vector<3x3x64xf32> to vector<1x1x64xf32>
    %169 = vector.shape_cast %168 : vector<1x1x64xf32> to vector<64xf32>
    %170 = vector.shape_cast %169 : vector<64xf32> to vector<1x1x64xf32>
    %171 = vector.broadcast %170 : vector<1x1x64xf32> to vector<8x8x64xf32>
    %172 = arith.mulf %167, %171 : vector<8x8x64xf32>
    %173 = arith.addf %166, %172 : vector<8x8x64xf32>
    %174 = vector.extract_strided_slice %1 {offsets = [10, 0, 0], sizes = [8, 8, 64], strides = [1, 1, 1]} : vector<18x18x64xf32> to vector<8x8x64xf32>
    %175 = vector.extract_strided_slice %131 {offsets = [2, 0, 0], sizes = [1, 1, 64], strides = [1, 1, 1]} : vector<3x3x64xf32> to vector<1x1x64xf32>
    %176 = vector.shape_cast %175 : vector<1x1x64xf32> to vector<64xf32>
    %177 = vector.shape_cast %176 : vector<64xf32> to vector<1x1x64xf32>
    %178 = vector.broadcast %177 : vector<1x1x64xf32> to vector<8x8x64xf32>
    %179 = arith.mulf %174, %178 : vector<8x8x64xf32>
    %180 = arith.addf %173, %179 : vector<8x8x64xf32>
    %181 = vector.extract_strided_slice %1 {offsets = [10, 5, 0], sizes = [8, 8, 64], strides = [1, 1, 1]} : vector<18x18x64xf32> to vector<8x8x64xf32>
    %182 = vector.extract_strided_slice %131 {offsets = [2, 1, 0], sizes = [1, 1, 64], strides = [1, 1, 1]} : vector<3x3x64xf32> to vector<1x1x64xf32>
    %183 = vector.shape_cast %182 : vector<1x1x64xf32> to vector<64xf32>
    %184 = vector.shape_cast %183 : vector<64xf32> to vector<1x1x64xf32>
    %185 = vector.broadcast %184 : vector<1x1x64xf32> to vector<8x8x64xf32>
    %186 = arith.mulf %181, %185 : vector<8x8x64xf32>
    %187 = arith.addf %180, %186 : vector<8x8x64xf32>
    %188 = vector.extract_strided_slice %1 {offsets = [10, 10, 0], sizes = [8, 8, 64], strides = [1, 1, 1]} : vector<18x18x64xf32> to vector<8x8x64xf32>
    %189 = vector.extract_strided_slice %131 {offsets = [2, 2, 0], sizes = [1, 1, 64], strides = [1, 1, 1]} : vector<3x3x64xf32> to vector<1x1x64xf32>
    %190 = vector.shape_cast %189 : vector<1x1x64xf32> to vector<64xf32>
    %191 = vector.shape_cast %190 : vector<64xf32> to vector<1x1x64xf32>
    %192 = vector.broadcast %191 : vector<1x1x64xf32> to vector<8x8x64xf32>
    %193 = arith.mulf %188, %192 : vector<8x8x64xf32>
    %194 = arith.addf %187, %193 : vector<8x8x64xf32>
    %c0_12 = arith.constant 0 : index
    %c0_13 = arith.constant 0 : index
    %c0_14 = arith.constant 0 : index
    %c0_15 = arith.constant 0 : index
    %195 = vector.load %arg6[%c0_12, %c0_13, %c0_14, %c0_15] : memref<1x8x8x64xf32, #tpu.memory_space<vmem>>, vector<1x8x8x64xf32>
    %196 = vector.shape_cast %195 : vector<1x8x8x64xf32> to vector<8x8x64xf32>
    %197 = vector.shape_cast %194 : vector<8x8x64xf32> to vector<1x8x8x64xf32>
    tpu.vector_store %arg6[%c0_12, %c0_13, %c0_14, %c0_15], %197 {strides = array<i32>} : memref<1x8x8x64xf32, #tpu.memory_space<vmem>>, vector<1x8x8x64xf32>,
    return
  }
  func.func @transform_0(%arg0: i32, %arg1: i32) -> (i32, i32, i32, i32) {
    %c0_i32 = arith.constant 0 : i32
    %c0_i32_0 = arith.constant 0 : i32
    %c0_i32_1 = arith.constant 0 : i32
    return %arg0, %c0_i32, %c0_i32_0, %arg1 : i32, i32, i32, i32
  }
  func.func @transform_1(%arg0: i32, %arg1: i32) -> (i32, i32, i32) {
    %c0_i32 = arith.constant 0 : i32
    %c0_i32_0 = arith.constant 0 : i32
    %c0_i32_1 = arith.constant 0 : i32
    return %c0_i32, %c0_i32_0, %arg1 : i32, i32, i32
  }
  func.func @transform_2(%arg0: i32, %arg1: i32) -> (i32, i32, i32) {
    %c0_i32 = arith.constant 0 : i32
    %c0_i32_0 = arith.constant 0 : i32
    %c0_i32_1 = arith.constant 0 : i32
    return %c0_i32, %c0_i32_0, %arg1 : i32, i32, i32
  }
  func.func @transform_3(%arg0: i32, %arg1: i32) -> (i32, i32, i32) {
    %c0_i32 = arith.constant 0 : i32
    %c0_i32_0 = arith.constant 0 : i32
    %c0_i32_1 = arith.constant 0 : i32
    return %c0_i32, %c0_i32_0, %arg1 : i32, i32, i32
  }
  func.func @transform_4(%arg0: i32, %arg1: i32) -> (i32, i32, i32, i32) {
    %c0_i32 = arith.constant 0 : i32
    %c0_i32_0 = arith.constant 0 : i32
    %c0_i32_1 = arith.constant 0 : i32
    return %arg0, %c0_i32, %c0_i32_0, %arg1 : i32, i32, i32, i32
  }
}

module attributes {stable_mosaic.version = 11 : i64} {
  func.func @_tail_kernel(%arg0: i32, %arg1: memref<128x64xf32, #tpu.memory_space<vmem>>, %arg2: memref<128x1xf32, #tpu.memory_space<vmem>>, %arg3: memref<128x64xf32, #tpu.memory_space<vmem>>, %arg4: memref<1x64xf32, #tpu.memory_space<vmem>>, %arg5: memref<1x64xf32, #tpu.memory_space<vmem>>, %arg6: memref<1x64xf32, #tpu.memory_space<vmem>>, %arg7: memref<128x64xf32, #tpu.memory_space<vmem>>, %arg8: memref<128x64xf32, #tpu.memory_space<vmem>>) attributes {dimension_semantics = [#tpu.dimension_semantics<parallel>], iteration_bounds = array<i64: 1>, scalar_prefetch = 0 : i64, scratch_operands = 0 : i64, tpu.core_type = #tpu.core_type<tc>, window_params = [{transform_indices = @transform_0, window_bounds = array<i64: 128, 64>}, {transform_indices = @transform_1, window_bounds = array<i64: 128, 1>}, {transform_indices = @transform_2, window_bounds = array<i64: 128, 64>}, {pipeline_mode = #tpu.pipeline_mode<synchronous>, transform_indices = @transform_3, window_bounds = array<i64: 1, 64>}, {pipeline_mode = #tpu.pipeline_mode<synchronous>, transform_indices = @transform_4, window_bounds = array<i64: 1, 64>}, {pipeline_mode = #tpu.pipeline_mode<synchronous>, transform_indices = @transform_5, window_bounds = array<i64: 1, 64>}, {transform_indices = @transform_6, window_bounds = array<i64: 128, 64>}, {transform_indices = @transform_7, window_bounds = array<i64: 128, 64>}]} {
    %c0 = arith.constant 0 : index
    %c0_0 = arith.constant 0 : index
    %0 = vector.load %arg1[%c0, %c0_0] : memref<128x64xf32, #tpu.memory_space<vmem>>, vector<128x64xf32>
    %c0_1 = arith.constant 0 : index
    %c0_2 = arith.constant 0 : index
    %1 = vector.load %arg2[%c0_1, %c0_2] : memref<128x1xf32, #tpu.memory_space<vmem>>, vector<128x1xf32>
    %2 = vector.broadcast %1 : vector<128x1xf32> to vector<128x64xf32>
    %3 = arith.mulf %0, %2 : vector<128x64xf32>
    %c0_3 = arith.constant 0 : index
    %c0_4 = arith.constant 0 : index
    %4 = vector.load %arg3[%c0_3, %c0_4] : memref<128x64xf32, #tpu.memory_space<vmem>>, vector<128x64xf32>
    %c0_5 = arith.constant 0 : index
    %c0_6 = arith.constant 0 : index
    %5 = vector.load %arg4[%c0_5, %c0_6] : memref<1x64xf32, #tpu.memory_space<vmem>>, vector<1x64xf32>
    %6 = vector.broadcast %5 : vector<1x64xf32> to vector<128x64xf32>
    %7 = arith.mulf %4, %6 : vector<128x64xf32>
    %8 = arith.addf %3, %7 : vector<128x64xf32>
    %cst = arith.constant dense<0.000000e+00> : vector<128xf32>
    %9 = vector.multi_reduction <add>, %8, %cst [1] : vector<128x64xf32> to vector<128xf32>
    %10 = vector.shape_cast %9 : vector<128xf32> to vector<128x1xf32>
    %cst_7 = arith.constant 6.400000e+01 : f32
    %11 = vector.broadcast %cst_7 : f32 to vector<128x1xf32>
    %12 = arith.divf %10, %11 : vector<128x1xf32>
    %13 = vector.broadcast %12 : vector<128x1xf32> to vector<128x64xf32>
    %14 = arith.subf %8, %13 : vector<128x64xf32>
    %15 = arith.mulf %14, %14 : vector<128x64xf32>
    %cst_8 = arith.constant dense<0.000000e+00> : vector<128xf32>
    %16 = vector.multi_reduction <add>, %15, %cst_8 [1] : vector<128x64xf32> to vector<128xf32>
    %17 = vector.shape_cast %16 : vector<128xf32> to vector<128x1xf32>
    %cst_9 = arith.constant 6.400000e+01 : f32
    %18 = vector.broadcast %cst_9 : f32 to vector<128x1xf32>
    %19 = arith.divf %17, %18 : vector<128x1xf32>
    %cst_10 = arith.constant 9.99999974E-6 : f32
    %20 = vector.broadcast %cst_10 : f32 to vector<128x1xf32>
    %21 = arith.addf %19, %20 : vector<128x1xf32>
    %22 = math.rsqrt %21 : vector<128x1xf32>
    %23 = vector.broadcast %22 : vector<128x1xf32> to vector<128x64xf32>
    %24 = arith.mulf %14, %23 : vector<128x64xf32>
    %c0_11 = arith.constant 0 : index
    %c0_12 = arith.constant 0 : index
    %25 = vector.load %arg5[%c0_11, %c0_12] : memref<1x64xf32, #tpu.memory_space<vmem>>, vector<1x64xf32>
    %26 = vector.broadcast %25 : vector<1x64xf32> to vector<128x64xf32>
    %27 = arith.mulf %24, %26 : vector<128x64xf32>
    %c0_13 = arith.constant 0 : index
    %c0_14 = arith.constant 0 : index
    %28 = vector.load %arg6[%c0_13, %c0_14] : memref<1x64xf32, #tpu.memory_space<vmem>>, vector<1x64xf32>
    %29 = vector.broadcast %28 : vector<1x64xf32> to vector<128x64xf32>
    %30 = arith.addf %27, %29 : vector<128x64xf32>
    %c0_15 = arith.constant 0 : index
    %c0_16 = arith.constant 0 : index
    %31 = vector.load %arg7[%c0_15, %c0_16] : memref<128x64xf32, #tpu.memory_space<vmem>>, vector<128x64xf32>
    %cst_17 = arith.constant 0.000000e+00 : f32
    %32 = vector.broadcast %cst_17 : f32 to vector<128x64xf32>
    %33 = arith.subf %32, %31 : vector<128x64xf32>
    %34 = math.exp %33 : vector<128x64xf32>
    %cst_18 = arith.constant 1.000000e+00 : f32
    %35 = vector.broadcast %cst_18 : f32 to vector<128x64xf32>
    %36 = arith.addf %35, %34 : vector<128x64xf32>
    %cst_19 = arith.constant 1.000000e+00 : f32
    %37 = vector.broadcast %cst_19 : f32 to vector<128x64xf32>
    %38 = arith.divf %37, %36 : vector<128x64xf32>
    %39 = arith.mulf %31, %38 : vector<128x64xf32>
    %40 = arith.mulf %30, %39 : vector<128x64xf32>
    %c0_20 = arith.constant 0 : index
    %c0_21 = arith.constant 0 : index
    %41 = vector.load %arg8[%c0_20, %c0_21] : memref<128x64xf32, #tpu.memory_space<vmem>>, vector<128x64xf32>
    tpu.vector_store %arg8[%c0_20, %c0_21], %40 {strides = array<i32>} : memref<128x64xf32, #tpu.memory_space<vmem>>, vector<128x64xf32>,
    return
  }
  func.func @transform_0(%arg0: i32) -> (i32, i32) {
    %c0_i32 = arith.constant 0 : i32
    %c0_i32_0 = arith.constant 0 : i32
    return %arg0, %c0_i32 : i32, i32
  }
  func.func @transform_1(%arg0: i32) -> (i32, i32) {
    %c0_i32 = arith.constant 0 : i32
    %c0_i32_0 = arith.constant 0 : i32
    return %arg0, %c0_i32 : i32, i32
  }
  func.func @transform_2(%arg0: i32) -> (i32, i32) {
    %c0_i32 = arith.constant 0 : i32
    %c0_i32_0 = arith.constant 0 : i32
    return %arg0, %c0_i32 : i32, i32
  }
  func.func @transform_3(%arg0: i32) -> (i32, i32) {
    %c0_i32 = arith.constant 0 : i32
    %c0_i32_0 = arith.constant 0 : i32
    %c0_i32_1 = arith.constant 0 : i32
    return %c0_i32, %c0_i32_0 : i32, i32
  }
  func.func @transform_4(%arg0: i32) -> (i32, i32) {
    %c0_i32 = arith.constant 0 : i32
    %c0_i32_0 = arith.constant 0 : i32
    %c0_i32_1 = arith.constant 0 : i32
    return %c0_i32, %c0_i32_0 : i32, i32
  }
  func.func @transform_5(%arg0: i32) -> (i32, i32) {
    %c0_i32 = arith.constant 0 : i32
    %c0_i32_0 = arith.constant 0 : i32
    %c0_i32_1 = arith.constant 0 : i32
    return %c0_i32, %c0_i32_0 : i32, i32
  }
  func.func @transform_6(%arg0: i32) -> (i32, i32) {
    %c0_i32 = arith.constant 0 : i32
    %c0_i32_0 = arith.constant 0 : i32
    return %arg0, %c0_i32 : i32, i32
  }
  func.func @transform_7(%arg0: i32) -> (i32, i32) {
    %c0_i32 = arith.constant 0 : i32
    %c0_i32_0 = arith.constant 0 : i32
    return %arg0, %c0_i32 : i32, i32
  }
}

module attributes {stable_mosaic.version = 11 : i64} {
  func.func @_ln_linear_kernel(%arg0: i32, %arg1: i32, %arg2: memref<128x32xf32, #tpu.memory_space<vmem>>, %arg3: memref<1x32xf32, #tpu.memory_space<vmem>>, %arg4: memref<1x32xf32, #tpu.memory_space<vmem>>, %arg5: memref<32x128xbf16, #tpu.memory_space<vmem>>, %arg6: memref<1x128xf32, #tpu.memory_space<vmem>>, %arg7: memref<128x128xf32, #tpu.memory_space<vmem>>) attributes {dimension_semantics = [#tpu.dimension_semantics<parallel>, #tpu.dimension_semantics<parallel>], iteration_bounds = array<i64: 1, 1>, scalar_prefetch = 0 : i64, scratch_operands = 0 : i64, tpu.core_type = #tpu.core_type<tc>, window_params = [{transform_indices = @transform_0, window_bounds = array<i64: 128, 32>}, {pipeline_mode = #tpu.pipeline_mode<synchronous>, transform_indices = @transform_1, window_bounds = array<i64: 1, 32>}, {pipeline_mode = #tpu.pipeline_mode<synchronous>, transform_indices = @transform_2, window_bounds = array<i64: 1, 32>}, {transform_indices = @transform_3, window_bounds = array<i64: 32, 128>}, {transform_indices = @transform_4, window_bounds = array<i64: 1, 128>}, {transform_indices = @transform_5, window_bounds = array<i64: 128, 128>}]} {
    %c0 = arith.constant 0 : index
    %c0_0 = arith.constant 0 : index
    %0 = vector.load %arg2[%c0, %c0_0] : memref<128x32xf32, #tpu.memory_space<vmem>>, vector<128x32xf32>
    %cst = arith.constant dense<0.000000e+00> : vector<128xf32>
    %1 = vector.multi_reduction <add>, %0, %cst [1] : vector<128x32xf32> to vector<128xf32>
    %2 = vector.shape_cast %1 : vector<128xf32> to vector<128x1xf32>
    %cst_1 = arith.constant 3.200000e+01 : f32
    %3 = vector.broadcast %cst_1 : f32 to vector<128x1xf32>
    %4 = arith.divf %2, %3 : vector<128x1xf32>
    %5 = vector.broadcast %4 : vector<128x1xf32> to vector<128x32xf32>
    %6 = arith.subf %0, %5 : vector<128x32xf32>
    %7 = arith.mulf %6, %6 : vector<128x32xf32>
    %cst_2 = arith.constant dense<0.000000e+00> : vector<128xf32>
    %8 = vector.multi_reduction <add>, %7, %cst_2 [1] : vector<128x32xf32> to vector<128xf32>
    %9 = vector.shape_cast %8 : vector<128xf32> to vector<128x1xf32>
    %cst_3 = arith.constant 3.200000e+01 : f32
    %10 = vector.broadcast %cst_3 : f32 to vector<128x1xf32>
    %11 = arith.divf %9, %10 : vector<128x1xf32>
    %cst_4 = arith.constant 9.99999974E-6 : f32
    %12 = vector.broadcast %cst_4 : f32 to vector<128x1xf32>
    %13 = arith.addf %11, %12 : vector<128x1xf32>
    %14 = math.rsqrt %13 : vector<128x1xf32>
    %15 = vector.broadcast %14 : vector<128x1xf32> to vector<128x32xf32>
    %16 = arith.mulf %6, %15 : vector<128x32xf32>
    %c0_5 = arith.constant 0 : index
    %c0_6 = arith.constant 0 : index
    %17 = vector.load %arg3[%c0_5, %c0_6] : memref<1x32xf32, #tpu.memory_space<vmem>>, vector<1x32xf32>
    %18 = vector.broadcast %17 : vector<1x32xf32> to vector<128x32xf32>
    %19 = arith.mulf %16, %18 : vector<128x32xf32>
    %c0_7 = arith.constant 0 : index
    %c0_8 = arith.constant 0 : index
    %20 = vector.load %arg4[%c0_7, %c0_8] : memref<1x32xf32, #tpu.memory_space<vmem>>, vector<1x32xf32>
    %21 = vector.broadcast %20 : vector<1x32xf32> to vector<128x32xf32>
    %22 = arith.addf %19, %21 : vector<128x32xf32>
    %23 = arith.truncf %22 : vector<128x32xf32> to vector<128x32xbf16>
    %c0_9 = arith.constant 0 : index
    %c0_10 = arith.constant 0 : index
    %24 = vector.load %arg5[%c0_9, %c0_10] : memref<32x128xbf16, #tpu.memory_space<vmem>>, vector<32x128xbf16>
    %cst_11 = arith.constant dense<0.000000e+00> : vector<128x128xf32>
    %25 = tpu.matmul %23, %24, %cst_11 {dimension_numbers = #tpu.dot_dimension_numbers<[1], [0], [0], [1], [0, 0, 1, 1], [], []>} : vector<128x32xbf16>, vector<32x128xbf16>, vector<128x128xf32> -> vector<128x128xf32>
    %c0_12 = arith.constant 0 : index
    %c0_13 = arith.constant 0 : index
    %26 = vector.load %arg6[%c0_12, %c0_13] : memref<1x128xf32, #tpu.memory_space<vmem>>, vector<1x128xf32>
    %27 = vector.broadcast %26 : vector<1x128xf32> to vector<128x128xf32>
    %28 = arith.addf %25, %27 : vector<128x128xf32>
    %cst_14 = arith.constant 5.000000e-01 : f32
    %29 = vector.broadcast %cst_14 : f32 to vector<128x128xf32>
    %30 = arith.mulf %29, %28 : vector<128x128xf32>
    %cst_15 = arith.constant 4.471500e-02 : f32
    %31 = vector.broadcast %cst_15 : f32 to vector<128x128xf32>
    %32 = arith.mulf %31, %28 : vector<128x128xf32>
    %33 = arith.mulf %32, %28 : vector<128x128xf32>
    %34 = arith.mulf %33, %28 : vector<128x128xf32>
    %35 = arith.addf %28, %34 : vector<128x128xf32>
    %cst_16 = arith.constant 0.797884583 : f32
    %36 = vector.broadcast %cst_16 : f32 to vector<128x128xf32>
    %37 = arith.mulf %36, %35 : vector<128x128xf32>
    %38 = math.tanh %37 : vector<128x128xf32>
    %cst_17 = arith.constant 1.000000e+00 : f32
    %39 = vector.broadcast %cst_17 : f32 to vector<128x128xf32>
    %40 = arith.addf %39, %38 : vector<128x128xf32>
    %41 = arith.mulf %30, %40 : vector<128x128xf32>
    %c0_18 = arith.constant 0 : index
    %c0_19 = arith.constant 0 : index
    %42 = vector.load %arg7[%c0_18, %c0_19] : memref<128x128xf32, #tpu.memory_space<vmem>>, vector<128x128xf32>
    tpu.vector_store %arg7[%c0_18, %c0_19], %41 {strides = array<i32>} : memref<128x128xf32, #tpu.memory_space<vmem>>, vector<128x128xf32>,
    return
  }
  func.func @transform_0(%arg0: i32, %arg1: i32) -> (i32, i32) {
    %c0_i32 = arith.constant 0 : i32
    %c0_i32_0 = arith.constant 0 : i32
    return %arg0, %c0_i32 : i32, i32
  }
  func.func @transform_1(%arg0: i32, %arg1: i32) -> (i32, i32) {
    %c0_i32 = arith.constant 0 : i32
    %c0_i32_0 = arith.constant 0 : i32
    %c0_i32_1 = arith.constant 0 : i32
    return %c0_i32, %c0_i32_0 : i32, i32
  }
  func.func @transform_2(%arg0: i32, %arg1: i32) -> (i32, i32) {
    %c0_i32 = arith.constant 0 : i32
    %c0_i32_0 = arith.constant 0 : i32
    %c0_i32_1 = arith.constant 0 : i32
    return %c0_i32, %c0_i32_0 : i32, i32
  }
  func.func @transform_3(%arg0: i32, %arg1: i32) -> (i32, i32) {
    %c0_i32 = arith.constant 0 : i32
    %c0_i32_0 = arith.constant 0 : i32
    return %c0_i32, %arg1 : i32, i32
  }
  func.func @transform_4(%arg0: i32, %arg1: i32) -> (i32, i32) {
    %c0_i32 = arith.constant 0 : i32
    %c0_i32_0 = arith.constant 0 : i32
    return %c0_i32, %arg1 : i32, i32
  }
  func.func @transform_5(%arg0: i32, %arg1: i32) -> (i32, i32) {
    %c0_i32 = arith.constant 0 : i32
    return %arg0, %arg1 : i32, i32
  }
}

</mosaic_0001>

<bundles_post_ra>
// kernel: _lambda_.22
= control target key start
LH: loop header
LB: loop body
LE: loop exit
PB: predicated region body
PF: predicated region fallthrough
CT: control target
= control target key end

     0   :  { %s1048_s12 = smov 0   ;;  %s1050_s13 = smov 0   ;;  %s1483_s0 = inlined_call_operand.vmem [shape: f32[2,10,10,32], index: 0, kind: input, shape index: {}]   ;;  %s1484_s1 = inlined_call_operand.vmem [shape: f32[3,3,32], index: 1, kind: input, shape index: {}]   ;;  %s1485_s2 = inlined_call_operand.vmem [shape: f32[1,32], index: 2, kind: input, shape index: {}]   ;;  %s1486_s3 = inlined_call_operand.vmem [shape: f32[2,8,8,32], index: 3, kind: output, shape index: {}]  }
   0x1   :  { %s1052_s14 = smov 0  }
   0x2 LB: > { %s25_s15 = sadd.s32 1, %s1022_s13  ;;  %p971_p0 = scmp.ge.s32.totalorder %s1026_s14, 1  ;;  %s1026_s14 = sphi %s1052_s14, %s13_s14   ;;  %s1022_s13 = sphi %s1050_s13, %s1488_s13   ;;  %s1018_s12 = sphi %s1048_s12, %s1487_s12  }
   0x3   : > { %p27_p1 = scmp.ge.s32.totalorder %s25_s15, 2  ;;  %p173_p2 = scmp.lt.s32.totalorder %s1026_s14, 3 }
   0x5   : > { %s1490_s15 = smov (%p27_p1, %s25_s15), 0  ;;  %p174_p3 = pnand %p971_p0, %p173_p2 }
   0x6   : > { %p210_p4 = scmp.lt.s32.totalorder (!%p174_p3), %s1018_s12, 1  ;;  %v256_v0 = vlaneseq (!%p174_p3)  ;;  %v253_v2 = vld [vmem:[%s1484_s1] sm:$0x7] (!%p174_p3)  ;;  %v254_v3 = vld [vmem:[%s1484_s1 + $0x4] sm:$0x7] (!%p174_p3)  ;;  %vm312_vm0 = vcmask (!%p174_p3), 1046528  }
   0x7   : > { %177 = sbr.rel (%p174_p3) target bundleno = 124 (0x7c), region = 32  ;;  %v255_v4 = vld [vmem:[%s1484_s1 + $0x8] sm:$0x7] (!%p174_p3)  ;;  %vm389_vm1 = vcmask (!%p174_p3), 1045504   ;;  %vm845_vm2 = vcmask (!%p174_p3), 261120  }
   0x8   : > { %v257_v1 = vshrl.u32 (!%p174_p3), %v256_v0, 7 }
   0xa   : > { %v258_v5 = vsub.s32 (!%p174_p3), 0, %v257_v1  ;;  %v278_v6 = vsub.s32 (!%p174_p3), 1, %v257_v1  ;;  %v355_v7 = vsub.s32 (!%p174_p3), 2, %v257_v1 }
   0xc   : > { %v1083_v8 = vrot.slane (!%p174_p3), %v253_v2, %v258_v5  ;;  %v1085_v9 = vrot.slane (!%p174_p3), %v253_v2, %v278_v6  ;;  %v1087_v10 = vrot.slane (!%p174_p3), %v253_v2, %v355_v7  ;;  %v1091_v13 = vrot.slane (!%p174_p3), %v254_v3, %v258_v5 }
   0xd   : > { %v1093_v14 = vrot.slane (!%p174_p3), %v254_v3, %v278_v6  ;;  %v1095_v15 = vrot.slane (!%p174_p3), %v254_v3, %v355_v7  ;;  %v1097_v16 = vrot.slane (!%p174_p3), %v255_v4, %v258_v5  ;;  %v1103_v21 = vrot.slane (!%p174_p3), %v255_v4, %v278_v6 }
   0xe   : > { %s1492_s12 = smov (!%p210_p4, %s1018_s12), 1  ;;  %v1129_v51 = vrot.slane %v255_v4, %v355_v7 }
   0xf   : > { %s979_s20 = smul.u32 160, %s1492_s12  ;;  %s978_s28 = sshll.u32 %s1492_s12, 6 }
  0x10   : > { %s1192_s4 = scalar_lea.vmem %s1486_s3, %s978_s28 }
  0x11   : > { %s1081_s25 = scalar_lea.vmem %s1483_s0, %s979_s20 }
  0x12   : > { %v233_v11 = vld [vmem:[%s1081_s25] sm:$0xff]  ;;  %v234_v12 = vld [vmem:[%s1081_s25 + $0x8] sm:$0x3]  ;;  %v236_v17 = vld [vmem:[%s1081_s25 + $0x18] sm:$0x3] }
  0x13   : > { %v280_v18 = vmul.f32 %v1085_v9, %v233_v11  ;;  %v281_v19 = vmul.f32 %v1085_v9, %v234_v12  ;;  %v357_v20 = vmul.f32 %v1087_v10, %v233_v11  ;;  %v235_v22 = vld [vmem:[%s1081_s25 + $0x10] sm:$0xff]  ;;  %v260_v23 = vmul.f32 %v1083_v8, %v233_v11  ;;  %v1117_v39 = vld [vmem:[%s1081_s25 + $0x20] sm:$0xff]  ;;  %v1120_v40 = vld [vmem:[%s1081_s25 + $0x28] sm:$0x3] }
  0x14   : > { %v283_v24 = vmul.f32 %v1085_v9, %v236_v17  ;;  %v358_v25 = vmul.f32 %v1087_v10, %v234_v12  ;;  %v360_v26 = vmul.f32 %v1087_v10, %v236_v17  ;;  %v454_v30 = vmul.f32 %v1093_v14, %v235_v22 }
  0x15   : > { %v313_v27 = vrot.slane %v280_v18, 1  ;;  %v314_v28 = vrot.slane %v281_v19, 1  ;;  %v390_v29 = vrot.slane %v357_v20, 2  ;;  %v434_v33 = vmul.f32 %v1091_v13, %v235_v22 }
  0x16   : > { %v317_v31 = vrot.slane %v283_v24, 1  ;;  %v391_v32 = vrot.slane %v358_v25, 2  ;;  %v455_v34 = vmul.f32 %v1093_v14, %v236_v17  ;;  %v486_v36 = vrot.slane %v454_v30, 1 }
  0x17   : > { %v315_v35 = vsel %vm312_vm0, %v313_v27, %v314_v28  ;;  %v530_v37 = vmul.f32 %v1095_v15, %v235_v22  ;;  %v531_v38 = vmul.f32 %v1095_v15, %v236_v17  ;;  %v394_v43 = vrot.slane %v360_v26, 2  ;;  %v1155_v26 = vld [vmem:[%s1081_s25 + $0x30] sm:$0xff]  ;;  %v1158_v27 = vld [vmem:[%s1081_s25 + $0x38] sm:$0x3] }
  0x18   : > { %v345_v41 = vadd.f32 %v315_v35, %v260_v23  ;;  %v392_v42 = vsel %vm389_vm1, %v390_v29, %v391_v32  ;;  %v487_v44 = vrot.slane %v455_v34, 1  ;;  %v626_v47 = vmul.f32 %v1103_v21, %v1117_v39 }
  0x19   : > { %v562_v45 = vrot.slane %v530_v37, 2  ;;  %v563_v46 = vrot.slane %v531_v38, 2  ;;  %v627_v48 = vmul.f32 %v1103_v21, %v1120_v40  ;;  %v606_v50 = vmul.f32 %v1097_v16, %v1117_v39 }
  0x1a   : > { %v422_v49 = vadd.f32 %v392_v42, %v345_v41  ;;  %v805_v52 = vrot.slane %v235_v22, 1  ;;  %v488_v53 = vsel %vm312_vm0, %v486_v36, %v487_v44  ;;  %v658_v54 = vrot.slane %v626_v47, 1  ;;  %v1173_v41 = vld [vmem:[%s1485_s2] ss:$0 sm:$0xff] }
  0x1b   : > { %v659_v55 = vrot.slane %v627_v48, 1  ;;  %v806_v56 = vrot.slane %v236_v17, 1  ;;  %v564_v58 = vsel %vm389_vm1, %v562_v45, %v563_v46  ;;  %v702_v59 = vmul.f32 %v1129_v51, %v1117_v39 }
  0x1c   : > { %v442_v57 = vadd.f32 %v434_v33, %v422_v49  ;;  %v703_v60 = vmul.f32 %v1129_v51, %v1120_v40  ;;  %v261_v62 = vmul.f32 %v1083_v8, %v235_v22  ;;  %v282_v63 = vmul.f32 %v1085_v9, %v235_v22 }
  0x1d   : > { %v660_v61 = vsel %vm312_vm0, %v658_v54, %v659_v55  ;;  %v359_v0 = vmul.f32 %v1087_v10, %v235_v22  ;;  %v734_v2 = vrot.slane %v702_v59, 2  ;;  %v807_v4 = vsel %vm312_vm0, %v805_v52, %v806_v56 }
  0x1e   : > { %v518_v1 = vadd.f32 %v488_v53, %v442_v57  ;;  %v735_v3 = vrot.slane %v703_v60, 2  ;;  %v316_v5 = vrot.slane %v282_v63, 1  ;;  %v456_v7 = vmul.f32 %v1093_v14, %v1117_v39 }
  0x1f   : > { %v393_v6 = vrot.slane %v359_v0, 2  ;;  %v457_v11 = vmul.f32 %v1093_v14, %v1120_v40  ;;  %v435_v17 = vmul.f32 %v1091_v13, %v1117_v39  ;;  %v532_v18 = vmul.f32 %v1095_v15, %v1117_v39 }
  0x20   : > { %v594_v12 = vadd.f32 %v564_v58, %v518_v1  ;;  %v533_v19 = vmul.f32 %v1095_v15, %v1120_v40  ;;  %v318_v20 = vsel %vm312_vm0, %v316_v5, %v317_v31  ;;  %v489_v23 = vrot.slane %v456_v7, 1 }
  0x21   : > { %v395_v22 = vsel %vm389_vm1, %v393_v6, %v394_v43  ;;  %v490_v24 = vrot.slane %v457_v11, 1  ;;  %v346_v28 = vadd.f32 %v318_v20, %v261_v62  ;;  %v565_v29 = vrot.slane %v532_v18, 2 }
  0x22   : > { %v614_v25 = vadd.f32 %v606_v50, %v594_v12  ;;  %v566_v30 = vrot.slane %v533_v19, 2  ;;  %v736_v32 = vsel %vm389_vm1, %v734_v2, %v735_v3  ;;  %v628_v31 = vmul.f32 %v1103_v21, %v1155_v26 }
  0x23   : > { %v491_v33 = vsel %vm312_vm0, %v489_v23, %v490_v24  ;;  %v629_v34 = vmul.f32 %v1103_v21, %v1158_v27  ;;  %v423_v36 = vadd.f32 %v395_v22, %v346_v28  ;;  %v607_v37 = vmul.f32 %v1097_v16, %v1155_v26  ;;  %v1214_v22 = vld [vmem:[%s1081_s25 + $0x40] sm:$0xff]  ;;  %v1217_v23 = vld [vmem:[%s1081_s25 + $0x48] sm:$0x3] }
  0x24   : > { %v690_v35 = vadd.f32 %v660_v61, %v614_v25  ;;  %v704_v38 = vmul.f32 %v1129_v51, %v1155_v26  ;;  %v567_v42 = vsel %vm389_vm1, %v565_v29, %v566_v30  ;;  %v661_v43 = vrot.slane %v628_v31, 1 }
  0x25   : > { %v662_v44 = vrot.slane %v629_v34, 1  ;;  %v705_v45 = vmul.f32 %v1129_v51, %v1158_v27  ;;  %v443_v47 = vadd.f32 %v435_v17, %v423_v36  ;;  %v808_v49 = vrot.slane %v1117_v39, 1 }
  0x26   : > { %v766_v46 = vadd.f32 %v736_v32, %v690_v35  ;;  %v737_v48 = vrot.slane %v704_v38, 2  ;;  %v809_v53 = vrot.slane %v1120_v40, 1  ;;  %v284_v54 = vmul.f32 %v1085_v9, %v1117_v39 }
  0x27   : > { %v663_v50 = vsel %vm312_vm0, %v661_v43, %v662_v44  ;;  %v738_v52 = vrot.slane %v705_v45, 2  ;;  %v519_v56 = vadd.f32 %v491_v33, %v443_v47  ;;  %v262_v57 = vmul.f32 %v1083_v8, %v1117_v39 }
  0x28   : > { %v781_v55 = vadd.f32 %v1173_v41, %v766_v46  ;;  %v285_v58 = vmul.f32 %v1085_v9, %v1120_v40  ;;  %v319_v60 = vrot.slane %v284_v54, 1  ;;  %v361_v61 = vmul.f32 %v1087_v10, %v1117_v39 }
  0x29   : > { %v739_v59 = vsel %vm389_vm1, %v737_v48, %v738_v52  ;;  %v362_v62 = vmul.f32 %v1087_v10, %v1120_v40  ;;  %v595_v0 = vadd.f32 %v567_v42, %v519_v56  ;;  %v436_v2 = vmul.f32 %v1091_v13, %v1155_v26 }
  0x2a   : > { %v837_v63 = vadd.f32 %v807_v4, %v781_v55  ;;  %v320_v1 = vrot.slane %v285_v58, 1  ;;  %v396_v3 = vrot.slane %v361_v61, 2  ;;  %v458_v6 = vmul.f32 %v1093_v14, %v1155_v26 }
  0x2b   : > { %v397_v5 = vrot.slane %v362_v62, 2  ;;  %v459_v7 = vmul.f32 %v1093_v14, %v1158_v27  ;;  %v615_v39 = vadd.f32 %v607_v37, %v595_v0  ;;  %v534_v4 = vmul.f32 %v1095_v15, %v1155_v26 }
  0x2c   : > { %846 = vst.msk [vmem:[%s1192_s4] sm:$0xff] %vm845_vm2, %v837_v63  ;;  %v321_v40 = vsel %vm312_vm0, %v319_v60, %v320_v1  ;;  %v535_v11 = vmul.f32 %v1095_v15, %v1158_v27  ;;  %v492_v18 = vrot.slane %v458_v6, 1  ;;  %v810_v28 = vsel %vm312_vm0, %v808_v49, %v809_v53 }
  0x2d   : > { %v347_v12 = vadd.f32 %v321_v40, %v262_v57  ;;  %v398_v17 = vsel %vm389_vm1, %v396_v3, %v397_v5  ;;  %v493_v19 = vrot.slane %v459_v7, 1  ;;  %v691_v20 = vadd.f32 %v663_v50, %v615_v39  ;;  %v1259_v39 = vld [vmem:[%s1081_s25 + $0x50] sm:$0xff] }
  0x2e   : > { %v568_v24 = vrot.slane %v534_v4, 2  ;;  %v569_v25 = vrot.slane %v535_v11, 2  ;;  %v630_v30 = vmul.f32 %v1103_v21, %v1214_v22  ;;  %v631_v32 = vmul.f32 %v1103_v21, %v1217_v23 }
  0x2f   : > { %v424_v29 = vadd.f32 %v398_v17, %v347_v12  ;;  %v767_v33 = vadd.f32 %v739_v59, %v691_v20  ;;  %v494_v31 = vsel %vm312_vm0, %v492_v18, %v493_v19  ;;  %v706_v34 = vmul.f32 %v1129_v51, %v1214_v22  ;;  %v1266_v17 = vld [vmem:[%s1081_s25 + $0x58] sm:$0x3] }
  0x30   : > { %v707_v35 = vmul.f32 %v1129_v51, %v1217_v23  ;;  %v608_v37 = vmul.f32 %v1097_v16, %v1214_v22  ;;  %v664_v38 = vrot.slane %v630_v30, 1  ;;  %v665_v42 = vrot.slane %v631_v32, 1 }
  0x31   : > { %v444_v36 = vadd.f32 %v436_v2, %v424_v29  ;;  %v782_v43 = vadd.f32 %v1173_v41, %v767_v33  ;;  %v570_v44 = vsel %vm389_vm1, %v568_v24, %v569_v25  ;;  %v740_v45 = vrot.slane %v706_v34, 2 }
  0x32   : > { %v741_v46 = vrot.slane %v707_v35, 2  ;;  %v811_v48 = vrot.slane %v1155_v26, 1  ;;  %v812_v49 = vrot.slane %v1158_v27, 1  ;;  %v286_v50 = vmul.f32 %v1085_v9, %v1155_v26 }
  0x33   : > { %v520_v47 = vadd.f32 %v494_v31, %v444_v36  ;;  %v838_v52 = vadd.f32 %v810_v28, %v782_v43  ;;  %v666_v53 = vsel %vm312_vm0, %v664_v38, %v665_v42  ;;  %v263_v54 = vmul.f32 %v1083_v8, %v1155_v26 }
  0x34   : > { %v287_v55 = vmul.f32 %v1085_v9, %v1158_v27  ;;  %v322_v57 = vrot.slane %v286_v50, 1  ;;  %v363_v58 = vmul.f32 %v1087_v10, %v1155_v26  ;;  %v364_v59 = vmul.f32 %v1087_v10, %v1158_v27 }
  0x35   : > { %v596_v56 = vadd.f32 %v570_v44, %v520_v47  ;;  %847 = vst.msk [vmem:[%s1192_s4 + $0x8] sm:$0xff] %vm845_vm2, %v838_v52  ;;  %v742_v60 = vsel %vm389_vm1, %v740_v45, %v741_v46  ;;  %v460_v62 = vmul.f32 %v1093_v14, %v1214_v22  ;;  %v461_v63 = vmul.f32 %v1093_v14, %v1217_v23 }
  0x36   : > { %v323_v61 = vrot.slane %v287_v55, 1  ;;  %v399_v1 = vrot.slane %v363_v58, 2  ;;  %v400_v2 = vrot.slane %v364_v59, 2  ;;  %v536_v26 = vmul.f32 %v1095_v15, %v1214_v22 }
  0x37   : > { %v616_v0 = vadd.f32 %v608_v37, %v596_v56  ;;  %v495_v3 = vrot.slane %v460_v62, 1  ;;  %v496_v5 = vrot.slane %v461_v63, 1  ;;  %v537_v6 = vmul.f32 %v1095_v15, %v1217_v23 }
  0x38   : > { %v324_v27 = vsel %vm312_vm0, %v322_v57, %v323_v61  ;;  %v401_v4 = vsel %vm389_vm1, %v399_v1, %v400_v2  ;;  %v437_v11 = vmul.f32 %v1091_v13, %v1214_v22  ;;  %v813_v12 = vsel %vm312_vm0, %v811_v48, %v812_v49 }
  0x39   : > { %v692_v7 = vadd.f32 %v666_v53, %v616_v0  ;;  %v348_v40 = vadd.f32 %v324_v27, %v263_v54  ;;  %v571_v18 = vrot.slane %v536_v26, 2  ;;  %v572_v19 = vrot.slane %v537_v6, 2 }
  0x3a   : > { %v632_v20 = vmul.f32 %v1103_v21, %v1259_v39  ;;  %v633_v28 = vmul.f32 %v1103_v21, %v1266_v17  ;;  %v708_v29 = vmul.f32 %v1129_v51, %v1259_v39  ;;  %v497_v30 = vsel %vm312_vm0, %v495_v3, %v496_v5  ;;  %v1309_v3 = vld [vmem:[%s1081_s25 + $0x60] sm:$0xff]  ;;  %v1312_v5 = vld [vmem:[%s1081_s25 + $0x68] sm:$0x3] }
  0x3b   : > { %v768_v24 = vadd.f32 %v742_v60, %v692_v7  ;;  %v425_v25 = vadd.f32 %v401_v4, %v348_v40  ;;  %v609_v32 = vmul.f32 %v1097_v16, %v1259_v39  ;;  %v709_v31 = vmul.f32 %v1129_v51, %v1266_v17 }
  0x3c   : > { %v667_v33 = vrot.slane %v632_v20, 1  ;;  %v668_v36 = vrot.slane %v633_v28, 1  ;;  %v743_v37 = vrot.slane %v708_v29, 2  ;;  %v573_v38 = vsel %vm389_vm1, %v571_v18, %v572_v19 }
  0x3d   : > { %v783_v34 = vadd.f32 %v1173_v41, %v768_v24  ;;  %v445_v35 = vadd.f32 %v437_v11, %v425_v25  ;;  %v744_v42 = vrot.slane %v709_v31, 2  ;;  %v814_v43 = vrot.slane %v1214_v22, 1 }
  0x3e   : > { %v288_v44 = vmul.f32 %v1085_v9, %v1214_v22  ;;  %v815_v47 = vrot.slane %v1217_v23, 1  ;;  %v289_v48 = vmul.f32 %v1085_v9, %v1217_v23  ;;  %v669_v49 = vsel %vm312_vm0, %v667_v33, %v668_v36 }
  0x3f   : > { %v839_v45 = vadd.f32 %v813_v12, %v783_v34  ;;  %v521_v46 = vadd.f32 %v497_v30, %v445_v35  ;;  %v264_v50 = vmul.f32 %v1083_v8, %v1214_v22  ;;  %v365_v53 = vmul.f32 %v1087_v10, %v1214_v22 }
  0x40   : > { %v325_v52 = vrot.slane %v288_v44, 1  ;;  %v745_v55 = vsel %vm389_vm1, %v743_v37, %v744_v42  ;;  %v326_v56 = vrot.slane %v289_v48, 1  ;;  %v366_v57 = vmul.f32 %v1087_v10, %v1217_v23 }
  0x41   : > { %848 = vst.msk [vmem:[%s1192_s4 + $0x10] sm:$0xff] %vm845_vm2, %v839_v45  ;;  %v597_v54 = vadd.f32 %v573_v38, %v521_v46  ;;  %v402_v58 = vrot.slane %v365_v53, 2  ;;  %v462_v59 = vmul.f32 %v1093_v14, %v1259_v39  ;;  %v463_v60 = vmul.f32 %v1093_v14, %v1266_v17 }
  0x42   : > { %v538_v22 = vmul.f32 %v1095_v15, %v1259_v39  ;;  %v327_v62 = vsel %vm312_vm0, %v325_v52, %v326_v56  ;;  %v403_v63 = vrot.slane %v366_v57, 2  ;;  %v539_v0 = vmul.f32 %v1095_v15, %v1266_v17 }
  0x43   : > { %v617_v61 = vadd.f32 %v609_v32, %v597_v54  ;;  %v349_v1 = vadd.f32 %v327_v62, %v264_v50  ;;  %v438_v23 = vmul.f32 %v1091_v13, %v1259_v39  ;;  %v498_v2 = vrot.slane %v462_v59, 1  ;;  %v1355_v62 = vld [vmem:[%s1081_s25 + $0x70] sm:$0xff] }
  0x44   : > { %v499_v26 = vrot.slane %v463_v60, 1  ;;  %v404_v6 = vsel %vm389_vm1, %v402_v58, %v403_v63  ;;  %v574_v7 = vrot.slane %v538_v22, 2  ;;  %v575_v40 = vrot.slane %v539_v0, 2 }
  0x45   : > { %v693_v27 = vadd.f32 %v669_v49, %v617_v61  ;;  %v816_v4 = vsel %vm312_vm0, %v814_v43, %v815_v47  ;;  %v426_v11 = vadd.f32 %v404_v6, %v349_v1  ;;  %v634_v12 = vmul.f32 %v1103_v21, %v1309_v3 }
  0x46   : > { %v635_v18 = vmul.f32 %v1103_v21, %v1312_v5  ;;  %v500_v20 = vsel %vm312_vm0, %v498_v2, %v499_v26  ;;  %v710_v24 = vmul.f32 %v1129_v51, %v1309_v3  ;;  %v711_v25 = vmul.f32 %v1129_v51, %v1312_v5  ;;  %v1362_v2 = vld [vmem:[%s1081_s25 + $0x78] sm:$0x3] }
  0x47   : > { %v769_v19 = vadd.f32 %v745_v55, %v693_v27  ;;  %v446_v28 = vadd.f32 %v438_v23, %v426_v11  ;;  %v610_v29 = vmul.f32 %v1097_v16, %v1309_v3  ;;  %v670_v30 = vrot.slane %v634_v12, 1 }
  0x48   : > { %v671_v32 = vrot.slane %v635_v18, 1  ;;  %v576_v31 = vsel %vm389_vm1, %v574_v7, %v575_v40  ;;  %v746_v34 = vrot.slane %v710_v24, 2  ;;  %v747_v35 = vrot.slane %v711_v25, 2 }
  0x49   : > { %v784_v33 = vadd.f32 %v1173_v41, %v769_v19  ;;  %v522_v36 = vadd.f32 %v500_v20, %v446_v28  ;;  %v817_v37 = vrot.slane %v1259_v39, 1  ;;  %v818_v38 = vrot.slane %v1266_v17, 1 }
  0x4a   : > { %v290_v42 = vmul.f32 %v1085_v9, %v1259_v39  ;;  %v672_v44 = vsel %vm312_vm0, %v670_v30, %v671_v32  ;;  %v265_v45 = vmul.f32 %v1083_v8, %v1259_v39  ;;  %v291_v46 = vmul.f32 %v1085_v9, %v1266_v17 }
  0x4b   : > { %v840_v43 = vadd.f32 %v816_v4, %v784_v33  ;;  %v598_v47 = vadd.f32 %v576_v31, %v522_v36  ;;  %v367_v49 = vmul.f32 %v1087_v10, %v1259_v39  ;;  %v368_v50 = vmul.f32 %v1087_v10, %v1266_v17 }
  0x4c   : > { %v328_v48 = vrot.slane %v290_v42, 1  ;;  %v748_v52 = vsel %vm389_vm1, %v746_v34, %v747_v35  ;;  %v329_v53 = vrot.slane %v291_v46, 1  ;;  %v464_v54 = vmul.f32 %v1093_v14, %v1309_v3 }
  0x4d   : > { %849 = vst.msk [vmem:[%s1192_s4 + $0x18] sm:$0xff] %vm845_vm2, %v840_v43  ;;  %v465_v55 = vmul.f32 %v1093_v14, %v1312_v5  ;;  %v618_v56 = vadd.f32 %v610_v29, %v598_v47  ;;  %v405_v57 = vrot.slane %v367_v49, 2  ;;  %v406_v58 = vrot.slane %v368_v50, 2 }
  0x4e   : > { %v540_v39 = vmul.f32 %v1095_v15, %v1309_v3  ;;  %v330_v17 = vsel %vm312_vm0, %v328_v48, %v329_v53  ;;  %v501_v59 = vrot.slane %v464_v54, 1  ;;  %v541_v22 = vmul.f32 %v1095_v15, %v1312_v5 }
  0x4f   : > { %v502_v60 = vrot.slane %v465_v55, 1  ;;  %v694_v61 = vadd.f32 %v672_v44, %v618_v56  ;;  %v350_v63 = vadd.f32 %v330_v17, %v265_v45  ;;  %v407_v0 = vsel %vm389_vm1, %v405_v57, %v406_v58 }
  0x50   : > { %v439_v1 = vmul.f32 %v1091_v13, %v1309_v3  ;;  %v819_v23 = vsel %vm312_vm0, %v817_v37, %v818_v38  ;;  %v577_v26 = vrot.slane %v540_v39, 2  ;;  %v578_v27 = vrot.slane %v541_v22, 2 }
  0x51   : > { %v636_v6 = vmul.f32 %v1103_v21, %v1355_v62  ;;  %v770_v7 = vadd.f32 %v748_v52, %v694_v61  ;;  %v427_v40 = vadd.f32 %v407_v0, %v350_v63  ;;  %v637_v4 = vmul.f32 %v1103_v21, %v1362_v2 }
  0x52   : > { %v712_v11 = vmul.f32 %v1129_v51, %v1355_v62  ;;  %v503_v12 = vsel %vm312_vm0, %v501_v59, %v502_v60  ;;  %v611_v18 = vmul.f32 %v1097_v16, %v1355_v62  ;;  %v713_v20 = vmul.f32 %v1129_v51, %v1362_v2  ;;  %v1405_v59 = vld [vmem:[%s1081_s25 + $0x80] sm:$0xff]  ;;  %v1408_v60 = vld [vmem:[%s1081_s25 + $0x88] sm:$0x3] }
  0x53   : > { %v673_v19 = vrot.slane %v636_v6, 1  ;;  %v785_v24 = vadd.f32 %v1173_v41, %v770_v7  ;;  %v447_v25 = vadd.f32 %v439_v1, %v427_v40  ;;  %v674_v28 = vrot.slane %v637_v4, 1 }
  0x54   : > { %v749_v29 = vrot.slane %v712_v11, 2  ;;  %v579_v30 = vsel %vm389_vm1, %v577_v26, %v578_v27  ;;  %v750_v32 = vrot.slane %v713_v20, 2  ;;  %v820_v33 = vrot.slane %v1309_v3, 1 }
  0x55   : > { %v292_v31 = vmul.f32 %v1085_v9, %v1309_v3  ;;  %v841_v34 = vadd.f32 %v819_v23, %v785_v24  ;;  %v523_v35 = vadd.f32 %v503_v12, %v447_v25  ;;  %v821_v36 = vrot.slane %v1312_v5, 1 }
  0x56   : > { %v293_v37 = vmul.f32 %v1085_v9, %v1312_v5  ;;  %v675_v38 = vsel %vm312_vm0, %v673_v19, %v674_v28  ;;  %v266_v42 = vmul.f32 %v1083_v8, %v1309_v3  ;;  %v369_v44 = vmul.f32 %v1087_v10, %v1309_v3 }
  0x57   : > { %v331_v43 = vrot.slane %v292_v31, 1  ;;  %850 = vst.msk [vmem:[%s1192_s4 + $0x20] sm:$0xff] %vm845_vm2, %v841_v34  ;;  %v599_v45 = vadd.f32 %v579_v30, %v523_v35  ;;  %v751_v46 = vsel %vm389_vm1, %v749_v29, %v750_v32  ;;  %v370_v48 = vmul.f32 %v1087_v10, %v1312_v5 }
  0x58   : > { %v332_v47 = vrot.slane %v293_v37, 1  ;;  %v408_v49 = vrot.slane %v369_v44, 2  ;;  %v466_v50 = vmul.f32 %v1093_v14, %v1355_v62  ;;  %v467_v52 = vmul.f32 %v1093_v14, %v1362_v2 }
  0x59   : > { %v542_v3 = vmul.f32 %v1095_v15, %v1355_v62  ;;  %v619_v53 = vadd.f32 %v611_v18, %v599_v45  ;;  %v409_v55 = vrot.slane %v370_v48, 2  ;;  %v543_v56 = vmul.f32 %v1095_v15, %v1362_v2 }
  0x5a   : > { %v333_v54 = vsel %vm312_vm0, %v331_v43, %v332_v47  ;;  %v440_v5 = vmul.f32 %v1091_v13, %v1355_v62  ;;  %v504_v58 = vrot.slane %v466_v50, 1  ;;  %v505_v39 = vrot.slane %v467_v52, 1 }
  0x5b   : > { %v351_v57 = vadd.f32 %v333_v54, %v266_v42  ;;  %v695_v17 = vadd.f32 %v675_v38, %v619_v53  ;;  %v410_v22 = vsel %vm389_vm1, %v408_v49, %v409_v55  ;;  %v580_v61 = vrot.slane %v542_v3, 2  ;;  %v252_v49 = vld [vmem:[%s1081_s25 + $0x98] sm:$0x3] }
  0x5c   : > { %v581_v63 = vrot.slane %v543_v56, 2  ;;  %v822_v0 = vsel %vm312_vm0, %v820_v33, %v821_v36  ;;  %v638_v23 = vmul.f32 %v1103_v21, %v1405_v59  ;;  %v639_v26 = vmul.f32 %v1103_v21, %v1408_v60 }
  0x5d   : > { %v428_v1 = vadd.f32 %v410_v22, %v351_v57  ;;  %v771_v27 = vadd.f32 %v751_v46, %v695_v17  ;;  %v506_v6 = vsel %vm312_vm0, %v504_v58, %v505_v39  ;;  %v714_v7 = vmul.f32 %v1129_v51, %v1405_v59  ;;  %v251_v46 = vld [vmem:[%s1081_s25 + $0x90] sm:$0xff] }
  0x5e   : > { %v715_v40 = vmul.f32 %v1129_v51, %v1408_v60  ;;  %v612_v11 = vmul.f32 %v1097_v16, %v1405_v59  ;;  %v676_v12 = vrot.slane %v638_v23, 1  ;;  %v677_v18 = vrot.slane %v639_v26, 1 }
  0x5f   : > { %v448_v4 = vadd.f32 %v440_v5, %v428_v1  ;;  %v786_v19 = vadd.f32 %v1173_v41, %v771_v27  ;;  %v582_v20 = vsel %vm389_vm1, %v580_v61, %v581_v63  ;;  %v752_v24 = vrot.slane %v714_v7, 2 }
  0x60   : > { %v753_v25 = vrot.slane %v715_v40, 2  ;;  %v823_v29 = vrot.slane %v1355_v62, 1  ;;  %v824_v30 = vrot.slane %v1362_v2, 1  ;;  %v294_v32 = vmul.f32 %v1085_v9, %v1355_v62 }
  0x61   : > { %v524_v28 = vadd.f32 %v506_v6, %v448_v4  ;;  %v842_v33 = vadd.f32 %v822_v0, %v786_v19  ;;  %v678_v31 = vsel %vm312_vm0, %v676_v12, %v677_v18  ;;  %v267_v34 = vmul.f32 %v1083_v8, %v1355_v62 }
  0x62   : > { %v295_v35 = vmul.f32 %v1085_v9, %v1362_v2  ;;  %v334_v37 = vrot.slane %v294_v32, 1  ;;  %v371_v38 = vmul.f32 %v1087_v10, %v1355_v62  ;;  %v372_v42 = vmul.f32 %v1087_v10, %v1362_v2 }
  0x63   : > { %v600_v36 = vadd.f32 %v582_v20, %v524_v28  ;;  %851 = vst.msk [vmem:[%s1192_s4 + $0x28] sm:$0xff] %vm845_vm2, %v842_v33  ;;  %v754_v43 = vsel %vm389_vm1, %v752_v24, %v753_v25  ;;  %v468_v8 = vmul.f32 %v1093_v14, %v1405_v59  ;;  %v469_v45 = vmul.f32 %v1093_v14, %v1408_v60 }
  0x64   : > { %v335_v44 = vrot.slane %v295_v35, 1  ;;  %v411_v47 = vrot.slane %v371_v38, 2  ;;  %v412_v48 = vrot.slane %v372_v42, 2  ;;  %v544_v62 = vmul.f32 %v1095_v15, %v1405_v59 }
  0x65   : > { %v620_v9 = vadd.f32 %v612_v11, %v600_v36  ;;  %v507_v2 = vrot.slane %v468_v8, 1  ;;  %v508_v50 = vrot.slane %v469_v45, 1  ;;  %v545_v52 = vmul.f32 %v1095_v15, %v1408_v60 }
  0x66   : > { %v336_v10 = vsel %vm312_vm0, %v334_v37, %v335_v44  ;;  %v413_v54 = vsel %vm389_vm1, %v411_v47, %v412_v48  ;;  %v441_v14 = vmul.f32 %v1091_v13, %v1405_v59  ;;  %v583_v55 = vrot.slane %v544_v62, 2 }
  0x67   : > { %v696_v3 = vadd.f32 %v678_v31, %v620_v9  ;;  %v352_v53 = vadd.f32 %v336_v10, %v267_v34  ;;  %v584_v56 = vrot.slane %v545_v52, 2  ;;  %v640_v57 = vmul.f32 %v1103_v21, %v251_v46 }
  0x68   : > { %v641_v39 = vmul.f32 %v1103_v21, %v252_v49  ;;  %v825_v17 = vsel %vm312_vm0, %v823_v29, %v824_v30  ;;  %v509_v15 = vsel %vm312_vm0, %v507_v2, %v508_v50  ;;  %v716_v22 = vmul.f32 %v1129_v51, %v251_v46 }
  0x69   : > { %v772_v5 = vadd.f32 %v754_v43, %v696_v3  ;;  %v429_v58 = vadd.f32 %v413_v54, %v352_v53  ;;  %v717_v61 = vmul.f32 %v1129_v51, %v252_v49  ;;  %v585_v0 = vsel %vm389_vm1, %v583_v55, %v584_v56 }
  0x6a   : > { %v679_v1 = vrot.slane %v640_v57, 1  ;;  %v680_v23 = vrot.slane %v641_v39, 1  ;;  %v613_v21 = vmul.f32 %v1097_v16, %v251_v46  ;;  %v755_v6 = vrot.slane %v716_v22, 2 }
  0x6b   : > { %v787_v63 = vadd.f32 %v1173_v41, %v772_v5  ;;  %v449_v13 = vadd.f32 %v441_v14, %v429_v58  ;;  %v756_v7 = vrot.slane %v717_v61, 2  ;;  %v826_v12 = vrot.slane %v1405_v59, 1 }
  0x6c   : > { %v681_v4 = vsel %vm312_vm0, %v679_v1, %v680_v23  ;;  %v827_v18 = vrot.slane %v1408_v60, 1 }
  0x6d   : > { %v843_v26 = vadd.f32 %v825_v17, %v787_v63  ;;  %v525_v27 = vadd.f32 %v509_v15, %v449_v13  ;;  %v757_v11 = vsel %vm389_vm1, %v755_v6, %v756_v7 }
  0x6e   : > { %v828_v24 = vsel %vm312_vm0, %v826_v12, %v827_v18 }
  0x6f   : > { %852 = vst.msk [vmem:[%s1192_s4 + $0x30] sm:$0xff] %vm845_vm2, %v843_v26  ;;  %v601_v40 = vadd.f32 %v585_v0, %v525_v27 }
  0x71   : > { %v621_v51 = vadd.f32 %v613_v21, %v601_v40 }
  0x73   : > { %v697_v19 = vadd.f32 %v681_v4, %v621_v51 }
  0x75   : > { %v773_v20 = vadd.f32 %v757_v11, %v697_v19 }
  0x77   : > { %v788_v16 = vadd.f32 %v1173_v41, %v773_v20 }
  0x79   : > { %v844_v25 = vadd.f32 %v828_v24, %v788_v16 }
  0x7b   : > { %853 = vst.msk [vmem:[%s1192_s4 + $0x38] sm:$0xff] %vm845_vm2, %v844_v25 }
  0x7c PF: > { %s13_s14 = sadd.s32 1, %s1026_s14   ;;  %s1487_s12 = smov %s1022_s13 }
  0x7d   : > { %p10_p5 = scmp.ge.s32.totalorder %s13_s14, 4   ;;  %s1488_s13 = smov %s1490_s15 }
  0x7f   :  { %12 = sbr.rel (!%p10_p5) target bundleno = 2 (0x2), region = 68 }

// kernel: _lambda_.24
= control target key start
LH: loop header
LB: loop body
LE: loop exit
PB: predicated region body
PF: predicated region fallthrough
CT: control target
= control target key end

     0   :  { %s1080_s12 = smov 0   ;;  %s1082_s13 = smov 0   ;;  %s1503_s0 = inlined_call_operand.vmem [shape: f32[2,10,10,64], index: 0, kind: input, shape index: {}]   ;;  %s1504_s1 = inlined_call_operand.vmem [shape: f32[3,3,64], index: 1, kind: input, shape index: {}]   ;;  %s1505_s2 = inlined_call_operand.vmem [shape: f32[1,64], index: 2, kind: input, shape index: {}]   ;;  %s1506_s3 = inlined_call_operand.vmem [shape: f32[2,8,8,64], index: 3, kind: output, shape index: {}]  }
   0x1   :  { %s1084_s14 = smov 0  }
   0x2 LB: > { %s25_s15 = sadd.s32 1, %s1054_s13  ;;  %p971_p0 = scmp.ge.s32.totalorder %s1058_s14, 1  ;;  %s1058_s14 = sphi %s1084_s14, %s13_s14   ;;  %s1054_s13 = sphi %s1082_s13, %s1508_s13   ;;  %s1050_s12 = sphi %s1080_s12, %s1507_s12  }
   0x3   : > { %p27_p1 = scmp.ge.s32.totalorder %s25_s15, 2  ;;  %p173_p2 = scmp.lt.s32.totalorder %s1058_s14, 3 }
   0x5   : > { %s1510_s15 = smov (%p27_p1, %s25_s15), 0  ;;  %p174_p3 = pnand %p971_p0, %p173_p2 }
   0x6   : > { %p210_p4 = scmp.lt.s32.totalorder (!%p174_p3), %s1050_s12, 1  ;;  %v256_v0 = vlaneseq (!%p174_p3)  ;;  %v253_v2 = vld [vmem:[%s1504_s1] sm:$0x7] (!%p174_p3)  ;;  %v254_v3 = vld [vmem:[%s1504_s1 + $0x4] sm:$0x7] (!%p174_p3)  ;;  %vm312_vm0 = vcmask (!%p174_p3), 1046528  }
   0x7   : > { %177 = sbr.rel (%p174_p3) target bundleno = 152 (0x98), region = 32  ;;  %v255_v4 = vld [vmem:[%s1504_s1 + $0x8] sm:$0x7] (!%p174_p3)  ;;  %vm389_vm1 = vcmask (!%p174_p3), 1045504   ;;  %vm845_vm2 = vcmask (!%p174_p3), 523264  }
   0x8   : > { %v257_v1 = vshrl.u32 (!%p174_p3), %v256_v0, 7 }
   0xa   : > { %v258_v5 = vsub.s32 (!%p174_p3), 0, %v257_v1  ;;  %v278_v6 = vsub.s32 (!%p174_p3), 1, %v257_v1  ;;  %v355_v7 = vsub.s32 (!%p174_p3), 2, %v257_v1 }
   0xc   : > { %v1115_v8 = vrot.slane (!%p174_p3), %v253_v2, %v258_v5  ;;  %v1117_v9 = vrot.slane (!%p174_p3), %v253_v2, %v278_v6  ;;  %v1119_v10 = vrot.slane (!%p174_p3), %v253_v2, %v355_v7  ;;  %v1121_v11 = vrot.slane (!%p174_p3), %v254_v3, %v258_v5 }
   0xd   : > { %v1125_v14 = vrot.slane (!%p174_p3), %v254_v3, %v278_v6  ;;  %v1127_v15 = vrot.slane (!%p174_p3), %v254_v3, %v355_v7  ;;  %v1129_v16 = vrot.slane (!%p174_p3), %v255_v4, %v258_v5  ;;  %v1131_v17 = vrot.slane (!%p174_p3), %v255_v4, %v278_v6 }
   0xe   : > { %s1512_s12 = smov (!%p210_p4, %s1050_s12), 1  ;;  %v1160_v48 = vrot.slane %v255_v4, %v355_v7 }
   0xf   : > { %s979_s20 = smul.u32 160, %s1512_s12  ;;  %s978_s28 = sshll.u32 %s1512_s12, 6 }
  0x10   : > { %s1338_s4 = scalar_lea.vmem %s1506_s3, %s978_s28 }
  0x11   : > { %s1113_s25 = scalar_lea.vmem %s1503_s0, %s979_s20 }
  0x12   : > { %v233_v12 = vld [vmem:[%s1113_s25] sm:$0xff]  ;;  %v234_v13 = vld [vmem:[%s1113_s25 + $0x8] sm:$0x3]  ;;  %v235_v18 = vld [vmem:[%s1113_s25 + $0x10] sm:$0xff] }
  0x13   : > { %v236_v19 = vld [vmem:[%s1113_s25 + $0x18] sm:$0x3]  ;;  %v260_v20 = vmul.f32 %v1115_v8, %v233_v12  ;;  %v280_v21 = vmul.f32 %v1117_v9, %v233_v12  ;;  %v281_v22 = vmul.f32 %v1117_v9, %v234_v13  ;;  %v357_v23 = vmul.f32 %v1119_v10, %v233_v12  ;;  %v1145_v32 = vld [vmem:[%s1113_s25 + $0x20] sm:$0xff]  ;;  %v1154_v41 = vld [vmem:[%s1113_s25 + $0x28] sm:$0x3] }
  0x14   : > { %v358_v24 = vmul.f32 %v1119_v10, %v234_v13  ;;  %v434_v25 = vmul.f32 %v1121_v11, %v235_v18  ;;  %v454_v26 = vmul.f32 %v1125_v14, %v235_v18  ;;  %v455_v27 = vmul.f32 %v1125_v14, %v236_v19 }
  0x15   : > { %v313_v28 = vrot.slane %v280_v21, 1  ;;  %v314_v29 = vrot.slane %v281_v22, 1  ;;  %v390_v30 = vrot.slane %v357_v23, 2  ;;  %v530_v31 = vmul.f32 %v1127_v15, %v235_v18 }
  0x16   : > { %v391_v33 = vrot.slane %v358_v24, 2  ;;  %v486_v34 = vrot.slane %v454_v26, 1  ;;  %v487_v35 = vrot.slane %v455_v27, 1  ;;  %v531_v36 = vmul.f32 %v1127_v15, %v236_v19 }
  0x17   : > { %v315_v37 = vsel %vm312_vm0, %v313_v28, %v314_v29  ;;  %v562_v38 = vrot.slane %v530_v31, 2  ;;  %v606_v39 = vmul.f32 %v1129_v16, %v1145_v32  ;;  %v626_v40 = vmul.f32 %v1131_v17, %v1145_v32  ;;  %v1192_v28 = vld [vmem:[%s1113_s25 + $0x38] sm:$0x3] }
  0x18   : > { %v345_v42 = vadd.f32 %v315_v37, %v260_v20  ;;  %v392_v43 = vsel %vm389_vm1, %v390_v30, %v391_v33  ;;  %v488_v44 = vsel %vm312_vm0, %v486_v34, %v487_v35  ;;  %v563_v45 = vrot.slane %v531_v36, 2 }
  0x19   : > { %v627_v46 = vmul.f32 %v1131_v17, %v1154_v41  ;;  %v658_v47 = vrot.slane %v626_v40, 1  ;;  %v261_v49 = vmul.f32 %v1115_v8, %v235_v18  ;;  %v282_v52 = vmul.f32 %v1117_v9, %v235_v18 }
  0x1a   : > { %v422_v50 = vadd.f32 %v392_v43, %v345_v42  ;;  %v564_v51 = vsel %vm389_vm1, %v562_v38, %v563_v45  ;;  %v283_v53 = vmul.f32 %v1117_v9, %v236_v19  ;;  %v702_v55 = vmul.f32 %v1160_v48, %v1145_v32  ;;  %v1207_v42 = vld [vmem:[%s1505_s2] ss:$0 sm:$0xff] }
  0x1b   : > { %v659_v54 = vrot.slane %v627_v46, 1  ;;  %v703_v56 = vmul.f32 %v1160_v48, %v1154_v41  ;;  %v359_v57 = vmul.f32 %v1119_v10, %v235_v18  ;;  %v316_v59 = vrot.slane %v282_v52, 1 }
  0x1c   : > { %v442_v58 = vadd.f32 %v434_v25, %v422_v50  ;;  %v317_v60 = vrot.slane %v283_v53, 1  ;;  %v360_v61 = vmul.f32 %v1119_v10, %v236_v19  ;;  %v734_v63 = vrot.slane %v702_v55, 2  ;;  %v1182_v19 = vld [vmem:[%s1113_s25 + $0x30] sm:$0xff] }
  0x1d   : > { %v660_v62 = vsel %vm312_vm0, %v658_v47, %v659_v54  ;;  %v735_v0 = vrot.slane %v703_v56, 2  ;;  %v393_v1 = vrot.slane %v359_v57, 2  ;;  %v435_v5 = vmul.f32 %v1121_v11, %v1145_v32 }
  0x1e   : > { %v518_v2 = vadd.f32 %v488_v44, %v442_v58  ;;  %v318_v3 = vsel %vm312_vm0, %v316_v59, %v317_v60  ;;  %v394_v4 = vrot.slane %v360_v61, 2  ;;  %v456_v12 = vmul.f32 %v1125_v14, %v1145_v32 }
  0x1f   : > { %v736_v6 = vsel %vm389_vm1, %v734_v63, %v735_v0  ;;  %v346_v7 = vadd.f32 %v318_v3, %v261_v49  ;;  %v457_v13 = vmul.f32 %v1125_v14, %v1154_v41  ;;  %v532_v21 = vmul.f32 %v1127_v15, %v1145_v32 }
  0x20   : > { %v594_v18 = vadd.f32 %v564_v51, %v518_v2  ;;  %v395_v20 = vsel %vm389_vm1, %v393_v1, %v394_v4  ;;  %v533_v22 = vmul.f32 %v1127_v15, %v1154_v41  ;;  %v489_v24 = vrot.slane %v456_v12, 1 }
  0x21   : > { %v423_v23 = vadd.f32 %v395_v20, %v346_v7  ;;  %v490_v25 = vrot.slane %v457_v13, 1  ;;  %v607_v26 = vmul.f32 %v1129_v16, %v1182_v19  ;;  %v565_v29 = vrot.slane %v532_v21, 2  ;;  %v1236_v7 = vld [vmem:[%s1113_s25 + $0x40] sm:$0xff] }
  0x22   : > { %v614_v27 = vadd.f32 %v606_v39, %v594_v18  ;;  %v566_v30 = vrot.slane %v533_v22, 2  ;;  %v628_v31 = vmul.f32 %v1131_v17, %v1182_v19  ;;  %v629_v35 = vmul.f32 %v1131_v17, %v1192_v28 }
  0x23   : > { %v443_v33 = vadd.f32 %v435_v5, %v423_v23  ;;  %v491_v34 = vsel %vm312_vm0, %v489_v24, %v490_v25  ;;  %v704_v36 = vmul.f32 %v1160_v48, %v1182_v19  ;;  %v705_v40 = vmul.f32 %v1160_v48, %v1192_v28  ;;  %v1243_v24 = vld [vmem:[%s1113_s25 + $0x48] sm:$0x3] }
  0x24   : > { %v690_v37 = vadd.f32 %v660_v62, %v614_v27  ;;  %v567_v38 = vsel %vm389_vm1, %v565_v29, %v566_v30  ;;  %v661_v39 = vrot.slane %v628_v31, 1  ;;  %v662_v44 = vrot.slane %v629_v35, 1 }
  0x25   : > { %v519_v43 = vadd.f32 %v491_v34, %v443_v33  ;;  %v737_v45 = vrot.slane %v704_v36, 2  ;;  %v262_v46 = vmul.f32 %v1115_v8, %v1145_v32  ;;  %v738_v49 = vrot.slane %v705_v40, 2 }
  0x26   : > { %v766_v47 = vadd.f32 %v736_v6, %v690_v37  ;;  %v284_v50 = vmul.f32 %v1117_v9, %v1145_v32  ;;  %v285_v51 = vmul.f32 %v1117_v9, %v1154_v41  ;;  %v663_v53 = vsel %vm312_vm0, %v661_v39, %v662_v44 }
  0x27   : > { %v595_v52 = vadd.f32 %v567_v38, %v519_v43  ;;  %v361_v54 = vmul.f32 %v1119_v10, %v1145_v32  ;;  %v362_v55 = vmul.f32 %v1119_v10, %v1154_v41  ;;  %v739_v57 = vsel %vm389_vm1, %v737_v45, %v738_v49 }
  0x28   : > { %v1221_v56 = vadd.f32 %v1207_v42, %v766_v47  ;;  %v319_v58 = vrot.slane %v284_v50, 1  ;;  %v320_v59 = vrot.slane %v285_v51, 1  ;;  %v436_v63 = vmul.f32 %v1121_v11, %v1182_v19 }
  0x29   : > { %v615_v60 = vadd.f32 %v607_v26, %v595_v52  ;;  %v396_v61 = vrot.slane %v361_v54, 2  ;;  %v397_v62 = vrot.slane %v362_v55, 2  ;;  %v458_v41 = vmul.f32 %v1125_v14, %v1182_v19 }
  0x2a   : > { %v789_v0 = vsub.f32 0.0, %v1221_v56  ;;  %v321_v32 = vsel %vm312_vm0, %v319_v58, %v320_v59  ;;  %v459_v1 = vmul.f32 %v1125_v14, %v1192_v28  ;;  %v534_v5 = vmul.f32 %v1127_v15, %v1182_v19 }
  0x2b   : > { %v691_v2 = vadd.f32 %v663_v53, %v615_v60  ;;  %v347_v3 = vadd.f32 %v321_v32, %v262_v46  ;;  %v398_v4 = vsel %vm389_vm1, %v396_v61, %v397_v62  ;;  %v492_v12 = vrot.slane %v458_v41, 1 }
  0x2c   : > { %v797_v6 = vmul.f32 1.442695, %v789_v0  ;;  %v493_v13 = vrot.slane %v459_v1, 1  ;;  %v535_v18 = vmul.f32 %v1127_v15, %v1192_v28  ;;  %v568_v22 = vrot.slane %v534_v5, 2  ;;  %v1281_v0 = vld [vmem:[%s1113_s25 + $0x50] sm:$0xff] }
  0x2d   : > { %v767_v20 = vadd.f32 %v739_v57, %v691_v2  ;;  %v424_v21 = vadd.f32 %v398_v4, %v347_v3  ;;  %v608_v23 = vmul.f32 %v1129_v16, %v1236_v7  ;;  %v630_v27 = vmul.f32 %v1131_v17, %v1236_v7 }
  0x2e   : > { %1004 = vpow2.f32 %v797_v6  ;;  %v494_v25 = vsel %vm312_vm0, %v492_v12, %v493_v13  ;;  %v569_v26 = vrot.slane %v535_v18, 2  ;;  %v631_v31 = vmul.f32 %v1131_v17, %v1243_v24  ;;  %v1289_v18 = vld [vmem:[%s1113_s25 + $0x58] sm:$0x3] }
  0x2f   : > { %v1249_v29 = vadd.f32 %v1207_v42, %v767_v20  ;;  %v444_v30 = vadd.f32 %v436_v63, %v424_v21  ;;  %v706_v33 = vmul.f32 %v1160_v48, %v1236_v7  ;;  %v664_v35 = vrot.slane %v630_v27, 1 }
  0x30   : > { %v570_v34 = vsel %vm389_vm1, %v568_v22, %v569_v26  ;;  %v707_v36 = vmul.f32 %v1160_v48, %v1243_v24  ;;  %v263_v37 = vmul.f32 %v1115_v8, %v1182_v19  ;;  %v665_v40 = vrot.slane %v631_v31, 1 }
  0x31   : > { %v790_v38 = vsub.f32 0.0, %v1249_v29  ;;  %v520_v39 = vadd.f32 %v494_v25, %v444_v30  ;;  %v740_v43 = vrot.slane %v706_v33, 2  ;;  %v286_v45 = vmul.f32 %v1117_v9, %v1182_v19 }
  0x32   : > { %v741_v44 = vrot.slane %v707_v36, 2  ;;  %v287_v46 = vmul.f32 %v1117_v9, %v1192_v28  ;;  %v363_v47 = vmul.f32 %v1119_v10, %v1182_v19  ;;  %v666_v51 = vsel %vm312_vm0, %v664_v35, %v665_v40 }
  0x33   : > { %v799_v49 = vmul.f32 1.442695, %v790_v38  ;;  %v596_v50 = vadd.f32 %v570_v34, %v520_v39  ;;  %v364_v52 = vmul.f32 %v1119_v10, %v1192_v28  ;;  %v322_v54 = vrot.slane %v286_v45, 1 }
  0x34   : > { %v742_v53 = vsel %vm389_vm1, %v740_v43, %v741_v44  ;;  %v323_v55 = vrot.slane %v287_v46, 1  ;;  %v399_v57 = vrot.slane %v363_v47, 2  ;;  %v437_v60 = vmul.f32 %v1121_v11, %v1236_v7 }
  0x35   : > { %1006 = vpow2.f32 %v799_v49  ;;  %v616_v58 = vadd.f32 %v608_v23, %v596_v50  ;;  %v400_v59 = vrot.slane %v364_v52, 2  ;;  %v460_v61 = vmul.f32 %v1125_v14, %v1236_v7 }
  0x36   : > { %v324_v19 = vsel %vm312_vm0, %v322_v54, %v323_v55  ;;  %v461_v28 = vmul.f32 %v1125_v14, %v1243_v24  ;;  %v536_v62 = vmul.f32 %v1127_v15, %v1236_v7  ;;  %v537_v1 = vmul.f32 %v1127_v15, %v1243_v24 }
  0x37   : > { %v692_v63 = vadd.f32 %v666_v51, %v616_v58  ;;  %v348_v32 = vadd.f32 %v324_v19, %v263_v37  ;;  %v401_v41 = vsel %vm389_vm1, %v399_v57, %v400_v59  ;;  %v495_v3 = vrot.slane %v460_v61, 1 }
  0x38   : > { %v1005_v2 = vpop.eup %1004  ;;  %v496_v4 = vrot.slane %v461_v28, 1  ;;  %v571_v5 = vrot.slane %v536_v62, 2  ;;  %v609_v6 = vmul.f32 %v1129_v16, %v1281_v0  ;;  %v572_v21 = vrot.slane %v537_v1, 2  ;;  %v1326_v28 = vld [vmem:[%s1113_s25 + $0x60] sm:$0xff] }
  0x39   : > { %v813_v12 = vadd.f32 1.0, %v1005_v2  ;;  %v768_v13 = vadd.f32 %v742_v53, %v692_v63  ;;  %v425_v20 = vadd.f32 %v401_v41, %v348_v32  ;;  %v632_v23 = vmul.f32 %v1131_v17, %v1281_v0 }
  0x3a   : > { %v497_v22 = vsel %vm312_vm0, %v495_v3, %v496_v4  ;;  %v633_v25 = vmul.f32 %v1131_v17, %v1289_v18  ;;  %v708_v26 = vmul.f32 %v1160_v48, %v1281_v0  ;;  %v573_v31 = vsel %vm389_vm1, %v571_v5, %v572_v21 }
  0x3b   : > { %1008 = vrcp.f32 %v813_v12  ;;  %v1299_v27 = vadd.f32 %v1207_v42, %v768_v13  ;;  %v445_v30 = vadd.f32 %v437_v60, %v425_v20  ;;  %v667_v33 = vrot.slane %v632_v23, 1 }
  0x3c   : > { %v668_v34 = vrot.slane %v633_v25, 1  ;;  %v709_v35 = vmul.f32 %v1160_v48, %v1289_v18  ;;  %v743_v36 = vrot.slane %v708_v26, 2  ;;  %v264_v39 = vmul.f32 %v1115_v8, %v1236_v7 }
  0x3d   : > { %v791_v37 = vsub.f32 0.0, %v1299_v27  ;;  %v521_v38 = vadd.f32 %v497_v22, %v445_v30  ;;  %v288_v40 = vmul.f32 %v1117_v9, %v1236_v7  ;;  %v289_v45 = vmul.f32 %v1117_v9, %v1243_v24 }
  0x3e   : > { %v669_v43 = vsel %vm312_vm0, %v667_v33, %v668_v34  ;;  %v744_v44 = vrot.slane %v709_v35, 2  ;;  %v365_v46 = vmul.f32 %v1119_v10, %v1236_v7  ;;  %v366_v52 = vmul.f32 %v1119_v10, %v1243_v24 }
  0x3f   : > { %v1007_v47 = vpop.eup %1006  ;;  %v801_v49 = vmul.f32 1.442695, %v791_v37  ;;  %v597_v50 = vadd.f32 %v573_v31, %v521_v38  ;;  %v325_v51 = vrot.slane %v288_v40, 1  ;;  %v326_v55 = vrot.slane %v289_v45, 1 }
  0x40   : > { %v814_v53 = vadd.f32 1.0, %v1007_v47  ;;  %v745_v54 = vsel %vm389_vm1, %v743_v36, %v744_v44  ;;  %v402_v57 = vrot.slane %v365_v46, 2  ;;  %v403_v59 = vrot.slane %v366_v52, 2 }
  0x41   : > { %1010 = vpow2.f32 %v801_v49  ;;  %v617_v58 = vadd.f32 %v609_v6, %v597_v50  ;;  %v438_v60 = vmul.f32 %v1121_v11, %v1281_v0  ;;  %v327_v7 = vsel %vm312_vm0, %v325_v51, %v326_v55  ;;  %v1341_v6 = vld [vmem:[%s1113_s25 + $0x68] sm:$0x3] }
  0x42   : > { %1012 = vrcp.f32 %v814_v53  ;;  %v462_v19 = vmul.f32 %v1125_v14, %v1281_v0  ;;  %v463_v24 = vmul.f32 %v1125_v14, %v1289_v18  ;;  %v349_v62 = vadd.f32 %v327_v7, %v264_v39 }
  0x43   : > { %v693_v61 = vadd.f32 %v669_v43, %v617_v58  ;;  %v404_v63 = vsel %vm389_vm1, %v402_v57, %v403_v59  ;;  %v538_v32 = vmul.f32 %v1127_v15, %v1281_v0  ;;  %v539_v2 = vmul.f32 %v1127_v15, %v1289_v18 }
  0x44   : > { %v498_v41 = vrot.slane %v462_v19, 1  ;;  %v499_v1 = vrot.slane %v463_v24, 1  ;;  %v610_v3 = vmul.f32 %v1129_v16, %v1326_v28  ;;  %v426_v12 = vadd.f32 %v404_v63, %v349_v62 }
  0x45   : > { %v1009_v4 = vpop.eup %1008  ;;  %v769_v5 = vadd.f32 %v745_v54, %v693_v61  ;;  %v574_v13 = vrot.slane %v538_v32, 2  ;;  %v634_v20 = vmul.f32 %v1131_v17, %v1326_v28  ;;  %v575_v23 = vrot.slane %v539_v2, 2  ;;  %v1381_v61 = vld [vmem:[%s1113_s25 + $0x70] sm:$0xff] }
  0x46   : > { %v837_v21 = vmul.f32 %v1009_v4, %v1221_v56  ;;  %v500_v22 = vsel %vm312_vm0, %v498_v41, %v499_v1  ;;  %v635_v25 = vmul.f32 %v1131_v17, %v1341_v6  ;;  %v446_v30 = vadd.f32 %v438_v60, %v426_v12  ;;  %v1393_v4 = vld [vmem:[%s1113_s25 + $0x78] sm:$0x3] }
  0x47   : > { %v1350_v26 = vadd.f32 %v1207_v42, %v769_v5  ;;  %v670_v31 = vrot.slane %v634_v20, 1  ;;  %v710_v33 = vmul.f32 %v1160_v48, %v1326_v28  ;;  %v576_v34 = vsel %vm389_vm1, %v574_v13, %v575_v23 }
  0x48   : > { %846 = vst.msk [vmem:[%s1338_s4] sm:$0xff] %vm845_vm2, %v837_v21  ;;  %v671_v35 = vrot.slane %v635_v25, 1  ;;  %v711_v56 = vmul.f32 %v1160_v48, %v1341_v6  ;;  %v265_v36 = vmul.f32 %v1115_v8, %v1281_v0  ;;  %v522_v38 = vadd.f32 %v500_v22, %v446_v30 }
  0x49   : > { %v792_v37 = vsub.f32 0.0, %v1350_v26  ;;  %v746_v39 = vrot.slane %v710_v33, 2  ;;  %v290_v40 = vmul.f32 %v1117_v9, %v1281_v0  ;;  %v291_v45 = vmul.f32 %v1117_v9, %v1289_v18 }
  0x4a   : > { %v672_v43 = vsel %vm312_vm0, %v670_v31, %v671_v35  ;;  %v747_v44 = vrot.slane %v711_v56, 2  ;;  %v367_v46 = vmul.f32 %v1119_v10, %v1281_v0  ;;  %v598_v50 = vadd.f32 %v576_v34, %v522_v38 }
  0x4b   : > { %v1011_v47 = vpop.eup %1010  ;;  %v803_v49 = vmul.f32 1.442695, %v792_v37  ;;  %v328_v51 = vrot.slane %v290_v40, 1  ;;  %v368_v52 = vmul.f32 %v1119_v10, %v1289_v18  ;;  %v329_v57 = vrot.slane %v291_v45, 1 }
  0x4c   : > { %v1013_v53 = vpop.eup %1012  ;;  %v815_v54 = vadd.f32 1.0, %v1011_v47  ;;  %v748_v55 = vsel %vm389_vm1, %v746_v39, %v747_v44  ;;  %v405_v58 = vrot.slane %v367_v46, 2  ;;  %v618_v60 = vadd.f32 %v610_v3, %v598_v50 }
  0x4d   : > { %v838_v59 = vmul.f32 %v1013_v53, %v1249_v29  ;;  %1014 = vpow2.f32 %v803_v49  ;;  %v406_v0 = vrot.slane %v368_v52, 2  ;;  %v330_v7 = vsel %vm312_vm0, %v328_v51, %v329_v57 }
  0x4e   : > { %1016 = vrcp.f32 %v815_v54  ;;  %v439_v19 = vmul.f32 %v1121_v11, %v1326_v28  ;;  %v464_v18 = vmul.f32 %v1125_v14, %v1326_v28  ;;  %v694_v24 = vadd.f32 %v672_v43, %v618_v60 }
  0x4f   : > { %847 = vst.msk [vmem:[%s1338_s4 + $0x8] sm:$0xff] %vm845_vm2, %v838_v59  ;;  %v350_v62 = vadd.f32 %v330_v7, %v265_v36  ;;  %v407_v29 = vsel %vm389_vm1, %v405_v58, %v406_v0  ;;  %v465_v63 = vmul.f32 %v1125_v14, %v1341_v6  ;;  %v540_v41 = vmul.f32 %v1127_v15, %v1326_v28 }
  0x50   : > { %v501_v32 = vrot.slane %v464_v18, 1  ;;  %v541_v1 = vmul.f32 %v1127_v15, %v1341_v6  ;;  %v611_v2 = vmul.f32 %v1129_v16, %v1381_v61  ;;  %v770_v3 = vadd.f32 %v748_v55, %v694_v24  ;;  %v249_v18 = vld [vmem:[%s1113_s25 + $0x80] sm:$0xff] }
  0x51   : > { %v427_v5 = vadd.f32 %v407_v29, %v350_v62  ;;  %v502_v12 = vrot.slane %v465_v63, 1  ;;  %v636_v13 = vmul.f32 %v1131_v17, %v1381_v61  ;;  %v577_v20 = vrot.slane %v540_v41, 2 }
  0x52   : > { %v578_v21 = vrot.slane %v541_v1, 2  ;;  %v637_v22 = vmul.f32 %v1131_v17, %v1393_v4  ;;  %v712_v23 = vmul.f32 %v1160_v48, %v1381_v61  ;;  %v1402_v25 = vadd.f32 %v1207_v42, %v770_v3 }
  0x53   : > { %v447_v30 = vadd.f32 %v439_v19, %v427_v5  ;;  %v503_v31 = vsel %vm312_vm0, %v501_v32, %v502_v12  ;;  %v673_v33 = vrot.slane %v636_v13, 1  ;;  %v713_v56 = vmul.f32 %v1160_v48, %v1393_v4 }
  0x54   : > { %v579_v34 = vsel %vm389_vm1, %v577_v20, %v578_v21  ;;  %v674_v35 = vrot.slane %v637_v22, 1  ;;  %v749_v36 = vrot.slane %v712_v23, 2  ;;  %v793_v37 = vsub.f32 0.0, %v1402_v25 }
  0x55   : > { %v523_v38 = vadd.f32 %v503_v31, %v447_v30  ;;  %v266_v39 = vmul.f32 %v1115_v8, %v1326_v28  ;;  %v292_v40 = vmul.f32 %v1117_v9, %v1326_v28  ;;  %v750_v44 = vrot.slane %v713_v56, 2 }
  0x56   : > { %v675_v43 = vsel %vm312_vm0, %v673_v33, %v674_v35  ;;  %v293_v45 = vmul.f32 %v1117_v9, %v1341_v6  ;;  %v369_v46 = vmul.f32 %v1119_v10, %v1326_v28  ;;  %v805_v49 = vmul.f32 1.442695, %v793_v37 }
  0x57   : > { %v1015_v47 = vpop.eup %1014  ;;  %v599_v50 = vadd.f32 %v579_v34, %v523_v38  ;;  %v331_v51 = vrot.slane %v292_v40, 1  ;;  %v370_v52 = vmul.f32 %v1119_v10, %v1341_v6  ;;  %v751_v55 = vsel %vm389_vm1, %v749_v36, %v750_v44 }
  0x58   : > { %v1017_v53 = vpop.eup %1016  ;;  %v816_v54 = vadd.f32 1.0, %v1015_v47  ;;  %v332_v57 = vrot.slane %v293_v45, 1  ;;  %v408_v58 = vrot.slane %v369_v46, 2  ;;  %1018 = vpow2.f32 %v805_v49 }
  0x59   : > { %v839_v59 = vmul.f32 %v1017_v53, %v1299_v27  ;;  %v619_v60 = vadd.f32 %v611_v2, %v599_v50  ;;  %v409_v28 = vrot.slane %v370_v52, 2  ;;  %v440_v7 = vmul.f32 %v1121_v11, %v1381_v61  ;;  %v250_v2 = vld [vmem:[%s1113_s25 + $0x88] sm:$0x3] }
  0x5a   : > { %1020 = vrcp.f32 %v816_v54  ;;  %v333_v0 = vsel %vm312_vm0, %v331_v51, %v332_v57  ;;  %v466_v6 = vmul.f32 %v1125_v14, %v1381_v61  ;;  %v467_v62 = vmul.f32 %v1125_v14, %v1393_v4 }
  0x5b   : > { %848 = vst.msk [vmem:[%s1338_s4 + $0x10] sm:$0xff] %vm845_vm2, %v839_v59  ;;  %v695_v19 = vadd.f32 %v675_v43, %v619_v60  ;;  %v351_v24 = vadd.f32 %v333_v0, %v266_v39  ;;  %v410_v27 = vsel %vm389_vm1, %v408_v58, %v409_v28  ;;  %v542_v63 = vmul.f32 %v1127_v15, %v1381_v61  ;;  %v251_v59 = vld [vmem:[%s1113_s25 + $0x90] sm:$0xff]  ;;  %v252_v0 = vld [vmem:[%s1113_s25 + $0x98] sm:$0x3] }
  0x5c   : > { %v504_v29 = vrot.slane %v466_v6, 1  ;;  %v543_v32 = vmul.f32 %v1127_v15, %v1393_v4  ;;  %v612_v41 = vmul.f32 %v1129_v16, %v249_v18  ;;  %v505_v5 = vrot.slane %v467_v62, 1 }
  0x5d   : > { %v771_v1 = vadd.f32 %v751_v55, %v695_v19  ;;  %v428_v3 = vadd.f32 %v410_v27, %v351_v24  ;;  %v638_v12 = vmul.f32 %v1131_v17, %v249_v18  ;;  %v580_v13 = vrot.slane %v542_v63, 2 }
  0x5e   : > { %v581_v20 = vrot.slane %v543_v32, 2  ;;  %v639_v21 = vmul.f32 %v1131_v17, %v250_v2  ;;  %v714_v22 = vmul.f32 %v1160_v48, %v249_v18  ;;  %v506_v31 = vsel %vm312_vm0, %v504_v29, %v505_v5 }
  0x5f   : > { %v1443_v23 = vadd.f32 %v1207_v42, %v771_v1  ;;  %v448_v30 = vadd.f32 %v440_v7, %v428_v3  ;;  %v676_v33 = vrot.slane %v638_v12, 1  ;;  %v715_v56 = vmul.f32 %v1160_v48, %v250_v2 }
  0x60   : > { %v582_v34 = vsel %vm389_vm1, %v580_v13, %v581_v20  ;;  %v677_v35 = vrot.slane %v639_v21, 1  ;;  %v752_v36 = vrot.slane %v714_v22, 2  ;;  %v267_v39 = vmul.f32 %v1115_v8, %v1381_v61 }
  0x61   : > { %v794_v37 = vsub.f32 0.0, %v1443_v23  ;;  %v524_v38 = vadd.f32 %v506_v31, %v448_v30  ;;  %v294_v40 = vmul.f32 %v1117_v9, %v1381_v61  ;;  %v753_v44 = vrot.slane %v715_v56, 2 }
  0x62   : > { %v678_v43 = vsel %vm312_vm0, %v676_v33, %v677_v35  ;;  %v295_v45 = vmul.f32 %v1117_v9, %v1393_v4  ;;  %v371_v46 = vmul.f32 %v1119_v10, %v1381_v61  ;;  %v1019_v47 = vpop.eup %1018  ;;  %v372_v8 = vmul.f32 %v1119_v10, %v1393_v4 }
  0x63   : > { %v807_v49 = vmul.f32 1.442695, %v794_v37  ;;  %v600_v50 = vadd.f32 %v582_v34, %v524_v38  ;;  %v334_v51 = vrot.slane %v294_v40, 1  ;;  %v817_v53 = vadd.f32 1.0, %v1019_v47 }
  0x64   : > { %v1021_v52 = vpop.eup %1020  ;;  %v754_v54 = vsel %vm389_vm1, %v752_v36, %v753_v44  ;;  %v335_v55 = vrot.slane %v295_v45, 1  ;;  %v411_v57 = vrot.slane %v371_v46, 2  ;;  %v412_v58 = vrot.slane %v372_v8, 2 }
  0x65   : > { %v840_v9 = vmul.f32 %v1021_v52, %v1350_v26  ;;  %1022 = vpow2.f32 %v807_v49  ;;  %v620_v61 = vadd.f32 %v612_v41, %v600_v50  ;;  %v441_v28 = vmul.f32 %v1121_v11, %v249_v18 }
  0x66   : > { %1024 = vrcp.f32 %v817_v53  ;;  %v336_v60 = vsel %vm312_vm0, %v334_v51, %v335_v55  ;;  %v468_v10 = vmul.f32 %v1125_v14, %v249_v18  ;;  %v413_v6 = vsel %vm389_vm1, %v411_v57, %v412_v58 }
  0x67   : > { %849 = vst.msk [vmem:[%s1338_s4 + $0x18] sm:$0xff] %vm845_vm2, %v840_v9  ;;  %v696_v4 = vadd.f32 %v678_v43, %v620_v61  ;;  %v352_v7 = vadd.f32 %v336_v60, %v267_v39  ;;  %v469_v26 = vmul.f32 %v1125_v14, %v250_v2  ;;  %v544_v24 = vmul.f32 %v1127_v15, %v249_v18 }
  0x68   : > { %v507_v19 = vrot.slane %v468_v10, 1  ;;  %v545_v27 = vmul.f32 %v1127_v15, %v250_v2  ;;  %v640_v11 = vmul.f32 %v1131_v17, %v251_v59  ;;  %v641_v1 = vmul.f32 %v1131_v17, %v252_v0 }
  0x69   : > { %v772_v62 = vadd.f32 %v754_v54, %v696_v4  ;;  %v429_v29 = vadd.f32 %v413_v6, %v352_v7  ;;  %v508_v63 = vrot.slane %v469_v26, 1  ;;  %v583_v32 = vrot.slane %v544_v24, 2 }
  0x6a   : > { %v584_v41 = vrot.slane %v545_v27, 2  ;;  %v716_v3 = vmul.f32 %v1160_v48, %v251_v59  ;;  %v679_v13 = vrot.slane %v640_v11, 1  ;;  %v680_v15 = vrot.slane %v641_v1, 1 }
  0x6b   : > { %v787_v5 = vadd.f32 %v1207_v42, %v772_v62  ;;  %v449_v12 = vadd.f32 %v441_v28, %v429_v29  ;;  %v509_v14 = vsel %vm312_vm0, %v507_v19, %v508_v63  ;;  %v717_v2 = vmul.f32 %v1160_v48, %v252_v0 }
  0x6c   : > { %v585_v18 = vsel %vm389_vm1, %v583_v32, %v584_v41  ;;  %v613_v22 = vmul.f32 %v1129_v16, %v251_v59  ;;  %v755_v30 = vrot.slane %v716_v3, 2  ;;  %v681_v36 = vsel %vm312_vm0, %v679_v13, %v680_v15 }
  0x6d   : > { %v795_v20 = vsub.f32 0.0, %v787_v5  ;;  %v525_v21 = vadd.f32 %v509_v14, %v449_v12  ;;  %v756_v17 = vrot.slane %v717_v2, 2 }
  0x6f   : > { %v1023_v31 = vpop.eup %1022  ;;  %v809_v33 = vmul.f32 1.442695, %v795_v20  ;;  %v601_v34 = vadd.f32 %v585_v18, %v525_v21  ;;  %v757_v48 = vsel %vm389_vm1, %v755_v30, %v756_v17 }
  0x70   : > { %v1025_v35 = vpop.eup %1024  ;;  %v818_v56 = vadd.f32 1.0, %v1023_v31 }
  0x71   : > { %v841_v37 = vmul.f32 %v1025_v35, %v1402_v25  ;;  %1026 = vpow2.f32 %v809_v33  ;;  %v621_v38 = vadd.f32 %v613_v22, %v601_v34 }
  0x72   : > { %1028 = vrcp.f32 %v818_v56 }
  0x73   : > { %850 = vst.msk [vmem:[%s1338_s4 + $0x20] sm:$0xff] %vm845_vm2, %v841_v37  ;;  %v697_v16 = vadd.f32 %v681_v36, %v621_v38 }
  0x75   : > { %v773_v39 = vadd.f32 %v757_v48, %v697_v16 }
  0x77   : > { %v788_v40 = vadd.f32 %v1207_v42, %v773_v39 }
  0x79   : > { %v796_v43 = vsub.f32 0.0, %v788_v40 }
  0x7b   : > { %v1027_v44 = vpop.eup %1026  ;;  %v811_v45 = vmul.f32 1.442695, %v796_v43 }
  0x7c   : > { %v1029_v46 = vpop.eup %1028  ;;  %v819_v47 = vadd.f32 1.0, %v1027_v44 }
  0x7d   : > { %v842_v25 = vmul.f32 %v1029_v46, %v1443_v23  ;;  %1030 = vpow2.f32 %v811_v45 }
  0x7e   : > { %1032 = vrcp.f32 %v819_v47 }
  0x7f   : > { %851 = vst.msk [vmem:[%s1338_s4 + $0x28] sm:$0xff] %vm845_vm2, %v842_v25 }
  0x87   : > { %v1031_v49 = vpop.eup %1030 }
  0x88   : > { %v1033_v50 = vpop.eup %1032  ;;  %v820_v51 = vadd.f32 1.0, %v1031_v49 }
  0x89   : > { %v843_v8 = vmul.f32 %v1033_v50, %v787_v5 }
  0x8a   : > { %1034 = vrcp.f32 %v820_v51 }
  0x8b   : > { %852 = vst.msk [vmem:[%s1338_s4 + $0x30] sm:$0xff] %vm845_vm2, %v843_v8 }
  0x94   : > { %v1035_v42 = vpop.eup %1034 }
  0x95   : > { %v844_v52 = vmul.f32 %v1035_v42, %v788_v40 }
  0x97   : > { %853 = vst.msk [vmem:[%s1338_s4 + $0x38] sm:$0xff] %vm845_vm2, %v844_v52 }
  0x98 PF: > { %s13_s14 = sadd.s32 1, %s1058_s14   ;;  %s1507_s12 = smov %s1054_s13 }
  0x99   : > { %p10_p5 = scmp.ge.s32.totalorder %s13_s14, 4   ;;  %s1508_s13 = smov %s1510_s15 }
  0x9b   :  { %12 = sbr.rel (!%p10_p5) target bundleno = 2 (0x2), region = 68 }

// kernel: _lambda_.23
= control target key start
LH: loop header
LB: loop body
LE: loop exit
PB: predicated region body
PF: predicated region fallthrough
CT: control target
= control target key end

     0   :  { %vm37_vm0 = vcmask 261120   ;;  %s883_s0 = inlined_call_operand.vmem [shape: f32[128,32], index: 0, kind: input, shape index: {}]   ;;  %s884_s3 = inlined_call_operand.vmem [shape: bf16[32,128], index: 3, kind: input, shape index: {}]   ;;  %s885_s1 = inlined_call_operand.vmem [shape: f32[1,32], index: 1, kind: input, shape index: {}]   ;;  %s886_s2 = inlined_call_operand.vmem [shape: f32[1,32], index: 2, kind: input, shape index: {}]   ;;  %s887_s4 = inlined_call_operand.vmem [shape: f32[1,128], index: 4, kind: input, shape index: {}]   ;;  %s888_s5 = inlined_call_operand.vmem [shape: f32[128,128], index: 5, kind: output, shape index: {}]  }
   0x1   :  { %v21_v0 = vld [vmem:[%s883_s0] sm:$0xff]  ;;  %v22_v2 = vld [vmem:[%s883_s0 + $0x8] sm:$0xff]  ;;  %v23_v8 = vld [vmem:[%s883_s0 + $0x10] sm:$0xff] }
   0x2   :  { %v29_v1 = vld [vmem:[%s883_s0 + $0x40] sm:$0xff]  ;;  %v38_v3 = vsel %vm37_vm0, %v21_v0, 0.0  ;;  %v30_v5 = vld [vmem:[%s883_s0 + $0x48] sm:$0xff]  ;;  %v41_v6 = vsel %vm37_vm0, %v22_v2, 0.0  ;;  %v24_v9 = vld [vmem:[%s883_s0 + $0x18] sm:$0xff]  ;;  %v44_v10 = vsel %vm37_vm0, %v23_v8, 0.0 }
   0x3   :  { %v62_v4 = vsel %vm37_vm0, %v29_v1, 0.0  ;;  %39 = vadd.xlane.f32.xlu0 %v38_v3  ;;  %v65_v7 = vsel %vm37_vm0, %v30_v5, 0.0  ;;  %v47_v11 = vsel %vm37_vm0, %v24_v9, 0.0  ;;  %v603_v12 = vld [vmem:[%s883_s0 + $0x50] sm:$0xff]  ;;  %v608_v13 = vld [vmem:[%s883_s0 + $0x58] sm:$0xff]  ;;  %v617_v16 = vld [vmem:[%s883_s0 + $0x20] sm:$0xff] }
   0x4   :  { %63 = vadd.xlane.f32.xlu1 %v62_v4  ;;  %v68_v14 = vsel %vm37_vm0, %v603_v12, 0.0  ;;  %v71_v15 = vsel %vm37_vm0, %v608_v13, 0.0  ;;  %v622_v17 = vld [vmem:[%s883_s0 + $0x28] sm:$0xff]  ;;  %v50_v18 = vsel %vm37_vm0, %v617_v16, 0.0  ;;  %v631_v20 = vld [vmem:[%s883_s0 + $0x60] sm:$0xff]  ;;  %v645_v24 = vld [vmem:[%s883_s0 + $0x30] sm:$0xff] }
   0x5   :  { %v53_v19 = vsel %vm37_vm0, %v622_v17, 0.0  ;;  %v636_v21 = vld [vmem:[%s883_s0 + $0x68] sm:$0xff]  ;;  %v74_v22 = vsel %vm37_vm0, %v631_v20, 0.0  ;;  %v650_v25 = vld [vmem:[%s883_s0 + $0x38] sm:$0xff]  ;;  %v56_v26 = vsel %vm37_vm0, %v645_v24, 0.0  ;;  %v659_v28 = vld [vmem:[%s883_s0 + $0x70] sm:$0xff] }
   0x6   :  { %v77_v23 = vsel %vm37_vm0, %v636_v21, 0.0  ;;  %v59_v27 = vsel %vm37_vm0, %v650_v25, 0.0  ;;  %v664_v29 = vld [vmem:[%s883_s0 + $0x78] sm:$0xff]  ;;  %v80_v30 = vsel %vm37_vm0, %v659_v28, 0.0 }
   0x7   :  { %42 = vadd.xlane.f32.xlu0 %v41_v6  ;;  %v83_v31 = vsel %vm37_vm0, %v664_v29, 0.0 }
   0x8   :  { %66 = vadd.xlane.f32.xlu1 %v65_v7 }
   0xb   :  { %45 = vadd.xlane.f32.xlu0 %v44_v10 }
   0xc   :  { %48 = vadd.xlane.f32.xlu1 %v47_v11 }
   0xf   :  { %69 = vadd.xlane.f32.xlu0 %v68_v14 }
  0x10   :  { %72 = vadd.xlane.f32.xlu1 %v71_v15 }
  0x13   :  { %51 = vadd.xlane.f32.xlu0 %v50_v18 }
  0x14   :  { %54 = vadd.xlane.f32.xlu1 %v53_v19 }
  0x17   :  { %75 = vadd.xlane.f32.xlu0 %v74_v22 }
  0x18   :  { %78 = vadd.xlane.f32.xlu1 %v77_v23 }
  0x1b   :  { %57 = vadd.xlane.f32.xlu0 %v56_v26 }
  0x1c   :  { %60 = vadd.xlane.f32.xlu1 %v59_v27 }
  0x1f   :  { %81 = vadd.xlane.f32.xlu0 %v80_v30 }
  0x20   :  { %84 = vadd.xlane.f32.xlu1 %v83_v31 }
  0x90   :  { %v40_v32 = vpop.xlane.xlu0 %39 }
  0x91   :  { %v64_v33 = vpop.xlane.xlu1 %63  ;;  %v87_v34 = vmul.f32 0.03125, %v40_v32 }
  0x92   :  { %v95_v35 = vmul.f32 0.03125, %v64_v33 }
  0x93   :  { %v670_v36 = vsub.f32 %v21_v0, %v87_v34 }
  0x94   :  { %v672_v37 = vsub.f32 %v29_v1, %v95_v35  ;;  %v43_v38 = vpop.xlane.xlu0 %42 }
  0x95   :  { %v67_v39 = vpop.xlane.xlu1 %66  ;;  %v88_v40 = vmul.f32 0.03125, %v43_v38  ;;  %v119_v42 = vmul.f32 %v670_v36, %v670_v36 }
  0x96   :  { %v96_v41 = vmul.f32 0.03125, %v67_v39  ;;  %v127_v43 = vmul.f32 %v672_v37, %v672_v37 }
  0x97   :  { %v678_v44 = vsub.f32 %v22_v2, %v88_v40  ;;  %v135_v46 = vsel %vm37_vm0, %v119_v42, 0.0 }
  0x98   :  { %v680_v45 = vsub.f32 %v30_v5, %v96_v41  ;;  %136 = vadd.xlane.f32.xlu0 %v135_v46  ;;  %v46_v47 = vpop.xlane.xlu0 %45  ;;  %v159_v49 = vsel %vm37_vm0, %v127_v43, 0.0 }
  0x99   :  { %v49_v48 = vpop.xlane.xlu1 %48  ;;  %v89_v50 = vmul.f32 0.03125, %v46_v47  ;;  %v120_v52 = vmul.f32 %v678_v44, %v678_v44 }
  0x9a   :  { %v90_v51 = vmul.f32 0.03125, %v49_v48  ;;  %v128_v53 = vmul.f32 %v680_v45, %v680_v45 }
  0x9b   :  { %v688_v54 = vsub.f32 %v23_v8, %v89_v50  ;;  %v138_v56 = vsel %vm37_vm0, %v120_v52, 0.0 }
  0x9c   :  { %v690_v55 = vsub.f32 %v24_v9, %v90_v51  ;;  %160 = vadd.xlane.f32.xlu0 %v159_v49  ;;  %139 = vadd.xlane.f32.xlu1 %v138_v56  ;;  %v70_v57 = vpop.xlane.xlu0 %69  ;;  %v162_v59 = vsel %vm37_vm0, %v128_v53, 0.0  ;;  %v513_v53 = vld [vmem:[%s884_s3 + $0x8] sm:$0xff]  }
  0x9d   :  { %v73_v58 = vpop.xlane.xlu1 %72  ;;  %v97_v60 = vmul.f32 0.03125, %v70_v57  ;;  %v121_v62 = vmul.f32 %v688_v54, %v688_v54 }
  0x9e   :  { %v98_v61 = vmul.f32 0.03125, %v73_v58  ;;  %v122_v63 = vmul.f32 %v690_v55, %v690_v55 }
  0x9f   :  { %v699_v0 = vsub.f32 %v603_v12, %v97_v60  ;;  %v141_v2 = vsel %vm37_vm0, %v121_v62, 0.0 }
  0xa0   :  { %v702_v1 = vsub.f32 %v608_v13, %v98_v61  ;;  %163 = vadd.xlane.f32.xlu1 %v162_v59  ;;  %142 = vadd.xlane.f32.xlu0 %v141_v2  ;;  %v52_v3 = vpop.xlane.xlu0 %51  ;;  %v144_v5 = vsel %vm37_vm0, %v122_v63, 0.0 }
  0xa1   :  { %v55_v4 = vpop.xlane.xlu1 %54  ;;  %v91_v6 = vmul.f32 0.03125, %v52_v3  ;;  %v129_v8 = vmul.f32 %v699_v0, %v699_v0 }
  0xa2   :  { %v92_v7 = vmul.f32 0.03125, %v55_v4  ;;  %v130_v9 = vmul.f32 %v702_v1, %v702_v1 }
  0xa3   :  { %v711_v10 = vsub.f32 %v617_v16, %v91_v6  ;;  %v165_v12 = vsel %vm37_vm0, %v129_v8, 0.0 }
  0xa4   :  { %v714_v11 = vsub.f32 %v622_v17, %v92_v7  ;;  %145 = vadd.xlane.f32.xlu1 %v144_v5  ;;  %166 = vadd.xlane.f32.xlu0 %v165_v12  ;;  %v76_v13 = vpop.xlane.xlu0 %75  ;;  %v168_v15 = vsel %vm37_vm0, %v130_v9, 0.0 }
  0xa5   :  { %v79_v14 = vpop.xlane.xlu1 %78  ;;  %v99_v18 = vmul.f32 0.03125, %v76_v13  ;;  %v123_v22 = vmul.f32 %v711_v10, %v711_v10 }
  0xa6   :  { %v100_v19 = vmul.f32 0.03125, %v79_v14  ;;  %v124_v16 = vmul.f32 %v714_v11, %v714_v11 }
  0xa7   :  { %v723_v23 = vsub.f32 %v631_v20, %v99_v18  ;;  %v147_v26 = vsel %vm37_vm0, %v123_v22, 0.0 }
  0xa8   :  { %v726_v17 = vsub.f32 %v636_v21, %v100_v19  ;;  %169 = vadd.xlane.f32.xlu1 %v168_v15  ;;  %148 = vadd.xlane.f32.xlu0 %v147_v26  ;;  %v58_v27 = vpop.xlane.xlu0 %57  ;;  %v150_v31 = vsel %vm37_vm0, %v124_v16, 0.0 }
  0xa9   :  { %v61_v30 = vpop.xlane.xlu1 %60  ;;  %v93_v32 = vmul.f32 0.03125, %v58_v27  ;;  %v131_v34 = vmul.f32 %v723_v23, %v723_v23 }
  0xaa   :  { %v94_v33 = vmul.f32 0.03125, %v61_v30  ;;  %v132_v20 = vmul.f32 %v726_v17, %v726_v17 }
  0xab   :  { %v735_v35 = vsub.f32 %v645_v24, %v93_v32  ;;  %v171_v38 = vsel %vm37_vm0, %v131_v34, 0.0 }
  0xac   :  { %v738_v21 = vsub.f32 %v650_v25, %v94_v33  ;;  %151 = vadd.xlane.f32.xlu1 %v150_v31  ;;  %172 = vadd.xlane.f32.xlu0 %v171_v38  ;;  %v82_v39 = vpop.xlane.xlu0 %81  ;;  %v174_v41 = vsel %vm37_vm0, %v132_v20, 0.0  ;;  %v770_v31 = vld [vmem:[%s885_s1] ss:$0 sm:$0xff] }
  0xad   :  { %v85_v40 = vpop.xlane.xlu1 %84  ;;  %v101_v42 = vmul.f32 0.03125, %v82_v39  ;;  %v125_v46 = vmul.f32 %v735_v35, %v735_v35 }
  0xae   :  { %v102_v43 = vmul.f32 0.03125, %v85_v40  ;;  %v126_v24 = vmul.f32 %v738_v21, %v738_v21 }
  0xaf   :  { %v747_v47 = vsub.f32 %v659_v28, %v101_v42  ;;  %v153_v48 = vsel %vm37_vm0, %v125_v46, 0.0 }
  0xb0   :  { %v750_v25 = vsub.f32 %v664_v29, %v102_v43  ;;  %175 = vadd.xlane.f32.xlu1 %v174_v41  ;;  %154 = vadd.xlane.f32.xlu0 %v153_v48  ;;  %v156_v49 = vsel %vm37_vm0, %v126_v24, 0.0  ;;  %v512_v29 = vld [vmem:[%s884_s3] sm:$0xff]  }
  0xb1   :  { %v133_v50 = vmul.f32 %v747_v47, %v747_v47  ;;  %488 = vmatprep.subr.bf16.mxu0 %v512_v29  ;;  %508 = vmatprep.subr.bf16.mxu1 %v512_v29  ;;  %v777_v43 = vld [vmem:[%s886_s2] ss:$0 sm:$0xff] }
  0xb2   :  { %v134_v51 = vmul.f32 %v750_v25, %v750_v25  ;;  %489 = vmatpush3.bf16.msra.mxu0 %v512_v29  ;;  %510 = vmatpush3.bf16.msra.mxu1 %v512_v29 }
  0xb3   :  { %v177_v52 = vsel %vm37_vm0, %v133_v50, 0.0  ;;  %490 = vmatprep.subr.bf16.mxu0 %v513_v53  ;;  %509 = vmatprep.subr.bf16.mxu1 %v513_v53 }
  0xb4   :  { %157 = vadd.xlane.f32.xlu1 %v156_v49  ;;  %178 = vadd.xlane.f32.xlu0 %v177_v52  ;;  %v180_v28 = vsel %vm37_vm0, %v134_v51, 0.0 }
  0xb6   :  { %491 = vmatpush3.bf16.msra.mxu0 %v513_v53  ;;  %511 = vmatpush3.bf16.msra.mxu1 %v513_v53 }
  0xb8   :  { %181 = vadd.xlane.f32.xlu1 %v180_v28 }
 0x125   :  { %v137_v56 = vpop.xlane.xlu0 %136 }
 0x126   :  { %v183_v57 = vmul.f32 0.03125, %v137_v56 }
 0x128   :  { %v199_v58 = vadd.f32 1e-05, %v183_v57 }
 0x129   :  { %v140_v59 = vpop.xlane.xlu1 %139  ;;  %v161_v60 = vpop.xlane.xlu0 %160 }
 0x12a   :  { %514 = vrsqrt.f32 %v199_v58  ;;  %v184_v61 = vmul.f32 0.03125, %v140_v59  ;;  %v191_v62 = vmul.f32 0.03125, %v161_v60 }
 0x12c   :  { %v200_v63 = vadd.f32 1e-05, %v184_v61  ;;  %v207_v2 = vadd.f32 1e-05, %v191_v62 }
 0x12d   :  { %v164_v3 = vpop.xlane.xlu1 %163  ;;  %v143_v4 = vpop.xlane.xlu0 %142 }
 0x12e   :  { %516 = vrsqrt.f32 %v200_v63  ;;  %v192_v5 = vmul.f32 0.03125, %v164_v3  ;;  %v185_v6 = vmul.f32 0.03125, %v143_v4 }
 0x12f   :  { %518 = vrsqrt.f32 %v207_v2 }
 0x130   :  { %v208_v7 = vadd.f32 1e-05, %v192_v5  ;;  %v201_v8 = vadd.f32 1e-05, %v185_v6 }
 0x131   :  { %v146_v9 = vpop.xlane.xlu1 %145  ;;  %v167_v12 = vpop.xlane.xlu0 %166 }
 0x132   :  { %520 = vrsqrt.f32 %v208_v7  ;;  %v186_v13 = vmul.f32 0.03125, %v146_v9  ;;  %v193_v14 = vmul.f32 0.03125, %v167_v12 }
 0x133   :  { %522 = vrsqrt.f32 %v201_v8 }
 0x134   :  { %v515_v15 = vpop.eup %514  ;;  %v202_v18 = vadd.f32 1e-05, %v186_v13  ;;  %v209_v19 = vadd.f32 1e-05, %v193_v14 }
 0x135   :  { %v170_v22 = vpop.xlane.xlu1 %169  ;;  %v149_v16 = vpop.xlane.xlu0 %148  ;;  %v231_v26 = vmul.f32 %v515_v15, %v670_v36 }
 0x136   :  { %524 = vrsqrt.f32 %v202_v18  ;;  %v194_v27 = vmul.f32 0.03125, %v170_v22  ;;  %v187_v30 = vmul.f32 0.03125, %v149_v16 }
 0x137   :  { %526 = vrsqrt.f32 %v209_v19  ;;  %v254_v41 = vmul.f32 %v770_v31, %v231_v26 }
 0x138   :  { %v517_v32 = vpop.eup %516  ;;  %v210_v33 = vadd.f32 1e-05, %v194_v27  ;;  %v203_v34 = vadd.f32 1e-05, %v187_v30 }
 0x139   :  { %v519_v20 = vpop.eup %518  ;;  %v152_v38 = vpop.xlane.xlu1 %151  ;;  %v232_v40 = vmul.f32 %v517_v32, %v678_v44  ;;  %v277_v28 = vadd.f32 %v777_v43, %v254_v41 }
 0x13a   :  { %v173_v39 = vpop.xlane.xlu0 %172  ;;  %528 = vrsqrt.f32 %v210_v33  ;;  %v188_v36 = vmul.f32 0.03125, %v152_v38  ;;  %v239_v46 = vmul.f32 %v519_v20, %v672_v37 }
 0x13b   :  { %v195_v42 = vmul.f32 0.03125, %v173_v39  ;;  %530 = vrsqrt.f32 %v203_v34  ;;  %v255_v24 = vmul.f32 %v770_v31, %v232_v40 }
 0x13c   :  { %v521_v48 = vpop.eup %520  ;;  %v204_v49 = vadd.f32 1e-05, %v188_v36  ;;  %v262_v56 = vmul.f32 %v770_v31, %v239_v46 }
 0x13d   :  { %v211_v50 = vadd.f32 1e-05, %v195_v42  ;;  %v523_v51 = vpop.eup %522  ;;  %v176_v44 = vpop.xlane.xlu1 %175  ;;  %v278_v29 = vadd.f32 %v777_v43, %v255_v24  ;;  %v240_v53 = vmul.f32 %v521_v48, %v680_v45 }
 0x13e   :  { %v155_v52 = vpop.xlane.xlu0 %154  ;;  %v233_v57 = vmul.f32 %v523_v51, %v688_v54  ;;  %532 = vrsqrt.f32 %v204_v49  ;;  %v196_v37 = vmul.f32 0.03125, %v176_v44  ;;  %v285_v5 = vadd.f32 %v777_v43, %v262_v56 }
 0x13f   :  { %v189_v58 = vmul.f32 0.03125, %v155_v52  ;;  %534 = vrsqrt.f32 %v211_v50  ;;  %v293_v59 = vpack.c.bf16 %v278_v29, %v277_v28  ;;  %v263_v60 = vmul.f32 %v770_v31, %v240_v53 }
 0x140   :  { %v525_v61 = vpop.eup %524  ;;  %v212_v62 = vadd.f32 1e-05, %v196_v37  ;;  %v256_v6 = vmul.f32 %v770_v31, %v233_v57 }
 0x141   :  { %v205_v63 = vadd.f32 1e-05, %v189_v58  ;;  %v527_v2 = vpop.eup %526  ;;  %v234_v3 = vmul.f32 %v525_v61, %v690_v55  ;;  %v158_v4 = vpop.xlane.xlu1 %157  ;;  %492 = vmatprep.mubr.msk.bf16.mxu0 %vm37_vm0, %v293_v59  ;;  %v286_v54 = vadd.f32 %v777_v43, %v263_v60 }
 0x142   :  { %v179_v45 = vpop.xlane.xlu0 %178  ;;  %v241_v7 = vmul.f32 %v527_v2, %v699_v0  ;;  %536 = vrsqrt.f32 %v212_v62  ;;  %v190_v8 = vmul.f32 0.03125, %v158_v4  ;;  %v279_v16 = vadd.f32 %v777_v43, %v256_v6 }
 0x143   :  { %v197_v9 = vmul.f32 0.03125, %v179_v45  ;;  %538 = vrsqrt.f32 %v205_v63  ;;  %v297_v12 = vpack.c.bf16 %v286_v54, %v285_v5  ;;  %v257_v13 = vmul.f32 %v770_v31, %v234_v3 }
 0x144   :  { %v529_v55 = vpop.eup %528  ;;  %v206_v14 = vadd.f32 1e-05, %v190_v8  ;;  %v264_v26 = vmul.f32 %v770_v31, %v241_v7 }
 0x145   :  { %v213_v15 = vadd.f32 1e-05, %v197_v9  ;;  %v531_v18 = vpop.eup %530  ;;  %v242_v19 = vmul.f32 %v529_v55, %v702_v1  ;;  %v182_v22 = vpop.xlane.xlu1 %181  ;;  %500 = vmatprep.mubr.msk.bf16.mxu1 %vm37_vm0, %v297_v12  ;;  %v280_v0 = vadd.f32 %v777_v43, %v257_v13 }
 0x146   :  { %v235_v27 = vmul.f32 %v531_v18, %v711_v10  ;;  %540 = vrsqrt.f32 %v206_v14  ;;  %v198_v30 = vmul.f32 0.03125, %v182_v22  ;;  %v287_v39 = vadd.f32 %v777_v43, %v264_v26 }
 0x147   :  { %542 = vrsqrt.f32 %v213_v15  ;;  %v294_v32 = vpack.c.bf16 %v280_v0, %v279_v16  ;;  %v265_v33 = vmul.f32 %v770_v31, %v242_v19 }
 0x148   :  { %v533_v34 = vpop.eup %532  ;;  %v214_v20 = vadd.f32 1e-05, %v198_v30  ;;  %v258_v41 = vmul.f32 %v770_v31, %v235_v27 }
 0x149   :  { %v535_v1 = vpop.eup %534  ;;  %v236_v38 = vmul.f32 %v533_v34, %v714_v11  ;;  %493 = vmatmul.mubr.msk.bf16.vlgmr.msra.gmra.mrb[0].mxu0 %vm37_vm0, %v294_v32  ;;  %v288_v40 = vadd.f32 %v777_v43, %v265_v33 }
 0x14a   :  { %v243_v10 = vmul.f32 %v535_v1, %v723_v23  ;;  %544 = vrsqrt.f32 %v214_v20  ;;  %v281_v11 = vadd.f32 %v777_v43, %v258_v41 }
 0x14b   :  { %v298_v36 = vpack.c.bf16 %v288_v40, %v287_v39  ;;  %v259_v42 = vmul.f32 %v770_v31, %v236_v38 }
 0x14c   :  { %v537_v46 = vpop.eup %536  ;;  %v266_v50 = vmul.f32 %v770_v31, %v243_v10 }
 0x14d   :  { %v539_v24 = vpop.eup %538  ;;  %v244_v48 = vmul.f32 %v537_v46, %v726_v17  ;;  %501 = vmatmul.mubr.msk.bf16.vlgmr.msra.gmra.mrb[0].mxu1 %vm37_vm0, %v298_v36  ;;  %v282_v49 = vadd.f32 %v777_v43, %v259_v42 }
 0x14e   :  { %v237_v51 = vmul.f32 %v539_v24, %v735_v35  ;;  %v289_v17 = vadd.f32 %v777_v43, %v266_v50 }
 0x14f   :  { %v295_v44 = vpack.c.bf16 %v282_v49, %v281_v11  ;;  %v267_v23 = vmul.f32 %v770_v31, %v244_v48 }
 0x150   :  { %v541_v52 = vpop.eup %540  ;;  %v260_v56 = vmul.f32 %v770_v31, %v237_v51 }
 0x151   :  { %v543_v28 = vpop.eup %542  ;;  %v238_v29 = vmul.f32 %v541_v52, %v738_v21  ;;  %496 = vmatprep.mubr.msk.bf16.mxu0 %vm37_vm0, %v295_v44  ;;  %v290_v53 = vadd.f32 %v777_v43, %v267_v23 }
 0x152   :  { %v245_v57 = vmul.f32 %v543_v28, %v747_v47  ;;  %v283_v21 = vadd.f32 %v777_v43, %v260_v56 }
 0x153   :  { %v299_v37 = vpack.c.bf16 %v290_v53, %v289_v17  ;;  %v261_v35 = vmul.f32 %v770_v31, %v238_v29 }
 0x154   :  { %v545_v58 = vpop.eup %544  ;;  %v268_v61 = vmul.f32 %v770_v31, %v245_v57 }
 0x155   :  { %v246_v59 = vmul.f32 %v545_v58, %v750_v25  ;;  %504 = vmatprep.mubr.msk.bf16.mxu1 %vm37_vm0, %v299_v37  ;;  %v284_v60 = vadd.f32 %v777_v43, %v261_v35  ;;  %v467_v25 = vld [vmem:[%s887_s4] ss:$0 sm:$0xff] }
 0x156   :  { %v291_v47 = vadd.f32 %v777_v43, %v268_v61 }
 0x157   :  { %v296_v62 = vpack.c.bf16 %v284_v60, %v283_v21  ;;  %v269_v63 = vmul.f32 %v770_v31, %v246_v59 }
 0x159   :  { %497 = vmatmul.mubr.msk.bf16.gmra.mrb[4].mxu0 %vm37_vm0, %v296_v62  ;;  %v292_v2 = vadd.f32 %v777_v43, %v269_v63 }
 0x15b   :  { %v300_v3 = vpack.c.bf16 %v292_v2, %v291_v47 }
 0x15d   :  { %505 = vmatmul.mubr.msk.bf16.gmra.mrb[4].mxu1 %vm37_vm0, %v300_v3 }
 0x21c   :  { %v494_v4 = vpop.f32.mrb[0].mxu0 }
 0x21d   :  { %v391_v45 = vadd.f32 %v494_v4, %v467_v25  ;;  %v382_v5 = vpop.f32.mrb[1].mxu0 }
 0x21e   :  { %v383_v54 = vadd.f32 %v467_v25, %v382_v5  ;;  %v495_v6 = vpop.f32.mrb[2].mxu0 }
 0x21f   :  { %447 = vst [vmem:[%s888_s5 + $0x10] sm:$0xff] %v391_v45  ;;  %v394_v31 = vadd.f32 %v495_v6, %v467_v25  ;;  %v385_v7 = vpop.f32.mrb[3].mxu0 }
 0x220   :  { %445 = vst [vmem:[%s888_s5] sm:$0xff] %v383_v54  ;;  %v386_v43 = vadd.f32 %v467_v25, %v385_v7  ;;  %v502_v8 = vpop.f32.mrb[0].mxu1 }
 0x221   :  { %448 = vst [vmem:[%s888_s5 + $0x18] sm:$0xff] %v394_v31  ;;  %v423_v9 = vadd.f32 %v502_v8, %v467_v25  ;;  %v414_v12 = vpop.f32.mrb[1].mxu1 }
 0x222   :  { %446 = vst [vmem:[%s888_s5 + $0x8] sm:$0xff] %v386_v43  ;;  %v415_v13 = vadd.f32 %v467_v25, %v414_v12  ;;  %v503_v55 = vpop.f32.mrb[2].mxu1 }
 0x223   :  { %455 = vst [vmem:[%s888_s5 + $0x50] sm:$0xff] %v423_v9  ;;  %v426_v14 = vadd.f32 %v503_v55, %v467_v25  ;;  %v417_v15 = vpop.f32.mrb[3].mxu1 }
 0x224   :  { %453 = vst [vmem:[%s888_s5 + $0x40] sm:$0xff] %v415_v13  ;;  %v418_v18 = vadd.f32 %v467_v25, %v417_v15 }
 0x225   :  { %456 = vst [vmem:[%s888_s5 + $0x58] sm:$0xff] %v426_v14 }
 0x226   :  { %454 = vst [vmem:[%s888_s5 + $0x48] sm:$0xff] %v418_v18 }
 0x22c   :  { %v498_v19 = vpop.f32.mrb[4].mxu0 }
 0x22d   :  { %v407_v22 = vadd.f32 %v498_v19, %v467_v25  ;;  %v398_v16 = vpop.f32.mrb[5].mxu0 }
 0x22e   :  { %v399_v0 = vadd.f32 %v467_v25, %v398_v16  ;;  %v499_v26 = vpop.f32.mrb[6].mxu0 }
 0x22f   :  { %451 = vst [vmem:[%s888_s5 + $0x30] sm:$0xff] %v407_v22  ;;  %v410_v27 = vadd.f32 %v499_v26, %v467_v25  ;;  %v401_v30 = vpop.f32.mrb[7].mxu0 }
 0x230   :  { %449 = vst [vmem:[%s888_s5 + $0x20] sm:$0xff] %v399_v0  ;;  %v402_v32 = vadd.f32 %v467_v25, %v401_v30  ;;  %v506_v33 = vpop.f32.mrb[4].mxu1 }
 0x231   :  { %452 = vst [vmem:[%s888_s5 + $0x38] sm:$0xff] %v410_v27  ;;  %v439_v34 = vadd.f32 %v506_v33, %v467_v25  ;;  %v430_v20 = vpop.f32.mrb[5].mxu1 }
 0x232   :  { %450 = vst [vmem:[%s888_s5 + $0x28] sm:$0xff] %v402_v32  ;;  %v431_v1 = vadd.f32 %v467_v25, %v430_v20  ;;  %v507_v38 = vpop.f32.mrb[6].mxu1 }
 0x233   :  { %459 = vst [vmem:[%s888_s5 + $0x70] sm:$0xff] %v439_v34  ;;  %v442_v39 = vadd.f32 %v507_v38, %v467_v25  ;;  %v433_v40 = vpop.f32.mrb[7].mxu1 }
 0x234   :  { %457 = vst [vmem:[%s888_s5 + $0x60] sm:$0xff] %v431_v1  ;;  %v434_v41 = vadd.f32 %v467_v25, %v433_v40 }
 0x235   :  { %460 = vst [vmem:[%s888_s5 + $0x78] sm:$0xff] %v442_v39 }
 0x236   :  { %458 = vst [vmem:[%s888_s5 + $0x68] sm:$0xff] %v434_v41 }

// kernel: _lambda_.25
= control target key start
LH: loop header
LB: loop body
LE: loop exit
PB: predicated region body
PF: predicated region fallthrough
CT: control target
= control target key end

     0   :  { %s586_s1 = inlined_call_operand.vmem [shape: bf16[128,128], index: 1, kind: input, shape index: {}]   ;;  %s587_s0 = inlined_call_operand.vmem [shape: bf16[128,128], index: 0, kind: input, shape index: {}]   ;;  %s588_s2 = inlined_call_operand.vmem [shape: f32[1,128], index: 2, kind: input, shape index: {}]   ;;  %s589_s3 = inlined_call_operand.vmem [shape: f32[128,128], index: 3, kind: output, shape index: {}]  }
   0x1   :  { %v451_v0 = vld [vmem:[%s586_s1] sm:$0xff]   ;;  %v452_v1 = vld [vmem:[%s586_s1 + $0x8] sm:$0xff]   ;;  %v453_v2 = vld [vmem:[%s586_s1 + $0x10] sm:$0xff]  }
   0x2   :  { %403 = vmatprep.subr.bf16.mxu0 %v451_v0  ;;  %435 = vmatprep.subr.bf16.mxu1 %v451_v0  ;;  %v454_v3 = vld [vmem:[%s586_s1 + $0x18] sm:$0xff]   ;;  %v459_v4 = vld [vmem:[%s587_s0] sm:$0xff]   ;;  %v456_v7 = vld [vmem:[%s586_s1 + $0x28] sm:$0xff]  }
   0x3   :  { %404 = vmatpush3.bf16.msra.mxu0 %v451_v0  ;;  %443 = vmatpush3.bf16.msra.mxu1 %v451_v0  ;;  %v460_v5 = vld [vmem:[%s587_s0 + $0x20] sm:$0xff]   ;;  %v457_v8 = vld [vmem:[%s586_s1 + $0x30] sm:$0xff]   ;;  %v458_v9 = vld [vmem:[%s586_s1 + $0x38] sm:$0xff]  }
   0x4   :  { %405 = vmatprep.subr.bf16.mxu0 %v452_v1  ;;  %436 = vmatprep.subr.bf16.mxu1 %v452_v1  ;;  %v455_v6 = vld [vmem:[%s586_s1 + $0x20] sm:$0xff]   ;;  %v461_v10 = vld [vmem:[%s587_s0 + $0x8] sm:$0xff]   ;;  %v463_v12 = vld [vmem:[%s587_s0 + $0x10] sm:$0xff]  }
   0x5   :  { %419 = vmatprep.mubr.bf16.mxu0 %v459_v4  ;;  %427 = vmatprep.mubr.bf16.mxu1 %v460_v5  ;;  %v462_v11 = vld [vmem:[%s587_s0 + $0x28] sm:$0xff]   ;;  %v464_v13 = vld [vmem:[%s587_s0 + $0x30] sm:$0xff]   ;;  %v465_v14 = vld [vmem:[%s587_s0 + $0x18] sm:$0xff]  }
   0x6   :  { %v466_v15 = vld [vmem:[%s587_s0 + $0x38] sm:$0xff]   ;;  %v386_v16 = vld [vmem:[%s588_s2] ss:$0 sm:$0xff] }
   0x7   :  { %406 = vmatpush3.bf16.msra.mxu0 %v452_v1  ;;  %444 = vmatpush3.bf16.msra.mxu1 %v452_v1 }
   0x8   :  { %407 = vmatprep.subr.bf16.mxu0 %v453_v2  ;;  %437 = vmatprep.subr.bf16.mxu1 %v453_v2 }
   0xb   :  { %408 = vmatpush3.bf16.msra.mxu0 %v453_v2  ;;  %445 = vmatpush3.bf16.msra.mxu1 %v453_v2 }
   0xc   :  { %409 = vmatprep.subr.bf16.mxu0 %v454_v3  ;;  %438 = vmatprep.subr.bf16.mxu1 %v454_v3 }
   0xf   :  { %410 = vmatpush3.bf16.msra.mxu0 %v454_v3  ;;  %446 = vmatpush3.bf16.msra.mxu1 %v454_v3 }
  0x10   :  { %411 = vmatprep.subr.bf16.mxu0 %v455_v6  ;;  %439 = vmatprep.subr.bf16.mxu1 %v455_v6 }
  0x13   :  { %412 = vmatpush3.bf16.msra.mxu0 %v455_v6  ;;  %447 = vmatpush3.bf16.msra.mxu1 %v455_v6 }
  0x14   :  { %413 = vmatprep.subr.bf16.mxu0 %v456_v7  ;;  %440 = vmatprep.subr.bf16.mxu1 %v456_v7 }
  0x17   :  { %414 = vmatpush3.bf16.msra.mxu0 %v456_v7  ;;  %448 = vmatpush3.bf16.msra.mxu1 %v456_v7 }
  0x18   :  { %415 = vmatprep.subr.bf16.mxu0 %v457_v8  ;;  %441 = vmatprep.subr.bf16.mxu1 %v457_v8 }
  0x1b   :  { %416 = vmatpush3.bf16.msra.mxu0 %v457_v8  ;;  %449 = vmatpush3.bf16.msra.mxu1 %v457_v8 }
  0x1c   :  { %417 = vmatprep.subr.bf16.mxu0 %v458_v9  ;;  %442 = vmatprep.subr.bf16.mxu1 %v458_v9 }
  0x1f   :  { %418 = vmatpush3.bf16.msra.mxu0 %v458_v9  ;;  %450 = vmatpush3.bf16.msra.mxu1 %v458_v9 }
  0x22   :  { %420 = vmatmul.mubr.bf16.vlgmr.msra.gmra.mrb[0].mxu0 %v461_v10  ;;  %428 = vmatmul.mubr.bf16.vlgmr.msra.gmra.mrb[0].mxu1 %v462_v11 }
  0x23   :  { %423 = vmatprep.mubr.bf16.mxu0 %v463_v12  ;;  %431 = vmatprep.mubr.bf16.mxu1 %v464_v13 }
  0x2a   :  { %424 = vmatmul.mubr.bf16.gmra.mrb[4].mxu0 %v465_v14  ;;  %432 = vmatmul.mubr.bf16.gmra.mrb[4].mxu1 %v466_v15 }
  0xf5   :  { %v421_v17 = vpop.f32.mrb[0].mxu0  ;;  %v429_v18 = vpop.f32.mrb[0].mxu1 }
  0xf6   :  { %v336_v19 = vadd.f32 %v421_v17, %v386_v16  ;;  %v344_v20 = vadd.f32 %v429_v18, %v386_v16  ;;  %v213_v21 = vpop.f32.mrb[1].mxu0  ;;  %v245_v22 = vpop.f32.mrb[1].mxu1 }
  0xf7   :  { %v334_v23 = vadd.f32 %v386_v16, %v213_v21  ;;  %v342_v24 = vadd.f32 %v386_v16, %v245_v22  ;;  %v422_v25 = vpop.f32.mrb[2].mxu0  ;;  %v430_v26 = vpop.f32.mrb[2].mxu1 }
  0xf8   :  { %352 = vst [vmem:[%s589_s3 + $0x10] sm:$0xff] %v336_v19  ;;  %360 = vst [vmem:[%s589_s3 + $0x50] sm:$0xff] %v344_v20  ;;  %v337_v27 = vadd.f32 %v422_v25, %v386_v16  ;;  %v345_v28 = vadd.f32 %v430_v26, %v386_v16  ;;  %v216_v29 = vpop.f32.mrb[3].mxu0  ;;  %v248_v30 = vpop.f32.mrb[3].mxu1 }
  0xf9   :  { %350 = vst [vmem:[%s589_s3] sm:$0xff] %v334_v23  ;;  %358 = vst [vmem:[%s589_s3 + $0x40] sm:$0xff] %v342_v24  ;;  %v335_v31 = vadd.f32 %v386_v16, %v216_v29  ;;  %v343_v32 = vadd.f32 %v386_v16, %v248_v30 }
  0xfa   :  { %353 = vst [vmem:[%s589_s3 + $0x18] sm:$0xff] %v337_v27  ;;  %361 = vst [vmem:[%s589_s3 + $0x58] sm:$0xff] %v345_v28 }
  0xfb   :  { %351 = vst [vmem:[%s589_s3 + $0x8] sm:$0xff] %v335_v31  ;;  %359 = vst [vmem:[%s589_s3 + $0x48] sm:$0xff] %v343_v32 }
  0xfd   :  { %v425_v33 = vpop.f32.mrb[4].mxu0  ;;  %v433_v34 = vpop.f32.mrb[4].mxu1 }
  0xfe   :  { %v340_v35 = vadd.f32 %v425_v33, %v386_v16  ;;  %v348_v36 = vadd.f32 %v433_v34, %v386_v16  ;;  %v229_v37 = vpop.f32.mrb[5].mxu0  ;;  %v261_v38 = vpop.f32.mrb[5].mxu1 }
  0xff   :  { %v338_v39 = vadd.f32 %v386_v16, %v229_v37  ;;  %v346_v40 = vadd.f32 %v386_v16, %v261_v38  ;;  %v426_v41 = vpop.f32.mrb[6].mxu0  ;;  %v434_v42 = vpop.f32.mrb[6].mxu1 }
 0x100   :  { %356 = vst [vmem:[%s589_s3 + $0x30] sm:$0xff] %v340_v35  ;;  %364 = vst [vmem:[%s589_s3 + $0x70] sm:$0xff] %v348_v36  ;;  %v341_v43 = vadd.f32 %v426_v41, %v386_v16  ;;  %v349_v44 = vadd.f32 %v434_v42, %v386_v16  ;;  %v232_v45 = vpop.f32.mrb[7].mxu0  ;;  %v264_v46 = vpop.f32.mrb[7].mxu1 }
 0x101   :  { %354 = vst [vmem:[%s589_s3 + $0x20] sm:$0xff] %v338_v39  ;;  %362 = vst [vmem:[%s589_s3 + $0x60] sm:$0xff] %v346_v40  ;;  %v339_v47 = vadd.f32 %v386_v16, %v232_v45  ;;  %v347_v48 = vadd.f32 %v386_v16, %v264_v46 }
 0x102   :  { %357 = vst [vmem:[%s589_s3 + $0x38] sm:$0xff] %v341_v43  ;;  %365 = vst [vmem:[%s589_s3 + $0x78] sm:$0xff] %v349_v44 }
 0x103   :  { %355 = vst [vmem:[%s589_s3 + $0x28] sm:$0xff] %v339_v47  ;;  %363 = vst [vmem:[%s589_s3 + $0x68] sm:$0xff] %v347_v48 }

// kernel: _lambda_.26
= control target key start
LH: loop header
LB: loop body
LE: loop exit
PB: predicated region body
PF: predicated region fallthrough
CT: control target
= control target key end

     0   :  { %s743_s15 = smov 0   ;;  %s745_s16 = smov 0   ;;  %s833_s0 = inlined_call_operand.vmem [shape: f32[2,64,64], index: 0, kind: input, shape index: {}]   ;;  %s834_s1 = inlined_call_operand.vmem [shape: f32[2,64,64], index: 1, kind: input, shape index: {}]   ;;  %s835_s2 = inlined_call_operand.vmem [shape: f32[1,64], index: 2, kind: input, shape index: {}]   ;;  %s836_s3 = inlined_call_operand.vmem [shape: f32[1,64], index: 3, kind: input, shape index: {}]   ;;  %s837_s4 = inlined_call_operand.vmem [shape: f32[2,64,64], index: 4, kind: output, shape index: {}]  }
   0x1   :  { %s747_s17 = smov 0  }
   0x2 LB: > { %s33_s18 = sadd.s32 1, %s703_s16  ;;  %p615_p0 = scmp.ge.s32.totalorder %s707_s17, 1  ;;  %s707_s17 = sphi %s747_s17, %s14_s17   ;;  %s703_s16 = sphi %s745_s16, %s840_s16   ;;  %s699_s15 = sphi %s743_s15, %s839_s15  }
   0x3   : > { %p35_p1 = scmp.ge.s32.totalorder %s33_s18, 2  ;;  %p235_p2 = scmp.lt.s32.totalorder %s707_s17, 3 }
   0x5   : > { %s842_s18 = smov (%p35_p1, %s33_s18), 0  ;;  %p236_p3 = pnand %p615_p0, %p235_p2 }
   0x6   : > { %p294_p4 = scmp.lt.s32.totalorder (!%p236_p3), %s699_s15, 1  ;;  %vm342_vm0 = vcmask (!%p236_p3), 516096   ;;  %v764_v0 = vld [vmem:[%s835_s2] ss:$0 sm:$0xff] (!%p236_p3)  ;;  %v717_v1 = vmov (!%p236_p3), 0.0   ;;  %s788_s7 = smov (!%p236_p3), 0  }
   0x7   : > { %239 = sbr.rel (%p236_p3) target bundleno = 127 (0x7f), region = 36  ;;  %343 = vst.msk [vmem:[#allocation2] sm:$0x1] (!%p236_p3), %vm342_vm0, %v717_v1  ;;  %v770_v2 = vld [vmem:[%s836_s3] ss:$0 sm:$0xff] (!%p236_p3) }
   0xe   : > { %s844_s15 = smov (!%p294_p4, %s699_s15), 1  ;;  %v346_v3 = vld [vmem:[#allocation2] sm:$0x1]  }
   0xf   : > { %s772_s23 = sshll.u32 %s844_s15, 6 }
  0x10   : > { %s304_s26 = scalar_lea.vmem %s833_s0, %s772_s23  ;;  %s317_s29 = scalar_lea.vmem %s834_s1, %s772_s23 }
  0x11   : > { %s336_s6 = scalar_lea.vmem %s837_s4, %s772_s23 }
  0x12 LB: >> { %s795_s8 = sshll.u32 %s715_s7, 3  ;;  %vm394_vm1 = vcmask 517121   ;;  %vm401_vm2 = vcmask 518146   ;;  %vm408_vm3 = vcmask 519171   ;;  %vm415_vm4 = vcmask 520196   ;;  %s352_s7 = sadd.s32 1, %s715_s7   ;;  %s715_s7 = sphi %s788_s7, %s352_s7   ;;  %v711_v3 = vphi %v346_v3, %v838_v3  }
  0x13   : >> { %s355_s11 = scalar_lea.vmem %s304_s26, %s795_s8  ;;  %s357_s14 = scalar_lea.vmem %s317_s29, %s795_s8  ;;  %vm422_vm5 = vcmask 521221   ;;  %vm429_vm6 = vcmask 522246   ;;  %vm436_vm7 = vcmask 523271   ;;  %vm440_vm8 = vcmask 523264  }
  0x14   : >> { %v356_v4 = vld [vmem:[%s355_s11] sm:$0xff]  ;;  %s439_s20 = scalar_lea.vmem %s336_s6, %s795_s8  ;;  %p349_p5 = scmp.ge.s32.totalorder %s352_s7, 8  }
  0x15   : >> { %v365_v5 = vadd.f32 %v770_v2, %v356_v4  ;;  %v358_v17 = vld [vmem:[%s357_s14] sm:$0xff] }
  0x17   : >> { %v367_v6 = vand.u32 2147483647, %v365_v5  ;;  %v366_v11 = vmax.f32 %v365_v5, 0.0 }
  0x19   : >> { %v368_v7 = vsub.f32 0.0, %v367_v6 }
  0x1b   : >> { %v369_v8 = vmul.f32 1.442695, %v368_v7 }
  0x1d   : >> { %671 = vpow2.f32 %v369_v8 }
  0x27   : >> { %v672_v9 = vpop.eup %671 }
  0x28   : >> { %v371_v10 = vadd.f32 1.0, %v672_v9 }
  0x2a   : >> { %673 = vlog2.f32 %v371_v10 }
  0x34   : >> { %v674_v12 = vpop.eup %673 }
  0x35   : >> { %v373_v13 = vmul.f32 0.6931472, %v674_v12 }
  0x37   : >> { %v374_v14 = vadd.f32 %v373_v13, %v366_v11 }
  0x39   : >> { %v381_v15 = vmul.f32 %v764_v0, %v374_v14  ;;  %v384_v18 = vmul.f32 %v374_v14, %v358_v17 }
  0x3b   : >> { %v382_v16 = vmul.f32 1.442695, %v381_v15 }
  0x3d   : >> { %675 = vpow2.f32 %v382_v16 }
  0x47   : >> { %v676_v19 = vpop.eup %675 }
  0x48   : >> { %v385_v20 = vmul.f32 %v711_v3, %v676_v19 }
  0x4a   : >> { %v386_v21 = vadd.f32 %v385_v20, %v384_v18 }
  0x4c   : >> { %388 = vst.msk [vmem:[#allocation3] sm:$0x1] %vm342_vm0, %v386_v21  ;;  %v390_v22 = vrot.slane %v386_v21, 7 }
  0x4e   : >> { %v392_v23 = vmul.f32 %v676_v19, %v390_v22 }
  0x50   : >> { %v393_v24 = vadd.f32 %v392_v23, %v384_v18 }
  0x52   : >> { %395 = vst.msk [vmem:[#allocation3] sm:$0x2] %vm394_vm1, %v393_v24  ;;  %v397_v25 = vrot.slane %v393_v24, 7 }
  0x54   : >> { %v399_v26 = vmul.f32 %v676_v19, %v397_v25 }
  0x56   : >> { %v400_v27 = vadd.f32 %v399_v26, %v384_v18 }
  0x58   : >> { %402 = vst.msk [vmem:[#allocation3] sm:$0x4] %vm401_vm2, %v400_v27  ;;  %v404_v28 = vrot.slane %v400_v27, 7 }
  0x5a   : >> { %v406_v29 = vmul.f32 %v676_v19, %v404_v28 }
  0x5c   : >> { %v407_v30 = vadd.f32 %v406_v29, %v384_v18 }
  0x5e   : >> { %409 = vst.msk [vmem:[#allocation3] sm:$0x8] %vm408_vm3, %v407_v30  ;;  %v411_v31 = vrot.slane %v407_v30, 7 }
  0x60   : >> { %v413_v32 = vmul.f32 %v676_v19, %v411_v31 }
  0x62   : >> { %v414_v33 = vadd.f32 %v413_v32, %v384_v18 }
  0x64   : >> { %416 = vst.msk [vmem:[#allocation3] sm:$0x10] %vm415_vm4, %v414_v33  ;;  %v418_v34 = vrot.slane %v414_v33, 7 }
  0x66   : >> { %v420_v35 = vmul.f32 %v676_v19, %v418_v34 }
  0x68   : >> { %v421_v36 = vadd.f32 %v420_v35, %v384_v18 }
  0x6a   : >> { %423 = vst.msk [vmem:[#allocation3] sm:$0x20] %vm422_vm5, %v421_v36  ;;  %v425_v37 = vrot.slane %v421_v36, 7 }
  0x6c   : >> { %v427_v38 = vmul.f32 %v676_v19, %v425_v37 }
  0x6e   : >> { %v428_v39 = vadd.f32 %v427_v38, %v384_v18 }
  0x70   : >> { %430 = vst.msk [vmem:[#allocation3] sm:$0x40] %vm429_vm6, %v428_v39  ;;  %v432_v40 = vrot.slane %v428_v39, 7 }
  0x72   : >> { %v434_v41 = vmul.f32 %v676_v19, %v432_v40 }
  0x74   : >> { %v435_v42 = vadd.f32 %v434_v41, %v384_v18 }
  0x76   : >> { %437 = vst.msk [vmem:[#allocation3] sm:$0x80] %vm436_vm7, %v435_v42  ;;  %v443_v43 = vrot.slane %v435_v42, 7  }
  0x78   : >> { %v838_v3 = vmov %v443_v43  ;;  %351 = sbr.rel (!%p349_p5) target bundleno = 18 (0x12), region = 89  ;;  %446 = vst.msk [vmem:[#allocation2] sm:$0x1] (%p349_p5), %vm342_vm0, %v443_v43 }
  0x7d   : >> { %v438_v44 = vld [vmem:[#allocation3] sm:$0xff] }
  0x7e   : >> { %441 = vst.msk [vmem:[%s439_s20] sm:$0xff] %vm440_vm8, %v438_v44 }
  0x7f PF: > { %s14_s17 = sadd.s32 1, %s707_s17   ;;  %s839_s15 = smov %s703_s16 }
  0x80   : > { %p11_p6 = scmp.ge.s32.totalorder %s14_s17, 4   ;;  %s840_s16 = smov %s842_s18 }
  0x82   :  { %13 = sbr.rel (!%p11_p6) target bundleno = 2 (0x2), region = 100 }

// kernel: _lambda_.28
= control target key start
LH: loop header
LB: loop body
LE: loop exit
PB: predicated region body
PF: predicated region fallthrough
CT: control target
= control target key end

     0   :  { %v731_v0 = vmov 0   ;;  %vm209_vm0 = vcmask 523264   ;;  %s1349_s1 = inlined_call_operand.vmem [shape: f32[128,1], index: 1, kind: input, shape index: {}]   ;;  %s1350_s2 = inlined_call_operand.vmem [shape: f32[128,64], index: 2, kind: input, shape index: {}]   ;;  %s1351_s3 = inlined_call_operand.vmem [shape: f32[1,64], index: 3, kind: input, shape index: {}, may-alias: {3,4}]   ;;  %s1352_s0 = inlined_call_operand.vmem [shape: f32[128,64], index: 0, kind: input, shape index: {}]   ;;  %s1353_s6 = inlined_call_operand.vmem [shape: f32[128,64], index: 6, kind: input, shape index: {}]   ;;  %s1354_s4 = inlined_call_operand.vmem [shape: f32[1,64], index: 4, kind: input, shape index: {}, may-alias: {3,4}]   ;;  %s1355_s5 = inlined_call_operand.vmem [shape: f32[1,64], index: 5, kind: input, shape index: {}]   ;;  %s1356_s7 = inlined_call_operand.vmem [shape: f32[128,64], index: 7, kind: output, shape index: {}]  }
   0x1   :  { %634 = vset.pattern.permute.xlu1 %v731_v0  ;;  %633 = vset.pattern.permute.xlu0 %v731_v0  ;;  %v44_v1 = vld [vmem:[%s1349_s1 + $0x10] sm:$0xff]  ;;  %v42_v2 = vld [vmem:[%s1349_s1] sm:$0xff]  ;;  %v45_v3 = vld [vmem:[%s1349_s1 + $0x18] sm:$0xff] }
   0x2   :  { %70 = vperm.xlu1 %634, %v44_v1   ;;  %60 = vperm.xlu0 %633, %v42_v2   ;;  %v43_v4 = vld [vmem:[%s1349_s1 + $0x8] sm:$0xff]  ;;  %v46_v6 = vld [vmem:[%s1349_s1 + $0x20] sm:$0xff]  ;;  %v49_v7 = vld [vmem:[%s1349_s1 + $0x38] sm:$0xff] }
   0x3   :  { %v47_v5 = vld [vmem:[%s1349_s1 + $0x28] sm:$0xff]  ;;  %v48_v8 = vld [vmem:[%s1349_s1 + $0x30] sm:$0xff]  ;;  %v50_v10 = vld [vmem:[%s1349_s1 + $0x40] sm:$0xff] }
   0x4   :  { %v51_v9 = vld [vmem:[%s1349_s1 + $0x48] sm:$0xff]  ;;  %v53_v11 = vld [vmem:[%s1349_s1 + $0x58] sm:$0xff]  ;;  %v52_v12 = vld [vmem:[%s1349_s1 + $0x50] sm:$0xff] }
   0x5   :  { %v55_v13 = vld [vmem:[%s1349_s1 + $0x68] sm:$0xff]  ;;  %v54_v14 = vld [vmem:[%s1349_s1 + $0x60] sm:$0xff]  ;;  %v57_v15 = vld [vmem:[%s1349_s1 + $0x78] sm:$0xff] }
   0x6   :  { %75 = vperm.xlu1 %634, %v45_v3   ;;  %65 = vperm.xlu0 %633, %v43_v4   ;;  %v56_v16 = vld [vmem:[%s1349_s1 + $0x70] sm:$0xff]  ;;  %v154_v17 = vld [vmem:[%s1350_s2] sm:$0xff]  ;;  %v155_v26 = vld [vmem:[%s1350_s2 + $0x8] sm:$0xff] }
   0x7   :  { %v826_v18 = vld [vmem:[%s1351_s3] ss:$0 sm:$0xff]  ;;  %v156_v19 = vld [vmem:[%s1350_s2 + $0x10] sm:$0xff]  ;;  %v157_v29 = vld [vmem:[%s1350_s2 + $0x18] sm:$0xff] }
   0x8   :  { %v28_v20 = vld [vmem:[%s1352_s0 + $0x10] sm:$0xff]  ;;  %v26_v21 = vld [vmem:[%s1352_s0] sm:$0xff]  ;;  %v177_v22 = vmul.f32 %v826_v18, %v154_v17  ;;  %v179_v23 = vmul.f32 %v826_v18, %v156_v19  ;;  %v29_v30 = vld [vmem:[%s1352_s0 + $0x18] sm:$0xff]  ;;  %v178_v33 = vmul.f32 %v826_v18, %v155_v26  ;;  %v180_v38 = vmul.f32 %v826_v18, %v157_v29 }
   0x9   :  { %v27_v31 = vld [vmem:[%s1352_s0 + $0x8] sm:$0xff]  ;;  %v158_v37 = vld [vmem:[%s1350_s2 + $0x20] sm:$0xff]  ;;  %v160_v51 = vld [vmem:[%s1350_s2 + $0x30] sm:$0xff] }
   0xa   :  { %85 = vperm.xlu1 %634, %v47_v5   ;;  %80 = vperm.xlu0 %633, %v46_v6   ;;  %v31_v42 = vld [vmem:[%s1352_s0 + $0x28] sm:$0xff]  ;;  %v30_v43 = vld [vmem:[%s1352_s0 + $0x20] sm:$0xff]  ;;  %v181_v47 = vmul.f32 %v826_v18, %v158_v37  ;;  %v161_v56 = vld [vmem:[%s1350_s2 + $0x38] sm:$0xff]  ;;  %v183_v60 = vmul.f32 %v826_v18, %v160_v51 }
   0xb   :  { %v159_v44 = vld [vmem:[%s1350_s2 + $0x28] sm:$0xff]  ;;  %v33_v57 = vld [vmem:[%s1352_s0 + $0x38] sm:$0xff]  ;;  %v32_v58 = vld [vmem:[%s1352_s0 + $0x30] sm:$0xff]  ;;  %v184_v1 = vmul.f32 %v826_v18, %v161_v56 }
   0xc   :  { %v182_v55 = vmul.f32 %v826_v18, %v159_v44  ;;  %v162_v0 = vld [vmem:[%s1350_s2 + $0x40] sm:$0xff]  ;;  %v163_v6 = vld [vmem:[%s1350_s2 + $0x48] sm:$0xff] }
   0xd   :  { %v166_v29 = vld [vmem:[%s1350_s2 + $0x60] sm:$0xff]  ;;  %v167_v37 = vld [vmem:[%s1350_s2 + $0x68] sm:$0xff] }
   0xe   :  { %95 = vperm.xlu1 %634, %v49_v7   ;;  %90 = vperm.xlu0 %633, %v48_v8   ;;  %v35_v7 = vld [vmem:[%s1352_s0 + $0x48] sm:$0xff]  ;;  %v34_v8 = vld [vmem:[%s1352_s0 + $0x40] sm:$0xff] }
  0x12   :  { %105 = vperm.xlu1 %634, %v51_v9   ;;  %100 = vperm.xlu0 %633, %v50_v10   ;;  %v185_v10 = vmul.f32 %v826_v18, %v162_v0 }
  0x16   :  { %115 = vperm.xlu1 %634, %v53_v11   ;;  %110 = vperm.xlu0 %633, %v52_v12  }
  0x1a   :  { %125 = vperm.xlu1 %634, %v55_v13   ;;  %120 = vperm.xlu0 %633, %v54_v14   ;;  %v164_v14 = vld [vmem:[%s1350_s2 + $0x50] sm:$0xff] }
  0x1e   :  { %135 = vperm.xlu1 %634, %v57_v15   ;;  %130 = vperm.xlu0 %633, %v56_v16   ;;  %v186_v15 = vmul.f32 %v826_v18, %v163_v6 }
  0x81   :  { %v71_v24 = vpop.permute.xlu1 %70  ;;  %v61_v25 = vpop.permute.xlu0 %60 }
  0x82   :  { %v140_v27 = vmul.f32 %v71_v24, %v28_v20  ;;  %v138_v28 = vmul.f32 %v61_v25, %v26_v21  ;;  %v165_v21 = vld [vmem:[%s1350_s2 + $0x58] sm:$0xff]  ;;  %v187_v25 = vmul.f32 %v826_v18, %v164_v14 }
  0x84   :  { %v851_v32 = vadd.f32 %v177_v22, %v138_v28  ;;  %v854_v34 = vadd.f32 %v179_v23, %v140_v27  ;;  %v37_v22 = vld [vmem:[%s1352_s0 + $0x58] sm:$0xff]  ;;  %v36_v23 = vld [vmem:[%s1352_s0 + $0x50] sm:$0xff] }
  0x85   :  { %v76_v35 = vpop.permute.xlu1 %75  ;;  %v66_v36 = vpop.permute.xlu0 %65 }
  0x86   :  { %v141_v39 = vmul.f32 %v76_v35, %v29_v30  ;;  %v139_v40 = vmul.f32 %v66_v36, %v27_v31  ;;  %v210_v41 = vsel %vm209_vm0, %v851_v32, 0.0  ;;  %v216_v46 = vsel %vm209_vm0, %v854_v34, 0.0 }
  0x87   :  { %211 = vadd.xlane.f32.xlu0 %v210_v41  ;;  %v188_v30 = vmul.f32 %v826_v18, %v165_v21  ;;  %v189_v41 = vmul.f32 %v826_v18, %v166_v29 }
  0x88   :  { %v871_v45 = vadd.f32 %v178_v33, %v139_v40  ;;  %v876_v50 = vadd.f32 %v180_v38, %v141_v39  ;;  %v39_v38 = vld [vmem:[%s1352_s0 + $0x68] sm:$0xff]  ;;  %v38_v39 = vld [vmem:[%s1352_s0 + $0x60] sm:$0xff] }
  0x89   :  { %v86_v48 = vpop.permute.xlu1 %85  ;;  %v81_v49 = vpop.permute.xlu0 %80 }
  0x8a   :  { %v143_v52 = vmul.f32 %v86_v48, %v31_v42  ;;  %v142_v53 = vmul.f32 %v81_v49, %v30_v43  ;;  %v213_v54 = vsel %vm209_vm0, %v871_v45, 0.0  ;;  %v219_v63 = vsel %vm209_vm0, %v876_v50, 0.0 }
  0x8b   :  { %214 = vadd.xlane.f32.xlu1 %v213_v54  ;;  %217 = vadd.xlane.f32.xlu0 %v216_v46  ;;  %v168_v46 = vld [vmem:[%s1350_s2 + $0x70] sm:$0xff]  ;;  %v41_v54 = vld [vmem:[%s1352_s0 + $0x78] sm:$0xff] }
  0x8c   :  { %v893_v59 = vadd.f32 %v181_v47, %v142_v53  ;;  %v904_v5 = vadd.f32 %v182_v55, %v143_v52  ;;  %v190_v47 = vmul.f32 %v826_v18, %v167_v37  ;;  %v169_v53 = vld [vmem:[%s1350_s2 + $0x78] sm:$0xff]  ;;  %v40_v55 = vld [vmem:[%s1352_s0 + $0x70] sm:$0xff] }
  0x8d   :  { %v96_v61 = vpop.permute.xlu1 %95  ;;  %v91_v62 = vpop.permute.xlu0 %90 }
  0x8e   :  { %v145_v2 = vmul.f32 %v96_v61, %v33_v57  ;;  %v144_v3 = vmul.f32 %v91_v62, %v32_v58  ;;  %v222_v4 = vsel %vm209_vm0, %v893_v59, 0.0  ;;  %v225_v20 = vsel %vm209_vm0, %v904_v5, 0.0 }
  0x8f   :  { %223 = vadd.xlane.f32.xlu1 %v222_v4  ;;  %220 = vadd.xlane.f32.xlu0 %v219_v63  ;;  %v191_v57 = vmul.f32 %v826_v18, %v168_v46  ;;  %v192_v62 = vmul.f32 %v826_v18, %v169_v53 }
  0x90   :  { %v915_v9 = vadd.f32 %v183_v60, %v144_v3  ;;  %v918_v13 = vadd.f32 %v184_v1, %v145_v2 }
  0x91   :  { %v106_v11 = vpop.permute.xlu1 %105  ;;  %v101_v12 = vpop.permute.xlu0 %100 }
  0x92   :  { %v147_v16 = vmul.f32 %v106_v11, %v35_v7  ;;  %v146_v17 = vmul.f32 %v101_v12, %v34_v8  ;;  %v228_v19 = vsel %vm209_vm0, %v915_v9, 0.0  ;;  %v231_v28 = vsel %vm209_vm0, %v918_v13, 0.0 }
  0x93   :  { %229 = vadd.xlane.f32.xlu1 %v228_v19  ;;  %226 = vadd.xlane.f32.xlu0 %v225_v20 }
  0x94   :  { %v937_v24 = vadd.f32 %v185_v10, %v146_v17  ;;  %v948_v36 = vadd.f32 %v186_v15, %v147_v16 }
  0x95   :  { %v116_v26 = vpop.permute.xlu1 %115  ;;  %v111_v27 = vpop.permute.xlu0 %110 }
  0x96   :  { %v149_v31 = vmul.f32 %v116_v26, %v37_v22  ;;  %v148_v33 = vmul.f32 %v111_v27, %v36_v23  ;;  %v234_v35 = vsel %vm209_vm0, %v937_v24, 0.0  ;;  %v237_v52 = vsel %vm209_vm0, %v948_v36, 0.0 }
  0x97   :  { %235 = vadd.xlane.f32.xlu1 %v234_v35  ;;  %232 = vadd.xlane.f32.xlu0 %v231_v28 }
  0x98   :  { %v959_v40 = vadd.f32 %v187_v25, %v148_v33  ;;  %v962_v44 = vadd.f32 %v188_v30, %v149_v31 }
  0x99   :  { %v126_v42 = vpop.permute.xlu1 %125  ;;  %v121_v43 = vpop.permute.xlu0 %120 }
  0x9a   :  { %v151_v48 = vmul.f32 %v126_v42, %v39_v38  ;;  %v150_v49 = vmul.f32 %v121_v43, %v38_v39  ;;  %v240_v51 = vsel %vm209_vm0, %v959_v40, 0.0  ;;  %v243_v61 = vsel %vm209_vm0, %v962_v44, 0.0 }
  0x9b   :  { %241 = vadd.xlane.f32.xlu1 %v240_v51  ;;  %238 = vadd.xlane.f32.xlu0 %v237_v52 }
  0x9c   :  { %v981_v56 = vadd.f32 %v189_v41, %v150_v49  ;;  %v989_v2 = vadd.f32 %v190_v47, %v151_v48 }
  0x9d   :  { %v136_v58 = vpop.permute.xlu1 %135  ;;  %v131_v60 = vpop.permute.xlu0 %130 }
  0x9e   :  { %v153_v63 = vmul.f32 %v136_v58, %v41_v54  ;;  %v152_v0 = vmul.f32 %v131_v60, %v40_v55  ;;  %v246_v1 = vsel %vm209_vm0, %v981_v56, 0.0  ;;  %v249_v6 = vsel %vm209_vm0, %v989_v2, 0.0 }
  0x9f   :  { %247 = vadd.xlane.f32.xlu1 %v246_v1  ;;  %244 = vadd.xlane.f32.xlu0 %v243_v61 }
  0xa0   :  { %v991_v3 = vadd.f32 %v191_v57, %v152_v0  ;;  %v997_v7 = vadd.f32 %v192_v62, %v153_v63 }
  0xa2   :  { %v252_v4 = vsel %vm209_vm0, %v991_v3, 0.0  ;;  %v255_v18 = vsel %vm209_vm0, %v997_v7, 0.0 }
  0xa3   :  { %253 = vadd.xlane.f32.xlu1 %v252_v4  ;;  %250 = vadd.xlane.f32.xlu0 %v249_v6 }
  0xa7   :  { %256 = vadd.xlane.f32.xlu0 %v255_v18 }
 0x114   :  { %v212_v8 = vpop.xlane.xlu0 %211 }
 0x115   :  { %v259_v10 = vmul.f32 0.015625, %v212_v8 }
 0x117   :  { %v1002_v11 = vsub.f32 %v851_v32, %v259_v10 }
 0x118   :  { %v215_v12 = vpop.xlane.xlu1 %214  ;;  %v218_v14 = vpop.xlane.xlu0 %217 }
 0x119   :  { %v260_v15 = vmul.f32 0.015625, %v215_v12  ;;  %v261_v16 = vmul.f32 0.015625, %v218_v14  ;;  %v291_v17 = vmul.f32 %v1002_v11, %v1002_v11 }
 0x11b   :  { %v1007_v19 = vsub.f32 %v871_v45, %v260_v15  ;;  %v1010_v20 = vsub.f32 %v854_v34, %v261_v16  ;;  %v307_v21 = vsel %vm209_vm0, %v291_v17, 0.0 }
 0x11c   :  { %v224_v22 = vpop.xlane.xlu1 %223  ;;  %308 = vadd.xlane.f32.xlu1 %v307_v21  ;;  %v221_v23 = vpop.xlane.xlu0 %220 }
 0x11d   :  { %v263_v32 = vmul.f32 0.015625, %v224_v22  ;;  %v262_v25 = vmul.f32 0.015625, %v221_v23  ;;  %v292_v26 = vmul.f32 %v1007_v19, %v1007_v19  ;;  %v293_v27 = vmul.f32 %v1010_v20, %v1010_v20 }
 0x11f   :  { %v1018_v28 = vsub.f32 %v893_v59, %v263_v32  ;;  %v1021_v45 = vsub.f32 %v876_v50, %v262_v25  ;;  %v310_v34 = vsel %vm209_vm0, %v292_v26, 0.0  ;;  %v313_v29 = vsel %vm209_vm0, %v293_v27, 0.0 }
 0x120   :  { %v230_v30 = vpop.xlane.xlu1 %229  ;;  %311 = vadd.xlane.f32.xlu0 %v310_v34  ;;  %314 = vadd.xlane.f32.xlu1 %v313_v29  ;;  %v227_v31 = vpop.xlane.xlu0 %226 }
 0x121   :  { %v265_v33 = vmul.f32 0.015625, %v230_v30  ;;  %v264_v35 = vmul.f32 0.015625, %v227_v31  ;;  %v295_v37 = vmul.f32 %v1018_v28, %v1018_v28  ;;  %v294_v59 = vmul.f32 %v1021_v45, %v1021_v45  ;;  %v1100_v31 = vld [vmem:[%s1353_s6] sm:$0xff] }
 0x123   :  { %v1030_v38 = vsub.f32 %v915_v9, %v265_v33  ;;  %v1033_v50 = vsub.f32 %v904_v5, %v264_v35  ;;  %v319_v39 = vsel %vm209_vm0, %v295_v37, 0.0  ;;  %v316_v41 = vsel %vm209_vm0, %v294_v59, 0.0  ;;  %v1110_v33 = vld [vmem:[%s1353_s6 + $0x8] sm:$0xff]  ;;  %v1116_v37 = vld [vmem:[%s1353_s6 + $0x20] sm:$0xff] }
 0x124   :  { %v236_v42 = vpop.xlane.xlu1 %235  ;;  %320 = vadd.xlane.f32.xlu1 %v319_v39  ;;  %317 = vadd.xlane.f32.xlu0 %v316_v41  ;;  %v233_v43 = vpop.xlane.xlu0 %232  ;;  %v481_v35 = vsub.f32 0.0, %v1100_v31  ;;  %v482_v39 = vsub.f32 0.0, %v1110_v33  ;;  %v1123_v41 = vld [vmem:[%s1353_s6 + $0x18] sm:$0xff] }
 0x125   :  { %v267_v46 = vmul.f32 0.015625, %v236_v42  ;;  %v266_v47 = vmul.f32 0.015625, %v233_v43  ;;  %v297_v48 = vmul.f32 %v1030_v38, %v1030_v38  ;;  %v296_v9 = vmul.f32 %v1033_v50, %v1033_v50 }
 0x126   :  { %v485_v42 = vsub.f32 0.0, %v1116_v37  ;;  %v497_v43 = vmul.f32 1.442695, %v481_v35  ;;  %v1177_v35 = vld [vmem:[%s1353_s6 + $0x70] sm:$0xff] }
 0x127   :  { %v1042_v49 = vsub.f32 %v937_v24, %v267_v46  ;;  %v1045_v5 = vsub.f32 %v918_v13, %v266_v47  ;;  %v325_v51 = vsel %vm209_vm0, %v297_v48, 0.0  ;;  %v322_v52 = vsel %vm209_vm0, %v296_v9, 0.0  ;;  %v1129_v46 = vld [vmem:[%s1353_s6 + $0x30] sm:$0xff] }
 0x128   :  { %v242_v53 = vpop.xlane.xlu1 %241  ;;  %326 = vadd.xlane.f32.xlu1 %v325_v51  ;;  %323 = vadd.xlane.f32.xlu0 %v322_v52  ;;  %v239_v54 = vpop.xlane.xlu0 %238  ;;  %v484_v48 = vsub.f32 0.0, %v1123_v41  ;;  %v499_v9 = vmul.f32 1.442695, %v482_v39  ;;  %v1135_v51 = vld [vmem:[%s1353_s6 + $0x28] sm:$0xff]  ;;  %v505_v52 = vmul.f32 1.442695, %v485_v42  ;;  %635 = vpow2.f32 %v497_v43 }
 0x129   :  { %v269_v55 = vmul.f32 0.015625, %v242_v53  ;;  %v268_v57 = vmul.f32 0.015625, %v239_v54  ;;  %v299_v58 = vmul.f32 %v1042_v49, %v1042_v49  ;;  %v298_v24 = vmul.f32 %v1045_v5, %v1045_v5 }
 0x12a   :  { %v487_v53 = vsub.f32 0.0, %v1129_v46  ;;  %v503_v54 = vmul.f32 1.442695, %v484_v48 }
 0x12b   :  { %v1054_v60 = vsub.f32 %v959_v40, %v269_v55  ;;  %v1057_v13 = vsub.f32 %v948_v36, %v268_v57  ;;  %v331_v61 = vsel %vm209_vm0, %v299_v58, 0.0  ;;  %v328_v62 = vsel %vm209_vm0, %v298_v24, 0.0  ;;  %v1142_v57 = vld [vmem:[%s1353_s6 + $0x40] sm:$0xff] }
 0x12c   :  { %v248_v63 = vpop.xlane.xlu1 %247  ;;  %332 = vadd.xlane.f32.xlu1 %v331_v61  ;;  %329 = vadd.xlane.f32.xlu0 %v328_v62  ;;  %v245_v0 = vpop.xlane.xlu0 %244  ;;  %v486_v55 = vsub.f32 0.0, %v1135_v51  ;;  %v509_v58 = vmul.f32 1.442695, %v487_v53  ;;  %v489_v24 = vsub.f32 0.0, %v1142_v57  ;;  %v1148_v62 = vld [vmem:[%s1353_s6 + $0x38] sm:$0xff]  ;;  %v1184_v53 = vld [vmem:[%s1353_s6 + $0x68] sm:$0xff] }
 0x12d   :  { %v271_v1 = vmul.f32 0.015625, %v248_v63  ;;  %v270_v4 = vmul.f32 0.015625, %v245_v0  ;;  %v301_v6 = vmul.f32 %v1054_v60, %v1054_v60  ;;  %v300_v40 = vmul.f32 %v1057_v13, %v1057_v13 }
 0x12e   :  { %v507_v61 = vmul.f32 1.442695, %v486_v55  ;;  %v513_v63 = vmul.f32 1.442695, %v489_v24  ;;  %v488_v0 = vsub.f32 0.0, %v1148_v62  ;;  %v1189_v24 = vld [vmem:[%s1353_s6 + $0x78] sm:$0xff] }
 0x12f   :  { %v1066_v18 = vsub.f32 %v981_v56, %v271_v1  ;;  %v1069_v36 = vsub.f32 %v962_v44, %v270_v4  ;;  %v337_v8 = vsel %vm209_vm0, %v301_v6, 0.0  ;;  %v334_v10 = vsel %vm209_vm0, %v300_v40, 0.0  ;;  %v1154_v4 = vld [vmem:[%s1353_s6 + $0x50] sm:$0xff] }
 0x130   :  { %v254_v12 = vpop.xlane.xlu1 %253  ;;  %338 = vadd.xlane.f32.xlu1 %v337_v8  ;;  %335 = vadd.xlane.f32.xlu0 %v334_v10  ;;  %v251_v14 = vpop.xlane.xlu0 %250  ;;  %v511_v8 = vmul.f32 1.442695, %v488_v0  ;;  %v1159_v10 = vld [vmem:[%s1353_s6 + $0x48] sm:$0xff] }
 0x131   :  { %v273_v15 = vmul.f32 0.015625, %v254_v12  ;;  %v272_v16 = vmul.f32 0.015625, %v251_v14  ;;  %v303_v17 = vmul.f32 %v1066_v18, %v1066_v18  ;;  %v302_v56 = vmul.f32 %v1069_v36, %v1069_v36 }
 0x132   :  { %v636_v1 = vpop.eup %635 }
 0x133   :  { %v1078_v21 = vsub.f32 %v991_v3, %v273_v15  ;;  %v1081_v44 = vsub.f32 %v989_v2, %v272_v16  ;;  %v343_v22 = vsel %vm209_vm0, %v303_v17, 0.0  ;;  %v340_v23 = vsel %vm209_vm0, %v302_v56, 0.0  ;;  %v1165_v17 = vld [vmem:[%s1353_s6 + $0x60] sm:$0xff] }
 0x134   :  { %344 = vadd.xlane.f32.xlu1 %v343_v22  ;;  %341 = vadd.xlane.f32.xlu0 %v340_v23  ;;  %v257_v32 = vpop.xlane.xlu0 %256  ;;  %v529_v14 = vadd.f32 1.0, %v636_v1  ;;  %v491_v15 = vsub.f32 0.0, %v1154_v4  ;;  %v490_v23 = vsub.f32 0.0, %v1159_v10 }
 0x135   :  { %v274_v25 = vmul.f32 0.015625, %v257_v32  ;;  %v305_v26 = vmul.f32 %v1078_v21, %v1078_v21  ;;  %v304_v27 = vmul.f32 %v1081_v44, %v1081_v44 }
 0x137   :  { %v1090_v3 = vsub.f32 %v997_v7, %v274_v25  ;;  %v349_v2 = vsel %vm209_vm0, %v305_v26, 0.0  ;;  %v346_v34 = vsel %vm209_vm0, %v304_v27, 0.0  ;;  %v1105_v7 = vld [vmem:[%s1353_s6 + $0x10] sm:$0xff]  ;;  %v517_v26 = vmul.f32 1.442695, %v491_v15 }
 0x138   :  { %350 = vadd.xlane.f32.xlu1 %v349_v2  ;;  %347 = vadd.xlane.f32.xlu0 %v346_v34  ;;  %v483_v59 = vsub.f32 0.0, %v1105_v7  ;;  %v493_v27 = vsub.f32 0.0, %v1165_v17  ;;  %v1172_v2 = vld [vmem:[%s1353_s6 + $0x58] sm:$0xff]  ;;  %v496_v15 = vsub.f32 0.0, %v1189_v24 }
 0x139   :  { %v306_v29 = vmul.f32 %v1090_v3, %v1090_v3  ;;  %v492_v39 = vsub.f32 0.0, %v1172_v2 }
 0x13a   :  { %v501_v47 = vmul.f32 1.442695, %v483_v59  ;;  %v521_v42 = vmul.f32 1.442695, %v493_v27 }
 0x13b   :  { %v352_v30 = vsel %vm209_vm0, %v306_v29, 0.0 }
 0x13c   :  { %353 = vadd.xlane.f32.xlu0 %v352_v30  ;;  %637 = vpow2.f32 %v501_v47  ;;  %v515_v30 = vmul.f32 1.442695, %v490_v23 }
 0x13d   :  { %639 = vpow2.f32 %v499_v9  ;;  %v495_v9 = vsub.f32 0.0, %v1177_v35 }
 0x13e   :  { %641 = vpow2.f32 %v505_v52 }
 0x13f   :  { %643 = vpow2.f32 %v503_v54  ;;  %v519_v54 = vmul.f32 1.442695, %v492_v39  ;;  %v525_v1 = vmul.f32 1.442695, %v495_v9 }
 0x140   :  { %645 = vpow2.f32 %v509_v58 }
 0x141   :  { %647 = vpow2.f32 %v507_v61 }
 0x142   :  { %649 = vpow2.f32 %v513_v63 }
 0x143   :  { %651 = vpow2.f32 %v511_v8 }
 0x144   :  { %653 = vrcp.f32 %v529_v14 }
 0x146   :  { %v638_v6 = vpop.eup %637 }
 0x147   :  { %v640_v40 = vpop.eup %639  ;;  %v531_v16 = vadd.f32 1.0, %v638_v6  ;;  %v494_v6 = vsub.f32 0.0, %v1184_v53 }
 0x148   :  { %v642_v12 = vpop.eup %641  ;;  %v530_v22 = vadd.f32 1.0, %v640_v40 }
 0x149   :  { %v644_v56 = vpop.eup %643  ;;  %v533_v32 = vadd.f32 1.0, %v642_v12  ;;  %655 = vrcp.f32 %v531_v16  ;;  %v523_v27 = vmul.f32 1.442695, %v494_v6 }
 0x14a   :  { %v646_v25 = vpop.eup %645  ;;  %v532_v34 = vadd.f32 1.0, %v644_v56  ;;  %657 = vrcp.f32 %v530_v22 }
 0x14b   :  { %v648_v29 = vpop.eup %647  ;;  %659 = vrcp.f32 %v533_v32  ;;  %v535_v59 = vadd.f32 1.0, %v646_v25 }
 0x14c   :  { %661 = vpow2.f32 %v517_v26  ;;  %v650_v43 = vpop.eup %649  ;;  %v534_v48 = vadd.f32 1.0, %v648_v29 }
 0x14d   :  { %663 = vrcp.f32 %v532_v34  ;;  %v537_v58 = vadd.f32 1.0, %v650_v43  ;;  %v652_v61 = vpop.eup %651 }
 0x14e   :  { %665 = vpow2.f32 %v515_v30  ;;  %v654_v40 = vpop.eup %653  ;;  %v536_v23 = vadd.f32 1.0, %v652_v61 }
 0x14f   :  { %667 = vrcp.f32 %v535_v59 }
 0x150   :  { %669 = vpow2.f32 %v521_v42 }
 0x151   :  { %671 = vrcp.f32 %v534_v48 }
 0x153   :  { %v656_v14 = vpop.eup %655 }
 0x154   :  { %v658_v16 = vpop.eup %657 }
 0x155   :  { %v660_v32 = vpop.eup %659 }
 0x156   :  { %v662_v34 = vpop.eup %661 }
 0x157   :  { %v664_v59 = vpop.eup %663 }
 0x158   :  { %v666_v39 = vpop.eup %665 }
 0x159   :  { %v668_v48 = vpop.eup %667 }
 0x1a9   :  { %v309_v47 = vpop.xlane.xlu1 %308 }
 0x1aa   :  { %v355_v52 = vmul.f32 0.015625, %v309_v47  ;;  %v527_v47 = vmul.f32 1.442695, %v496_v15 }
 0x1ac   :  { %v371_v55 = vadd.f32 1e-05, %v355_v52 }
 0x1ad   :  { %v315_v63 = vpop.xlane.xlu1 %314  ;;  %v312_v0 = vpop.xlane.xlu0 %311 }
 0x1ae   :  { %673 = vrsqrt.f32 %v371_v55  ;;  %v357_v8 = vmul.f32 0.015625, %v315_v63  ;;  %v356_v12 = vmul.f32 0.015625, %v312_v0  ;;  %v670_v55 = vpop.eup %669  ;;  %v1196_v0 = vld [vmem:[%s1354_s4] ss:$0 sm:$0xff] }
 0x1af   :  { %675 = vpow2.f32 %v519_v54  ;;  %v539_v54 = vadd.f32 1.0, %v662_v34  ;;  %v672_v63 = vpop.eup %671  ;;  %v1205_v34 = vld [vmem:[%s1355_s5] ss:$0 sm:$0xff] }
 0x1b0   :  { %v373_v56 = vadd.f32 1e-05, %v357_v8  ;;  %v372_v22 = vadd.f32 1e-05, %v356_v12  ;;  %677 = vrcp.f32 %v537_v58  ;;  %v538_v12 = vadd.f32 1.0, %v666_v39 }
 0x1b1   :  { %v321_v25 = vpop.xlane.xlu1 %320  ;;  %v318_v26 = vpop.xlane.xlu0 %317  ;;  %679 = vpow2.f32 %v525_v1 }
 0x1b2   :  { %681 = vrsqrt.f32 %v373_v56  ;;  %v359_v29 = vmul.f32 0.015625, %v321_v25  ;;  %v358_v30 = vmul.f32 0.015625, %v318_v26  ;;  %v577_v56 = vmul.f32 %v654_v40, %v1100_v31 }
 0x1b3   :  { %683 = vrsqrt.f32 %v372_v22  ;;  %v541_v26 = vadd.f32 1.0, %v670_v55  ;;  %v1211_v40 = vmul.f32 %v660_v32, %v1116_v37 }
 0x1b4   :  { %v375_v42 = vadd.f32 1e-05, %v359_v29  ;;  %v374_v43 = vadd.f32 1e-05, %v358_v30  ;;  %685 = vrcp.f32 %v536_v23  ;;  %v579_v29 = vmul.f32 %v656_v14, %v1105_v7 }
 0x1b5   :  { %v327_v9 = vpop.xlane.xlu1 %326  ;;  %v324_v52 = vpop.xlane.xlu0 %323  ;;  %687 = vpow2.f32 %v523_v27 }
 0x1b6   :  { %689 = vrsqrt.f32 %v375_v42  ;;  %v361_v58 = vmul.f32 0.015625, %v327_v9  ;;  %v360_v61 = vmul.f32 0.015625, %v324_v52 }
 0x1b7   :  { %691 = vrsqrt.f32 %v374_v43 }
 0x1b8   :  { %v674_v1 = vpop.eup %673  ;;  %v377_v6 = vadd.f32 1e-05, %v361_v58  ;;  %v376_v8 = vadd.f32 1e-05, %v360_v61  ;;  %693 = vpow2.f32 %v527_v47  ;;  %v1214_v47 = vmul.f32 %v664_v59, %v1123_v41 }
 0x1b9   :  { %v676_v15 = vpop.eup %675  ;;  %v403_v22 = vmul.f32 %v674_v1, %v1002_v11  ;;  %v333_v23 = vpop.xlane.xlu1 %332  ;;  %695 = vrcp.f32 %v539_v54  ;;  %v578_v11 = vmul.f32 %v658_v16, %v1110_v33 }
 0x1ba   :  { %v330_v25 = vpop.xlane.xlu0 %329  ;;  %v1200_v27 = vpop.eup %677  ;;  %697 = vrsqrt.f32 %v377_v6  ;;  %v363_v30 = vmul.f32 0.015625, %v333_v23  ;;  %v540_v33 = vadd.f32 1.0, %v676_v15  ;;  %v1223_v6 = vmul.f32 %v668_v48, %v1129_v46 }
 0x1bb   :  { %v362_v39 = vmul.f32 0.015625, %v330_v25  ;;  %v680_v42 = vpop.eup %679  ;;  %v426_v31 = vmul.f32 %v1196_v0, %v403_v22  ;;  %699 = vrsqrt.f32 %v376_v8  ;;  %v582_v46 = vmul.f32 %v672_v63, %v1135_v51 }
 0x1bc   :  { %v682_v43 = vpop.eup %681  ;;  %v379_v9 = vadd.f32 1e-05, %v363_v30  ;;  %701 = vrcp.f32 %v538_v12  ;;  %v543_v22 = vadd.f32 1.0, %v680_v42 }
 0x1bd   :  { %v378_v52 = vadd.f32 1e-05, %v362_v39  ;;  %v684_v7 = vpop.eup %683  ;;  %v449_v14 = vadd.f32 %v1205_v34, %v426_v31  ;;  %v405_v54 = vmul.f32 %v682_v43, %v1010_v20  ;;  %v339_v55 = vpop.xlane.xlu1 %338  ;;  %703 = vrcp.f32 %v541_v26 }
 0x1be   :  { %v336_v58 = vpop.xlane.xlu0 %335  ;;  %v1218_v16 = vpop.eup %685  ;;  %v404_v37 = vmul.f32 %v684_v7, %v1007_v19  ;;  %705 = vrsqrt.f32 %v379_v9  ;;  %v365_v32 = vmul.f32 0.015625, %v339_v55 }
 0x1bf   :  { %v364_v41 = vmul.f32 0.015625, %v336_v58  ;;  %v688_v59 = vpop.eup %687  ;;  %v593_v61 = vmul.f32 %v577_v56, %v449_v14  ;;  %v428_v1 = vmul.f32 %v1196_v0, %v405_v54  ;;  %707 = vrsqrt.f32 %v378_v52 }
 0x1c0   :  { %v690_v20 = vpop.eup %689  ;;  %v427_v8 = vmul.f32 %v1196_v0, %v404_v37  ;;  %v381_v12 = vadd.f32 1e-05, %v365_v32  ;;  %709 = vrcp.f32 %v540_v33  ;;  %v542_v58 = vadd.f32 1.0, %v688_v59 }
 0x1c1   :  { %v380_v15 = vadd.f32 1e-05, %v364_v41  ;;  %v692_v23 = vpop.eup %691  ;;  %609 = vst.msk [vmem:[%s1356_s7] sm:$0xff] %vm209_vm0, %v593_v61  ;;  %v451_v19 = vadd.f32 %v1205_v34, %v428_v1  ;;  %v407_v56 = vmul.f32 %v690_v20, %v1018_v28  ;;  %v345_v48 = vpop.xlane.xlu1 %344 }
 0x1c2   :  { %v342_v25 = vpop.xlane.xlu0 %341  ;;  %v694_v26 = vpop.eup %693  ;;  %v450_v30 = vadd.f32 %v1205_v34, %v427_v8  ;;  %v406_v39 = vmul.f32 %v692_v23, %v1021_v45  ;;  %711 = vrsqrt.f32 %v381_v12  ;;  %v367_v42 = vmul.f32 0.015625, %v345_v48 }
 0x1c3   :  { %v1235_v31 = vpop.eup %695  ;;  %v595_v43 = vmul.f32 %v579_v29, %v451_v19  ;;  %v430_v9 = vmul.f32 %v1196_v0, %v407_v56  ;;  %713 = vrsqrt.f32 %v380_v15  ;;  %v366_v52 = vmul.f32 0.015625, %v342_v25 }
 0x1c4   :  { %v698_v28 = vpop.eup %697  ;;  %v594_v7 = vmul.f32 %v578_v11, %v450_v30  ;;  %v429_v51 = vmul.f32 %v1196_v0, %v406_v39  ;;  %v383_v63 = vadd.f32 1e-05, %v367_v42  ;;  %715 = vrcp.f32 %v543_v22 }
 0x1c5   :  { %v700_v14 = vpop.eup %699  ;;  %611 = vst.msk [vmem:[%s1356_s7 + $0x10] sm:$0xff] %vm209_vm0, %v595_v43  ;;  %v453_v45 = vadd.f32 %v1205_v34, %v430_v9  ;;  %v409_v29 = vmul.f32 %v698_v28, %v1030_v38  ;;  %v382_v54 = vadd.f32 1e-05, %v366_v52  ;;  %v351_v55 = vpop.xlane.xlu1 %350  ;;  %v544_v22 = vadd.f32 1.0, %v694_v26 }
 0x1c6   :  { %v348_v33 = vpop.xlane.xlu0 %347  ;;  %v702_v37 = vpop.eup %701  ;;  %610 = vst.msk [vmem:[%s1356_s7 + $0x8] sm:$0xff] %vm209_vm0, %v594_v7  ;;  %v452_v11 = vadd.f32 %v1205_v34, %v429_v51  ;;  %v408_v32 = vmul.f32 %v700_v14, %v1033_v50  ;;  %717 = vrsqrt.f32 %v383_v63  ;;  %v369_v41 = vmul.f32 0.015625, %v351_v55 }
 0x1c7   :  { %v704_v61 = vpop.eup %703  ;;  %v597_v1 = vmul.f32 %v1211_v40, %v453_v45  ;;  %v432_v38 = vmul.f32 %v1196_v0, %v409_v29  ;;  %719 = vrsqrt.f32 %v382_v54  ;;  %v368_v59 = vmul.f32 0.015625, %v348_v33 }
 0x1c8   :  { %v706_v20 = vpop.eup %705  ;;  %v596_v8 = vmul.f32 %v1214_v47, %v452_v11  ;;  %v431_v12 = vmul.f32 %v1196_v0, %v408_v32  ;;  %v385_v15 = vadd.f32 1e-05, %v369_v41  ;;  %721 = vrcp.f32 %v542_v58 }
 0x1c9   :  { %v708_v23 = vpop.eup %707  ;;  %613 = vst.msk [vmem:[%s1356_s7 + $0x20] sm:$0xff] %vm209_vm0, %v597_v1  ;;  %v455_v50 = vadd.f32 %v1205_v34, %v432_v38  ;;  %v411_v40 = vmul.f32 %v706_v20, %v1042_v49  ;;  %v384_v19 = vadd.f32 1e-05, %v368_v59  ;;  %v585_v49 = vmul.f32 %v1200_v27, %v1142_v57 }
 0x1ca   :  { %v354_v56 = vpop.xlane.xlu0 %353  ;;  %612 = vst.msk [vmem:[%s1356_s7 + $0x18] sm:$0xff] %vm209_vm0, %v596_v8  ;;  %v454_v47 = vadd.f32 %v1205_v34, %v431_v12  ;;  %v410_v48 = vmul.f32 %v708_v23, %v1045_v5  ;;  %723 = vrsqrt.f32 %v385_v15  ;;  %v710_v26 = vpop.eup %709  ;;  %v584_v9 = vmul.f32 %v1218_v16, %v1148_v62 }
 0x1cb   :  { %v370_v25 = vmul.f32 0.015625, %v354_v56  ;;  %v599_v30 = vmul.f32 %v1223_v6, %v455_v50  ;;  %v434_v39 = vmul.f32 %v1196_v0, %v411_v40  ;;  %725 = vrsqrt.f32 %v384_v19 }
 0x1cc   :  { %v712_v42 = vpop.eup %711  ;;  %v598_v43 = vmul.f32 %v582_v46, %v454_v47  ;;  %v433_v52 = vmul.f32 %v1196_v0, %v410_v48  ;;  %727 = vrcp.f32 %v544_v22  ;;  %v587_v7 = vmul.f32 %v1235_v31, %v1154_v4 }
 0x1cd   :  { %v386_v28 = vadd.f32 1e-05, %v370_v25  ;;  %v714_v5 = vpop.eup %713  ;;  %615 = vst.msk [vmem:[%s1356_s7 + $0x30] sm:$0xff] %vm209_vm0, %v599_v30  ;;  %v457_v6 = vadd.f32 %v1205_v34, %v434_v39  ;;  %v413_v57 = vmul.f32 %v712_v42, %v1054_v60  ;;  %v586_v14 = vmul.f32 %v702_v37, %v1159_v10 }
 0x1ce   :  { %v716_v27 = vpop.eup %715  ;;  %614 = vst.msk [vmem:[%s1356_s7 + $0x28] sm:$0xff] %vm209_vm0, %v598_v43  ;;  %v456_v62 = vadd.f32 %v1205_v34, %v433_v52  ;;  %v412_v16 = vmul.f32 %v714_v5, %v1057_v13  ;;  %v589_v58 = vmul.f32 %v704_v61, %v1165_v17  ;;  %v588_v32 = vmul.f32 %v710_v26, %v1172_v2 }
 0x1cf   :  { %729 = vrsqrt.f32 %v386_v28  ;;  %v601_v46 = vmul.f32 %v585_v49, %v457_v6  ;;  %v436_v51 = vmul.f32 %v1196_v0, %v413_v57  ;;  %v591_v59 = vmul.f32 %v716_v27, %v1177_v35 }
 0x1d0   :  { %v718_v63 = vpop.eup %717  ;;  %v600_v60 = vmul.f32 %v584_v9, %v456_v62  ;;  %v435_v45 = vmul.f32 %v1196_v0, %v412_v16 }
 0x1d1   :  { %v720_v29 = vpop.eup %719  ;;  %617 = vst.msk [vmem:[%s1356_s7 + $0x40] sm:$0xff] %vm209_vm0, %v601_v46  ;;  %v459_v13 = vadd.f32 %v1205_v34, %v436_v51  ;;  %v415_v54 = vmul.f32 %v718_v63, %v1066_v18 }
 0x1d2   :  { %616 = vst.msk [vmem:[%s1356_s7 + $0x38] sm:$0xff] %vm209_vm0, %v600_v60  ;;  %v458_v4 = vadd.f32 %v1205_v34, %v435_v45  ;;  %v414_v10 = vmul.f32 %v720_v29, %v1069_v36  ;;  %v722_v31 = vpop.eup %721 }
 0x1d3   :  { %v603_v55 = vmul.f32 %v587_v7, %v459_v13  ;;  %v438_v33 = vmul.f32 %v1196_v0, %v415_v54  ;;  %v590_v15 = vmul.f32 %v722_v31, %v1184_v53 }
 0x1d4   :  { %v724_v37 = vpop.eup %723  ;;  %v602_v11 = vmul.f32 %v586_v14, %v458_v4  ;;  %v437_v18 = vmul.f32 %v1196_v0, %v414_v10 }
 0x1d5   :  { %v726_v41 = vpop.eup %725  ;;  %619 = vst.msk [vmem:[%s1356_s7 + $0x50] sm:$0xff] %vm209_vm0, %v603_v55  ;;  %v461_v36 = vadd.f32 %v1205_v34, %v438_v33  ;;  %v417_v1 = vmul.f32 %v724_v37, %v1078_v21 }
 0x1d6   :  { %618 = vst.msk [vmem:[%s1356_s7 + $0x48] sm:$0xff] %vm209_vm0, %v602_v11  ;;  %v460_v17 = vadd.f32 %v1205_v34, %v437_v18  ;;  %v416_v2 = vmul.f32 %v726_v41, %v1081_v44  ;;  %v728_v61 = vpop.eup %727 }
 0x1d7   :  { %v605_v38 = vmul.f32 %v589_v58, %v461_v36  ;;  %v440_v20 = vmul.f32 %v1196_v0, %v417_v1  ;;  %v592_v53 = vmul.f32 %v728_v61, %v1189_v24 }
 0x1d8   :  { %v604_v12 = vmul.f32 %v588_v32, %v460_v17  ;;  %v439_v21 = vmul.f32 %v1196_v0, %v416_v2 }
 0x1d9   :  { %v730_v8 = vpop.eup %729  ;;  %621 = vst.msk [vmem:[%s1356_s7 + $0x60] sm:$0xff] %vm209_vm0, %v605_v38  ;;  %v463_v22 = vadd.f32 %v1205_v34, %v440_v20 }
 0x1da   :  { %v418_v44 = vmul.f32 %v730_v8, %v1090_v3  ;;  %620 = vst.msk [vmem:[%s1356_s7 + $0x58] sm:$0xff] %vm209_vm0, %v604_v12  ;;  %v462_v35 = vadd.f32 %v1205_v34, %v439_v21 }
 0x1db   :  { %v607_v23 = vmul.f32 %v591_v59, %v463_v22 }
 0x1dc   :  { %v441_v50 = vmul.f32 %v1196_v0, %v418_v44  ;;  %v606_v40 = vmul.f32 %v590_v15, %v462_v35 }
 0x1dd   :  { %623 = vst.msk [vmem:[%s1356_s7 + $0x70] sm:$0xff] %vm209_vm0, %v607_v23 }
 0x1de   :  { %v464_v3 = vadd.f32 %v1205_v34, %v441_v50  ;;  %622 = vst.msk [vmem:[%s1356_s7 + $0x68] sm:$0xff] %vm209_vm0, %v606_v40 }
 0x1e0   :  { %v608_v19 = vmul.f32 %v592_v53, %v464_v3 }
 0x1e2   :  { %624 = vst.msk [vmem:[%s1356_s7 + $0x78] sm:$0xff] %vm209_vm0, %v608_v19 }

// kernel: _lambda_.31
= control target key start
LH: loop header
LB: loop body
LE: loop exit
PB: predicated region body
PF: predicated region fallthrough
CT: control target
= control target key end

     0   :  { %vm37_vm0 = vcmask 261120   ;;  %s1147_s0 = inlined_call_operand.vmem [shape: f32[128,32], index: 0, kind: input, shape index: {}]   ;;  %s1148_s3 = inlined_call_operand.vmem [shape: bf16[32,128], index: 3, kind: input, shape index: {}]   ;;  %s1149_s1 = inlined_call_operand.vmem [shape: f32[1,32], index: 1, kind: input, shape index: {}]   ;;  %s1150_s2 = inlined_call_operand.vmem [shape: f32[1,32], index: 2, kind: input, shape index: {}]   ;;  %s1151_s4 = inlined_call_operand.vmem [shape: f32[1,128], index: 4, kind: input, shape index: {}]   ;;  %s1152_s5 = inlined_call_operand.vmem [shape: f32[128,128], index: 5, kind: output, shape index: {}]  }
   0x1   :  { %v21_v0 = vld [vmem:[%s1147_s0] sm:$0xff]  ;;  %v22_v2 = vld [vmem:[%s1147_s0 + $0x8] sm:$0xff]  ;;  %v23_v8 = vld [vmem:[%s1147_s0 + $0x10] sm:$0xff] }
   0x2   :  { %v29_v1 = vld [vmem:[%s1147_s0 + $0x40] sm:$0xff]  ;;  %v38_v3 = vsel %vm37_vm0, %v21_v0, 0.0  ;;  %v30_v5 = vld [vmem:[%s1147_s0 + $0x48] sm:$0xff]  ;;  %v41_v6 = vsel %vm37_vm0, %v22_v2, 0.0  ;;  %v24_v9 = vld [vmem:[%s1147_s0 + $0x18] sm:$0xff]  ;;  %v44_v10 = vsel %vm37_vm0, %v23_v8, 0.0 }
   0x3   :  { %v62_v4 = vsel %vm37_vm0, %v29_v1, 0.0  ;;  %39 = vadd.xlane.f32.xlu0 %v38_v3  ;;  %v65_v7 = vsel %vm37_vm0, %v30_v5, 0.0  ;;  %v47_v11 = vsel %vm37_vm0, %v24_v9, 0.0  ;;  %v779_v12 = vld [vmem:[%s1147_s0 + $0x50] sm:$0xff]  ;;  %v784_v13 = vld [vmem:[%s1147_s0 + $0x58] sm:$0xff]  ;;  %v793_v16 = vld [vmem:[%s1147_s0 + $0x20] sm:$0xff] }
   0x4   :  { %63 = vadd.xlane.f32.xlu1 %v62_v4  ;;  %v68_v14 = vsel %vm37_vm0, %v779_v12, 0.0  ;;  %v71_v15 = vsel %vm37_vm0, %v784_v13, 0.0  ;;  %v798_v17 = vld [vmem:[%s1147_s0 + $0x28] sm:$0xff]  ;;  %v50_v18 = vsel %vm37_vm0, %v793_v16, 0.0  ;;  %v807_v20 = vld [vmem:[%s1147_s0 + $0x60] sm:$0xff]  ;;  %v821_v24 = vld [vmem:[%s1147_s0 + $0x30] sm:$0xff] }
   0x5   :  { %v53_v19 = vsel %vm37_vm0, %v798_v17, 0.0  ;;  %v812_v21 = vld [vmem:[%s1147_s0 + $0x68] sm:$0xff]  ;;  %v74_v22 = vsel %vm37_vm0, %v807_v20, 0.0  ;;  %v826_v25 = vld [vmem:[%s1147_s0 + $0x38] sm:$0xff]  ;;  %v56_v26 = vsel %vm37_vm0, %v821_v24, 0.0  ;;  %v835_v28 = vld [vmem:[%s1147_s0 + $0x70] sm:$0xff] }
   0x6   :  { %v77_v23 = vsel %vm37_vm0, %v812_v21, 0.0  ;;  %v59_v27 = vsel %vm37_vm0, %v826_v25, 0.0  ;;  %v840_v29 = vld [vmem:[%s1147_s0 + $0x78] sm:$0xff]  ;;  %v80_v30 = vsel %vm37_vm0, %v835_v28, 0.0 }
   0x7   :  { %42 = vadd.xlane.f32.xlu0 %v41_v6  ;;  %v83_v31 = vsel %vm37_vm0, %v840_v29, 0.0 }
   0x8   :  { %66 = vadd.xlane.f32.xlu1 %v65_v7 }
   0xb   :  { %45 = vadd.xlane.f32.xlu0 %v44_v10 }
   0xc   :  { %48 = vadd.xlane.f32.xlu1 %v47_v11 }
   0xf   :  { %69 = vadd.xlane.f32.xlu0 %v68_v14 }
  0x10   :  { %72 = vadd.xlane.f32.xlu1 %v71_v15 }
  0x13   :  { %51 = vadd.xlane.f32.xlu0 %v50_v18 }
  0x14   :  { %54 = vadd.xlane.f32.xlu1 %v53_v19 }
  0x17   :  { %75 = vadd.xlane.f32.xlu0 %v74_v22 }
  0x18   :  { %78 = vadd.xlane.f32.xlu1 %v77_v23 }
  0x1b   :  { %57 = vadd.xlane.f32.xlu0 %v56_v26 }
  0x1c   :  { %60 = vadd.xlane.f32.xlu1 %v59_v27 }
  0x1f   :  { %81 = vadd.xlane.f32.xlu0 %v80_v30 }
  0x20   :  { %84 = vadd.xlane.f32.xlu1 %v83_v31 }
  0x90   :  { %v40_v32 = vpop.xlane.xlu0 %39 }
  0x91   :  { %v64_v33 = vpop.xlane.xlu1 %63  ;;  %v87_v34 = vmul.f32 0.03125, %v40_v32 }
  0x92   :  { %v95_v35 = vmul.f32 0.03125, %v64_v33 }
  0x93   :  { %v846_v36 = vsub.f32 %v21_v0, %v87_v34 }
  0x94   :  { %v848_v37 = vsub.f32 %v29_v1, %v95_v35  ;;  %v43_v38 = vpop.xlane.xlu0 %42 }
  0x95   :  { %v67_v39 = vpop.xlane.xlu1 %66  ;;  %v88_v40 = vmul.f32 0.03125, %v43_v38  ;;  %v119_v42 = vmul.f32 %v846_v36, %v846_v36 }
  0x96   :  { %v96_v41 = vmul.f32 0.03125, %v67_v39  ;;  %v127_v43 = vmul.f32 %v848_v37, %v848_v37 }
  0x97   :  { %v854_v44 = vsub.f32 %v22_v2, %v88_v40  ;;  %v135_v46 = vsel %vm37_vm0, %v119_v42, 0.0 }
  0x98   :  { %v856_v45 = vsub.f32 %v30_v5, %v96_v41  ;;  %136 = vadd.xlane.f32.xlu0 %v135_v46  ;;  %v46_v47 = vpop.xlane.xlu0 %45  ;;  %v159_v49 = vsel %vm37_vm0, %v127_v43, 0.0 }
  0x99   :  { %v49_v48 = vpop.xlane.xlu1 %48  ;;  %v89_v50 = vmul.f32 0.03125, %v46_v47  ;;  %v120_v52 = vmul.f32 %v854_v44, %v854_v44 }
  0x9a   :  { %v90_v51 = vmul.f32 0.03125, %v49_v48  ;;  %v128_v53 = vmul.f32 %v856_v45, %v856_v45 }
  0x9b   :  { %v864_v54 = vsub.f32 %v23_v8, %v89_v50  ;;  %v138_v56 = vsel %vm37_vm0, %v120_v52, 0.0 }
  0x9c   :  { %v866_v55 = vsub.f32 %v24_v9, %v90_v51  ;;  %160 = vadd.xlane.f32.xlu0 %v159_v49  ;;  %139 = vadd.xlane.f32.xlu1 %v138_v56  ;;  %v70_v57 = vpop.xlane.xlu0 %69  ;;  %v162_v59 = vsel %vm37_vm0, %v128_v53, 0.0  ;;  %v657_v53 = vld [vmem:[%s1148_s3 + $0x8] sm:$0xff]  }
  0x9d   :  { %v73_v58 = vpop.xlane.xlu1 %72  ;;  %v97_v60 = vmul.f32 0.03125, %v70_v57  ;;  %v121_v62 = vmul.f32 %v864_v54, %v864_v54 }
  0x9e   :  { %v98_v61 = vmul.f32 0.03125, %v73_v58  ;;  %v122_v63 = vmul.f32 %v866_v55, %v866_v55 }
  0x9f   :  { %v875_v0 = vsub.f32 %v779_v12, %v97_v60  ;;  %v141_v2 = vsel %vm37_vm0, %v121_v62, 0.0 }
  0xa0   :  { %v878_v1 = vsub.f32 %v784_v13, %v98_v61  ;;  %163 = vadd.xlane.f32.xlu1 %v162_v59  ;;  %142 = vadd.xlane.f32.xlu0 %v141_v2  ;;  %v52_v3 = vpop.xlane.xlu0 %51  ;;  %v144_v5 = vsel %vm37_vm0, %v122_v63, 0.0 }
  0xa1   :  { %v55_v4 = vpop.xlane.xlu1 %54  ;;  %v91_v6 = vmul.f32 0.03125, %v52_v3  ;;  %v129_v8 = vmul.f32 %v875_v0, %v875_v0 }
  0xa2   :  { %v92_v7 = vmul.f32 0.03125, %v55_v4  ;;  %v130_v9 = vmul.f32 %v878_v1, %v878_v1 }
  0xa3   :  { %v887_v10 = vsub.f32 %v793_v16, %v91_v6  ;;  %v165_v12 = vsel %vm37_vm0, %v129_v8, 0.0 }
  0xa4   :  { %v890_v11 = vsub.f32 %v798_v17, %v92_v7  ;;  %145 = vadd.xlane.f32.xlu1 %v144_v5  ;;  %166 = vadd.xlane.f32.xlu0 %v165_v12  ;;  %v76_v13 = vpop.xlane.xlu0 %75  ;;  %v168_v15 = vsel %vm37_vm0, %v130_v9, 0.0 }
  0xa5   :  { %v79_v14 = vpop.xlane.xlu1 %78  ;;  %v99_v18 = vmul.f32 0.03125, %v76_v13  ;;  %v123_v22 = vmul.f32 %v887_v10, %v887_v10 }
  0xa6   :  { %v100_v19 = vmul.f32 0.03125, %v79_v14  ;;  %v124_v16 = vmul.f32 %v890_v11, %v890_v11 }
  0xa7   :  { %v899_v23 = vsub.f32 %v807_v20, %v99_v18  ;;  %v147_v26 = vsel %vm37_vm0, %v123_v22, 0.0 }
  0xa8   :  { %v902_v17 = vsub.f32 %v812_v21, %v100_v19  ;;  %169 = vadd.xlane.f32.xlu1 %v168_v15  ;;  %148 = vadd.xlane.f32.xlu0 %v147_v26  ;;  %v58_v27 = vpop.xlane.xlu0 %57  ;;  %v150_v31 = vsel %vm37_vm0, %v124_v16, 0.0 }
  0xa9   :  { %v61_v30 = vpop.xlane.xlu1 %60  ;;  %v93_v32 = vmul.f32 0.03125, %v58_v27  ;;  %v131_v34 = vmul.f32 %v899_v23, %v899_v23 }
  0xaa   :  { %v94_v33 = vmul.f32 0.03125, %v61_v30  ;;  %v132_v20 = vmul.f32 %v902_v17, %v902_v17 }
  0xab   :  { %v911_v35 = vsub.f32 %v821_v24, %v93_v32  ;;  %v171_v38 = vsel %vm37_vm0, %v131_v34, 0.0 }
  0xac   :  { %v914_v21 = vsub.f32 %v826_v25, %v94_v33  ;;  %151 = vadd.xlane.f32.xlu1 %v150_v31  ;;  %172 = vadd.xlane.f32.xlu0 %v171_v38  ;;  %v82_v39 = vpop.xlane.xlu0 %81  ;;  %v174_v41 = vsel %vm37_vm0, %v132_v20, 0.0  ;;  %v946_v31 = vld [vmem:[%s1149_s1] ss:$0 sm:$0xff] }
  0xad   :  { %v85_v40 = vpop.xlane.xlu1 %84  ;;  %v101_v42 = vmul.f32 0.03125, %v82_v39  ;;  %v125_v46 = vmul.f32 %v911_v35, %v911_v35 }
  0xae   :  { %v102_v43 = vmul.f32 0.03125, %v85_v40  ;;  %v126_v24 = vmul.f32 %v914_v21, %v914_v21 }
  0xaf   :  { %v923_v47 = vsub.f32 %v835_v28, %v101_v42  ;;  %v153_v48 = vsel %vm37_vm0, %v125_v46, 0.0 }
  0xb0   :  { %v926_v25 = vsub.f32 %v840_v29, %v102_v43  ;;  %175 = vadd.xlane.f32.xlu1 %v174_v41  ;;  %154 = vadd.xlane.f32.xlu0 %v153_v48  ;;  %v156_v49 = vsel %vm37_vm0, %v126_v24, 0.0  ;;  %v656_v29 = vld [vmem:[%s1148_s3] sm:$0xff]  }
  0xb1   :  { %v133_v50 = vmul.f32 %v923_v47, %v923_v47  ;;  %632 = vmatprep.subr.bf16.mxu0 %v656_v29  ;;  %652 = vmatprep.subr.bf16.mxu1 %v656_v29  ;;  %v953_v43 = vld [vmem:[%s1150_s2] ss:$0 sm:$0xff] }
  0xb2   :  { %v134_v51 = vmul.f32 %v926_v25, %v926_v25  ;;  %633 = vmatpush3.bf16.msra.mxu0 %v656_v29  ;;  %654 = vmatpush3.bf16.msra.mxu1 %v656_v29 }
  0xb3   :  { %v177_v52 = vsel %vm37_vm0, %v133_v50, 0.0  ;;  %634 = vmatprep.subr.bf16.mxu0 %v657_v53  ;;  %653 = vmatprep.subr.bf16.mxu1 %v657_v53 }
  0xb4   :  { %157 = vadd.xlane.f32.xlu1 %v156_v49  ;;  %178 = vadd.xlane.f32.xlu0 %v177_v52  ;;  %v180_v28 = vsel %vm37_vm0, %v134_v51, 0.0 }
  0xb6   :  { %635 = vmatpush3.bf16.msra.mxu0 %v657_v53  ;;  %655 = vmatpush3.bf16.msra.mxu1 %v657_v53 }
  0xb8   :  { %181 = vadd.xlane.f32.xlu1 %v180_v28 }
 0x125   :  { %v137_v56 = vpop.xlane.xlu0 %136 }
 0x126   :  { %v183_v57 = vmul.f32 0.03125, %v137_v56 }
 0x128   :  { %v199_v58 = vadd.f32 1e-05, %v183_v57 }
 0x129   :  { %v140_v59 = vpop.xlane.xlu1 %139  ;;  %v161_v60 = vpop.xlane.xlu0 %160 }
 0x12a   :  { %658 = vrsqrt.f32 %v199_v58  ;;  %v184_v61 = vmul.f32 0.03125, %v140_v59  ;;  %v191_v62 = vmul.f32 0.03125, %v161_v60 }
 0x12c   :  { %v200_v63 = vadd.f32 1e-05, %v184_v61  ;;  %v207_v2 = vadd.f32 1e-05, %v191_v62 }
 0x12d   :  { %v164_v3 = vpop.xlane.xlu1 %163  ;;  %v143_v4 = vpop.xlane.xlu0 %142 }
 0x12e   :  { %660 = vrsqrt.f32 %v200_v63  ;;  %v192_v5 = vmul.f32 0.03125, %v164_v3  ;;  %v185_v6 = vmul.f32 0.03125, %v143_v4 }
 0x12f   :  { %662 = vrsqrt.f32 %v207_v2 }
 0x130   :  { %v208_v7 = vadd.f32 1e-05, %v192_v5  ;;  %v201_v8 = vadd.f32 1e-05, %v185_v6 }
 0x131   :  { %v146_v9 = vpop.xlane.xlu1 %145  ;;  %v167_v12 = vpop.xlane.xlu0 %166 }
 0x132   :  { %664 = vrsqrt.f32 %v208_v7  ;;  %v186_v13 = vmul.f32 0.03125, %v146_v9  ;;  %v193_v14 = vmul.f32 0.03125, %v167_v12 }
 0x133   :  { %666 = vrsqrt.f32 %v201_v8 }
 0x134   :  { %v659_v15 = vpop.eup %658  ;;  %v202_v18 = vadd.f32 1e-05, %v186_v13  ;;  %v209_v19 = vadd.f32 1e-05, %v193_v14 }
 0x135   :  { %v170_v22 = vpop.xlane.xlu1 %169  ;;  %v149_v16 = vpop.xlane.xlu0 %148  ;;  %v231_v26 = vmul.f32 %v659_v15, %v846_v36 }
 0x136   :  { %668 = vrsqrt.f32 %v202_v18  ;;  %v194_v27 = vmul.f32 0.03125, %v170_v22  ;;  %v187_v30 = vmul.f32 0.03125, %v149_v16 }
 0x137   :  { %670 = vrsqrt.f32 %v209_v19  ;;  %v254_v41 = vmul.f32 %v946_v31, %v231_v26 }
 0x138   :  { %v661_v32 = vpop.eup %660  ;;  %v210_v33 = vadd.f32 1e-05, %v194_v27  ;;  %v203_v34 = vadd.f32 1e-05, %v187_v30 }
 0x139   :  { %v663_v20 = vpop.eup %662  ;;  %v152_v38 = vpop.xlane.xlu1 %151  ;;  %v232_v40 = vmul.f32 %v661_v32, %v854_v44  ;;  %v277_v28 = vadd.f32 %v953_v43, %v254_v41 }
 0x13a   :  { %v173_v39 = vpop.xlane.xlu0 %172  ;;  %672 = vrsqrt.f32 %v210_v33  ;;  %v188_v36 = vmul.f32 0.03125, %v152_v38  ;;  %v239_v46 = vmul.f32 %v663_v20, %v848_v37 }
 0x13b   :  { %v195_v42 = vmul.f32 0.03125, %v173_v39  ;;  %674 = vrsqrt.f32 %v203_v34  ;;  %v255_v24 = vmul.f32 %v946_v31, %v232_v40 }
 0x13c   :  { %v665_v48 = vpop.eup %664  ;;  %v204_v49 = vadd.f32 1e-05, %v188_v36  ;;  %v262_v56 = vmul.f32 %v946_v31, %v239_v46 }
 0x13d   :  { %v211_v50 = vadd.f32 1e-05, %v195_v42  ;;  %v667_v51 = vpop.eup %666  ;;  %v176_v44 = vpop.xlane.xlu1 %175  ;;  %v278_v29 = vadd.f32 %v953_v43, %v255_v24  ;;  %v240_v53 = vmul.f32 %v665_v48, %v856_v45 }
 0x13e   :  { %v155_v52 = vpop.xlane.xlu0 %154  ;;  %v233_v57 = vmul.f32 %v667_v51, %v864_v54  ;;  %676 = vrsqrt.f32 %v204_v49  ;;  %v196_v37 = vmul.f32 0.03125, %v176_v44  ;;  %v285_v5 = vadd.f32 %v953_v43, %v262_v56 }
 0x13f   :  { %v189_v58 = vmul.f32 0.03125, %v155_v52  ;;  %678 = vrsqrt.f32 %v211_v50  ;;  %v293_v59 = vpack.c.bf16 %v278_v29, %v277_v28  ;;  %v263_v60 = vmul.f32 %v946_v31, %v240_v53 }
 0x140   :  { %v669_v61 = vpop.eup %668  ;;  %v212_v62 = vadd.f32 1e-05, %v196_v37  ;;  %v256_v6 = vmul.f32 %v946_v31, %v233_v57 }
 0x141   :  { %v205_v63 = vadd.f32 1e-05, %v189_v58  ;;  %v671_v2 = vpop.eup %670  ;;  %v234_v3 = vmul.f32 %v669_v61, %v866_v55  ;;  %v158_v4 = vpop.xlane.xlu1 %157  ;;  %636 = vmatprep.mubr.msk.bf16.mxu0 %vm37_vm0, %v293_v59  ;;  %v286_v54 = vadd.f32 %v953_v43, %v263_v60 }
 0x142   :  { %v179_v45 = vpop.xlane.xlu0 %178  ;;  %v241_v7 = vmul.f32 %v671_v2, %v875_v0  ;;  %680 = vrsqrt.f32 %v212_v62  ;;  %v190_v8 = vmul.f32 0.03125, %v158_v4  ;;  %v279_v16 = vadd.f32 %v953_v43, %v256_v6 }
 0x143   :  { %v197_v9 = vmul.f32 0.03125, %v179_v45  ;;  %682 = vrsqrt.f32 %v205_v63  ;;  %v297_v12 = vpack.c.bf16 %v286_v54, %v285_v5  ;;  %v257_v13 = vmul.f32 %v946_v31, %v234_v3 }
 0x144   :  { %v673_v55 = vpop.eup %672  ;;  %v206_v14 = vadd.f32 1e-05, %v190_v8  ;;  %v264_v26 = vmul.f32 %v946_v31, %v241_v7 }
 0x145   :  { %v213_v15 = vadd.f32 1e-05, %v197_v9  ;;  %v675_v18 = vpop.eup %674  ;;  %v242_v19 = vmul.f32 %v673_v55, %v878_v1  ;;  %v182_v22 = vpop.xlane.xlu1 %181  ;;  %644 = vmatprep.mubr.msk.bf16.mxu1 %vm37_vm0, %v297_v12  ;;  %v280_v0 = vadd.f32 %v953_v43, %v257_v13 }
 0x146   :  { %v235_v27 = vmul.f32 %v675_v18, %v887_v10  ;;  %684 = vrsqrt.f32 %v206_v14  ;;  %v198_v30 = vmul.f32 0.03125, %v182_v22  ;;  %v287_v39 = vadd.f32 %v953_v43, %v264_v26 }
 0x147   :  { %686 = vrsqrt.f32 %v213_v15  ;;  %v294_v32 = vpack.c.bf16 %v280_v0, %v279_v16  ;;  %v265_v33 = vmul.f32 %v946_v31, %v242_v19 }
 0x148   :  { %v677_v34 = vpop.eup %676  ;;  %v214_v20 = vadd.f32 1e-05, %v198_v30  ;;  %v258_v41 = vmul.f32 %v946_v31, %v235_v27 }
 0x149   :  { %v679_v1 = vpop.eup %678  ;;  %v236_v38 = vmul.f32 %v677_v34, %v890_v11  ;;  %637 = vmatmul.mubr.msk.bf16.vlgmr.msra.gmra.mrb[0].mxu0 %vm37_vm0, %v294_v32  ;;  %v288_v40 = vadd.f32 %v953_v43, %v265_v33 }
 0x14a   :  { %v243_v10 = vmul.f32 %v679_v1, %v899_v23  ;;  %688 = vrsqrt.f32 %v214_v20  ;;  %v281_v11 = vadd.f32 %v953_v43, %v258_v41 }
 0x14b   :  { %v298_v36 = vpack.c.bf16 %v288_v40, %v287_v39  ;;  %v259_v42 = vmul.f32 %v946_v31, %v236_v38 }
 0x14c   :  { %v681_v46 = vpop.eup %680  ;;  %v266_v50 = vmul.f32 %v946_v31, %v243_v10 }
 0x14d   :  { %v683_v24 = vpop.eup %682  ;;  %v244_v48 = vmul.f32 %v681_v46, %v902_v17  ;;  %645 = vmatmul.mubr.msk.bf16.vlgmr.msra.gmra.mrb[0].mxu1 %vm37_vm0, %v298_v36  ;;  %v282_v49 = vadd.f32 %v953_v43, %v259_v42 }
 0x14e   :  { %v237_v51 = vmul.f32 %v683_v24, %v911_v35  ;;  %v289_v17 = vadd.f32 %v953_v43, %v266_v50 }
 0x14f   :  { %v295_v44 = vpack.c.bf16 %v282_v49, %v281_v11  ;;  %v267_v23 = vmul.f32 %v946_v31, %v244_v48 }
 0x150   :  { %v685_v52 = vpop.eup %684  ;;  %v260_v56 = vmul.f32 %v946_v31, %v237_v51 }
 0x151   :  { %v687_v28 = vpop.eup %686  ;;  %v238_v29 = vmul.f32 %v685_v52, %v914_v21  ;;  %640 = vmatprep.mubr.msk.bf16.mxu0 %vm37_vm0, %v295_v44  ;;  %v290_v53 = vadd.f32 %v953_v43, %v267_v23 }
 0x152   :  { %v245_v57 = vmul.f32 %v687_v28, %v923_v47  ;;  %v283_v21 = vadd.f32 %v953_v43, %v260_v56 }
 0x153   :  { %v299_v37 = vpack.c.bf16 %v290_v53, %v289_v17  ;;  %v261_v35 = vmul.f32 %v946_v31, %v238_v29 }
 0x154   :  { %v689_v58 = vpop.eup %688  ;;  %v268_v61 = vmul.f32 %v946_v31, %v245_v57 }
 0x155   :  { %v246_v59 = vmul.f32 %v689_v58, %v926_v25  ;;  %648 = vmatprep.mubr.msk.bf16.mxu1 %vm37_vm0, %v299_v37  ;;  %v284_v60 = vadd.f32 %v953_v43, %v261_v35  ;;  %v1011_v25 = vld [vmem:[%s1151_s4] ss:$0 sm:$0xff] }
 0x156   :  { %v291_v47 = vadd.f32 %v953_v43, %v268_v61 }
 0x157   :  { %v296_v62 = vpack.c.bf16 %v284_v60, %v283_v21  ;;  %v269_v63 = vmul.f32 %v946_v31, %v246_v59 }
 0x159   :  { %641 = vmatmul.mubr.msk.bf16.gmra.mrb[4].mxu0 %vm37_vm0, %v296_v62  ;;  %v292_v2 = vadd.f32 %v953_v43, %v269_v63 }
 0x15b   :  { %v300_v3 = vpack.c.bf16 %v292_v2, %v291_v47 }
 0x15d   :  { %649 = vmatmul.mubr.msk.bf16.gmra.mrb[4].mxu1 %vm37_vm0, %v300_v3 }
 0x21c   :  { %v638_v4 = vpop.f32.mrb[0].mxu0 }
 0x21d   :  { %v391_v45 = vadd.f32 %v638_v4, %v1011_v25  ;;  %v382_v5 = vpop.f32.mrb[1].mxu0 }
 0x21e   :  { %v383_v31 = vadd.f32 %v1011_v25, %v382_v5  ;;  %v639_v54 = vpop.f32.mrb[2].mxu0 }
 0x21f   :  { %v463_v6 = vmul.f32 0.044715, %v391_v45  ;;  %v394_v7 = vadd.f32 %v639_v54, %v1011_v25  ;;  %v385_v8 = vpop.f32.mrb[3].mxu0  ;;  %v447_v37 = vmul.f32 0.5, %v391_v45 }
 0x220   :  { %v461_v43 = vmul.f32 0.044715, %v383_v31  ;;  %v386_v9 = vadd.f32 %v1011_v25, %v385_v8  ;;  %v646_v12 = vpop.f32.mrb[0].mxu1  ;;  %v445_v21 = vmul.f32 0.5, %v383_v31 }
 0x221   :  { %v479_v13 = vmul.f32 %v463_v6, %v391_v45  ;;  %v464_v55 = vmul.f32 0.044715, %v394_v7  ;;  %v423_v14 = vadd.f32 %v646_v12, %v1011_v25  ;;  %v414_v15 = vpop.f32.mrb[1].mxu1  ;;  %v448_v63 = vmul.f32 0.5, %v394_v7 }
 0x222   :  { %v477_v18 = vmul.f32 %v461_v43, %v383_v31  ;;  %v462_v19 = vmul.f32 0.044715, %v386_v9  ;;  %v415_v22 = vadd.f32 %v1011_v25, %v414_v15  ;;  %v647_v16 = vpop.f32.mrb[2].mxu1 }
 0x223   :  { %v495_v0 = vmul.f32 %v479_v13, %v391_v45  ;;  %v480_v26 = vmul.f32 %v464_v55, %v394_v7  ;;  %v471_v27 = vmul.f32 0.044715, %v423_v14  ;;  %v417_v30 = vpop.f32.mrb[3].mxu1  ;;  %v1020_v39 = vadd.f32 %v647_v16, %v1011_v25 }
 0x224   :  { %v493_v32 = vmul.f32 %v477_v18, %v383_v31  ;;  %v478_v33 = vmul.f32 %v462_v19, %v386_v9  ;;  %v469_v34 = vmul.f32 0.044715, %v415_v22  ;;  %v1023_v24 = vadd.f32 %v1011_v25, %v417_v30 }
 0x225   :  { %v511_v20 = vadd.f32 %v495_v0, %v391_v45  ;;  %v496_v1 = vmul.f32 %v480_v26, %v394_v7  ;;  %v487_v38 = vmul.f32 %v471_v27, %v423_v14  ;;  %v472_v50 = vmul.f32 0.044715, %v1020_v39 }
 0x226   :  { %v509_v40 = vadd.f32 %v493_v32, %v383_v31  ;;  %v494_v41 = vmul.f32 %v478_v33, %v386_v9  ;;  %v485_v10 = vmul.f32 %v469_v34, %v415_v22  ;;  %v470_v17 = vmul.f32 0.044715, %v1023_v24 }
 0x227   :  { %v527_v36 = vmul.f32 0.7978846, %v511_v20  ;;  %v512_v42 = vadd.f32 %v496_v1, %v394_v7  ;;  %v503_v46 = vmul.f32 %v487_v38, %v423_v14  ;;  %v488_v28 = vmul.f32 %v472_v50, %v1020_v39 }
 0x228   :  { %v525_v48 = vmul.f32 0.7978846, %v509_v40  ;;  %v510_v11 = vadd.f32 %v494_v41, %v386_v9  ;;  %v501_v49 = vmul.f32 %v485_v10, %v415_v22  ;;  %v486_v35 = vmul.f32 %v470_v17, %v1023_v24 }
 0x229   :  { %690 = vtanh.f32 %v527_v36  ;;  %v528_v51 = vmul.f32 0.7978846, %v512_v42  ;;  %v519_v44 = vadd.f32 %v503_v46, %v423_v14  ;;  %v504_v56 = vmul.f32 %v488_v28, %v1020_v39 }
 0x22a   :  { %692 = vtanh.f32 %v525_v48  ;;  %v526_v23 = vmul.f32 0.7978846, %v510_v11  ;;  %v517_v52 = vadd.f32 %v501_v49, %v415_v22  ;;  %v502_v47 = vmul.f32 %v486_v35, %v1023_v24 }
 0x22b   :  { %694 = vtanh.f32 %v528_v51  ;;  %v535_v29 = vmul.f32 0.7978846, %v519_v44  ;;  %v520_v60 = vadd.f32 %v504_v56, %v1020_v39  ;;  %v446_v45 = vmul.f32 0.5, %v386_v9 }
 0x22c   :  { %696 = vtanh.f32 %v526_v23  ;;  %v533_v53 = vmul.f32 0.7978846, %v517_v52  ;;  %v642_v57 = vpop.f32.mrb[4].mxu0  ;;  %v455_v8 = vmul.f32 0.5, %v423_v14  ;;  %v518_v43 = vadd.f32 %v502_v47, %v1023_v24 }
 0x22d   :  { %698 = vtanh.f32 %v535_v29  ;;  %v1031_v58 = vadd.f32 %v642_v57, %v1011_v25  ;;  %v398_v59 = vpop.f32.mrb[5].mxu0  ;;  %v536_v5 = vmul.f32 0.7978846, %v520_v60  ;;  %v453_v55 = vmul.f32 0.5, %v415_v22 }
 0x22e   :  { %700 = vtanh.f32 %v533_v53  ;;  %v1035_v61 = vadd.f32 %v1011_v25, %v398_v59  ;;  %v643_v62 = vpop.f32.mrb[6].mxu0  ;;  %v534_v16 = vmul.f32 0.7978846, %v518_v43  ;;  %v456_v47 = vmul.f32 0.5, %v1020_v39 }
 0x22f   :  { %v467_v2 = vmul.f32 0.044715, %v1031_v58  ;;  %v1040_v3 = vadd.f32 %v643_v62, %v1011_v25  ;;  %v401_v4 = vpop.f32.mrb[7].mxu0  ;;  %702 = vtanh.f32 %v536_v5  ;;  %v454_v43 = vmul.f32 0.5, %v1023_v24 }
 0x230   :  { %v465_v31 = vmul.f32 0.044715, %v1035_v61  ;;  %v1044_v54 = vadd.f32 %v1011_v25, %v401_v4  ;;  %v650_v6 = vpop.f32.mrb[4].mxu1  ;;  %704 = vtanh.f32 %v534_v16  ;;  %v451_v24 = vmul.f32 0.5, %v1031_v58 }
 0x231   :  { %v483_v7 = vmul.f32 %v467_v2, %v1031_v58  ;;  %v468_v12 = vmul.f32 0.044715, %v1040_v3  ;;  %v430_v13 = vpop.f32.mrb[5].mxu1  ;;  %v1054_v26 = vadd.f32 %v650_v6, %v1011_v25 }
 0x232   :  { %v481_v15 = vmul.f32 %v465_v31, %v1035_v61  ;;  %v466_v9 = vmul.f32 0.044715, %v1044_v54  ;;  %v651_v18 = vpop.f32.mrb[6].mxu1  ;;  %v1059_v34 = vadd.f32 %v1011_v25, %v430_v13 }
 0x233   :  { %v691_v19 = vpop.eup %690  ;;  %v499_v0 = vmul.f32 %v483_v7, %v1031_v58  ;;  %v484_v14 = vmul.f32 %v468_v12, %v1040_v3  ;;  %v433_v27 = vpop.f32.mrb[7].mxu1  ;;  %v475_v59 = vmul.f32 0.044715, %v1054_v26  ;;  %v1085_v62 = vadd.f32 %v651_v18, %v1011_v25 }
 0x234   :  { %v693_v30 = vpop.eup %692  ;;  %v559_v32 = vadd.f32 1.0, %v691_v19  ;;  %v497_v22 = vmul.f32 %v481_v15, %v1035_v61  ;;  %v482_v33 = vmul.f32 %v466_v9, %v1044_v54  ;;  %v473_v60 = vmul.f32 0.044715, %v1059_v34 }
 0x235   :  { %v695_v20 = vpop.eup %694  ;;  %v557_v1 = vadd.f32 1.0, %v693_v30  ;;  %v515_v38 = vadd.f32 %v499_v0, %v1031_v58  ;;  %v500_v40 = vmul.f32 %v484_v14, %v1040_v3  ;;  %v491_v4 = vmul.f32 %v475_v59, %v1054_v26 }
 0x236   :  { %v697_v41 = vpop.eup %696  ;;  %v575_v10 = vmul.f32 %v559_v32, %v447_v37  ;;  %v560_v36 = vadd.f32 1.0, %v695_v20  ;;  %v513_v42 = vadd.f32 %v497_v22, %v1035_v61  ;;  %v498_v46 = vmul.f32 %v482_v33, %v1044_v54 }
 0x237   :  { %v699_v48 = vpop.eup %698  ;;  %v573_v11 = vmul.f32 %v557_v1, %v445_v21  ;;  %v558_v49 = vadd.f32 1.0, %v697_v41  ;;  %v531_v50 = vmul.f32 0.7978846, %v515_v38  ;;  %v516_v51 = vadd.f32 %v500_v40, %v1040_v3 }
 0x238   :  { %v701_v44 = vpop.eup %700  ;;  %591 = vst [vmem:[%s1152_s5 + $0x10] sm:$0xff] %v575_v10  ;;  %v576_v23 = vmul.f32 %v560_v36, %v448_v63  ;;  %v567_v52 = vadd.f32 1.0, %v699_v48  ;;  %v529_v28 = vmul.f32 0.7978846, %v513_v42  ;;  %v514_v29 = vadd.f32 %v498_v46, %v1044_v54 }
 0x239   :  { %589 = vst [vmem:[%s1152_s5] sm:$0xff] %v573_v11  ;;  %v574_v17 = vmul.f32 %v558_v49, %v446_v45  ;;  %v565_v53 = vadd.f32 1.0, %v701_v44  ;;  %706 = vtanh.f32 %v531_v50  ;;  %v532_v56 = vmul.f32 0.7978846, %v516_v51  ;;  %v703_v21 = vpop.eup %702 }
 0x23a   :  { %592 = vst [vmem:[%s1152_s5 + $0x18] sm:$0xff] %v576_v23  ;;  %v583_v57 = vmul.f32 %v567_v52, %v455_v8  ;;  %708 = vtanh.f32 %v529_v28  ;;  %v530_v37 = vmul.f32 0.7978846, %v514_v29  ;;  %v1088_v63 = vadd.f32 %v1011_v25, %v433_v27  ;;  %v705_v31 = vpop.eup %704 }
 0x23b   :  { %590 = vst [vmem:[%s1152_s5 + $0x8] sm:$0xff] %v574_v17  ;;  %v581_v35 = vmul.f32 %v565_v53, %v453_v55  ;;  %710 = vtanh.f32 %v532_v56  ;;  %v568_v2 = vadd.f32 1.0, %v703_v21  ;;  %v489_v45 = vmul.f32 %v473_v60, %v1059_v34 }
 0x23c   :  { %599 = vst [vmem:[%s1152_s5 + $0x50] sm:$0xff] %v583_v57  ;;  %712 = vtanh.f32 %v530_v37  ;;  %v476_v5 = vmul.f32 0.044715, %v1085_v62  ;;  %v507_v8 = vmul.f32 %v491_v4, %v1054_v26  ;;  %v474_v25 = vmul.f32 0.044715, %v1088_v63 }
 0x23d   :  { %597 = vst [vmem:[%s1152_s5 + $0x40] sm:$0xff] %v581_v35  ;;  %v584_v6 = vmul.f32 %v568_v2, %v456_v47  ;;  %v566_v7 = vadd.f32 1.0, %v705_v31  ;;  %v505_v12 = vmul.f32 %v489_v45, %v1059_v34  ;;  %v449_v30 = vmul.f32 0.5, %v1035_v61 }
 0x23e   :  { %v492_v39 = vmul.f32 %v476_v5, %v1085_v62  ;;  %v523_v13 = vadd.f32 %v507_v8, %v1054_v26  ;;  %v490_v55 = vmul.f32 %v474_v25, %v1088_v63  ;;  %v452_v1 = vmul.f32 0.5, %v1040_v3 }
 0x23f   :  { %600 = vst [vmem:[%s1152_s5 + $0x58] sm:$0xff] %v584_v6  ;;  %v582_v15 = vmul.f32 %v566_v7, %v454_v43  ;;  %v521_v9 = vadd.f32 %v505_v12, %v1059_v34  ;;  %v450_v42 = vmul.f32 0.5, %v1044_v54  ;;  %v459_v49 = vmul.f32 0.5, %v1054_v26 }
 0x240   :  { %v508_v18 = vmul.f32 %v492_v39, %v1085_v62  ;;  %v539_v16 = vmul.f32 0.7978846, %v523_v13  ;;  %v506_v0 = vmul.f32 %v490_v55, %v1088_v63  ;;  %v457_v51 = vmul.f32 0.5, %v1059_v34 }
 0x241   :  { %598 = vst [vmem:[%s1152_s5 + $0x48] sm:$0xff] %v582_v15  ;;  %v537_v32 = vmul.f32 0.7978846, %v521_v9  ;;  %v460_v17 = vmul.f32 0.5, %v1085_v62  ;;  %v458_v56 = vmul.f32 0.5, %v1088_v63 }
 0x242   :  { %v524_v22 = vadd.f32 %v508_v18, %v1085_v62  ;;  %714 = vtanh.f32 %v539_v16  ;;  %v522_v58 = vadd.f32 %v506_v0, %v1088_v63 }
 0x243   :  { %v707_v19 = vpop.eup %706  ;;  %716 = vtanh.f32 %v537_v32 }
 0x244   :  { %v709_v14 = vpop.eup %708  ;;  %v563_v27 = vadd.f32 1.0, %v707_v19  ;;  %v540_v10 = vmul.f32 0.7978846, %v524_v22  ;;  %v538_v61 = vmul.f32 0.7978846, %v522_v58 }
 0x245   :  { %v711_v33 = vpop.eup %710  ;;  %v561_v20 = vadd.f32 1.0, %v709_v14 }
 0x246   :  { %v713_v38 = vpop.eup %712  ;;  %v579_v40 = vmul.f32 %v563_v27, %v451_v24  ;;  %v564_v41 = vadd.f32 1.0, %v711_v33  ;;  %718 = vtanh.f32 %v540_v10 }
 0x247   :  { %v577_v36 = vmul.f32 %v561_v20, %v449_v30  ;;  %v562_v46 = vadd.f32 1.0, %v713_v38  ;;  %720 = vtanh.f32 %v538_v61 }
 0x248   :  { %595 = vst [vmem:[%s1152_s5 + $0x30] sm:$0xff] %v579_v40  ;;  %v580_v48 = vmul.f32 %v564_v41, %v452_v1 }
 0x249   :  { %593 = vst [vmem:[%s1152_s5 + $0x20] sm:$0xff] %v577_v36  ;;  %v578_v3 = vmul.f32 %v562_v46, %v450_v42 }
 0x24a   :  { %596 = vst [vmem:[%s1152_s5 + $0x38] sm:$0xff] %v580_v48 }
 0x24b   :  { %594 = vst [vmem:[%s1152_s5 + $0x28] sm:$0xff] %v578_v3 }
 0x24c   :  { %v715_v54 = vpop.eup %714 }
 0x24d   :  { %v717_v11 = vpop.eup %716  ;;  %v571_v50 = vadd.f32 1.0, %v715_v54 }
 0x24e   :  { %v569_v44 = vadd.f32 1.0, %v717_v11 }
 0x24f   :  { %v587_v52 = vmul.f32 %v571_v50, %v459_v49 }
 0x250   :  { %v719_v23 = vpop.eup %718  ;;  %v585_v29 = vmul.f32 %v569_v44, %v457_v51 }
 0x251   :  { %v721_v28 = vpop.eup %720  ;;  %v572_v53 = vadd.f32 1.0, %v719_v23  ;;  %603 = vst [vmem:[%s1152_s5 + $0x70] sm:$0xff] %v587_v52 }
 0x252   :  { %v570_v57 = vadd.f32 1.0, %v721_v28  ;;  %601 = vst [vmem:[%s1152_s5 + $0x60] sm:$0xff] %v585_v29 }
 0x253   :  { %v588_v26 = vmul.f32 %v572_v53, %v460_v17 }
 0x254   :  { %v586_v34 = vmul.f32 %v570_v57, %v458_v56 }
 0x255   :  { %604 = vst [vmem:[%s1152_s5 + $0x78] sm:$0xff] %v588_v26 }
 0x256   :  { %602 = vst [vmem:[%s1152_s5 + $0x68] sm:$0xff] %v586_v34 }

// kernel: _lambda_.27
= control target key start
LH: loop header
LB: loop body
LE: loop exit
PB: predicated region body
PF: predicated region fallthrough
CT: control target
= control target key end

     0   :  { %s2693_s15 = smov 0   ;;  %s2695_s16 = smov 0   ;;  %s4177_s0 = inlined_call_operand.vmem [shape: f32[2,18,18,64], index: 0, kind: input, shape index: {}]   ;;  %s4178_s1 = inlined_call_operand.vmem [shape: f32[3,3,64], index: 1, kind: input, shape index: {}, may-alias: {1,2,3}]   ;;  %s4179_s2 = inlined_call_operand.vmem [shape: f32[3,3,64], index: 2, kind: input, shape index: {}, may-alias: {1,2,3}]   ;;  %s4180_s3 = inlined_call_operand.vmem [shape: f32[3,3,64], index: 3, kind: input, shape index: {}, may-alias: {1,2,3}]   ;;  %s4181_s4 = inlined_call_operand.vmem [shape: f32[2,8,8,64], index: 4, kind: output, shape index: {}]  }
   0x1   :  { %s2697_s17 = smov 0  }
   0x2 LB: > { %s26_s18 = sadd.s32 1, %s2662_s16  ;;  %p2576_p0 = scmp.ge.s32.totalorder %s2666_s17, 1  ;;  %s2666_s17 = sphi %s2697_s17, %s14_s17   ;;  %s2662_s16 = sphi %s2695_s16, %s4389_s16   ;;  %s2658_s15 = sphi %s2693_s15, %s4388_s15  }
   0x3   : > { %p28_p1 = scmp.ge.s32.totalorder %s26_s18, 2  ;;  %p208_p2 = scmp.lt.s32.totalorder %s2666_s17, 3 }
   0x5   : > { %s4391_s18 = smov (%p28_p1, %s26_s18), 0  ;;  %p209_p3 = pnand %p2576_p0, %p208_p2 }
   0x7   : > { %212 = sbr.rel (%p209_p3) target bundleno = 356 (0x164), region = 36 }
   0xe   : > { %p252_p4 = scmp.lt.s32.totalorder %s2658_s15, 1  ;;  %v337_v0 = vlaneseq  ;;  %v334_v2 = vld [vmem:[%s4178_s1] sm:$0x7]  ;;  %v335_v6 = vld [vmem:[%s4178_s1 + $0x4] sm:$0x7]  ;;  %vm409_vm0 = vcmask 1046528  }
   0xf   : > { %v999_v7 = vld [vmem:[%s4179_s2] sm:$0x7]  ;;  %v336_v8 = vld [vmem:[%s4178_s1 + $0x8] sm:$0x7]  ;;  %vm502_vm1 = vcmask 1045504   ;;  %vm1038_vm2 = vcmask 1041408  }
  0x10   : > { %s4393_s15 = smov (!%p252_p4, %s2658_s15), 1  ;;  %v338_v1 = vshrl.u32 %v337_v0, 7  ;;  %vm2422_vm3 = vcmask 523268   ;;  %vm2424_vm4 = vcmask 519168  }
  0x11   : > { %s2583_s19 = smul.u32 432, %s4393_s15 }
  0x12   : > { %v2717_v3 = vsub.s32 0, %v338_v1  ;;  %v2719_v4 = vsub.s32 1, %v338_v1  ;;  %v2721_v5 = vsub.s32 2, %v338_v1 }
  0x13   : > { %s2744_s30 = scalar_lea.vmem %s4177_s0, %s2583_s19  ;;  %s2582_s19 = sshll.u32 %s4393_s15, 6 }
  0x14   : > { %4265 = vst [vmem:[#allocation2_spill] sm:$0xff] %v2717_v3  ;;  %4266 = vst [vmem:[#allocation3_spill] sm:$0xff] %v2719_v4  ;;  %v2733_v9 = vrot.slane %v334_v2, %v2717_v3  ;;  %v2736_v10 = vrot.slane %v334_v2, %v2719_v4  ;;  %v2739_v11 = vrot.slane %v334_v2, %v2721_v5  ;;  %v286_v16 = vld [vmem:[%s2744_s30 + $0x30] sm:$0xff]  ;;  %v287_v17 = vld [vmem:[%s2744_s30 + $0x38] sm:$0xff]  ;;  %s4122_s15 = scalar_lea.vmem %s4181_s4, %s2582_s19 }
  0x15   : > { %4267 = vst [vmem:[#allocation4_spill] sm:$0xff] %v2721_v5  ;;  %v2747_v12 = vrot.slane %v335_v6, %v2717_v3  ;;  %v2750_v13 = vrot.slane %v335_v6, %v2719_v4  ;;  %v2753_v14 = vrot.slane %v999_v7, %v2717_v3  ;;  %v2756_v15 = vrot.slane %v999_v7, %v2719_v4  ;;  %v289_v22 = vld [vmem:[%s2744_s30 + $0x48] sm:$0xff]  ;;  %v290_v23 = vld [vmem:[%s2744_s30 + $0x50] sm:$0xff]  ;;  %v2787_v28 = vld [vmem:[%s2744_s30 + $0x60] sm:$0xff] }
  0x16   : > { %v2761_v18 = vrot.slane %v335_v6, %v2721_v5  ;;  %v2764_v19 = vrot.slane %v336_v8, %v2717_v3  ;;  %v2767_v20 = vrot.slane %v336_v8, %v2719_v4  ;;  %v2770_v21 = vrot.slane %v336_v8, %v2721_v5  ;;  %4280 = vst [vmem:[#allocation17_spill] sm:$0xff] %v2787_v28  ;;  %v2790_v29 = vld [vmem:[%s2744_s30 + $0x68] sm:$0xff]  ;;  %v2805_v34 = vld [vmem:[%s2744_s30 + $0x78] sm:$0xff]  ;;  %v2808_v35 = vld [vmem:[%s2744_s30 + $0x80] sm:$0xff] }
  0x17   : > { %4268 = vst [vmem:[#allocation5_spill] sm:$0xff] %v2747_v12  ;;  %4269 = vst [vmem:[#allocation6_spill] sm:$0xff] %v2750_v13  ;;  %v2775_v24 = vmul.f32 %v2753_v14, %v286_v16  ;;  %v2778_v25 = vmul.f32 %v2753_v14, %v287_v17  ;;  %v2781_v26 = vmul.f32 %v2756_v15, %v286_v16  ;;  %v2822_v40 = vld [vmem:[%s2744_s30 + $0x90] sm:$0xff]  ;;  %v2825_v41 = vld [vmem:[%s2744_s30 + $0x98] sm:$0xff] }
  0x18   : > { %4270 = vst [vmem:[#allocation7_spill] sm:$0xff] %v2753_v14  ;;  %4271 = vst [vmem:[#allocation8_spill] sm:$0xff] %v2756_v15  ;;  %v2784_v27 = vrot.slane %v999_v7, %v2721_v5  ;;  %v2793_v30 = vmul.f32 %v2753_v14, %v289_v22  ;;  %v2796_v31 = vmul.f32 %v2753_v14, %v290_v23  ;;  %v2840_v46 = vld [vmem:[%s2744_s30 + $0xa8] sm:$0xff]  ;;  %v2843_v47 = vld [vmem:[%s2744_s30 + $0xb0] sm:$0xff] }
  0x19   : > { %4272 = vst [vmem:[#allocation9_spill] sm:$0xff] %v2761_v18  ;;  %4273 = vst [vmem:[#allocation10_spill] sm:$0xff] %v2764_v19  ;;  %v2799_v32 = vmul.f32 %v2756_v15, %v287_v17  ;;  %v2802_v33 = vmul.f32 %v2756_v15, %v289_v22  ;;  %v2812_v36 = vmul.f32 %v2733_v9, %v2787_v28  ;;  %v2858_v52 = vld [vmem:[%s2744_s30 + $0xc0] sm:$0xff]  ;;  %v2861_v53 = vld [vmem:[%s2744_s30 + $0xc8] sm:$0xff] }
  0x1a   : > { %4274 = vst [vmem:[#allocation11_spill] sm:$0xff] %v2767_v20  ;;  %4275 = vst [vmem:[#allocation12_spill] sm:$0xff] %v2770_v21  ;;  %v342_v37 = vmul.f32 %v2733_v9, %v2790_v29  ;;  %v377_v38 = vmul.f32 %v2736_v10, %v2787_v28  ;;  %v2819_v39 = vmul.f32 %v2756_v15, %v290_v23  ;;  %v2872_v58 = vld [vmem:[%s2744_s30 + $0xd8] sm:$0xff]  ;;  %v2875_v59 = vld [vmem:[%s2744_s30 + $0xe0] sm:$0xff] }
  0x1b   : > { %4276 = vst [vmem:[#allocation13_spill] sm:$0xff] %v2775_v24  ;;  %4277 = vst [vmem:[#allocation14_spill] sm:$0xff] %v2778_v25  ;;  %v2829_v42 = vmul.f32 %v2733_v9, %v2805_v34  ;;  %v2833_v43 = vmul.f32 %v2733_v9, %v2808_v35  ;;  %v378_v44 = vmul.f32 %v2736_v10, %v2790_v29  ;;  %v2886_v0 = vld [vmem:[%s2744_s30 + $0xf0] sm:$0xff]  ;;  %v2889_v1 = vld [vmem:[%s2744_s30 + $0xf8] sm:$0xff] }
  0x1c   : > { %4278 = vst [vmem:[#allocation15_spill] sm:$0xff] %v2781_v26  ;;  %4279 = vst [vmem:[#allocation16_spill] sm:$0xff] %v2784_v27  ;;  %v379_v45 = vmul.f32 %v2736_v10, %v2805_v34  ;;  %v2847_v48 = vmul.f32 %v2733_v9, %v2822_v40  ;;  %v2851_v49 = vmul.f32 %v2733_v9, %v2825_v41  ;;  %v2900_v16 = vld [vmem:[%s2744_s30 + $0x108] sm:$0xff]  ;;  %v2903_v17 = vld [vmem:[%s2744_s30 + $0x110] sm:$0xff]  ;;  %v410_v26 = vrot.slane %v377_v38, 1 }
  0x1d   : > { %4281 = vst [vmem:[#allocation18_spill] sm:$0xff] %v2790_v29  ;;  %4282 = vst [vmem:[#allocation19_spill] sm:$0xff] %v2793_v30  ;;  %v380_v50 = vmul.f32 %v2736_v10, %v2808_v35  ;;  %v381_v51 = vmul.f32 %v2736_v10, %v2822_v40  ;;  %v347_v54 = vmul.f32 %v2733_v9, %v2840_v46  ;;  %v411_v15 = vrot.slane %v378_v44, 1 }
  0x1e   : > { %4283 = vst [vmem:[#allocation20_spill] sm:$0xff] %v2796_v31  ;;  %4284 = vst [vmem:[#allocation21_spill] sm:$0xff] %v2799_v32  ;;  %v348_v55 = vmul.f32 %v2733_v9, %v2843_v47  ;;  %v382_v56 = vmul.f32 %v2736_v10, %v2825_v41  ;;  %v383_v57 = vmul.f32 %v2736_v10, %v2840_v46  ;;  %v413_v30 = vrot.slane %v379_v45, 1 }
  0x1f   : > { %4285 = vst [vmem:[#allocation22_spill] sm:$0xff] %v2802_v33  ;;  %4286 = vst [vmem:[#allocation23_spill] sm:$0xff] %v2805_v34  ;;  %v349_v60 = vmul.f32 %v2733_v9, %v2858_v52  ;;  %v350_v61 = vmul.f32 %v2733_v9, %v2861_v53  ;;  %v384_v62 = vmul.f32 %v2736_v10, %v2843_v47  ;;  %v414_v25 = vrot.slane %v380_v50, 1 }
  0x20   : > { %4287 = vst [vmem:[#allocation24_spill] sm:$0xff] %v2808_v35  ;;  %4288 = vst [vmem:[#allocation25_spill] sm:$0xff] %v2819_v39  ;;  %v385_v63 = vmul.f32 %v2736_v10, %v2858_v52  ;;  %v351_v2 = vmul.f32 %v2733_v9, %v2872_v58  ;;  %v352_v6 = vmul.f32 %v2733_v9, %v2875_v59  ;;  %v417_v21 = vrot.slane %v382_v56, 1 }
  0x21   : > { %v386_v7 = vmul.f32 %v2736_v10, %v2861_v53  ;;  %v387_v8 = vmul.f32 %v2736_v10, %v2872_v58  ;;  %4289 = vst [vmem:[#allocation26_spill] sm:$0xff] %v2903_v17  ;;  %v353_v22 = vmul.f32 %v2733_v9, %v2886_v0  ;;  %v354_v23 = vmul.f32 %v2733_v9, %v2889_v1 }
  0x22   : > { %v388_v5 = vmul.f32 %v2736_v10, %v2875_v59  ;;  %v389_v4 = vmul.f32 %v2736_v10, %v2886_v0  ;;  %v355_v3 = vmul.f32 %v2733_v9, %v2900_v16  ;;  %v2917_v27 = vmul.f32 %v2733_v9, %v2903_v17 }
  0x23   : > { %v390_v39 = vmul.f32 %v2736_v10, %v2889_v1  ;;  %v391_v33 = vmul.f32 %v2736_v10, %v2900_v16  ;;  %v2925_v32 = vmul.f32 %v2736_v10, %v2903_v17  ;;  %v2929_v31 = vmul.f32 %v2739_v11, %v2787_v28 }
  0x24   : > { %v2933_v9 = vmul.f32 %v2739_v11, %v2790_v29  ;;  %v2937_v24 = vmul.f32 %v2739_v11, %v2805_v34  ;;  %v412_v14 = vsel %vm409_vm0, %v410_v26, %v411_v15  ;;  %v416_v10 = vrot.slane %v381_v51, 1 }
  0x25   : > { %v2942_v38 = vmul.f32 %v2739_v11, %v2808_v35  ;;  %v415_v44 = vsel %vm409_vm0, %v413_v30, %v414_v25  ;;  %v419_v45 = vrot.slane %v383_v57, 1  ;;  %v420_v50 = vrot.slane %v384_v62, 1 }
  0x26   : > { %v2945_v28 = vadd.f32 %v411_v15, %v342_v37  ;;  %v418_v29 = vsel %vm409_vm0, %v416_v10, %v417_v21  ;;  %v422_v20 = vrot.slane %v385_v63, 1  ;;  %v423_v19 = vrot.slane %v386_v7, 1 }
  0x27   : > { %v450_v18 = vadd.f32 %v412_v14, %v2812_v36  ;;  %v421_v26 = vsel %vm409_vm0, %v419_v45, %v420_v50  ;;  %v425_v51 = vrot.slane %v387_v8, 1  ;;  %v426_v56 = vrot.slane %v388_v5, 1 }
  0x28   : > { %v428_v13 = vrot.slane %v389_v4, 1  ;;  %v424_v35 = vsel %vm409_vm0, %v422_v20, %v423_v19  ;;  %v429_v12 = vrot.slane %v390_v39, 1  ;;  %v431_v30 = vrot.slane %v391_v33, 1 }
  0x29   : > { %v432_v57 = vrot.slane %v2925_v32, 1  ;;  %v427_v15 = vsel %vm409_vm0, %v425_v51, %v426_v56  ;;  %v452_v37 = vadd.f32 %v415_v44, %v2829_v42  ;;  %v453_v62 = vadd.f32 %v414_v25, %v2833_v43 }
  0x2a   : > { %v454_v14 = vadd.f32 %v418_v29, %v2847_v48  ;;  %v430_v36 = vsel %vm409_vm0, %v428_v13, %v429_v12  ;;  %v455_v4 = vadd.f32 %v417_v21, %v2851_v49  ;;  %v456_v63 = vadd.f32 %v421_v26, %v347_v54 }
  0x2b   : > { %v433_v5 = vsel %vm409_vm0, %v431_v30, %v432_v57  ;;  %v457_v20 = vadd.f32 %v420_v50, %v348_v55  ;;  %v458_v39 = vadd.f32 %v424_v35, %v349_v60  ;;  %v459_v33 = vadd.f32 %v423_v19, %v350_v61 }
  0x2c   : > { %v460_v7 = vadd.f32 %v427_v15, %v351_v2  ;;  %v461_v32 = vadd.f32 %v426_v56, %v352_v6  ;;  %v462_v8 = vadd.f32 %v430_v36, %v353_v22  ;;  %v463_v10 = vadd.f32 %v429_v12, %v354_v23 }
  0x2d   : > { %v464_v45 = vadd.f32 %v433_v5, %v355_v3  ;;  %v474_v25 = vmul.f32 %v2739_v11, %v2822_v40  ;;  %v475_v29 = vmul.f32 %v2739_v11, %v2825_v41  ;;  %v476_v13 = vmul.f32 %v2739_v11, %v2840_v46 }
  0x2e   : > { %v477_v21 = vmul.f32 %v2739_v11, %v2843_v47  ;;  %v478_v19 = vmul.f32 %v2739_v11, %v2858_v52  ;;  %v479_v35 = vmul.f32 %v2739_v11, %v2861_v53  ;;  %v480_v3 = vmul.f32 %v2739_v11, %v2872_v58 }
  0x2f   : > { %v481_v12 = vmul.f32 %v2739_v11, %v2875_v59  ;;  %v482_v42 = vmul.f32 %v2739_v11, %v2886_v0  ;;  %v483_v43 = vmul.f32 %v2739_v11, %v2889_v1  ;;  %v484_v48 = vmul.f32 %v2739_v11, %v2900_v16 }
  0x30   : > { %v485_v49 = vmul.f32 %v2739_v11, %v2903_v17  ;;  %v503_v54 = vrot.slane %v2929_v31, 2  ;;  %v504_v55 = vrot.slane %v2933_v9, 2  ;;  %v506_v60 = vrot.slane %v2937_v24, 2 }
  0x31   : > { %v507_v61 = vrot.slane %v2942_v38, 2  ;;  %v509_v2 = vrot.slane %v474_v25, 2  ;;  %v510_v6 = vrot.slane %v475_v29, 2  ;;  %v512_v22 = vrot.slane %v476_v13, 2 }
  0x32   : > { %v513_v23 = vrot.slane %v477_v21, 2  ;;  %v465_v44 = vadd.f32 %v432_v57, %v2917_v27  ;;  %v505_v50 = vsel %vm502_vm1, %v503_v54, %v504_v55  ;;  %v515_v26 = vrot.slane %v478_v19, 2 }
  0x33   : > { %v516_v51 = vrot.slane %v479_v35, 2  ;;  %v508_v11 = vsel %vm502_vm1, %v506_v60, %v507_v61  ;;  %v511_v31 = vsel %vm502_vm1, %v509_v2, %v510_v6  ;;  %v518_v56 = vrot.slane %v480_v3, 2 }
  0x34   : > { %v519_v9 = vrot.slane %v481_v12, 2  ;;  %v514_v24 = vsel %vm502_vm1, %v512_v22, %v513_v23  ;;  %v521_v30 = vrot.slane %v482_v42, 2  ;;  %v522_v38 = vrot.slane %v483_v43, 2  ;;  %v2998_v22 = vld [vmem:[%s2744_s30 + $0x120] sm:$0xff] }
  0x35   : > { %v524_v15 = vrot.slane %v484_v48, 2  ;;  %v517_v36 = vsel %vm502_vm1, %v515_v26, %v516_v51  ;;  %v525_v27 = vrot.slane %v485_v49, 2  ;;  %v543_v57 = vadd.f32 %v505_v50, %v450_v18  ;;  %4290 = vst [vmem:[#allocation27_spill] sm:$0xff] %v2998_v22 }
  0x36   : > { %v520_v5 = vsel %vm502_vm1, %v518_v56, %v519_v9  ;;  %v523_v25 = vsel %vm502_vm1, %v521_v30, %v522_v38  ;;  %v544_v29 = vadd.f32 %v504_v55, %v2945_v28  ;;  %v545_v13 = vadd.f32 %v508_v11, %v452_v37  ;;  %v4291_v28 = vld [vmem:[#allocation5_spill] sm:$0xff] }
  0x37   : > { %v546_v21 = vadd.f32 %v507_v61, %v453_v62  ;;  %v526_v19 = vsel %vm502_vm1, %v524_v15, %v525_v27  ;;  %v547_v35 = vadd.f32 %v511_v31, %v454_v14  ;;  %v548_v3 = vadd.f32 %v510_v6, %v455_v4  ;;  %v4292_v62 = vld [vmem:[#allocation24_spill] sm:$0xff] }
  0x38   : > { %v549_v12 = vadd.f32 %v514_v24, %v456_v63  ;;  %v550_v42 = vadd.f32 %v513_v23, %v457_v20  ;;  %v551_v43 = vadd.f32 %v517_v36, %v458_v39  ;;  %v552_v48 = vadd.f32 %v516_v51, %v459_v33  ;;  %v3007_v63 = vld [vmem:[%s2744_s30 + $0x128] sm:$0xff] }
  0x39   : > { %v553_v54 = vadd.f32 %v520_v5, %v460_v7  ;;  %v554_v60 = vadd.f32 %v519_v9, %v461_v32  ;;  %v555_v49 = vadd.f32 %v523_v25, %v462_v8  ;;  %v556_v18 = vadd.f32 %v522_v38, %v463_v10  ;;  %4293 = vst [vmem:[#allocation5_spill] sm:$0xff] %v3007_v63 }
  0x3a   : > { %v557_v2 = vadd.f32 %v526_v19, %v464_v45  ;;  %v558_v50 = vadd.f32 %v525_v27, %v465_v44  ;;  %v563_v37 = vmul.f32 %v4291_v28, %v2805_v34  ;;  %v564_v14 = vmul.f32 %v4291_v28, %v4292_v62 }
  0x3b   : > { %v565_v4 = vmul.f32 %v4291_v28, %v2822_v40  ;;  %v566_v20 = vmul.f32 %v4291_v28, %v2825_v41  ;;  %v567_v39 = vmul.f32 %v4291_v28, %v2840_v46  ;;  %v568_v33 = vmul.f32 %v4291_v28, %v2843_v47 }
  0x3c   : > { %v569_v7 = vmul.f32 %v4291_v28, %v2858_v52  ;;  %v570_v32 = vmul.f32 %v4291_v28, %v2861_v53  ;;  %v571_v8 = vmul.f32 %v4291_v28, %v2872_v58  ;;  %v572_v10 = vmul.f32 %v4291_v28, %v2875_v59 }
  0x3d   : > { %v573_v45 = vmul.f32 %v4291_v28, %v2886_v0  ;;  %v574_v55 = vmul.f32 %v4291_v28, %v2889_v1  ;;  %v575_v61 = vmul.f32 %v4291_v28, %v2900_v16  ;;  %v576_v6 = vmul.f32 %v4291_v28, %v2903_v17 }
  0x3e   : > { %v577_v23 = vmul.f32 %v4291_v28, %v2998_v22  ;;  %v578_v44 = vmul.f32 %v4291_v28, %v3007_v63  ;;  %v579_v26 = vadd.f32 %v563_v37, %v543_v57  ;;  %v580_v51 = vadd.f32 %v564_v14, %v544_v29  ;;  %v4294_v22 = vld [vmem:[#allocation6_spill] sm:$0xff] }
  0x3f   : > { %v581_v11 = vadd.f32 %v565_v4, %v545_v13  ;;  %v582_v31 = vadd.f32 %v566_v20, %v546_v21  ;;  %v583_v56 = vadd.f32 %v567_v39, %v547_v35  ;;  %v584_v9 = vadd.f32 %v568_v33, %v548_v3 }
  0x40   : > { %v585_v24 = vadd.f32 %v569_v7, %v549_v12  ;;  %v586_v30 = vadd.f32 %v570_v32, %v550_v42  ;;  %v587_v38 = vadd.f32 %v571_v8, %v551_v43  ;;  %v588_v15 = vadd.f32 %v572_v10, %v552_v48 }
  0x41   : > { %v589_v36 = vadd.f32 %v573_v45, %v553_v54  ;;  %v590_v5 = vadd.f32 %v574_v55, %v554_v60  ;;  %v591_v27 = vadd.f32 %v575_v61, %v555_v49  ;;  %v592_v25 = vadd.f32 %v576_v6, %v556_v18  ;;  %v4295_v49 = vld [vmem:[#allocation26_spill] sm:$0xff] }
  0x42   : > { %v593_v19 = vadd.f32 %v577_v23, %v557_v2  ;;  %v599_v17 = vmul.f32 %v4294_v22, %v2805_v34  ;;  %v600_v57 = vmul.f32 %v4294_v22, %v4292_v62  ;;  %v601_v29 = vmul.f32 %v4294_v22, %v2822_v40  ;;  %v4296_v2 = vld [vmem:[#allocation27_spill] sm:$0xff] }
  0x43   : > { %v602_v13 = vmul.f32 %v4294_v22, %v2825_v41  ;;  %v603_v21 = vmul.f32 %v4294_v22, %v2840_v46  ;;  %v604_v35 = vmul.f32 %v4294_v22, %v2843_v47  ;;  %v605_v3 = vmul.f32 %v4294_v22, %v2858_v52 }
  0x44   : > { %v606_v12 = vmul.f32 %v4294_v22, %v2861_v53  ;;  %v607_v42 = vmul.f32 %v4294_v22, %v2872_v58  ;;  %v608_v43 = vmul.f32 %v4294_v22, %v2875_v59  ;;  %v609_v48 = vmul.f32 %v4294_v22, %v2886_v0 }
  0x45   : > { %v610_v54 = vmul.f32 %v4294_v22, %v2889_v1  ;;  %v611_v60 = vmul.f32 %v4294_v22, %v2900_v16  ;;  %v612_v18 = vmul.f32 %v4294_v22, %v4295_v49  ;;  %v613_v28 = vmul.f32 %v4294_v22, %v4296_v2 }
  0x46   : > { %v3067_v37 = vmul.f32 %v4294_v22, %v3007_v63  ;;  %v631_v14 = vrot.slane %v599_v17, 1  ;;  %v632_v4 = vrot.slane %v600_v57, 1  ;;  %v634_v20 = vrot.slane %v601_v29, 1 }
  0x47   : > { %v635_v39 = vrot.slane %v602_v13, 1  ;;  %v637_v33 = vrot.slane %v603_v21, 1  ;;  %v638_v7 = vrot.slane %v604_v35, 1  ;;  %v640_v32 = vrot.slane %v605_v3, 1 }
  0x48   : > { %v641_v8 = vrot.slane %v606_v12, 1  ;;  %v594_v10 = vadd.f32 %v578_v44, %v558_v50  ;;  %v633_v45 = vsel %vm409_vm0, %v631_v14, %v632_v4  ;;  %v643_v55 = vrot.slane %v607_v42, 1 }
  0x49   : > { %v644_v61 = vrot.slane %v608_v43, 1  ;;  %v636_v6 = vsel %vm409_vm0, %v634_v20, %v635_v39  ;;  %v639_v23 = vsel %vm409_vm0, %v637_v33, %v638_v7  ;;  %v646_v2 = vrot.slane %v609_v48, 1 }
  0x4a   : > { %v647_v22 = vrot.slane %v610_v54, 1  ;;  %v642_v17 = vsel %vm409_vm0, %v640_v32, %v641_v8  ;;  %v649_v57 = vrot.slane %v611_v60, 1  ;;  %v650_v29 = vrot.slane %v612_v18, 1 }
  0x4b   : > { %v652_v13 = vrot.slane %v613_v28, 1  ;;  %v645_v21 = vsel %vm409_vm0, %v643_v55, %v644_v61  ;;  %v653_v50 = vrot.slane %v3067_v37, 1  ;;  %v671_v44 = vadd.f32 %v633_v45, %v579_v26  ;;  %v4297_v26 = vld [vmem:[#allocation9_spill] sm:$0xff] }
  0x4c   : > { %v648_v35 = vsel %vm409_vm0, %v646_v2, %v647_v22  ;;  %v651_v3 = vsel %vm409_vm0, %v649_v57, %v650_v29  ;;  %v672_v12 = vadd.f32 %v632_v4, %v580_v51  ;;  %v673_v42 = vadd.f32 %v636_v6, %v581_v11 }
  0x4d   : > { %v674_v43 = vadd.f32 %v635_v39, %v582_v31  ;;  %v654_v48 = vsel %vm409_vm0, %v652_v13, %v653_v50  ;;  %v675_v54 = vadd.f32 %v639_v23, %v583_v56  ;;  %v676_v14 = vadd.f32 %v638_v7, %v584_v9  ;;  %v4299_v39 = vld [vmem:[#allocation5_spill] sm:$0xff] }
  0x4e   : > { %v677_v20 = vadd.f32 %v642_v17, %v585_v24  ;;  %v678_v60 = vadd.f32 %v641_v8, %v586_v30  ;;  %v679_v18 = vadd.f32 %v645_v21, %v587_v38  ;;  %v680_v28 = vadd.f32 %v644_v61, %v588_v15 }
  0x4f   : > { %v681_v33 = vadd.f32 %v648_v35, %v589_v36  ;;  %v682_v32 = vadd.f32 %v647_v22, %v590_v5  ;;  %v683_v55 = vadd.f32 %v651_v3, %v591_v27  ;;  %v684_v2 = vadd.f32 %v650_v29, %v592_v25 }
  0x50   : > { %v685_v63 = vadd.f32 %v654_v48, %v593_v19  ;;  %v691_v37 = vmul.f32 %v4297_v26, %v2805_v34  ;;  %v692_v51 = vmul.f32 %v4297_v26, %v4292_v62  ;;  %v693_v11 = vmul.f32 %v4297_v26, %v2822_v40  ;;  %v4298_v19 = vld [vmem:[#allocation27_spill] sm:$0xff] }
  0x51   : > { %v694_v31 = vmul.f32 %v4297_v26, %v2825_v41  ;;  %v695_v56 = vmul.f32 %v4297_v26, %v2840_v46  ;;  %v696_v9 = vmul.f32 %v4297_v26, %v2843_v47  ;;  %v697_v24 = vmul.f32 %v4297_v26, %v2858_v52 }
  0x52   : > { %v698_v30 = vmul.f32 %v4297_v26, %v2861_v53  ;;  %v699_v38 = vmul.f32 %v4297_v26, %v2872_v58  ;;  %v700_v15 = vmul.f32 %v4297_v26, %v2875_v59  ;;  %v701_v36 = vmul.f32 %v4297_v26, %v2886_v0 }
  0x53   : > { %v702_v5 = vmul.f32 %v4297_v26, %v2889_v1  ;;  %v703_v27 = vmul.f32 %v4297_v26, %v2900_v16  ;;  %v704_v25 = vmul.f32 %v4297_v26, %v4295_v49  ;;  %v705_v4 = vmul.f32 %v4297_v26, %v4298_v19 }
  0x54   : > { %v706_v7 = vmul.f32 %v4297_v26, %v4299_v39  ;;  %v723_v8 = vrot.slane %v691_v37, 2  ;;  %v724_v45 = vrot.slane %v692_v51, 2  ;;  %v726_v61 = vrot.slane %v693_v11, 2 }
  0x55   : > { %v727_v6 = vrot.slane %v694_v31, 2  ;;  %v729_v23 = vrot.slane %v695_v56, 2  ;;  %v730_v22 = vrot.slane %v696_v9, 2  ;;  %v732_v17 = vrot.slane %v697_v24, 2 }
  0x56   : > { %v733_v57 = vrot.slane %v698_v30, 2  ;;  %v686_v29 = vadd.f32 %v653_v50, %v594_v10  ;;  %v725_v13 = vsel %vm502_vm1, %v723_v8, %v724_v45  ;;  %v735_v21 = vrot.slane %v699_v38, 2 }
  0x57   : > { %v736_v35 = vrot.slane %v700_v15, 2  ;;  %v728_v3 = vsel %vm502_vm1, %v726_v61, %v727_v6  ;;  %v731_v48 = vsel %vm502_vm1, %v729_v23, %v730_v22  ;;  %v738_v62 = vrot.slane %v701_v36, 2 }
  0x58   : > { %v739_v34 = vrot.slane %v702_v5, 2  ;;  %v734_v26 = vsel %vm502_vm1, %v732_v17, %v733_v57  ;;  %v741_v37 = vrot.slane %v703_v27, 2  ;;  %v742_v51 = vrot.slane %v704_v25, 2  ;;  %v3119_v17 = vld [vmem:[%s2744_s30 + $0x138] sm:$0xff] }
  0x59   : > { %v744_v11 = vrot.slane %v705_v4, 2  ;;  %v737_v31 = vsel %vm502_vm1, %v735_v21, %v736_v35  ;;  %v745_v10 = vrot.slane %v706_v7, 2  ;;  %v763_v50 = vadd.f32 %v725_v13, %v671_v44  ;;  %4300 = vst [vmem:[#allocation6_spill] sm:$0xff] %v3119_v17 }
  0x5a   : > { %v740_v56 = vsel %vm502_vm1, %v738_v62, %v739_v34  ;;  %v743_v9 = vsel %vm502_vm1, %v741_v37, %v742_v51  ;;  %v764_v24 = vadd.f32 %v724_v45, %v672_v12  ;;  %v765_v30 = vadd.f32 %v728_v3, %v673_v42  ;;  %v4301_v12 = vld [vmem:[#allocation10_spill] sm:$0xff] }
  0x5b   : > { %v766_v38 = vadd.f32 %v727_v6, %v674_v43  ;;  %v746_v15 = vsel %vm502_vm1, %v744_v11, %v745_v10  ;;  %v767_v36 = vadd.f32 %v731_v48, %v675_v54  ;;  %v768_v5 = vadd.f32 %v730_v22, %v676_v14  ;;  %v3128_v14 = vld [vmem:[%s2744_s30 + $0x140] sm:$0xff] }
  0x5c   : > { %v769_v27 = vadd.f32 %v734_v26, %v677_v20  ;;  %v770_v25 = vadd.f32 %v733_v57, %v678_v60  ;;  %v771_v4 = vadd.f32 %v737_v31, %v679_v18  ;;  %v772_v8 = vadd.f32 %v736_v35, %v680_v28  ;;  %4302 = vst [vmem:[#allocation26_spill] sm:$0xff] %v3128_v14 }
  0x5d   : > { %v773_v61 = vadd.f32 %v740_v56, %v681_v33  ;;  %v774_v23 = vadd.f32 %v739_v34, %v682_v32  ;;  %v775_v62 = vadd.f32 %v743_v9, %v683_v55  ;;  %v776_v7 = vadd.f32 %v742_v51, %v684_v2 }
  0x5e   : > { %v777_v44 = vadd.f32 %v746_v15, %v685_v63  ;;  %v778_v13 = vadd.f32 %v745_v10, %v686_v29  ;;  %v783_v42 = vmul.f32 %v4301_v12, %v2822_v40  ;;  %v784_v43 = vmul.f32 %v4301_v12, %v2825_v41 }
  0x5f   : > { %v785_v54 = vmul.f32 %v4301_v12, %v2840_v46  ;;  %v786_v34 = vmul.f32 %v4301_v12, %v2843_v47  ;;  %v787_v63 = vmul.f32 %v4301_v12, %v2858_v52  ;;  %v788_v20 = vmul.f32 %v4301_v12, %v2861_v53 }
  0x60   : > { %v789_v60 = vmul.f32 %v4301_v12, %v2872_v58  ;;  %v790_v18 = vmul.f32 %v4301_v12, %v2875_v59  ;;  %v791_v28 = vmul.f32 %v4301_v12, %v2886_v0  ;;  %v792_v33 = vmul.f32 %v4301_v12, %v2889_v1 }
  0x61   : > { %v793_v32 = vmul.f32 %v4301_v12, %v2900_v16  ;;  %v794_v55 = vmul.f32 %v4301_v12, %v4295_v49  ;;  %v795_v2 = vmul.f32 %v4301_v12, %v4298_v19  ;;  %v796_v45 = vmul.f32 %v4301_v12, %v4299_v39 }
  0x62   : > { %v797_v6 = vmul.f32 %v4301_v12, %v3119_v17  ;;  %v798_v22 = vmul.f32 %v4301_v12, %v3128_v14  ;;  %v799_v57 = vadd.f32 %v783_v42, %v763_v50  ;;  %v800_v29 = vadd.f32 %v784_v43, %v764_v24  ;;  %v4303_v17 = vld [vmem:[#allocation11_spill] sm:$0xff] }
  0x63   : > { %v801_v21 = vadd.f32 %v785_v54, %v765_v30  ;;  %v802_v35 = vadd.f32 %v786_v34, %v766_v38  ;;  %v803_v3 = vadd.f32 %v787_v63, %v767_v36  ;;  %v804_v48 = vadd.f32 %v788_v20, %v768_v5 }
  0x64   : > { %v805_v26 = vadd.f32 %v789_v60, %v769_v27  ;;  %v806_v37 = vadd.f32 %v790_v18, %v770_v25  ;;  %v807_v51 = vadd.f32 %v791_v28, %v771_v4  ;;  %v808_v11 = vadd.f32 %v792_v33, %v772_v8 }
  0x65   : > { %v809_v31 = vadd.f32 %v793_v32, %v773_v61  ;;  %v810_v56 = vadd.f32 %v794_v55, %v774_v23  ;;  %v811_v10 = vadd.f32 %v795_v2, %v775_v62  ;;  %v812_v9 = vadd.f32 %v796_v45, %v776_v7  ;;  %v4304_v62 = vld [vmem:[#allocation5_spill] sm:$0xff] }
  0x66   : > { %v813_v15 = vadd.f32 %v797_v6, %v777_v44  ;;  %v819_v39 = vmul.f32 %v4303_v17, %v2822_v40  ;;  %v820_v50 = vmul.f32 %v4303_v17, %v2825_v41  ;;  %v821_v24 = vmul.f32 %v4303_v17, %v2840_v46  ;;  %v4305_v44 = vld [vmem:[#allocation6_spill] sm:$0xff] }
  0x67   : > { %v822_v30 = vmul.f32 %v4303_v17, %v2843_v47  ;;  %v823_v38 = vmul.f32 %v4303_v17, %v2858_v52  ;;  %v824_v36 = vmul.f32 %v4303_v17, %v2861_v53  ;;  %v825_v5 = vmul.f32 %v4303_v17, %v2872_v58 }
  0x68   : > { %v826_v27 = vmul.f32 %v4303_v17, %v2875_v59  ;;  %v827_v25 = vmul.f32 %v4303_v17, %v2886_v0  ;;  %v828_v4 = vmul.f32 %v4303_v17, %v2889_v1  ;;  %v829_v8 = vmul.f32 %v4303_v17, %v2900_v16 }
  0x69   : > { %v830_v61 = vmul.f32 %v4303_v17, %v4295_v49  ;;  %v831_v23 = vmul.f32 %v4303_v17, %v4298_v19  ;;  %v832_v7 = vmul.f32 %v4303_v17, %v4304_v62  ;;  %v833_v12 = vmul.f32 %v4303_v17, %v4305_v44 }
  0x6a   : > { %v3188_v42 = vmul.f32 %v4303_v17, %v3128_v14  ;;  %v851_v43 = vrot.slane %v819_v39, 1  ;;  %v852_v54 = vrot.slane %v820_v50, 1  ;;  %v854_v34 = vrot.slane %v821_v24, 1 }
  0x6b   : > { %v855_v63 = vrot.slane %v822_v30, 1  ;;  %v857_v20 = vrot.slane %v823_v38, 1  ;;  %v858_v60 = vrot.slane %v824_v36, 1  ;;  %v860_v18 = vrot.slane %v825_v5, 1 }
  0x6c   : > { %v861_v28 = vrot.slane %v826_v27, 1  ;;  %v814_v33 = vadd.f32 %v798_v22, %v778_v13  ;;  %v853_v32 = vsel %vm409_vm0, %v851_v43, %v852_v54  ;;  %v863_v55 = vrot.slane %v827_v25, 1 }
  0x6d   : > { %v864_v2 = vrot.slane %v828_v4, 1  ;;  %v856_v45 = vsel %vm409_vm0, %v854_v34, %v855_v63  ;;  %v859_v6 = vsel %vm409_vm0, %v857_v20, %v858_v60  ;;  %v866_v44 = vrot.slane %v829_v8, 1 }
  0x6e   : > { %v867_v17 = vrot.slane %v830_v61, 1  ;;  %v862_v39 = vsel %vm409_vm0, %v860_v18, %v861_v28  ;;  %v869_v50 = vrot.slane %v831_v23, 1  ;;  %v870_v24 = vrot.slane %v832_v7, 1 }
  0x6f   : > { %v872_v30 = vrot.slane %v833_v12, 1  ;;  %v865_v38 = vsel %vm409_vm0, %v863_v55, %v864_v2  ;;  %v873_v13 = vrot.slane %v3188_v42, 1  ;;  %v891_v22 = vadd.f32 %v853_v32, %v799_v57  ;;  %v4306_v57 = vld [vmem:[#allocation12_spill] sm:$0xff] }
  0x70   : > { %v868_v36 = vsel %vm409_vm0, %v866_v44, %v867_v17  ;;  %v871_v5 = vsel %vm409_vm0, %v869_v50, %v870_v24  ;;  %v892_v27 = vadd.f32 %v852_v54, %v800_v29  ;;  %v893_v25 = vadd.f32 %v856_v45, %v801_v21 }
  0x71   : > { %v894_v4 = vadd.f32 %v855_v63, %v802_v35  ;;  %v874_v8 = vsel %vm409_vm0, %v872_v30, %v873_v13  ;;  %v895_v61 = vadd.f32 %v859_v6, %v803_v3  ;;  %v896_v43 = vadd.f32 %v858_v60, %v804_v48  ;;  %v4308_v63 = vld [vmem:[#allocation26_spill] sm:$0xff] }
  0x72   : > { %v897_v34 = vadd.f32 %v862_v39, %v805_v26  ;;  %v898_v23 = vadd.f32 %v861_v28, %v806_v37  ;;  %v899_v7 = vadd.f32 %v865_v38, %v807_v51  ;;  %v900_v12 = vadd.f32 %v864_v2, %v808_v11 }
  0x73   : > { %v901_v20 = vadd.f32 %v868_v36, %v809_v31  ;;  %v902_v18 = vadd.f32 %v867_v17, %v810_v56  ;;  %v903_v55 = vadd.f32 %v871_v5, %v811_v10  ;;  %v904_v44 = vadd.f32 %v870_v24, %v812_v9 }
  0x74   : > { %v905_v14 = vadd.f32 %v874_v8, %v813_v15  ;;  %v911_v42 = vmul.f32 %v4306_v57, %v2822_v40  ;;  %v912_v29 = vmul.f32 %v4306_v57, %v2825_v41  ;;  %v913_v21 = vmul.f32 %v4306_v57, %v2840_v46  ;;  %v4307_v15 = vld [vmem:[#allocation6_spill] sm:$0xff] }
  0x75   : > { %v914_v35 = vmul.f32 %v4306_v57, %v2843_v47  ;;  %v915_v3 = vmul.f32 %v4306_v57, %v2858_v52  ;;  %v916_v48 = vmul.f32 %v4306_v57, %v2861_v53  ;;  %v917_v26 = vmul.f32 %v4306_v57, %v2872_v58 }
  0x76   : > { %v918_v37 = vmul.f32 %v4306_v57, %v2875_v59  ;;  %v919_v51 = vmul.f32 %v4306_v57, %v2886_v0  ;;  %v920_v11 = vmul.f32 %v4306_v57, %v2889_v1  ;;  %v921_v31 = vmul.f32 %v4306_v57, %v2900_v16 }
  0x77   : > { %v922_v56 = vmul.f32 %v4306_v57, %v4295_v49  ;;  %v923_v10 = vmul.f32 %v4306_v57, %v4298_v19  ;;  %v924_v9 = vmul.f32 %v4306_v57, %v4304_v62  ;;  %v925_v54 = vmul.f32 %v4306_v57, %v4307_v15 }
  0x78   : > { %v3231_v0 = vmul.f32 %v4306_v57, %v4308_v63  ;;  %v943_v1 = vrot.slane %v911_v42, 2  ;;  %v944_v60 = vrot.slane %v912_v29, 2  ;;  %v946_v28 = vrot.slane %v913_v21, 2 }
  0x79   : > { %v947_v16 = vrot.slane %v914_v35, 2  ;;  %v949_v32 = vrot.slane %v915_v3, 2  ;;  %v950_v2 = vrot.slane %v916_v48, 2  ;;  %v952_v49 = vrot.slane %v917_v26, 2 }
  0x7a   : > { %v953_v45 = vrot.slane %v918_v37, 2  ;;  %v906_v6 = vadd.f32 %v873_v13, %v814_v33  ;;  %v945_v17 = vsel %vm502_vm1, %v943_v1, %v944_v60  ;;  %v955_v39 = vrot.slane %v919_v51, 2 }
  0x7b   : > { %v956_v50 = vrot.slane %v920_v11, 2  ;;  %v948_v24 = vsel %vm502_vm1, %v946_v28, %v947_v16  ;;  %v951_v30 = vsel %vm502_vm1, %v949_v32, %v950_v2  ;;  %v958_v38 = vrot.slane %v921_v31, 2 }
  0x7c   : > { %v959_v36 = vrot.slane %v922_v56, 2  ;;  %v954_v5 = vsel %vm502_vm1, %v952_v49, %v953_v45  ;;  %v961_v8 = vrot.slane %v923_v10, 2  ;;  %v962_v57 = vrot.slane %v924_v9, 2 }
  0x7d   : > { %v964_v42 = vrot.slane %v925_v54, 2  ;;  %v957_v29 = vsel %vm502_vm1, %v955_v39, %v956_v50  ;;  %v965_v13 = vrot.slane %v3231_v0, 2  ;;  %v983_v21 = vadd.f32 %v945_v17, %v891_v22  ;;  %v4309_v0 = vld [vmem:[#allocation17_spill] sm:$0xff]  ;;  %v4310_v22 = vld [vmem:[#allocation7_spill] sm:$0xff]  ;;  %v4311_v39 = vld [vmem:[#allocation18_spill] sm:$0xff] }
  0x7e   : > { %v960_v33 = vsel %vm502_vm1, %v958_v38, %v959_v36  ;;  %v963_v35 = vsel %vm502_vm1, %v961_v8, %v962_v57  ;;  %v984_v3 = vadd.f32 %v944_v60, %v892_v27  ;;  %v985_v48 = vadd.f32 %v948_v24, %v893_v25  ;;  %v4312_v25 = vld [vmem:[#allocation23_spill] sm:$0xff]  ;;  %v4317_v24 = vld [vmem:[#allocation20_spill] sm:$0xff] }
  0x7f   : > { %v986_v26 = vadd.f32 %v947_v16, %v894_v4  ;;  %v966_v37 = vsel %vm502_vm1, %v964_v42, %v965_v13  ;;  %v987_v51 = vadd.f32 %v951_v30, %v895_v61  ;;  %v988_v11 = vadd.f32 %v950_v2, %v896_v43  ;;  %v4313_v61 = vld [vmem:[#allocation24_spill] sm:$0xff]  ;;  %v4315_v16 = vld [vmem:[#allocation14_spill] sm:$0xff] }
  0x80   : > { %v989_v31 = vadd.f32 %v954_v5, %v897_v34  ;;  %v990_v56 = vadd.f32 %v953_v45, %v898_v23  ;;  %v991_v10 = vadd.f32 %v957_v29, %v899_v7  ;;  %v992_v9 = vadd.f32 %v956_v50, %v900_v12  ;;  %v4316_v45 = vld [vmem:[#allocation19_spill] sm:$0xff] }
  0x81   : > { %v993_v54 = vadd.f32 %v960_v33, %v901_v20  ;;  %v994_v1 = vadd.f32 %v959_v36, %v902_v18  ;;  %v995_v28 = vadd.f32 %v963_v35, %v903_v55  ;;  %v996_v32 = vadd.f32 %v962_v57, %v904_v44  ;;  %v4314_v44 = vld [vmem:[#allocation13_spill] sm:$0xff] }
  0x82   : > { %v997_v49 = vadd.f32 %v966_v37, %v905_v14  ;;  %v1010_v17 = vmul.f32 %v4310_v22, %v4309_v0  ;;  %v1011_v27 = vmul.f32 %v4310_v22, %v4311_v39  ;;  %v1012_v4 = vmul.f32 %v4310_v22, %v4312_v25 }
  0x83   : > { %v1013_v43 = vmul.f32 %v4310_v22, %v4313_v61  ;;  %v1014_v34 = vmul.f32 %v4310_v22, %v2822_v40  ;;  %v1015_v23 = vmul.f32 %v4310_v22, %v2825_v41  ;;  %v1016_v14 = vmul.f32 %v4310_v22, %v2840_v46 }
  0x84   : > { %v1017_v7 = vmul.f32 %v4310_v22, %v2843_v47  ;;  %v1018_v12 = vmul.f32 %v4310_v22, %v2858_v52  ;;  %v1019_v20 = vmul.f32 %v4310_v22, %v2861_v53  ;;  %v1020_v18 = vmul.f32 %v4310_v22, %v2872_v58 }
  0x85   : > { %v1021_v55 = vmul.f32 %v4310_v22, %v2875_v59  ;;  %v1039_v60 = vrot.slane %v4314_v44, 6  ;;  %v1040_v2 = vrot.slane %v4315_v16, 6  ;;  %v1042_v50 = vrot.slane %v4316_v45, 6 }
  0x86   : > { %v1043_v30 = vrot.slane %v4317_v24, 6  ;;  %v1045_v38 = vrot.slane %v1010_v17, 6  ;;  %v1046_v36 = vrot.slane %v1011_v27, 6  ;;  %v1048_v5 = vrot.slane %v1012_v4, 6 }
  0x87   : > { %v1049_v8 = vrot.slane %v1013_v43, 6  ;;  %v998_v57 = vadd.f32 %v965_v13, %v906_v6  ;;  %v1041_v42 = vsel %vm1038_vm2, %v1039_v60, %v1040_v2  ;;  %v1051_v29 = vrot.slane %v1014_v34, 6 }
  0x88   : > { %v1052_v33 = vrot.slane %v1015_v23, 6  ;;  %v1044_v35 = vsel %vm1038_vm2, %v1042_v50, %v1043_v30  ;;  %v1047_v37 = vsel %vm1038_vm2, %v1045_v38, %v1046_v36  ;;  %v1054_v22 = vrot.slane %v1016_v14, 6 }
  0x89   : > { %v1055_v44 = vrot.slane %v1017_v7, 6  ;;  %v1050_v16 = vsel %vm1038_vm2, %v1048_v5, %v1049_v8  ;;  %v1057_v45 = vrot.slane %v1018_v12, 6  ;;  %v1058_v63 = vrot.slane %v1019_v20, 6 }
  0x8a   : > { %v1060_v24 = vrot.slane %v1020_v18, 6  ;;  %v1053_v17 = vsel %vm1038_vm2, %v1051_v29, %v1052_v33  ;;  %v1061_v6 = vrot.slane %v1021_v55, 6  ;;  %v1079_v13 = vadd.f32 %v1039_v60, %v983_v21  ;;  %v4318_v21 = vld [vmem:[#allocation8_spill] sm:$0xff] }
  0x8b   : > { %v1056_v27 = vsel %vm1038_vm2, %v1054_v22, %v1055_v44  ;;  %v1059_v4 = vsel %vm1038_vm2, %v1057_v45, %v1058_v63  ;;  %v1080_v43 = vadd.f32 %v1041_v42, %v984_v3  ;;  %v1081_v34 = vadd.f32 %v1042_v50, %v985_v48 }
  0x8c   : > { %v1082_v23 = vadd.f32 %v1044_v35, %v986_v26  ;;  %v1062_v2 = vsel %vm1038_vm2, %v1060_v24, %v1061_v6  ;;  %v1083_v14 = vadd.f32 %v1045_v38, %v987_v51  ;;  %v1084_v7 = vadd.f32 %v1047_v37, %v988_v11 }
  0x8d   : > { %v1085_v30 = vadd.f32 %v1048_v5, %v989_v31  ;;  %v1086_v36 = vadd.f32 %v1050_v16, %v990_v56  ;;  %v1087_v12 = vadd.f32 %v1051_v29, %v991_v10  ;;  %v1088_v20 = vadd.f32 %v1053_v17, %v992_v9 }
  0x8e   : > { %v1089_v18 = vadd.f32 %v1054_v22, %v993_v54  ;;  %v1090_v8 = vadd.f32 %v1056_v27, %v994_v1  ;;  %v1091_v33 = vadd.f32 %v1057_v45, %v995_v28  ;;  %v1092_v15 = vadd.f32 %v1059_v4, %v996_v32  ;;  %v4320_v1 = vld [vmem:[#allocation21_spill] sm:$0xff]  ;;  %v4321_v28 = vld [vmem:[#allocation22_spill] sm:$0xff] }
  0x8f   : > { %v1093_v44 = vadd.f32 %v1060_v24, %v997_v49  ;;  %v1103_v55 = vmul.f32 %v4318_v21, %v4309_v0  ;;  %v1104_v63 = vmul.f32 %v4318_v21, %v4311_v39  ;;  %v1105_v3 = vmul.f32 %v4318_v21, %v4312_v25 }
  0x90   : > { %v1106_v48 = vmul.f32 %v4318_v21, %v4313_v61  ;;  %v1107_v26 = vmul.f32 %v4318_v21, %v2822_v40  ;;  %v1108_v51 = vmul.f32 %v4318_v21, %v2825_v41  ;;  %v1109_v11 = vmul.f32 %v4318_v21, %v2840_v46  ;;  %v4319_v41 = vld [vmem:[#allocation15_spill] sm:$0xff] }
  0x91   : > { %v1110_v31 = vmul.f32 %v4318_v21, %v2843_v47  ;;  %v1111_v56 = vmul.f32 %v4318_v21, %v2858_v52  ;;  %v1112_v10 = vmul.f32 %v4318_v21, %v2861_v53  ;;  %v1113_v9 = vmul.f32 %v4318_v21, %v2872_v58  ;;  %v4322_v47 = vld [vmem:[#allocation25_spill] sm:$0xff] }
  0x92   : > { %v3302_v40 = vmul.f32 %v4318_v21, %v2875_v59  ;;  %v1131_v54 = vrot.slane %v4319_v41, 1  ;;  %v1132_v46 = vrot.slane %v4320_v1, 1  ;;  %v1134_v32 = vrot.slane %v4321_v28, 1 }
  0x93   : > { %v1135_v49 = vrot.slane %v4322_v47, 1  ;;  %v1137_v0 = vrot.slane %v1103_v55, 1  ;;  %v1138_v52 = vrot.slane %v1104_v63, 1  ;;  %v1140_v39 = vrot.slane %v1105_v3, 1 }
  0x94   : > { %v1141_v25 = vrot.slane %v1106_v48, 1  ;;  %v1094_v53 = vadd.f32 %v1062_v2, %v998_v57  ;;  %v1133_v61 = vsel %vm409_vm0, %v1131_v54, %v1132_v46  ;;  %v1143_v58 = vrot.slane %v1107_v26, 1 }
  0x95   : > { %v1144_v60 = vrot.slane %v1108_v51, 1  ;;  %v1136_v59 = vsel %vm409_vm0, %v1134_v32, %v1135_v49  ;;  %v1139_v50 = vsel %vm409_vm0, %v1137_v0, %v1138_v52  ;;  %v1146_v38 = vrot.slane %v1109_v11, 1  ;;  %v4324_v11 = vld [vmem:[#allocation16_spill] sm:$0xff] }
  0x96   : > { %v1147_v5 = vrot.slane %v1110_v31, 1  ;;  %v1142_v42 = vsel %vm409_vm0, %v1140_v39, %v1141_v25  ;;  %v1149_v29 = vrot.slane %v1111_v56, 1  ;;  %v1150_v35 = vrot.slane %v1112_v10, 1  ;;  %v3348_v31 = vld [vmem:[%s2744_s30 + $0xc8] sm:$0xff]  ;;  %v3353_v10 = vld [vmem:[%s2744_s30 + $0xe0] sm:$0xff] }
  0x97   : > { %v1152_v37 = vrot.slane %v1113_v9, 1  ;;  %v1145_v22 = vsel %vm409_vm0, %v1143_v58, %v1144_v60  ;;  %v1153_v57 = vrot.slane %v3302_v40, 1  ;;  %v1171_v45 = vadd.f32 %v1133_v61, %v1079_v13 }
  0x98   : > { %v1148_v16 = vsel %vm409_vm0, %v1146_v38, %v1147_v5  ;;  %v1151_v24 = vsel %vm409_vm0, %v1149_v29, %v1150_v35  ;;  %v1172_v17 = vadd.f32 %v1132_v46, %v1080_v43  ;;  %v1173_v27 = vadd.f32 %v1136_v59, %v1081_v34  ;;  %v3388_v29 = vld [vmem:[%s4180_s3] sm:$0x7] }
  0x99   : > { %v1174_v6 = vadd.f32 %v1135_v49, %v1082_v23  ;;  %v1154_v4 = vsel %vm409_vm0, %v1152_v37, %v1153_v57  ;;  %v1175_v2 = vadd.f32 %v1139_v50, %v1083_v14  ;;  %v1176_v21 = vadd.f32 %v1138_v52, %v1084_v7  ;;  %v3318_v23 = vld [vmem:[%s2744_s30 + $0x38] sm:$0xff]  ;;  %v3323_v7 = vld [vmem:[%s2744_s30 + $0x50] sm:$0xff]  ;;  %4330 = vst [vmem:[#allocation17_spill] sm:$0xff] %v3388_v29 }
  0x9a   : > { %v1177_v55 = vadd.f32 %v1142_v42, %v1085_v30  ;;  %v1178_v63 = vadd.f32 %v1141_v25, %v1086_v36  ;;  %v1179_v3 = vadd.f32 %v1145_v22, %v1087_v12  ;;  %v1180_v48 = vadd.f32 %v1144_v60, %v1088_v20  ;;  %4323 = vst [vmem:[#allocation9_spill] sm:$0xff] %v3318_v23  ;;  %v3328_v36 = vld [vmem:[%s2744_s30 + $0x68] sm:$0xff]  ;;  %v3333_v20 = vld [vmem:[%s2744_s30 + $0x80] sm:$0xff] }
  0x9b   : > { %v1181_v13 = vadd.f32 %v1148_v16, %v1089_v18  ;;  %v1182_v26 = vadd.f32 %v1147_v5, %v1090_v8  ;;  %v1183_v51 = vadd.f32 %v1151_v24, %v1091_v33  ;;  %v1184_v43 = vadd.f32 %v1150_v35, %v1092_v15  ;;  %4325 = vst [vmem:[#allocation27_spill] sm:$0xff] %v3323_v7  ;;  %v3338_v18 = vld [vmem:[%s2744_s30 + $0x98] sm:$0xff]  ;;  %v3343_v33 = vld [vmem:[%s2744_s30 + $0xb0] sm:$0xff]  ;;  %v1000_v25 = vld [vmem:[%s4179_s2 + $0x4] sm:$0x7] }
  0x9c   : > { %v1185_v34 = vadd.f32 %v1154_v4, %v1093_v44  ;;  %v1191_v14 = vmul.f32 %v3318_v23, %v4324_v11  ;;  %v1192_v30 = vmul.f32 %v3323_v7, %v4324_v11  ;;  %4326 = vst [vmem:[#allocation10_spill] sm:$0xff] %v3328_v36  ;;  %v1193_v12 = vmul.f32 %v3328_v36, %v4324_v11 }
  0x9d   : > { %4327 = vst [vmem:[#allocation11_spill] sm:$0xff] %v3333_v20  ;;  %v1194_v15 = vmul.f32 %v3333_v20, %v4324_v11  ;;  %4328 = vst [vmem:[#allocation5_spill] sm:$0xff] %v3338_v18  ;;  %v1195_v8 = vmul.f32 %v3338_v18, %v4324_v11  ;;  %v1196_v44 = vmul.f32 %v3343_v33, %v4324_v11 }
  0x9e   : > { %4329 = vst [vmem:[#allocation12_spill] sm:$0xff] %v3343_v33  ;;  %v1197_v56 = vmul.f32 %v3348_v31, %v4324_v11  ;;  %v1198_v9 = vmul.f32 %v3353_v10, %v4324_v11  ;;  %v1207_v40 = vrot.slane %v1191_v14, 4  ;;  %v1208_v41 = vrot.slane %v1192_v30, 4  ;;  %v3436_v30 = vld [vmem:[%s2744_s30 + $0xc0] sm:$0xff] }
  0x9f   : > { %v1209_v54 = vrot.slane %v1193_v12, 4  ;;  %v1210_v1 = vrot.slane %v1194_v15, 4  ;;  %v1211_v46 = vrot.slane %v1195_v8, 4  ;;  %v1212_v28 = vrot.slane %v1196_v44, 4  ;;  %v3441_v8 = vld [vmem:[%s2744_s30 + $0xd8] sm:$0xff] }
  0xa0   : > { %v1213_v32 = vrot.slane %v1197_v56, 4  ;;  %v1214_v47 = vrot.slane %v1198_v9, 4  ;;  %v1186_v49 = vadd.f32 %v1153_v57, %v1094_v53  ;;  %v3357_v0 = vadd.f32 %v1207_v40, %v1171_v45  ;;  %v1001_v53 = vld [vmem:[%s4179_s2 + $0x8] sm:$0x7]  ;;  %v4332_v45 = vld [vmem:[#allocation2_spill] sm:$0xff]  ;;  %v3446_v9 = vld [vmem:[%s2744_s30 + $0xf0] sm:$0xff] }
  0xa1   : > { %v3359_v52 = vadd.f32 %v1207_v40, %v1172_v17  ;;  %v3361_v39 = vadd.f32 %v1208_v41, %v1173_v27  ;;  %v3366_v61 = vadd.f32 %v1208_v41, %v1174_v6  ;;  %v3368_v58 = vadd.f32 %v1209_v54, %v1175_v2  ;;  %v4333_v17 = vld [vmem:[#allocation3_spill] sm:$0xff]  ;;  %v4334_v6 = vld [vmem:[#allocation4_spill] sm:$0xff]  ;;  %v3450_v41 = vld [vmem:[%s2744_s30 + $0xf8] sm:$0xff] }
  0xa2   : > { %v3370_v60 = vadd.f32 %v1209_v54, %v1176_v21  ;;  %v3372_v59 = vadd.f32 %v1210_v1, %v1177_v55  ;;  %v3377_v50 = vadd.f32 %v1210_v1, %v1178_v63  ;;  %v3379_v38 = vadd.f32 %v1211_v46, %v1179_v3  ;;  %v3421_v3 = vld [vmem:[%s2744_s30 + $0x78] sm:$0xff]  ;;  %4343 = vst [vmem:[#allocation15_spill] sm:$0xff] %v3450_v41  ;;  %v3454_v1 = vld [vmem:[%s2744_s30 + $0x108] sm:$0xff] }
  0xa3   : > { %v3381_v5 = vadd.f32 %v1211_v46, %v1180_v48  ;;  %v3383_v42 = vadd.f32 %v1212_v28, %v1181_v13  ;;  %v3390_v35 = vadd.f32 %v1212_v28, %v1182_v26  ;;  %v3392_v37 = vadd.f32 %v1213_v32, %v1183_v51  ;;  %4340 = vst [vmem:[#allocation19_spill] sm:$0xff] %v3421_v3  ;;  %v3426_v26 = vld [vmem:[%s2744_s30 + $0x90] sm:$0xff] }
  0xa4   : > { %v3394_v22 = vadd.f32 %v1213_v32, %v1184_v43  ;;  %v3396_v16 = vadd.f32 %v1214_v47, %v1185_v34  ;;  %v3398_v57 = vadd.f32 %v1214_v47, %v1186_v49  ;;  %v1242_v24 = vrot.slane %v1000_v25, %v4332_v45  ;;  %4341 = vst [vmem:[#allocation20_spill] sm:$0xff] %v3426_v26  ;;  %v3431_v34 = vld [vmem:[%s2744_s30 + $0xa8] sm:$0xff]  ;;  %v3458_v28 = vld [vmem:[%s2744_s30 + $0x110] sm:$0xff] }
  0xa5   : > { %v3402_v27 = vrot.slane %v1000_v25, %v4333_v17  ;;  %v3405_v4 = vrot.slane %v1000_v25, %v4334_v6  ;;  %v3408_v2 = vrot.slane %v1001_v53, %v4332_v45  ;;  %v3411_v21 = vrot.slane %v1001_v53, %v4333_v17  ;;  %4342 = vst [vmem:[#allocation8_spill] sm:$0xff] %v3431_v34 }
  0xa6   : > { %4331 = vst [vmem:[#allocation7_spill] sm:$0xff] %v3398_v57  ;;  %v3414_v55 = vrot.slane %v1001_v53, %v4334_v6  ;;  %v3418_v63 = vrot.slane %v3388_v29, %v4332_v45  ;;  %v1243_v48 = vmul.f32 %v3421_v3, %v1242_v24  ;;  %v1244_v13 = vmul.f32 %v3333_v20, %v1242_v24 }
  0xa7   : > { %4335 = vst [vmem:[#allocation18_spill] sm:$0xff] %v3405_v4  ;;  %4336 = vst [vmem:[#allocation23_spill] sm:$0xff] %v3408_v2  ;;  %v1245_v51 = vmul.f32 %v3426_v26, %v1242_v24  ;;  %v1246_v43 = vmul.f32 %v3338_v18, %v1242_v24  ;;  %v1247_v11 = vmul.f32 %v3431_v34, %v1242_v24 }
  0xa8   : > { %4337 = vst [vmem:[#allocation24_spill] sm:$0xff] %v3411_v21  ;;  %4338 = vst [vmem:[#allocation13_spill] sm:$0xff] %v3414_v55  ;;  %v1248_v14 = vmul.f32 %v3343_v33, %v1242_v24  ;;  %v1249_v12 = vmul.f32 %v3436_v30, %v1242_v24  ;;  %v1250_v15 = vmul.f32 %v3348_v31, %v1242_v24  ;;  %v1275_v25 = vrot.slane %v1243_v48, 6 }
  0xa9   : > { %4339 = vst [vmem:[#allocation14_spill] sm:$0xff] %v3418_v63  ;;  %v1251_v44 = vmul.f32 %v3441_v8, %v1242_v24  ;;  %v1252_v56 = vmul.f32 %v3353_v10, %v1242_v24  ;;  %v1253_v40 = vmul.f32 %v3446_v9, %v1242_v24  ;;  %v1254_v54 = vmul.f32 %v3450_v41, %v1242_v24 }
  0xaa   : > { %4344 = vst [vmem:[#allocation21_spill] sm:$0xff] %v3454_v1  ;;  %v1255_v46 = vmul.f32 %v3454_v1, %v1242_v24  ;;  %4345 = vst [vmem:[#allocation22_spill] sm:$0xff] %v3458_v28  ;;  %v1256_v32 = vmul.f32 %v3458_v28, %v1242_v24  ;;  %v1257_v47 = vmul.f32 %v1242_v24, %v4298_v19  ;;  %v1276_v53 = vrot.slane %v1244_v13, 6 }
  0xab   : > { %v1258_v49 = vmul.f32 %v1242_v24, %v4304_v62  ;;  %v1278_v45 = vrot.slane %v1245_v51, 6  ;;  %v1279_v6 = vrot.slane %v1246_v43, 6  ;;  %v1281_v36 = vrot.slane %v1247_v11, 6 }
  0xac   : > { %v1282_v7 = vrot.slane %v1248_v14, 6  ;;  %v1284_v23 = vrot.slane %v1249_v12, 6  ;;  %v1285_v63 = vrot.slane %v1250_v15, 6  ;;  %v1277_v55 = vsel %vm1038_vm2, %v1275_v25, %v1276_v53 }
  0xad   : > { %v1287_v21 = vrot.slane %v1251_v44, 6  ;;  %v1288_v2 = vrot.slane %v1252_v56, 6  ;;  %v3466_v4 = vrot.slane %v3388_v29, %v4333_v17  ;;  %v1280_v57 = vsel %vm1038_vm2, %v1278_v45, %v1279_v6 }
  0xae   : > { %v1283_v24 = vsel %vm1038_vm2, %v1281_v36, %v1282_v7  ;;  %v1290_v48 = vrot.slane %v1253_v40, 6  ;;  %v1291_v13 = vrot.slane %v1254_v54, 6  ;;  %v1286_v51 = vsel %vm1038_vm2, %v1284_v23, %v1285_v63 }
  0xaf   : > { %4346 = vst [vmem:[#allocation25_spill] sm:$0xff] %v3466_v4  ;;  %v1293_v43 = vrot.slane %v1255_v46, 6  ;;  %v1294_v11 = vrot.slane %v1256_v32, 6  ;;  %v1296_v14 = vrot.slane %v1257_v47, 6  ;;  %v1289_v12 = vsel %vm1038_vm2, %v1287_v21, %v1288_v2 }
  0xb0   : > { %v1292_v15 = vsel %vm1038_vm2, %v1290_v48, %v1291_v13  ;;  %v1297_v44 = vrot.slane %v1258_v49, 6  ;;  %v1315_v56 = vadd.f32 %v1275_v25, %v3357_v0  ;;  %v1316_v6 = vadd.f32 %v1277_v55, %v3359_v52 }
  0xb1   : > { %v1295_v53 = vsel %vm1038_vm2, %v1293_v43, %v1294_v11  ;;  %v1317_v7 = vadd.f32 %v1278_v45, %v3361_v39  ;;  %v1318_v40 = vadd.f32 %v1280_v57, %v3366_v61  ;;  %v1319_v54 = vadd.f32 %v1281_v36, %v3368_v58 }
  0xb2   : > { %v1298_v63 = vsel %vm1038_vm2, %v1296_v14, %v1297_v44  ;;  %v1320_v46 = vadd.f32 %v1283_v24, %v3370_v60  ;;  %v1321_v2 = vadd.f32 %v1284_v23, %v3372_v59  ;;  %v1322_v32 = vadd.f32 %v1286_v51, %v3377_v50 }
  0xb3   : > { %v1323_v0 = vadd.f32 %v1287_v21, %v3379_v38  ;;  %v1324_v47 = vadd.f32 %v1289_v12, %v3381_v5  ;;  %v1325_v52 = vadd.f32 %v1290_v48, %v3383_v42  ;;  %v1326_v39 = vadd.f32 %v1292_v15, %v3390_v35  ;;  %v4347_v12 = vld [vmem:[#allocation7_spill] sm:$0xff] }
  0xb4   : > { %v1327_v61 = vadd.f32 %v1293_v43, %v3392_v37  ;;  %v1328_v57 = vadd.f32 %v1295_v53, %v3394_v22  ;;  %v1329_v36 = vadd.f32 %v1296_v14, %v3396_v16  ;;  %v1335_v58 = vmul.f32 %v3421_v3, %v3402_v27 }
  0xb5   : > { %v1336_v23 = vmul.f32 %v3333_v20, %v3402_v27  ;;  %v1337_v60 = vmul.f32 %v3426_v26, %v3402_v27  ;;  %v1338_v59 = vmul.f32 %v3338_v18, %v3402_v27  ;;  %v1339_v50 = vmul.f32 %v3431_v34, %v3402_v27 }
  0xb6   : > { %v1340_v38 = vmul.f32 %v3343_v33, %v3402_v27  ;;  %v1341_v5 = vmul.f32 %v3436_v30, %v3402_v27  ;;  %v1342_v42 = vmul.f32 %v3348_v31, %v3402_v27  ;;  %v1343_v35 = vmul.f32 %v3441_v8, %v3402_v27 }
  0xb7   : > { %v1344_v37 = vmul.f32 %v3353_v10, %v3402_v27  ;;  %v1345_v22 = vmul.f32 %v3446_v9, %v3402_v27  ;;  %v1346_v16 = vmul.f32 %v3450_v41, %v3402_v27  ;;  %v1347_v45 = vmul.f32 %v3454_v1, %v3402_v27 }
  0xb8   : > { %v1348_v21 = vmul.f32 %v3458_v28, %v3402_v27  ;;  %v1349_v55 = vmul.f32 %v3402_v27, %v4298_v19  ;;  %v1350_v49 = vmul.f32 %v3402_v27, %v4304_v62  ;;  %v1367_v25 = vrot.slane %v1335_v58, 1 }
  0xb9   : > { %v1368_v24 = vrot.slane %v1336_v23, 1  ;;  %v1370_v48 = vrot.slane %v1337_v60, 1  ;;  %v1371_v13 = vrot.slane %v1338_v59, 1  ;;  %v1373_v51 = vrot.slane %v1339_v50, 1 }
  0xba   : > { %v1374_v43 = vrot.slane %v1340_v38, 1  ;;  %v1376_v11 = vrot.slane %v1341_v5, 1  ;;  %v1377_v14 = vrot.slane %v1342_v42, 1  ;;  %v1330_v15 = vadd.f32 %v1298_v63, %v4347_v12 }
  0xbb   : > { %v1369_v44 = vsel %vm409_vm0, %v1367_v25, %v1368_v24  ;;  %v1379_v53 = vrot.slane %v1343_v35, 1  ;;  %v1380_v17 = vrot.slane %v1344_v37, 1  ;;  %v1372_v29 = vsel %vm409_vm0, %v1370_v48, %v1371_v13 }
  0xbc   : > { %v1375_v19 = vsel %vm409_vm0, %v1373_v51, %v1374_v43  ;;  %v1382_v4 = vrot.slane %v1345_v22, 1  ;;  %v1383_v62 = vrot.slane %v1346_v16, 1  ;;  %v1378_v27 = vsel %vm409_vm0, %v1376_v11, %v1377_v14 }
  0xbd   : > { %v1385_v58 = vrot.slane %v1347_v45, 1  ;;  %v1386_v23 = vrot.slane %v1348_v21, 1  ;;  %v1388_v60 = vrot.slane %v1349_v55, 1  ;;  %v1381_v59 = vsel %vm409_vm0, %v1379_v53, %v1380_v17 }
  0xbe   : > { %v1384_v50 = vsel %vm409_vm0, %v1382_v4, %v1383_v62  ;;  %v1389_v63 = vrot.slane %v1350_v49, 1  ;;  %v1407_v38 = vadd.f32 %v1369_v44, %v1315_v56  ;;  %v1408_v42 = vadd.f32 %v1368_v24, %v1316_v6  ;;  %v4348_v56 = vld [vmem:[#allocation18_spill] sm:$0xff] }
  0xbf   : > { %v1387_v5 = vsel %vm409_vm0, %v1385_v58, %v1386_v23  ;;  %v1409_v35 = vadd.f32 %v1372_v29, %v1317_v7  ;;  %v1410_v37 = vadd.f32 %v1371_v13, %v1318_v40  ;;  %v1411_v22 = vadd.f32 %v1375_v19, %v1319_v54 }
  0xc0   : > { %v1390_v25 = vsel %vm409_vm0, %v1388_v60, %v1389_v63  ;;  %v1412_v16 = vadd.f32 %v1374_v43, %v1320_v46  ;;  %v1413_v48 = vadd.f32 %v1378_v27, %v1321_v2  ;;  %v1414_v45 = vadd.f32 %v1377_v14, %v1322_v32  ;;  %v3546_v46 = vld [vmem:[%s2744_s30 + $0x128] sm:$0xff] }
  0xc1   : > { %v1415_v21 = vadd.f32 %v1381_v59, %v1323_v0  ;;  %v1416_v55 = vadd.f32 %v1380_v17, %v1324_v47  ;;  %v1417_v51 = vadd.f32 %v1384_v50, %v1325_v52  ;;  %v1418_v11 = vadd.f32 %v1383_v62, %v1326_v39  ;;  %4349 = vst [vmem:[#allocation16_spill] sm:$0xff] %v3546_v46  ;;  %v3551_v50 = vld [vmem:[%s2744_s30 + $0x150] sm:$0xff] }
  0xc2   : > { %v1419_v12 = vadd.f32 %v1387_v5, %v1327_v61  ;;  %v1420_v4 = vadd.f32 %v1386_v23, %v1328_v57  ;;  %v1421_v49 = vadd.f32 %v1390_v25, %v1329_v36  ;;  %v1427_v44 = vmul.f32 %v3333_v20, %v4348_v56  ;;  %4350 = vst [vmem:[#allocation7_spill] sm:$0xff] %v3551_v50 }
  0xc3   : > { %v1428_v29 = vmul.f32 %v3338_v18, %v4348_v56  ;;  %v1429_v6 = vmul.f32 %v3343_v33, %v4348_v56  ;;  %v1430_v7 = vmul.f32 %v3348_v31, %v4348_v56  ;;  %v1431_v17 = vmul.f32 %v3353_v10, %v4348_v56 }
  0xc4   : > { %v1432_v40 = vmul.f32 %v3450_v41, %v4348_v56  ;;  %v1433_v54 = vmul.f32 %v3458_v28, %v4348_v56  ;;  %v1434_v2 = vmul.f32 %v3546_v46, %v4348_v56  ;;  %v1443_v32 = vrot.slane %v1427_v44, 4  ;;  %v4356_v56 = vld [vmem:[#allocation6_spill] sm:$0xff] }
  0xc5   : > { %v1444_v0 = vrot.slane %v1428_v29, 4  ;;  %v1445_v47 = vrot.slane %v1429_v6, 4  ;;  %v1446_v52 = vrot.slane %v1430_v7, 4  ;;  %v1447_v39 = vrot.slane %v1431_v17, 4  ;;  %v4357_v29 = vld [vmem:[#allocation26_spill] sm:$0xff] }
  0xc6   : > { %v1448_v61 = vrot.slane %v1432_v40, 4  ;;  %v1449_v57 = vrot.slane %v1433_v54, 4  ;;  %v1450_v36 = vrot.slane %v1434_v2, 4  ;;  %v1422_v24 = vadd.f32 %v1389_v63, %v1330_v15 }
  0xc7   : > { %v1459_v13 = vadd.f32 %v1443_v32, %v1407_v38  ;;  %v1460_v43 = vadd.f32 %v1443_v32, %v1408_v42  ;;  %v1461_v14 = vadd.f32 %v1444_v0, %v1409_v35  ;;  %v1462_v53 = vadd.f32 %v1444_v0, %v1410_v37  ;;  %v3554_v38 = vld [vmem:[%s2744_s30 + $0x158] sm:$0xff]  ;;  %v3557_v42 = vld [vmem:[%s2744_s30 + $0x168] sm:$0xff]  ;;  %v3560_v35 = vld [vmem:[%s2744_s30 + $0x170] sm:$0xff] }
  0xc8   : > { %v1463_v19 = vadd.f32 %v1445_v47, %v1411_v22  ;;  %v1464_v62 = vadd.f32 %v1445_v47, %v1412_v16  ;;  %v1465_v27 = vadd.f32 %v1446_v52, %v1413_v48  ;;  %v1466_v58 = vadd.f32 %v1446_v52, %v1414_v45  ;;  %4351 = vst [vmem:[#allocation18_spill] sm:$0xff] %v3554_v38  ;;  %v4354_v37 = vld [vmem:[#allocation23_spill] sm:$0xff] }
  0xc9   : > { %v1467_v23 = vadd.f32 %v1447_v39, %v1415_v21  ;;  %v1468_v60 = vadd.f32 %v1447_v39, %v1416_v55  ;;  %v1469_v59 = vadd.f32 %v1448_v61, %v1417_v51  ;;  %v1470_v5 = vadd.f32 %v1448_v61, %v1418_v11  ;;  %4352 = vst [vmem:[#allocation28_spill] sm:$0xff] %v3557_v42 }
  0xca   : > { %v1471_v25 = vadd.f32 %v1449_v57, %v1419_v12  ;;  %v1472_v15 = vadd.f32 %v1449_v57, %v1420_v4  ;;  %v1473_v63 = vadd.f32 %v1450_v36, %v1421_v49  ;;  %4353 = vst [vmem:[#allocation29_spill] sm:$0xff] %v3560_v35  ;;  %v1479_v22 = vmul.f32 %v3436_v30, %v4354_v37  ;;  %v3579_v12 = vld [vmem:[%s2744_s30 + $0x120] sm:$0xff] }
  0xcb   : > { %v1480_v16 = vmul.f32 %v3348_v31, %v4354_v37  ;;  %v1481_v48 = vmul.f32 %v3441_v8, %v4354_v37  ;;  %v1482_v45 = vmul.f32 %v3353_v10, %v4354_v37  ;;  %v1483_v21 = vmul.f32 %v3446_v9, %v4354_v37  ;;  %4355 = vst [vmem:[#allocation23_spill] sm:$0xff] %v3579_v12 }
  0xcc   : > { %v1484_v55 = vmul.f32 %v3450_v41, %v4354_v37  ;;  %v1485_v51 = vmul.f32 %v3454_v1, %v4354_v37  ;;  %v1486_v11 = vmul.f32 %v3458_v28, %v4354_v37  ;;  %v1487_v4 = vmul.f32 %v3579_v12, %v4354_v37 }
  0xcd   : > { %v1488_v49 = vmul.f32 %v3546_v46, %v4354_v37  ;;  %v1489_v44 = vmul.f32 %v4354_v37, %v4356_v56  ;;  %v1490_v6 = vmul.f32 %v4354_v37, %v4357_v29  ;;  %v1491_v7 = vmul.f32 %v4354_v37, %v3551_v50 }
  0xce   : > { %v1492_v17 = vmul.f32 %v4354_v37, %v3554_v38  ;;  %v1493_v40 = vmul.f32 %v4354_v37, %v3557_v42  ;;  %v1494_v54 = vmul.f32 %v4354_v37, %v3560_v35  ;;  %v1511_v2 = vrot.slane %v1479_v22, 6 }
  0xcf   : > { %v1512_v32 = vrot.slane %v1480_v16, 6  ;;  %v1514_v0 = vrot.slane %v1481_v48, 6  ;;  %v1515_v47 = vrot.slane %v1482_v45, 6  ;;  %v1517_v52 = vrot.slane %v1483_v21, 6 }
  0xd0   : > { %v1518_v39 = vrot.slane %v1484_v55, 6  ;;  %v1520_v61 = vrot.slane %v1485_v51, 6  ;;  %v1521_v57 = vrot.slane %v1486_v11, 6  ;;  %v1474_v33 = vadd.f32 %v1450_v36, %v1422_v24 }
  0xd1   : > { %v1513_v18 = vsel %vm1038_vm2, %v1511_v2, %v1512_v32  ;;  %v1523_v20 = vrot.slane %v1487_v4, 6  ;;  %v1524_v34 = vrot.slane %v1488_v49, 6  ;;  %v1516_v26 = vsel %vm1038_vm2, %v1514_v0, %v1515_v47 }
  0xd2   : > { %v1519_v3 = vsel %vm1038_vm2, %v1517_v52, %v1518_v39  ;;  %v1526_v42 = vrot.slane %v1489_v44, 6  ;;  %v1527_v38 = vrot.slane %v1490_v6, 6  ;;  %v1522_v37 = vsel %vm1038_vm2, %v1520_v61, %v1521_v57 }
  0xd3   : > { %v1529_v22 = vrot.slane %v1491_v7, 6  ;;  %v1530_v16 = vrot.slane %v1492_v17, 6  ;;  %v1532_v48 = vrot.slane %v1493_v40, 6  ;;  %v1525_v45 = vsel %vm1038_vm2, %v1523_v20, %v1524_v34 }
  0xd4   : > { %v1528_v21 = vsel %vm1038_vm2, %v1526_v42, %v1527_v38  ;;  %v1533_v36 = vrot.slane %v1494_v54, 6  ;;  %v1551_v24 = vadd.f32 %v1511_v2, %v1459_v13  ;;  %v1552_v51 = vadd.f32 %v1513_v18, %v1460_v43  ;;  %v4358_v54 = vld [vmem:[#allocation24_spill] sm:$0xff] }
  0xd5   : > { %v1531_v55 = vsel %vm1038_vm2, %v1529_v22, %v1530_v16  ;;  %v1553_v11 = vadd.f32 %v1514_v0, %v1461_v14  ;;  %v1554_v4 = vadd.f32 %v1516_v26, %v1462_v53  ;;  %v1555_v44 = vadd.f32 %v1517_v52, %v1463_v19 }
  0xd6   : > { %v1534_v49 = vsel %vm1038_vm2, %v1532_v48, %v1533_v36  ;;  %v1556_v6 = vadd.f32 %v1519_v3, %v1464_v62  ;;  %v1557_v32 = vadd.f32 %v1520_v61, %v1465_v27  ;;  %v1558_v47 = vadd.f32 %v1522_v37, %v1466_v58 }
  0xd7   : > { %v1559_v7 = vadd.f32 %v1523_v20, %v1467_v23  ;;  %v1560_v17 = vadd.f32 %v1525_v45, %v1468_v60  ;;  %v1561_v40 = vadd.f32 %v1526_v42, %v1469_v59  ;;  %v1562_v39 = vadd.f32 %v1528_v21, %v1470_v5  ;;  %v4359_v60 = vld [vmem:[#allocation18_spill] sm:$0xff]  ;;  %v4360_v5 = vld [vmem:[#allocation28_spill] sm:$0xff] }
  0xd8   : > { %v1563_v34 = vadd.f32 %v1529_v22, %v1471_v25  ;;  %v1564_v57 = vadd.f32 %v1531_v55, %v1472_v15  ;;  %v1565_v38 = vadd.f32 %v1532_v48, %v1473_v63  ;;  %v1571_v13 = vmul.f32 %v3436_v30, %v4358_v54 }
  0xd9   : > { %v1572_v18 = vmul.f32 %v3348_v31, %v4358_v54  ;;  %v1573_v26 = vmul.f32 %v3441_v8, %v4358_v54  ;;  %v1574_v3 = vmul.f32 %v3353_v10, %v4358_v54  ;;  %v1575_v20 = vmul.f32 %v3446_v9, %v4358_v54 }
  0xda   : > { %v1576_v43 = vmul.f32 %v3450_v41, %v4358_v54  ;;  %v1577_v14 = vmul.f32 %v3454_v1, %v4358_v54  ;;  %v1578_v53 = vmul.f32 %v3458_v28, %v4358_v54  ;;  %v1579_v19 = vmul.f32 %v3579_v12, %v4358_v54 }
  0xdb   : > { %v1580_v62 = vmul.f32 %v3546_v46, %v4358_v54  ;;  %v1581_v27 = vmul.f32 %v4358_v54, %v4356_v56  ;;  %v1582_v58 = vmul.f32 %v4358_v54, %v4357_v29  ;;  %v1583_v23 = vmul.f32 %v4358_v54, %v3551_v50 }
  0xdc   : > { %v1584_v59 = vmul.f32 %v4358_v54, %v4359_v60  ;;  %v1585_v25 = vmul.f32 %v4358_v54, %v4360_v5  ;;  %v1586_v15 = vmul.f32 %v4358_v54, %v3560_v35  ;;  %v1603_v63 = vrot.slane %v1571_v13, 1 }
  0xdd   : > { %v1604_v42 = vrot.slane %v1572_v18, 1  ;;  %v1606_v2 = vrot.slane %v1573_v26, 1  ;;  %v1607_v0 = vrot.slane %v1574_v3, 1  ;;  %v1609_v56 = vrot.slane %v1575_v20, 1 }
  0xde   : > { %v1610_v52 = vrot.slane %v1576_v43, 1  ;;  %v1612_v61 = vrot.slane %v1577_v14, 1  ;;  %v1613_v29 = vrot.slane %v1578_v53, 1  ;;  %v1566_v37 = vadd.f32 %v1534_v49, %v1474_v33 }
  0xdf   : > { %v1605_v22 = vsel %vm409_vm0, %v1603_v63, %v1604_v42  ;;  %v1615_v16 = vrot.slane %v1579_v19, 1  ;;  %v1616_v48 = vrot.slane %v1580_v62, 1  ;;  %v1608_v45 = vsel %vm409_vm0, %v1606_v2, %v1607_v0 }
  0xe0   : > { %v1611_v21 = vsel %vm409_vm0, %v1609_v56, %v1610_v52  ;;  %v1618_v36 = vrot.slane %v1581_v27, 1  ;;  %v1619_v55 = vrot.slane %v1582_v58, 1  ;;  %v1614_v54 = vsel %vm409_vm0, %v1612_v61, %v1613_v29 }
  0xe1   : > { %v1621_v13 = vrot.slane %v1583_v23, 1  ;;  %v1622_v18 = vrot.slane %v1584_v59, 1  ;;  %v1624_v26 = vrot.slane %v1585_v25, 1  ;;  %v1617_v3 = vsel %vm409_vm0, %v1615_v16, %v1616_v48 }
  0xe2   : > { %v1620_v20 = vsel %vm409_vm0, %v1618_v36, %v1619_v55  ;;  %v1625_v33 = vrot.slane %v1586_v15, 1  ;;  %v1643_v49 = vadd.f32 %v1605_v22, %v1551_v24  ;;  %v1644_v14 = vadd.f32 %v1604_v42, %v1552_v51  ;;  %v4361_v24 = vld [vmem:[#allocation13_spill] sm:$0xff] }
  0xe3   : > { %v1623_v43 = vsel %vm409_vm0, %v1621_v13, %v1622_v18  ;;  %v1645_v53 = vadd.f32 %v1608_v45, %v1553_v11  ;;  %v1646_v19 = vadd.f32 %v1607_v0, %v1554_v4  ;;  %v1647_v27 = vadd.f32 %v1611_v21, %v1555_v44  ;;  %v283_v45 = vld [vmem:[%s2744_s30 + $0x18] sm:$0xff] }
  0xe4   : > { %v1626_v62 = vsel %vm409_vm0, %v1624_v26, %v1625_v33  ;;  %v1648_v58 = vadd.f32 %v1610_v52, %v1556_v6  ;;  %v1649_v63 = vadd.f32 %v1614_v54, %v1557_v32  ;;  %v1650_v23 = vadd.f32 %v1613_v29, %v1558_v47  ;;  %v3656_v6 = vld [vmem:[%s2744_s30 + $0x140] sm:$0xff] }
  0xe5   : > { %v1651_v59 = vadd.f32 %v1617_v3, %v1559_v7  ;;  %v1652_v25 = vadd.f32 %v1616_v48, %v1560_v17  ;;  %v1653_v2 = vadd.f32 %v1620_v20, %v1561_v40  ;;  %v1654_v56 = vadd.f32 %v1619_v55, %v1562_v39  ;;  %4362 = vst [vmem:[#allocation6_spill] sm:$0xff] %v3656_v6  ;;  %v280_v48 = vld [vmem:[%s2744_s30] sm:$0xff] }
  0xe6   : > { %v1655_v61 = vadd.f32 %v1623_v43, %v1563_v34  ;;  %v1656_v16 = vadd.f32 %v1622_v18, %v1564_v57  ;;  %v1657_v15 = vadd.f32 %v1626_v62, %v1565_v38  ;;  %v1663_v22 = vmul.f32 %v3348_v31, %v4361_v24 }
  0xe7   : > { %v1664_v51 = vmul.f32 %v3353_v10, %v4361_v24  ;;  %v1665_v11 = vmul.f32 %v3450_v41, %v4361_v24  ;;  %v1666_v4 = vmul.f32 %v3458_v28, %v4361_v24  ;;  %v1667_v44 = vmul.f32 %v3546_v46, %v4361_v24 }
  0xe8   : > { %v1668_v32 = vmul.f32 %v3656_v6, %v4361_v24  ;;  %v1669_v31 = vmul.f32 %v4361_v24, %v4359_v60  ;;  %v1670_v10 = vmul.f32 %v4361_v24, %v3560_v35  ;;  %v1679_v47 = vrot.slane %v1663_v22, 4  ;;  %v2629_v24 = vld [vmem:[%s2744_s30 + $0x48] sm:$0xff] }
  0xe9   : > { %v1680_v7 = vrot.slane %v1664_v51, 4  ;;  %v1681_v17 = vrot.slane %v1665_v11, 4  ;;  %v1682_v40 = vrot.slane %v1666_v4, 4  ;;  %v1683_v39 = vrot.slane %v1667_v44, 4 }
  0xea   : > { %v1684_v34 = vrot.slane %v1668_v32, 4  ;;  %v1685_v57 = vrot.slane %v1669_v31, 4  ;;  %v1686_v38 = vrot.slane %v1670_v10, 4  ;;  %v1658_v42 = vadd.f32 %v1625_v33, %v1566_v37  ;;  %v4363_v33 = vld [vmem:[#allocation14_spill] sm:$0xff] }
  0xeb   : > { %v1695_v0 = vadd.f32 %v1679_v47, %v1643_v49  ;;  %v1696_v52 = vadd.f32 %v1679_v47, %v1644_v14  ;;  %v1697_v29 = vadd.f32 %v1680_v7, %v1645_v53  ;;  %v1698_v21 = vadd.f32 %v1680_v7, %v1646_v19  ;;  %v2628_v53 = vld [vmem:[%s2744_s30 + $0x30] sm:$0xff] }
  0xec   : > { %v1699_v36 = vadd.f32 %v1681_v17, %v1647_v27  ;;  %v1700_v55 = vadd.f32 %v1681_v17, %v1648_v58  ;;  %v1701_v54 = vadd.f32 %v1682_v40, %v1649_v63  ;;  %v1702_v13 = vadd.f32 %v1682_v40, %v1650_v23  ;;  %v2630_v58 = vld [vmem:[%s2744_s30 + $0x60] sm:$0xff]  ;;  %v4364_v23 = vld [vmem:[#allocation19_spill] sm:$0xff] }
  0xed   : > { %v1703_v18 = vadd.f32 %v1683_v39, %v1651_v59  ;;  %v1704_v26 = vadd.f32 %v1683_v39, %v1652_v25  ;;  %v1705_v3 = vadd.f32 %v1684_v34, %v1653_v2  ;;  %v1706_v20 = vadd.f32 %v1684_v34, %v1654_v56  ;;  %v4365_v25 = vld [vmem:[#allocation20_spill] sm:$0xff]  ;;  %v3681_v17 = vld [vmem:[%s2744_s30 + $0x8] sm:$0xff]  ;;  %v3684_v40 = vld [vmem:[%s2744_s30 + $0x20] sm:$0xff] }
  0xee   : > { %v1707_v43 = vadd.f32 %v1685_v57, %v1655_v61  ;;  %v1708_v62 = vadd.f32 %v1685_v57, %v1656_v16  ;;  %v1709_v37 = vadd.f32 %v1686_v38, %v1657_v15  ;;  %v1718_v49 = vmul.f32 %v4363_v33, %v280_v48  ;;  %v4366_v56 = vld [vmem:[#allocation8_spill] sm:$0xff] }
  0xef   : > { %v1719_v14 = vmul.f32 %v4363_v33, %v283_v45  ;;  %v1720_v19 = vmul.f32 %v2628_v53, %v4363_v33  ;;  %v1721_v27 = vmul.f32 %v2629_v24, %v4363_v33  ;;  %v1722_v63 = vmul.f32 %v2630_v58, %v4363_v33 }
  0xf0   : > { %v1723_v59 = vmul.f32 %v4364_v23, %v4363_v33  ;;  %v1724_v2 = vmul.f32 %v4365_v25, %v4363_v33  ;;  %v1725_v61 = vmul.f32 %v4366_v56, %v4363_v33  ;;  %v1734_v16 = vrot.slane %v1718_v49, 4 }
  0xf1   : > { %v1735_v15 = vrot.slane %v1719_v14, 4  ;;  %v1736_v22 = vrot.slane %v1720_v19, 4  ;;  %v1737_v51 = vrot.slane %v1721_v27, 4  ;;  %v1738_v11 = vrot.slane %v1722_v63, 4 }
  0xf2   : > { %v1739_v4 = vrot.slane %v1723_v59, 4  ;;  %v1740_v44 = vrot.slane %v1724_v2, 4  ;;  %v1741_v32 = vrot.slane %v1725_v61, 4  ;;  %v1710_v31 = vadd.f32 %v1686_v38, %v1658_v42  ;;  %v4367_v38 = vld [vmem:[#allocation25_spill] sm:$0xff] }
  0xf3   : > { %v1750_v10 = vadd.f32 %v1734_v16, %v1695_v0  ;;  %v1751_v47 = vadd.f32 %v1734_v16, %v1696_v52  ;;  %v1752_v7 = vadd.f32 %v1735_v15, %v1697_v29  ;;  %v1753_v39 = vadd.f32 %v1735_v15, %v1698_v21 }
  0xf4   : > { %v1754_v34 = vadd.f32 %v1736_v22, %v1699_v36  ;;  %v1755_v57 = vadd.f32 %v1736_v22, %v1700_v55  ;;  %v1756_v33 = vadd.f32 %v1737_v51, %v1701_v54  ;;  %v1757_v49 = vadd.f32 %v1737_v51, %v1702_v13  ;;  %v4368_v36 = vld [vmem:[#allocation9_spill] sm:$0xff]  ;;  %v4369_v13 = vld [vmem:[#allocation27_spill] sm:$0xff] }
  0xf5   : > { %v1758_v14 = vadd.f32 %v1738_v11, %v1703_v18  ;;  %v1759_v19 = vadd.f32 %v1738_v11, %v1704_v26  ;;  %v1760_v27 = vadd.f32 %v1739_v4, %v1705_v3  ;;  %v1761_v63 = vadd.f32 %v1739_v4, %v1706_v20  ;;  %v4370_v26 = vld [vmem:[#allocation10_spill] sm:$0xff]  ;;  %v4371_v20 = vld [vmem:[#allocation11_spill] sm:$0xff] }
  0xf6   : > { %v1762_v59 = vadd.f32 %v1740_v44, %v1707_v43  ;;  %v1763_v2 = vadd.f32 %v1740_v44, %v1708_v62  ;;  %v1764_v61 = vadd.f32 %v1741_v32, %v1709_v37  ;;  %v1770_v42 = vmul.f32 %v4367_v38, %v280_v48  ;;  %v4372_v37 = vld [vmem:[#allocation5_spill] sm:$0xff] }
  0xf7   : > { %v1771_v0 = vmul.f32 %v4367_v38, %v3681_v17  ;;  %v1772_v52 = vmul.f32 %v4367_v38, %v283_v45  ;;  %v1773_v29 = vmul.f32 %v4367_v38, %v3684_v40  ;;  %v1774_v21 = vmul.f32 %v2628_v53, %v4367_v38 }
  0xf8   : > { %v1775_v55 = vmul.f32 %v4368_v36, %v4367_v38  ;;  %v1776_v54 = vmul.f32 %v2629_v24, %v4367_v38  ;;  %v1777_v18 = vmul.f32 %v4369_v13, %v4367_v38  ;;  %v1778_v48 = vmul.f32 %v2630_v58, %v4367_v38  ;;  %v4373_v58 = vld [vmem:[#allocation12_spill] sm:$0xff] }
  0xf9   : > { %v1779_v3 = vmul.f32 %v4370_v26, %v4367_v38  ;;  %v1780_v45 = vmul.f32 %v4364_v23, %v4367_v38  ;;  %v1781_v43 = vmul.f32 %v4371_v20, %v4367_v38  ;;  %v1782_v62 = vmul.f32 %v4365_v25, %v4367_v38 }
  0xfa   : > { %v1783_v53 = vmul.f32 %v4372_v37, %v4367_v38  ;;  %v1784_v24 = vmul.f32 %v4366_v56, %v4367_v38  ;;  %v1785_v16 = vmul.f32 %v4373_v58, %v4367_v38  ;;  %v1802_v15 = vrot.slane %v1770_v42, 1 }
  0xfb   : > { %v1803_v22 = vrot.slane %v1771_v0, 1  ;;  %v1805_v51 = vrot.slane %v1772_v52, 1  ;;  %v1806_v11 = vrot.slane %v1773_v29, 1  ;;  %v1808_v4 = vrot.slane %v1774_v21, 1 }
  0xfc   : > { %v1809_v44 = vrot.slane %v1775_v55, 1  ;;  %v1811_v35 = vrot.slane %v1776_v54, 1  ;;  %v1812_v60 = vrot.slane %v1777_v18, 1  ;;  %v1765_v6 = vadd.f32 %v1741_v32, %v1710_v31 }
  0xfd   : > { %v1804_v5 = vsel %vm409_vm0, %v1802_v15, %v1803_v22  ;;  %v1814_v50 = vrot.slane %v1778_v48, 1  ;;  %v1815_v46 = vrot.slane %v1779_v3, 1  ;;  %v1807_v28 = vsel %vm409_vm0, %v1805_v51, %v1806_v11  ;;  %v3788_v15 = vld [vmem:[%s2744_s30 + $0xa0] sm:$0x3] }
  0xfe   : > { %v1810_v41 = vsel %vm409_vm0, %v1808_v4, %v1809_v44  ;;  %v1817_v12 = vrot.slane %v1780_v45, 1  ;;  %v1818_v1 = vrot.slane %v1781_v43, 1  ;;  %v1813_v38 = vsel %vm409_vm0, %v1811_v35, %v1812_v60  ;;  %v1712_v35 = vld [vmem:[%s4180_s3 + $0x4] sm:$0x7] }
  0xff   : > { %v1820_v42 = vrot.slane %v1782_v62, 1  ;;  %v1821_v0 = vrot.slane %v1783_v53, 1  ;;  %v1823_v52 = vrot.slane %v1784_v24, 1  ;;  %v1816_v29 = vsel %vm409_vm0, %v1814_v50, %v1815_v46  ;;  %v4376_v62 = vld [vmem:[#allocation2_spill] sm:$0xff]  ;;  %v3773_v24 = vld [vmem:[%s2744_s30 + $0x88] sm:$0x3] }
 0x100   : > { %v1819_v21 = vsel %vm409_vm0, %v1817_v12, %v1818_v1  ;;  %v1824_v32 = vrot.slane %v1785_v16, 1  ;;  %v3719_v31 = vadd.f32 %v1804_v5, %v1750_v10  ;;  %v3722_v54 = vadd.f32 %v1803_v22, %v1751_v47  ;;  %v3791_v22 = vld [vmem:[%s2744_s30 + $0xb8] sm:$0x3] }
 0x101   : > { %v1822_v55 = vsel %vm409_vm0, %v1820_v42, %v1821_v0  ;;  %v3724_v18 = vadd.f32 %v1807_v28, %v1752_v7  ;;  %v3726_v48 = vadd.f32 %v1806_v11, %v1753_v39  ;;  %v3732_v12 = vadd.f32 %v1810_v41, %v1754_v34  ;;  %v1713_v28 = vld [vmem:[%s4180_s3 + $0x8] sm:$0x7]  ;;  %v282_v41 = vld [vmem:[%s2744_s30 + $0x10] sm:$0x3] }
 0x102   : > { %v1825_v50 = vsel %vm409_vm0, %v1823_v52, %v1824_v32  ;;  %v3734_v5 = vadd.f32 %v1809_v44, %v1755_v57  ;;  %v3736_v10 = vadd.f32 %v1813_v38, %v1756_v33  ;;  %v3741_v47 = vadd.f32 %v1812_v60, %v1757_v49  ;;  %v285_v34 = vld [vmem:[%s2744_s30 + $0x28] sm:$0x3]  ;;  %v288_v49 = vld [vmem:[%s2744_s30 + $0x40] sm:$0x3] }
 0x103   : > { %v3743_v7 = vadd.f32 %v1816_v29, %v1758_v14  ;;  %v3745_v39 = vadd.f32 %v1815_v46, %v1759_v19  ;;  %v3747_v3 = vadd.f32 %v1819_v21, %v1760_v27  ;;  %v3751_v57 = vadd.f32 %v1818_v1, %v1761_v63  ;;  %v291_v14 = vld [vmem:[%s2744_s30 + $0x58] sm:$0x3]  ;;  %v4374_v46 = vld [vmem:[#allocation4_spill] sm:$0xff]  ;;  %v4377_v1 = vld [vmem:[#allocation3_spill] sm:$0xff] }
 0x104   : > { %v3753_v33 = vadd.f32 %v1822_v55, %v1762_v59  ;;  %v3755_v45 = vadd.f32 %v1821_v0, %v1763_v2  ;;  %v3757_v60 = vadd.f32 %v1825_v50, %v1764_v61  ;;  %v3761_v43 = vadd.f32 %v1824_v32, %v1765_v6  ;;  %v4375_v19 = vld [vmem:[#allocation17_spill] sm:$0xff]  ;;  %v294_v59 = vld [vmem:[%s2744_s30 + $0x70] sm:$0x3] }
 0x105   : > { %v1861_v27 = vrot.slane %v4375_v19, %v4374_v46  ;;  %v3766_v53 = vrot.slane %v1712_v35, %v4376_v62  ;;  %v3769_v63 = vrot.slane %v1712_v35, %v4377_v1  ;;  %v3776_v2 = vrot.slane %v1712_v35, %v4374_v46 }
 0x106   : > { %v3779_v61 = vrot.slane %v1713_v28, %v4376_v62  ;;  %v3782_v6 = vrot.slane %v1713_v28, %v4377_v1  ;;  %v3785_v16 = vrot.slane %v1713_v28, %v4374_v46 }
 0x107   : > { %v1862_v51 = vmul.f32 %v1861_v27, %v3681_v17  ;;  %v1863_v11 = vmul.f32 %v1861_v27, %v282_v41  ;;  %v1864_v4 = vmul.f32 %v1861_v27, %v3684_v40  ;;  %v1865_v44 = vmul.f32 %v1861_v27, %v285_v34 }
 0x108   : > { %v1866_v38 = vmul.f32 %v4368_v36, %v1861_v27  ;;  %v1867_v42 = vmul.f32 %v1861_v27, %v288_v49  ;;  %v1868_v0 = vmul.f32 %v4369_v13, %v1861_v27  ;;  %v1869_v52 = vmul.f32 %v1861_v27, %v291_v14 }
 0x109   : > { %v1870_v29 = vmul.f32 %v4370_v26, %v1861_v27  ;;  %v1871_v21 = vmul.f32 %v1861_v27, %v294_v59  ;;  %v1872_v32 = vmul.f32 %v4371_v20, %v1861_v27  ;;  %v1873_v55 = vmul.f32 %v1861_v27, %v3773_v24 }
 0x10a   : > { %v1874_v35 = vmul.f32 %v4372_v37, %v1861_v27  ;;  %v1875_v17 = vmul.f32 %v1861_v27, %v3788_v15  ;;  %v1876_v40 = vmul.f32 %v4373_v58, %v1861_v27  ;;  %v1877_v50 = vmul.f32 %v1861_v27, %v3791_v22 }
 0x10b   : > { %v1894_v36 = vrot.slane %v1862_v51, 6  ;;  %v1895_v28 = vrot.slane %v1863_v11, 6  ;;  %v1897_v41 = vrot.slane %v1864_v4, 6  ;;  %v1898_v13 = vrot.slane %v1865_v44, 6 }
 0x10c   : > { %v1900_v34 = vrot.slane %v1866_v38, 6  ;;  %v1901_v49 = vrot.slane %v1867_v42, 6  ;;  %v1903_v26 = vrot.slane %v1868_v0, 6  ;;  %v1904_v14 = vrot.slane %v1869_v52, 6 }
 0x10d   : > { %v1896_v20 = vsel %vm1038_vm2, %v1894_v36, %v1895_v28  ;;  %v1899_v46 = vsel %vm1038_vm2, %v1897_v41, %v1898_v13  ;;  %v1906_v19 = vrot.slane %v1870_v29, 6  ;;  %v1907_v37 = vrot.slane %v1871_v21, 6 }
 0x10e   : > { %v1902_v62 = vsel %vm1038_vm2, %v1900_v34, %v1901_v49  ;;  %v1905_v58 = vsel %vm1038_vm2, %v1903_v26, %v1904_v14  ;;  %v1909_v1 = vrot.slane %v1872_v32, 6  ;;  %v1910_v27 = vrot.slane %v1873_v55, 6 }
 0x10f   : > { %v1908_v59 = vsel %vm1038_vm2, %v1906_v19, %v1907_v37  ;;  %v1912_v51 = vrot.slane %v1874_v35, 6  ;;  %v1913_v11 = vrot.slane %v1875_v17, 6  ;;  %v1915_v4 = vrot.slane %v1876_v40, 6 }
 0x110   : > { %v1911_v44 = vsel %vm1038_vm2, %v1909_v1, %v1910_v27  ;;  %v1916_v38 = vrot.slane %v1877_v50, 6  ;;  %v1934_v42 = vadd.f32 %v1894_v36, %v3719_v31  ;;  %v1935_v0 = vadd.f32 %v1896_v20, %v3722_v54 }
 0x111   : > { %v1914_v52 = vsel %vm1038_vm2, %v1912_v51, %v1913_v11  ;;  %v1936_v29 = vadd.f32 %v1897_v41, %v3724_v18  ;;  %v1937_v21 = vadd.f32 %v1899_v46, %v3726_v48  ;;  %v1938_v32 = vadd.f32 %v1900_v34, %v3732_v12 }
 0x112   : > { %v1917_v55 = vsel %vm1038_vm2, %v1915_v4, %v1916_v38  ;;  %v1939_v35 = vadd.f32 %v1902_v62, %v3734_v5  ;;  %v1940_v17 = vadd.f32 %v1903_v26, %v3736_v10  ;;  %v1941_v40 = vadd.f32 %v1905_v58, %v3741_v47 }
 0x113   : > { %v1942_v31 = vadd.f32 %v1906_v19, %v3743_v7  ;;  %v1943_v54 = vadd.f32 %v1908_v59, %v3745_v39  ;;  %v1944_v50 = vadd.f32 %v1909_v1, %v3747_v3  ;;  %v1945_v18 = vadd.f32 %v1911_v44, %v3751_v57 }
 0x114   : > { %v1946_v48 = vadd.f32 %v1912_v51, %v3753_v33  ;;  %v1947_v12 = vadd.f32 %v1914_v52, %v3755_v45  ;;  %v1948_v36 = vadd.f32 %v1915_v4, %v3757_v60  ;;  %v1949_v5 = vadd.f32 %v1917_v55, %v3761_v43  ;;  %v4378_v33 = vld [vmem:[#allocation21_spill] sm:$0xff]  ;;  %v4379_v60 = vld [vmem:[#allocation23_spill] sm:$0xff] }
 0x115   : > { %v1954_v10 = vmul.f32 %v4364_v23, %v3766_v53  ;;  %v1955_v47 = vmul.f32 %v4365_v25, %v3766_v53  ;;  %v1956_v7 = vmul.f32 %v4366_v56, %v3766_v53  ;;  %v1957_v39 = vmul.f32 %v3436_v30, %v3766_v53  ;;  %v3862_v55 = vld [vmem:[%s2744_s30 + $0x98] sm:$0xff] }
 0x116   : > { %v1958_v3 = vmul.f32 %v3441_v8, %v3766_v53  ;;  %v1959_v57 = vmul.f32 %v3446_v9, %v3766_v53  ;;  %v1960_v45 = vmul.f32 %v4378_v33, %v3766_v53  ;;  %v1961_v43 = vmul.f32 %v4379_v60, %v3766_v53 }
 0x117   : > { %v1970_v28 = vrot.slane %v1954_v10, 4  ;;  %v1971_v41 = vrot.slane %v1955_v47, 4  ;;  %v1972_v13 = vrot.slane %v1956_v7, 4  ;;  %v1973_v34 = vrot.slane %v1957_v39, 4 }
 0x118   : > { %v1974_v49 = vrot.slane %v1958_v3, 4  ;;  %v1975_v26 = vrot.slane %v1959_v57, 4  ;;  %v1976_v14 = vrot.slane %v1960_v45, 4  ;;  %v1977_v20 = vrot.slane %v1961_v43, 4 }
 0x119   : > { %v1986_v46 = vadd.f32 %v1970_v28, %v1934_v42  ;;  %v1987_v19 = vadd.f32 %v1970_v28, %v1935_v0  ;;  %v1988_v37 = vadd.f32 %v1971_v41, %v1936_v29  ;;  %v1989_v62 = vadd.f32 %v1971_v41, %v1937_v21  ;;  %v3855_v29 = vld [vmem:[%s2744_s30 + $0x80] sm:$0xff] }
 0x11a   : > { %v1990_v58 = vadd.f32 %v1972_v13, %v1938_v32  ;;  %v1991_v1 = vadd.f32 %v1972_v13, %v1939_v35  ;;  %v1992_v27 = vadd.f32 %v1973_v34, %v1940_v17  ;;  %v1993_v59 = vadd.f32 %v1973_v34, %v1941_v40  ;;  %v3869_v40 = vld [vmem:[%s2744_s30 + $0xb0] sm:$0xff] }
 0x11b   : > { %v1994_v53 = vadd.f32 %v1974_v49, %v1942_v31  ;;  %v1995_v51 = vadd.f32 %v1974_v49, %v1943_v54  ;;  %v1996_v11 = vadd.f32 %v1975_v26, %v1944_v50  ;;  %v1997_v4 = vadd.f32 %v1975_v26, %v1945_v18  ;;  %v2634_v54 = vld [vmem:[%s2744_s30 + $0xc8] sm:$0xff]  ;;  %v2635_v18 = vld [vmem:[%s2744_s30 + $0xe0] sm:$0xff] }
 0x11c   : > { %v3844_v44 = vadd.f32 %v1976_v14, %v1946_v48  ;;  %v3846_v38 = vadd.f32 %v1976_v14, %v1947_v12  ;;  %v3848_v42 = vadd.f32 %v1977_v20, %v1948_v36  ;;  %v3850_v0 = vadd.f32 %v1977_v20, %v1949_v5  ;;  %v4380_v12 = vld [vmem:[#allocation15_spill] sm:$0xff] }
 0x11d   : > { %v2006_v52 = vmul.f32 %v4364_v23, %v3769_v63  ;;  %v2007_v21 = vmul.f32 %v3855_v29, %v3769_v63  ;;  %v2008_v32 = vmul.f32 %v4365_v25, %v3769_v63  ;;  %v2009_v35 = vmul.f32 %v3862_v55, %v3769_v63 }
 0x11e   : > { %v2010_v17 = vmul.f32 %v4366_v56, %v3769_v63  ;;  %v2011_v23 = vmul.f32 %v3869_v40, %v3769_v63  ;;  %v2012_v31 = vmul.f32 %v3436_v30, %v3769_v63  ;;  %v2013_v50 = vmul.f32 %v2634_v54, %v3769_v63  ;;  %v4381_v30 = vld [vmem:[#allocation22_spill] sm:$0xff] }
 0x11f   : > { %v2014_v25 = vmul.f32 %v3441_v8, %v3769_v63  ;;  %v2015_v48 = vmul.f32 %v2635_v18, %v3769_v63  ;;  %v2016_v56 = vmul.f32 %v3446_v9, %v3769_v63  ;;  %v2017_v36 = vmul.f32 %v4380_v12, %v3769_v63  ;;  %v4382_v8 = vld [vmem:[#allocation16_spill] sm:$0xff] }
 0x120   : > { %v2018_v5 = vmul.f32 %v4378_v33, %v3769_v63  ;;  %v2019_v10 = vmul.f32 %v4381_v30, %v3769_v63  ;;  %v2020_v47 = vmul.f32 %v4379_v60, %v3769_v63  ;;  %v2021_v7 = vmul.f32 %v4382_v8, %v3769_v63 }
 0x121   : > { %v2038_v39 = vrot.slane %v2006_v52, 1  ;;  %v2039_v3 = vrot.slane %v2007_v21, 1  ;;  %v2041_v57 = vrot.slane %v2008_v32, 1  ;;  %v2042_v45 = vrot.slane %v2009_v35, 1 }
 0x122   : > { %v2044_v9 = vrot.slane %v2010_v17, 1  ;;  %v2045_v43 = vrot.slane %v2011_v23, 1  ;;  %v2047_v28 = vrot.slane %v2012_v31, 1  ;;  %v2048_v41 = vrot.slane %v2013_v50, 1 }
 0x123   : > { %v2040_v13 = vsel %vm409_vm0, %v2038_v39, %v2039_v3  ;;  %v2043_v33 = vsel %vm409_vm0, %v2041_v57, %v2042_v45  ;;  %v2050_v34 = vrot.slane %v2014_v25, 1  ;;  %v2051_v49 = vrot.slane %v2015_v48, 1 }
 0x124   : > { %v2046_v26 = vsel %vm409_vm0, %v2044_v9, %v2045_v43  ;;  %v2049_v14 = vsel %vm409_vm0, %v2047_v28, %v2048_v41  ;;  %v2053_v20 = vrot.slane %v2016_v56, 1  ;;  %v2054_v63 = vrot.slane %v2017_v36, 1 }
 0x125   : > { %v2052_v52 = vsel %vm409_vm0, %v2050_v34, %v2051_v49  ;;  %v2056_v21 = vrot.slane %v2018_v5, 1  ;;  %v2057_v32 = vrot.slane %v2019_v10, 1  ;;  %v2059_v35 = vrot.slane %v2020_v47, 1 }
 0x126   : > { %v2055_v17 = vsel %vm409_vm0, %v2053_v20, %v2054_v63  ;;  %v2060_v23 = vrot.slane %v2021_v7, 1  ;;  %v3899_v31 = vadd.f32 %v2040_v13, %v1986_v46  ;;  %v3901_v50 = vadd.f32 %v2039_v3, %v1987_v19  ;;  %v306_v19 = vld [vmem:[%s2744_s30 + $0xd0] sm:$0x3]  ;;  %v3928_v7 = vld [vmem:[%s2744_s30 + $0x100] sm:$0x3] }
 0x127   : > { %v2058_v25 = vsel %vm409_vm0, %v2056_v21, %v2057_v32  ;;  %v3904_v48 = vadd.f32 %v2043_v33, %v1988_v37  ;;  %v3906_v56 = vadd.f32 %v2042_v45, %v1989_v62  ;;  %v3908_v12 = vadd.f32 %v2046_v26, %v1990_v58  ;;  %v309_v58 = vld [vmem:[%s2744_s30 + $0xe8] sm:$0x3]  ;;  %v3957_v45 = vld [vmem:[%s2744_s30 + $0xf8] sm:$0xff] }
 0x128   : > { %v2061_v36 = vsel %vm409_vm0, %v2059_v35, %v2060_v23  ;;  %v3911_v5 = vadd.f32 %v2045_v43, %v1991_v1  ;;  %v3913_v30 = vadd.f32 %v2049_v14, %v1992_v27  ;;  %v3915_v46 = vadd.f32 %v2048_v41, %v1993_v59 }
 0x129   : > { %v3918_v10 = vadd.f32 %v2052_v52, %v1994_v53  ;;  %v3920_v47 = vadd.f32 %v2051_v49, %v1995_v51  ;;  %v3922_v37 = vadd.f32 %v2055_v17, %v1996_v11  ;;  %v3924_v62 = vadd.f32 %v2054_v63, %v1997_v4  ;;  %v3935_v53 = vld [vmem:[%s2744_s30 + $0x118] sm:$0x3]  ;;  %v3938_v51 = vld [vmem:[%s2744_s30 + $0x130] sm:$0x3] }
 0x12a   : > { %v2090_v39 = vadd.f32 %v2058_v25, %v3844_v44  ;;  %v2091_v1 = vadd.f32 %v2057_v32, %v3846_v38  ;;  %v2092_v27 = vadd.f32 %v2061_v36, %v3848_v42  ;;  %v2093_v59 = vadd.f32 %v2060_v23, %v3850_v0 }
 0x12b   : > { %v2098_v11 = vmul.f32 %v3855_v29, %v3776_v2  ;;  %v2099_v4 = vmul.f32 %v3776_v2, %v3773_v24  ;;  %v2100_v44 = vmul.f32 %v3862_v55, %v3776_v2  ;;  %v2101_v38 = vmul.f32 %v3776_v2, %v3788_v15 }
 0x12c   : > { %v2102_v42 = vmul.f32 %v3869_v40, %v3776_v2  ;;  %v2103_v0 = vmul.f32 %v3776_v2, %v3791_v22  ;;  %v2104_v3 = vmul.f32 %v2634_v54, %v3776_v2  ;;  %v2105_v57 = vmul.f32 %v3776_v2, %v306_v19  ;;  %v3964_v40 = vld [vmem:[%s2744_s30 + $0x110] sm:$0xff] }
 0x12d   : > { %v2106_v29 = vmul.f32 %v2635_v18, %v3776_v2  ;;  %v2107_v24 = vmul.f32 %v3776_v2, %v309_v58  ;;  %v2108_v55 = vmul.f32 %v3957_v45, %v3776_v2  ;;  %v2109_v15 = vmul.f32 %v3776_v2, %v3928_v7 }
 0x12e   : > { %v2110_v22 = vmul.f32 %v3964_v40, %v3776_v2  ;;  %v2111_v54 = vmul.f32 %v3776_v2, %v3935_v53  ;;  %v2112_v18 = vmul.f32 %v4382_v8, %v3776_v2  ;;  %v2113_v9 = vmul.f32 %v3776_v2, %v3938_v51 }
 0x12f   : > { %v2130_v43 = vrot.slane %v2098_v11, 6  ;;  %v2131_v28 = vrot.slane %v2099_v4, 6  ;;  %v2133_v41 = vrot.slane %v2100_v44, 6  ;;  %v2134_v13 = vrot.slane %v2101_v38, 6 }
 0x130   : > { %v2136_v33 = vrot.slane %v2102_v42, 6  ;;  %v2137_v34 = vrot.slane %v2103_v0, 6  ;;  %v2139_v49 = vrot.slane %v2104_v3, 6  ;;  %v2140_v26 = vrot.slane %v2105_v57, 6 }
 0x131   : > { %v2132_v14 = vsel %vm1038_vm2, %v2130_v43, %v2131_v28  ;;  %v2135_v20 = vsel %vm1038_vm2, %v2133_v41, %v2134_v13  ;;  %v2142_v63 = vrot.slane %v2106_v29, 6  ;;  %v2143_v52 = vrot.slane %v2107_v24, 6  ;;  %v331_v29 = vld [vmem:[%s2744_s30 + $0x198] sm:$0xff] }
 0x132   : > { %v2138_v21 = vsel %vm1038_vm2, %v2136_v33, %v2137_v34  ;;  %v2141_v8 = vsel %vm1038_vm2, %v2139_v49, %v2140_v26  ;;  %v2145_v32 = vrot.slane %v2108_v55, 6  ;;  %v2146_v2 = vrot.slane %v2109_v15, 6 }
 0x133   : > { %v2144_v35 = vsel %vm1038_vm2, %v2142_v63, %v2143_v52  ;;  %v2148_v17 = vrot.slane %v2110_v22, 6  ;;  %v2149_v23 = vrot.slane %v2111_v54, 6  ;;  %v2151_v25 = vrot.slane %v2112_v18, 6  ;;  %v2639_v18 = vld [vmem:[%s2744_s30 + $0x108] sm:$0xff] }
 0x134   : > { %v2147_v36 = vsel %vm1038_vm2, %v2145_v32, %v2146_v2  ;;  %v2152_v19 = vrot.slane %v2113_v9, 6  ;;  %v2170_v58 = vadd.f32 %v2130_v43, %v3899_v31  ;;  %v2171_v11 = vadd.f32 %v2132_v14, %v3901_v50  ;;  %v328_v50 = vld [vmem:[%s2744_s30 + $0x180] sm:$0xff]  ;;  %v4383_v43 = vld [vmem:[#allocation7_spill] sm:$0xff] }
 0x135   : > { %v2150_v4 = vsel %vm1038_vm2, %v2148_v17, %v2149_v23  ;;  %v2172_v44 = vadd.f32 %v2133_v41, %v3904_v48  ;;  %v2173_v38 = vadd.f32 %v2135_v20, %v3906_v56  ;;  %v2174_v42 = vadd.f32 %v2136_v33, %v3908_v12 }
 0x136   : > { %v2153_v0 = vsel %vm1038_vm2, %v2151_v25, %v2152_v19  ;;  %v2175_v3 = vadd.f32 %v2138_v21, %v3911_v5  ;;  %v2176_v57 = vadd.f32 %v2139_v49, %v3913_v30  ;;  %v2177_v31 = vadd.f32 %v2141_v8, %v3915_v46  ;;  %v2638_v5 = vld [vmem:[%s2744_s30 + $0xf0] sm:$0xff] }
 0x137   : > { %v2178_v24 = vadd.f32 %v2142_v63, %v3918_v10  ;;  %v2179_v48 = vadd.f32 %v2144_v35, %v3920_v47  ;;  %v2180_v56 = vadd.f32 %v2145_v32, %v3922_v37  ;;  %v2181_v12 = vadd.f32 %v2147_v36, %v3924_v62  ;;  %v2640_v10 = vld [vmem:[%s2744_s30 + $0x138] sm:$0xff]  ;;  %v4384_v62 = vld [vmem:[#allocation28_spill] sm:$0xff] }
 0x138   : > { %v2182_v55 = vadd.f32 %v2148_v17, %v2090_v39  ;;  %v2183_v15 = vadd.f32 %v2150_v4, %v2091_v1  ;;  %v2184_v22 = vadd.f32 %v2151_v25, %v2092_v27  ;;  %v2185_v54 = vadd.f32 %v2153_v0, %v2093_v59  ;;  %v4011_v0 = vld [vmem:[%s2744_s30 + $0x188] sm:$0xff] }
 0x139   : > { %v2190_v30 = vmul.f32 %v2638_v5, %v3779_v61  ;;  %v2191_v46 = vmul.f32 %v2639_v18, %v3779_v61  ;;  %v2192_v9 = vmul.f32 %v4379_v60, %v3779_v61  ;;  %v2193_v47 = vmul.f32 %v2640_v10, %v3779_v61 }
 0x13a   : > { %v2194_v37 = vmul.f32 %v3779_v61, %v4383_v43  ;;  %v2195_v39 = vmul.f32 %v3779_v61, %v4384_v62  ;;  %v2196_v1 = vmul.f32 %v3779_v61, %v328_v50  ;;  %v2197_v27 = vmul.f32 %v3779_v61, %v331_v29 }
 0x13b   : > { %v2206_v59 = vrot.slane %v2190_v30, 4  ;;  %v2207_v28 = vrot.slane %v2191_v46, 4  ;;  %v2208_v41 = vrot.slane %v2192_v9, 4  ;;  %v2209_v13 = vrot.slane %v2193_v47, 4 }
 0x13c   : > { %v2210_v33 = vrot.slane %v2194_v37, 4  ;;  %v2211_v34 = vrot.slane %v2195_v39, 4  ;;  %v2212_v49 = vrot.slane %v2196_v1, 4  ;;  %v2213_v26 = vrot.slane %v2197_v27, 4 }
 0x13d   : > { %v2222_v14 = vadd.f32 %v2206_v59, %v2170_v58  ;;  %v2223_v20 = vadd.f32 %v2206_v59, %v2171_v11  ;;  %v2224_v63 = vadd.f32 %v2207_v28, %v2172_v44  ;;  %v2225_v52 = vadd.f32 %v2207_v28, %v2173_v38  ;;  %v4014_v58 = vld [vmem:[%s2744_s30 + $0x1a0] sm:$0xff] }
 0x13e   : > { %v2226_v21 = vadd.f32 %v2208_v41, %v2174_v42  ;;  %v2227_v8 = vadd.f32 %v2208_v41, %v2175_v3  ;;  %v2228_v32 = vadd.f32 %v2209_v13, %v2176_v57  ;;  %v2229_v2 = vadd.f32 %v2209_v13, %v2177_v31  ;;  %v2641_v57 = vld [vmem:[%s2744_s30 + $0x128] sm:$0xff] }
 0x13f   : > { %v2230_v61 = vadd.f32 %v2210_v33, %v2178_v24  ;;  %v2231_v35 = vadd.f32 %v2210_v33, %v2179_v48  ;;  %v2232_v17 = vadd.f32 %v2211_v34, %v2180_v56  ;;  %v2233_v23 = vadd.f32 %v2211_v34, %v2181_v12  ;;  %v4385_v48 = vld [vmem:[#allocation6_spill] sm:$0xff] }
 0x140   : > { %v2234_v25 = vadd.f32 %v2212_v49, %v2182_v55  ;;  %v2235_v36 = vadd.f32 %v2212_v49, %v2183_v15  ;;  %v2236_v19 = vadd.f32 %v2213_v26, %v2184_v22  ;;  %v2237_v4 = vadd.f32 %v2213_v26, %v2185_v54  ;;  %v4386_v55 = vld [vmem:[#allocation18_spill] sm:$0xff]  ;;  %v4387_v54 = vld [vmem:[#allocation29_spill] sm:$0xff] }
 0x141   : > { %v2242_v11 = vmul.f32 %v2638_v5, %v3782_v6  ;;  %v2243_v44 = vmul.f32 %v3957_v45, %v3782_v6  ;;  %v2244_v38 = vmul.f32 %v2639_v18, %v3782_v6  ;;  %v2245_v42 = vmul.f32 %v3964_v40, %v3782_v6 }
 0x142   : > { %v2246_v3 = vmul.f32 %v4379_v60, %v3782_v6  ;;  %v2247_v31 = vmul.f32 %v2641_v57, %v3782_v6  ;;  %v2248_v24 = vmul.f32 %v2640_v10, %v3782_v6  ;;  %v2249_v56 = vmul.f32 %v4385_v48, %v3782_v6 }
 0x143   : > { %v2250_v12 = vmul.f32 %v3782_v6, %v4383_v43  ;;  %v2251_v15 = vmul.f32 %v3782_v6, %v4386_v55  ;;  %v2252_v22 = vmul.f32 %v3782_v6, %v4384_v62  ;;  %v2253_v60 = vmul.f32 %v3782_v6, %v4387_v54 }
 0x144   : > { %v2254_v5 = vmul.f32 %v3782_v6, %v328_v50  ;;  %v2255_v30 = vmul.f32 %v3782_v6, %v4011_v0  ;;  %v2256_v18 = vmul.f32 %v3782_v6, %v331_v29  ;;  %v2257_v46 = vmul.f32 %v3782_v6, %v4014_v58 }
 0x145   : > { %v2274_v9 = vrot.slane %v2242_v11, 1  ;;  %v2275_v10 = vrot.slane %v2243_v44, 1  ;;  %v2277_v47 = vrot.slane %v2244_v38, 1  ;;  %v2278_v43 = vrot.slane %v2245_v42, 1 }
 0x146   : > { %v2280_v37 = vrot.slane %v2246_v3, 1  ;;  %v2281_v39 = vrot.slane %v2247_v31, 1  ;;  %v2283_v62 = vrot.slane %v2248_v24, 1  ;;  %v2284_v1 = vrot.slane %v2249_v56, 1 }
 0x147   : > { %v2276_v27 = vsel %vm409_vm0, %v2274_v9, %v2275_v10  ;;  %v2279_v50 = vsel %vm409_vm0, %v2277_v47, %v2278_v43  ;;  %v2286_v59 = vrot.slane %v2250_v12, 1  ;;  %v2287_v28 = vrot.slane %v2251_v15, 1 }
 0x148   : > { %v2282_v41 = vsel %vm409_vm0, %v2280_v37, %v2281_v39  ;;  %v2285_v29 = vsel %vm409_vm0, %v2283_v62, %v2284_v1  ;;  %v2289_v13 = vrot.slane %v2252_v22, 1  ;;  %v2290_v6 = vrot.slane %v2253_v60, 1  ;;  %v327_v60 = vld [vmem:[%s2744_s30 + $0x178] sm:$0x3] }
 0x149   : > { %v2288_v33 = vsel %vm409_vm0, %v2286_v59, %v2287_v28  ;;  %v2292_v34 = vrot.slane %v2254_v5, 1  ;;  %v2293_v49 = vrot.slane %v2255_v30, 1  ;;  %v2295_v26 = vrot.slane %v2256_v18, 1  ;;  %v333_v30 = vld [vmem:[%s2744_s30 + $0x1a8] sm:$0x3]  ;;  %v2642_v18 = vld [vmem:[%s2744_s30 + $0x158] sm:$0xff] }
 0x14a   : > { %v2291_v11 = vsel %vm409_vm0, %v2289_v13, %v2290_v6  ;;  %v2296_v44 = vrot.slane %v2257_v46, 1  ;;  %v4049_v38 = vadd.f32 %v2276_v27, %v2222_v14  ;;  %v4051_v42 = vadd.f32 %v2275_v10, %v2223_v20  ;;  %v321_v20 = vld [vmem:[%s2744_s30 + $0x148] sm:$0x3]  ;;  %v2643_v46 = vld [vmem:[%s2744_s30 + $0x170] sm:$0xff] }
 0x14b   : > { %v2294_v3 = vsel %vm409_vm0, %v2292_v34, %v2293_v49  ;;  %v4054_v31 = vadd.f32 %v2279_v50, %v2224_v63  ;;  %v4056_v24 = vadd.f32 %v2278_v43, %v2225_v52  ;;  %v4058_v56 = vadd.f32 %v2282_v41, %v2226_v21  ;;  %v324_v21 = vld [vmem:[%s2744_s30 + $0x160] sm:$0x3] }
 0x14c   : > { %v2297_v12 = vsel %vm409_vm0, %v2295_v26, %v2296_v44  ;;  %v4061_v55 = vadd.f32 %v2281_v39, %v2227_v8  ;;  %v4063_v15 = vadd.f32 %v2285_v29, %v2228_v32  ;;  %v4065_v14 = vadd.f32 %v2284_v1, %v2229_v2 }
 0x14d   : > { %v4068_v22 = vadd.f32 %v2288_v33, %v2230_v61  ;;  %v4070_v54 = vadd.f32 %v2287_v28, %v2231_v35  ;;  %v4072_v63 = vadd.f32 %v2291_v11, %v2232_v17  ;;  %v4074_v52 = vadd.f32 %v2290_v6, %v2233_v23  ;;  %v330_v61 = vld [vmem:[%s2744_s30 + $0x190] sm:$0x3] }
 0x14e   : > { %v4078_v5 = vadd.f32 %v2294_v3, %v2234_v25  ;;  %v4080_v8 = vadd.f32 %v2293_v49, %v2235_v36  ;;  %v4082_v32 = vadd.f32 %v2297_v12, %v2236_v19  ;;  %v4084_v2 = vadd.f32 %v2296_v44, %v2237_v4 }
 0x14f   : > { %v2334_v35 = vmul.f32 %v3957_v45, %v3785_v16  ;;  %v2335_v17 = vmul.f32 %v3785_v16, %v3928_v7  ;;  %v2336_v23 = vmul.f32 %v3964_v40, %v3785_v16  ;;  %v2337_v25 = vmul.f32 %v3785_v16, %v3935_v53 }
 0x150   : > { %v2338_v36 = vmul.f32 %v2641_v57, %v3785_v16  ;;  %v2339_v19 = vmul.f32 %v3785_v16, %v3938_v51  ;;  %v2340_v4 = vmul.f32 %v4385_v48, %v3785_v16  ;;  %v2341_v45 = vmul.f32 %v3785_v16, %v321_v20 }
 0x151   : > { %v2342_v7 = vmul.f32 %v2642_v18, %v3785_v16  ;;  %v2343_v40 = vmul.f32 %v3785_v16, %v324_v21  ;;  %v2344_v53 = vmul.f32 %v2643_v46, %v3785_v16  ;;  %v2345_v9 = vmul.f32 %v3785_v16, %v327_v60 }
 0x152   : > { %v2346_v57 = vmul.f32 %v3785_v16, %v4011_v0  ;;  %v2347_v51 = vmul.f32 %v3785_v16, %v330_v61  ;;  %v2348_v48 = vmul.f32 %v3785_v16, %v4014_v58  ;;  %v2349_v10 = vmul.f32 %v3785_v16, %v333_v30 }
 0x153   : > { %v2366_v47 = vrot.slane %v2334_v35, 6  ;;  %v2367_v43 = vrot.slane %v2335_v17, 6  ;;  %v2369_v37 = vrot.slane %v2336_v23, 6  ;;  %v2370_v39 = vrot.slane %v2337_v25, 6 }
 0x154   : > { %v2372_v62 = vrot.slane %v2338_v36, 6  ;;  %v2373_v1 = vrot.slane %v2339_v19, 6  ;;  %v2375_v27 = vrot.slane %v2340_v4, 6  ;;  %v2376_v50 = vrot.slane %v2341_v45, 6 }
 0x155   : > { %v2368_v59 = vsel %vm1038_vm2, %v2366_v47, %v2367_v43  ;;  %v2371_v0 = vsel %vm1038_vm2, %v2369_v37, %v2370_v39  ;;  %v2378_v28 = vrot.slane %v2342_v7, 6  ;;  %v2379_v41 = vrot.slane %v2343_v40, 6 }
 0x156   : > { %v2374_v29 = vsel %vm1038_vm2, %v2372_v62, %v2373_v1  ;;  %v2377_v58 = vsel %vm1038_vm2, %v2375_v27, %v2376_v50  ;;  %v2381_v16 = vrot.slane %v2344_v53, 6  ;;  %v2382_v13 = vrot.slane %v2345_v9, 6 }
 0x157   : > { %v2380_v6 = vsel %vm1038_vm2, %v2378_v28, %v2379_v41  ;;  %v2384_v33 = vrot.slane %v2346_v57, 6  ;;  %v2385_v34 = vrot.slane %v2347_v51, 6  ;;  %v2387_v49 = vrot.slane %v2348_v48, 6 }
 0x158   : > { %v2383_v26 = vsel %vm1038_vm2, %v2381_v16, %v2382_v13  ;;  %v2388_v11 = vrot.slane %v2349_v10, 6  ;;  %v2406_v44 = vadd.f32 %v2366_v47, %v4049_v38  ;;  %v2407_v3 = vadd.f32 %v2368_v59, %v4051_v42 }
 0x159   : > { %v2386_v12 = vsel %vm1038_vm2, %v2384_v33, %v2385_v34  ;;  %v2408_v20 = vadd.f32 %v2369_v37, %v4054_v31  ;;  %v2409_v21 = vadd.f32 %v2371_v0, %v4056_v24  ;;  %v2410_v60 = vadd.f32 %v2372_v62, %v4058_v56 }
 0x15a   : > { %v2389_v61 = vsel %vm1038_vm2, %v2387_v49, %v2388_v11  ;;  %v2411_v30 = vadd.f32 %v2374_v29, %v4061_v55  ;;  %v2412_v38 = vadd.f32 %v2375_v27, %v4063_v15  ;;  %v2413_v35 = vadd.f32 %v2377_v58, %v4065_v14  ;;  %2423 = vst.msk [vmem:[%s4122_s15 - $0x4] sm:$0xf0] %vm2422_vm3, %v2406_v44 }
 0x15b   : > { %v2414_v42 = vadd.f32 %v2378_v28, %v4068_v22  ;;  %v2415_v31 = vadd.f32 %v2380_v6, %v4070_v54  ;;  %v2416_v24 = vadd.f32 %v2381_v16, %v4072_v63  ;;  %v2417_v56 = vadd.f32 %v2383_v26, %v4074_v52  ;;  %2426 = vst.msk [vmem:[%s4122_s15 + $0x4] sm:$0xf0] %vm2422_vm3, %v2408_v20 }
 0x15c   : > { %2428 = vst.msk [vmem:[%s4122_s15 + $0xc] sm:$0xf0] %vm2422_vm3, %v2410_v60  ;;  %v2418_v55 = vadd.f32 %v2384_v33, %v4078_v5  ;;  %v2419_v15 = vadd.f32 %v2386_v12, %v4080_v8  ;;  %v2420_v14 = vadd.f32 %v2387_v49, %v4082_v32  ;;  %v2421_v22 = vadd.f32 %v2389_v61, %v4084_v2 }
 0x15d   : > { %2430 = vst.msk [vmem:[%s4122_s15 + $0x14] sm:$0xf0] %vm2422_vm3, %v2412_v38  ;;  %2432 = vst.msk [vmem:[%s4122_s15 + $0x1c] sm:$0xf0] %vm2422_vm3, %v2414_v42 }
 0x15e   : > { %2434 = vst.msk [vmem:[%s4122_s15 + $0x24] sm:$0xf0] %vm2422_vm3, %v2416_v24  ;;  %2436 = vst.msk [vmem:[%s4122_s15 + $0x2c] sm:$0xf0] %vm2422_vm3, %v2418_v55 }
 0x15f   : > { %2438 = vst.msk [vmem:[%s4122_s15 + $0x34] sm:$0xf0] %vm2422_vm3, %v2420_v14 }
 0x160   : > { %2425 = vst.msk [vmem:[%s4122_s15 + $0x4] sm:$0xf] %vm2424_vm4, %v2407_v3  ;;  %2427 = vst.msk [vmem:[%s4122_s15 + $0xc] sm:$0xf] %vm2424_vm4, %v2409_v21 }
 0x161   : > { %2429 = vst.msk [vmem:[%s4122_s15 + $0x14] sm:$0xf] %vm2424_vm4, %v2411_v30  ;;  %2431 = vst.msk [vmem:[%s4122_s15 + $0x1c] sm:$0xf] %vm2424_vm4, %v2413_v35 }
 0x162   : > { %2433 = vst.msk [vmem:[%s4122_s15 + $0x24] sm:$0xf] %vm2424_vm4, %v2415_v31  ;;  %2435 = vst.msk [vmem:[%s4122_s15 + $0x2c] sm:$0xf] %vm2424_vm4, %v2417_v56 }
 0x163   : > { %2437 = vst.msk [vmem:[%s4122_s15 + $0x34] sm:$0xf] %vm2424_vm4, %v2419_v15  ;;  %2439 = vst.msk [vmem:[%s4122_s15 + $0x3c] sm:$0xf] %vm2424_vm4, %v2421_v22 }
 0x164 PF: > { %s14_s17 = sadd.s32 1, %s2666_s17   ;;  %s4388_s15 = smov %s2662_s16 }
 0x165   : > { %p11_p5 = scmp.ge.s32.totalorder %s14_s17, 4   ;;  %s4389_s16 = smov %s4391_s18 }
 0x167   :  { %13 = sbr.rel (!%p11_p5) target bundleno = 2 (0x2), region = 75 }

</bundles_post_ra>
